<compile_context>
chip_gen: v7x
topology: tpu7x:2x2x1
jax: 0.10.0
libtpu: 0.0.40
codegen_flags: <defaults>
</compile_context>

<pallas_src>
import jax
import jax.numpy as jnp
from jax.experimental import pallas as pl
from jax.experimental.pallas import tpu as pltpu

INPUT_SIZE = 26
DP = 32                  # input feature dim padded for bf16-friendly contraction
HIDDEN_SIZE = 64
HP = 128                 # hidden size padded to a full 128-lane slab
NUM_LAYERS = 2
SEQ_LEN = 10
FC_HIDDEN = 64
FCP = 128                # FC hidden padded to 128 lanes
NUM_CLASSES = 2
OUT_PAD = 128            # logits padded to 128 lanes (lane-dense store)


# ----------------------------- Pallas kernel --------------------------------


def fused_forward_kernel(x_ref, wih1_ref, whh1_ref, b1_ref,
                         w2s_ref, b2_ref,
                         w1_ref, fb1_ref, w2_ref, fb2_ref,
                         out_ref):
    """Fused 2-layer LSTM (wavefront) + FC head.

    x_ref    : [T*Bp, DP]      time-major, batch-padded, feature-padded input (f32)
    wih1_ref : [DP, 4*HP]      layer-1 input weight, gate order (i,f,o,g)  (bf16)
    whh1_ref : [HP, 4*HP]      layer-1 recurrent weight                    (bf16)
    b1_ref   : [1, 4*HP]       layer-1 combined bias b_ih + b_hh           (f32)
    w2s_ref  : [2*HP, 4*HP]    layer-2 stacked [wih2; whh2]                (bf16)
    b2_ref   : [1, 4*HP]       layer-2 combined bias                       (f32)
    w1_ref   : [T, HP, FCP]    FC1 weight split per timestep, padded       (bf16)
    fb1_ref  : [1, FCP]        FC1 bias, padded                            (f32)
    w2_ref   : [FCP, OUT_PAD]  FC2 weight, padded                          (bf16)
    fb2_ref  : [1, OUT_PAD]    FC2 bias, padded                            (f32)
    out_ref  : [Bp, OUT_PAD]   padded logits                               (f32)
    """
    Bp = out_ref.shape[0]
    T = w1_ref.shape[0]

    # ---- Layer-1 input projection batched over all T timesteps (one MXU pass).
    xw1 = jnp.dot(x_ref[...].astype(jnp.bfloat16), wih1_ref[...],
                  preferred_element_type=jnp.float32) + b1_ref[...]   # [T*Bp, 4*HP]

    # Loop-invariant weights / biases hoisted out of the unrolled loop.
    whh1 = whh1_ref[...]
    w2s = w2s_ref[...]
    b2 = jnp.broadcast_to(b2_ref[...], (Bp, 4 * HP))

    def cell(gates, c):
        # Gate layout (i | f | o | g), each HP lanes wide: one wide sigmoid
        # over the first 3*HP lanes, one tanh over the last HP lanes.
        sig = jax.nn.sigmoid(gates[:, :3 * HP])
        i_g = sig[:, 0 * HP:1 * HP]
        f_g = sig[:, 1 * HP:2 * HP]
        o_g = sig[:, 2 * HP:3 * HP]
        g_g = jnp.tanh(gates[:, 3 * HP:4 * HP])
        c_new = f_g * c + i_g * g_g
        h_new = o_g * jnp.tanh(c_new)
        return h_new, c_new

    h1 = jnp.zeros((Bp, HP), jnp.float32)
    c1 = jnp.zeros((Bp, HP), jnp.float32)
    h2 = jnp.zeros((Bp, HP), jnp.float32)
    c2 = jnp.zeros((Bp, HP), jnp.float32)
    fc1 = jnp.zeros((Bp, FCP), jnp.float32)

    # Wavefront: layer-2 step t only needs h1_t and h2_{t-1}, so the scheduler
    # can overlap it with layer-1 step t+1.  Padded lanes [H:HP] of h/c stay
    # exactly zero (zero weight/bias pad columns, c starts at zero).
    for t in range(T):  # static unroll (T=10)
        # Layer-1 step t: only the recurrent matmul remains on the serial path.
        g1 = xw1[t * Bp:(t + 1) * Bp, :] + jnp.dot(
            h1.astype(jnp.bfloat16), whh1, preferred_element_type=jnp.float32)
        h1, c1 = cell(g1, c1)

        # Layer-2 step t: fused input+recurrent projection (single K=256 matmul).
        lhs2 = jnp.concatenate([h1, h2], axis=-1).astype(jnp.bfloat16)
        g2 = jnp.dot(lhs2, w2s, preferred_element_type=jnp.float32) + b2
        h2, c2 = cell(g2, c2)

        # lstm_out.reshape(B, T*H) @ W1 accumulated per step (no [B,T*H] slab).
        fc1 = fc1 + jnp.dot(h2.astype(jnp.bfloat16), w1_ref[t],
                            preferred_element_type=jnp.float32)

    # ---- FC head: ReLU -> Linear(64 -> 2), lane-padded. Dropout is identity.
    z = jnp.maximum(fc1 + fb1_ref[...], 0.0)
    out_ref[...] = jnp.dot(z.astype(jnp.bfloat16), w2_ref[...],
                           preferred_element_type=jnp.float32) + fb2_ref[...]


# ------------------------- parameter preparation -----------------------------


def _reorder_pad_gates(w):
    """PyTorch gate order (i,f,g,o) -> (i,f,o,g); zero-pad each H gate block to HP."""
    lead = w.shape[:-1]
    w4 = w.reshape(*lead, 4, HIDDEN_SIZE)
    w4 = jnp.take(w4, jnp.array([0, 1, 3, 2]), axis=-2)          # i, f, o, g
    w4 = jnp.pad(w4, [(0, 0)] * len(lead) + [(0, 0), (0, HP - HIDDEN_SIZE)])
    return w4.reshape(*lead, 4 * HP)


def prepare_params(params):
    """One-time repack of PyTorch-layout params into lane-aligned padded bf16 form.

    NOTE: expects weights already in transposed [in, 4H] / [T*H, FC] / [FC, C]
    form (as produced by init_params). A raw PyTorch checkpoint must be
    transposed before calling this.
    """
    (wih1_t, whh1_t, bias1), (wih2_t, whh2_t, bias2) = params["lstm"]

    wih1_p = _reorder_pad_gates(wih1_t)                              # [D, 4*HP]
    wih1_p = jnp.pad(wih1_p, ((0, DP - INPUT_SIZE), (0, 0))).astype(jnp.bfloat16)
    whh1_p = jnp.pad(_reorder_pad_gates(whh1_t),
                     ((0, HP - HIDDEN_SIZE), (0, 0))).astype(jnp.bfloat16)
    b1_p = _reorder_pad_gates(bias1).reshape(1, 4 * HP)

    wih2_p = jnp.pad(_reorder_pad_gates(wih2_t),
                     ((0, HP - HIDDEN_SIZE), (0, 0)))                # [HP, 4*HP]
    whh2_p = jnp.pad(_reorder_pad_gates(whh2_t),
                     ((0, HP - HIDDEN_SIZE), (0, 0)))                # [HP, 4*HP]
    w2s = jnp.concatenate([wih2_p, whh2_p], axis=0).astype(jnp.bfloat16)  # [2*HP,4*HP]
    b2_p = _reorder_pad_gates(bias2).reshape(1, 4 * HP)

    w1, b1, w2, b2 = params["fc"]
    w1_p = w1.reshape(SEQ_LEN, HIDDEN_SIZE, FC_HIDDEN)
    w1_p = jnp.pad(w1_p, ((0, 0), (0, HP - HIDDEN_SIZE),
                          (0, FCP - FC_HIDDEN))).astype(jnp.bfloat16)     # [T,HP,FCP]
    fb1_p = jnp.pad(b1, (0, FCP - FC_HIDDEN)).reshape(1, FCP)
    w2_p = jnp.pad(w2, ((0, FCP - FC_HIDDEN),
                        (0, OUT_PAD - NUM_CLASSES))).astype(jnp.bfloat16)  # [FCP,128]
    fb2_p = jnp.pad(b2, (0, OUT_PAD - NUM_CLASSES)).reshape(1, OUT_PAD)

    return {"lstm": (wih1_p, whh1_p, b1_p, w2s, b2_p),
            "fc": (w1_p, fb1_p, w2_p, fb2_p)}


# ------------------------------ wrapper --------------------------------------


@jax.jit
def deepfake_detector_forward(x, prep):
    """x: [B, T, D] float32  ->  logits [B, 2]."""
    B, T, D = x.shape
    Bp = ((B + 7) // 8) * 8                       # sublane-aligned batch
    x_tm = jnp.transpose(x, (1, 0, 2))            # [T, B, D] (tiny)
    x_tm = jnp.pad(x_tm, ((0, 0), (0, Bp - B), (0, DP - D)))
    x_flat = x_tm.reshape(T * Bp, DP)

    wih1, whh1, b1, w2s, b2 = prep["lstm"]
    w1, fb1, w2, fb2 = prep["fc"]

    vmem = pl.BlockSpec(memory_space=pltpu.MemorySpace.VMEM)
    out = pl.pallas_call(
        fused_forward_kernel,
        out_shape=jax.ShapeDtypeStruct((Bp, OUT_PAD), jnp.float32),
        in_specs=[vmem] * 10,
        out_specs=vmem,
    )(x_flat, wih1, whh1, b1, w2s, b2, w1, fb1, w2, fb2)
    return out[:B, :NUM_CLASSES]


# --------------------------- parameter init ----------------------------------


def init_params(key):
    k = 1.0 / jnp.sqrt(jnp.float32(HIDDEN_SIZE))
    params = {"lstm": [], "fc": None}
    for l in range(NUM_LAYERS):
        d_in = INPUT_SIZE if l == 0 else HIDDEN_SIZE
        key, k1, k2, k3, k4 = jax.random.split(key, 5)
        # PyTorch stores weight_ih: [4H, D]; we keep the transposed [D, 4H] form.
        wih_t = jax.random.uniform(k1, (d_in, 4 * HIDDEN_SIZE), jnp.float32, -k, k)
        whh_t = jax.random.uniform(k2, (HIDDEN_SIZE, 4 * HIDDEN_SIZE), jnp.float32, -k, k)
        b_ih = jax.random.uniform(k3, (4 * HIDDEN_SIZE,), jnp.float32, -k, k)
        b_hh = jax.random.uniform(k4, (4 * HIDDEN_SIZE,), jnp.float32, -k, k)
        params["lstm"].append((wih_t, whh_t, b_ih + b_hh))
    key, k1, k2, k3, k4 = jax.random.split(key, 5)
    fan1 = HIDDEN_SIZE * SEQ_LEN
    kf1 = 1.0 / jnp.sqrt(jnp.float32(fan1))
    kf2 = 1.0 / jnp.sqrt(jnp.float32(FC_HIDDEN))
    w1 = jax.random.uniform(k1, (fan1, FC_HIDDEN), jnp.float32, -kf1, kf1)
    b1 = jax.random.uniform(k2, (FC_HIDDEN,), jnp.float32, -kf1, kf1)
    w2 = jax.random.uniform(k3, (FC_HIDDEN, NUM_CLASSES), jnp.float32, -kf2, kf2)
    b2 = jax.random.uniform(k4, (NUM_CLASSES,), jnp.float32, -kf2, kf2)
    params["fc"] = (w1, b1, w2, b2)
    return params


# ----------------------------- pure-JAX reference ----------------------------


def reference_forward(x, params):
    B, T, _ = x.shape
    H = HIDDEN_SIZE
    h_in = x
    for l in range(NUM_LAYERS):
        wih_t, whh_t, bias = params["lstm"][l]
        h = jnp.zeros((B, H), jnp.float32)
        c = jnp.zeros((B, H), jnp.float32)
        outs = []
        for t in range(T):
            g = h_in[:, t, :] @ wih_t + h @ whh_t + bias
            i_g = jax.nn.sigmoid(g[:, :H])
            f_g = jax.nn.sigmoid(g[:, H:2 * H])
            g_g = jnp.tanh(g[:, 2 * H:3 * H])
            o_g = jax.nn.sigmoid(g[:, 3 * H:])
            c = f_g * c + i_g * g_g
            h = o_g * jnp.tanh(c)
            outs.append(h)
        h_in = jnp.stack(outs, axis=1)
    flat = h_in.reshape(B, -1)
    w1, b1, w2, b2 = params["fc"]
    z = jnp.maximum(flat @ w1 + b1, 0.0)
    return z @ w2 + b2


# --------------------------------- main --------------------------------------

if __name__ == "__main__":
    key = jax.random.PRNGKey(0)
    key, pkey, xkey = jax.random.split(key, 3)
    params = init_params(pkey)
    prep = prepare_params(params)

    batch = 4
    x = jax.random.normal(xkey, (batch, SEQ_LEN, INPUT_SIZE), jnp.float32)

    out = deepfake_detector_forward(x, prep)
    out = jax.block_until_ready(out)

    ref = reference_forward(x, params)
    assert out.shape == (batch, NUM_CLASSES)
    max_diff = jnp.max(jnp.abs(out - ref))
    # bf16 MXU operands with f32 accumulation; tanh-bounded 10-step recurrence.
    assert jnp.allclose(out, ref, atol=2e-2, rtol=2e-2), (
        f"max abs diff {max_diff}"
    )
    print("KERNEL_OK")
</pallas_src>

<mosaic_0001>
module attributes {stable_mosaic.version = 11 : i64} {
  func.func @fused_forward_kernel(%arg0: memref<80x32xf32, #tpu.memory_space<vmem>>, %arg1: memref<32x512xbf16, #tpu.memory_space<vmem>>, %arg2: memref<128x512xbf16, #tpu.memory_space<vmem>>, %arg3: memref<1x512xf32, #tpu.memory_space<vmem>>, %arg4: memref<256x512xbf16, #tpu.memory_space<vmem>>, %arg5: memref<1x512xf32, #tpu.memory_space<vmem>>, %arg6: memref<10x128x128xbf16, #tpu.memory_space<vmem>>, %arg7: memref<1x128xf32, #tpu.memory_space<vmem>>, %arg8: memref<128x128xbf16, #tpu.memory_space<vmem>>, %arg9: memref<1x128xf32, #tpu.memory_space<vmem>>, %arg10: memref<8x128xf32, #tpu.memory_space<vmem>>) attributes {dimension_semantics = [], scalar_prefetch = 0 : i64, scratch_operands = 0 : i64, tpu.core_type = #tpu.core_type<tc>} {
    %c0 = arith.constant 0 : index
    %c0_0 = arith.constant 0 : index
    %0 = vector.load %arg0[%c0, %c0_0] : memref<80x32xf32, #tpu.memory_space<vmem>>, vector<80x32xf32>
    %1 = arith.truncf %0 : vector<80x32xf32> to vector<80x32xbf16>
    %c0_1 = arith.constant 0 : index
    %c0_2 = arith.constant 0 : index
    %2 = vector.load %arg1[%c0_1, %c0_2] : memref<32x512xbf16, #tpu.memory_space<vmem>>, vector<32x512xbf16>
    %cst = arith.constant dense<0.000000e+00> : vector<80x512xf32>
    %3 = tpu.matmul %1, %2, %cst {dimension_numbers = #tpu.dot_dimension_numbers<[1], [0], [0], [1], [0, 0, 1, 1], [], []>} : vector<80x32xbf16>, vector<32x512xbf16>, vector<80x512xf32> -> vector<80x512xf32>
    %c0_3 = arith.constant 0 : index
    %c0_4 = arith.constant 0 : index
    %4 = vector.load %arg3[%c0_3, %c0_4] : memref<1x512xf32, #tpu.memory_space<vmem>>, vector<1x512xf32>
    %5 = vector.broadcast %4 : vector<1x512xf32> to vector<80x512xf32>
    %6 = arith.addf %3, %5 : vector<80x512xf32>
    %c0_5 = arith.constant 0 : index
    %c0_6 = arith.constant 0 : index
    %7 = vector.load %arg2[%c0_5, %c0_6] : memref<128x512xbf16, #tpu.memory_space<vmem>>, vector<128x512xbf16>
    %c0_7 = arith.constant 0 : index
    %c0_8 = arith.constant 0 : index
    %8 = vector.load %arg4[%c0_7, %c0_8] : memref<256x512xbf16, #tpu.memory_space<vmem>>, vector<256x512xbf16>
    %c0_9 = arith.constant 0 : index
    %c0_10 = arith.constant 0 : index
    %9 = vector.load %arg5[%c0_9, %c0_10] : memref<1x512xf32, #tpu.memory_space<vmem>>, vector<1x512xf32>
    %10 = vector.shape_cast %9 : vector<1x512xf32> to vector<1x512xf32>
    %11 = vector.broadcast %10 : vector<1x512xf32> to vector<8x512xf32>
    %cst_11 = arith.constant 0.000000e+00 : f32
    %12 = vector.broadcast %cst_11 : f32 to vector<8x128xf32>
    %cst_12 = arith.constant 0.000000e+00 : f32
    %13 = vector.broadcast %cst_12 : f32 to vector<8x128xf32>
    %cst_13 = arith.constant 0.000000e+00 : f32
    %14 = vector.broadcast %cst_13 : f32 to vector<8x128xf32>
    %cst_14 = arith.constant 0.000000e+00 : f32
    %15 = vector.broadcast %cst_14 : f32 to vector<8x128xf32>
    %cst_15 = arith.constant 0.000000e+00 : f32
    %16 = vector.broadcast %cst_15 : f32 to vector<8x128xf32>
    %17 = vector.extract_strided_slice %6 {offsets = [0, 0], sizes = [8, 512], strides = [1, 1]} : vector<80x512xf32> to vector<8x512xf32>
    %18 = arith.truncf %12 : vector<8x128xf32> to vector<8x128xbf16>
    %cst_16 = arith.constant dense<0.000000e+00> : vector<8x512xf32>
    %19 = tpu.matmul %18, %7, %cst_16 {dimension_numbers = #tpu.dot_dimension_numbers<[1], [0], [0], [1], [0, 0, 1, 1], [], []>} : vector<8x128xbf16>, vector<128x512xbf16>, vector<8x512xf32> -> vector<8x512xf32>
    %20 = arith.addf %17, %19 : vector<8x512xf32>
    %21 = vector.extract_strided_slice %20 {offsets = [0, 0], sizes = [8, 384], strides = [1, 1]} : vector<8x512xf32> to vector<8x384xf32>
    %22 = arith.negf %21 : vector<8x384xf32>
    %23 = math.exp %22 : vector<8x384xf32>
    %cst_17 = arith.constant 1.000000e+00 : f32
    %24 = vector.broadcast %cst_17 : f32 to vector<8x384xf32>
    %25 = arith.addf %24, %23 : vector<8x384xf32>
    %26 = arith.divf %24, %25 : vector<8x384xf32>
    %27 = vector.extract_strided_slice %26 {offsets = [0, 0], sizes = [8, 128], strides = [1, 1]} : vector<8x384xf32> to vector<8x128xf32>
    %28 = vector.extract_strided_slice %26 {offsets = [0, 128], sizes = [8, 128], strides = [1, 1]} : vector<8x384xf32> to vector<8x128xf32>
    %29 = vector.extract_strided_slice %26 {offsets = [0, 256], sizes = [8, 128], strides = [1, 1]} : vector<8x384xf32> to vector<8x128xf32>
    %30 = vector.extract_strided_slice %20 {offsets = [0, 384], sizes = [8, 128], strides = [1, 1]} : vector<8x512xf32> to vector<8x128xf32>
    %31 = math.tanh %30 : vector<8x128xf32>
    %32 = arith.mulf %28, %13 : vector<8x128xf32>
    %33 = arith.mulf %27, %31 : vector<8x128xf32>
    %34 = arith.addf %32, %33 : vector<8x128xf32>
    %35 = math.tanh %34 : vector<8x128xf32>
    %36 = arith.mulf %29, %35 : vector<8x128xf32>
    %37 = tpu.concatenate %36, %14 in 1 : vector<8x128xf32>, vector<8x128xf32> -> vector<8x256xf32>
    %38 = arith.truncf %37 : vector<8x256xf32> to vector<8x256xbf16>
    %cst_18 = arith.constant dense<0.000000e+00> : vector<8x512xf32>
    %39 = tpu.matmul %38, %8, %cst_18 {dimension_numbers = #tpu.dot_dimension_numbers<[1], [0], [0], [1], [0, 0, 1, 1], [], []>} : vector<8x256xbf16>, vector<256x512xbf16>, vector<8x512xf32> -> vector<8x512xf32>
    %40 = arith.addf %39, %11 : vector<8x512xf32>
    %41 = vector.extract_strided_slice %40 {offsets = [0, 0], sizes = [8, 384], strides = [1, 1]} : vector<8x512xf32> to vector<8x384xf32>
    %42 = arith.negf %41 : vector<8x384xf32>
    %43 = math.exp %42 : vector<8x384xf32>
    %cst_19 = arith.constant 1.000000e+00 : f32
    %44 = vector.broadcast %cst_19 : f32 to vector<8x384xf32>
    %45 = arith.addf %44, %43 : vector<8x384xf32>
    %46 = arith.divf %44, %45 : vector<8x384xf32>
    %47 = vector.extract_strided_slice %46 {offsets = [0, 0], sizes = [8, 128], strides = [1, 1]} : vector<8x384xf32> to vector<8x128xf32>
    %48 = vector.extract_strided_slice %46 {offsets = [0, 128], sizes = [8, 128], strides = [1, 1]} : vector<8x384xf32> to vector<8x128xf32>
    %49 = vector.extract_strided_slice %46 {offsets = [0, 256], sizes = [8, 128], strides = [1, 1]} : vector<8x384xf32> to vector<8x128xf32>
    %50 = vector.extract_strided_slice %40 {offsets = [0, 384], sizes = [8, 128], strides = [1, 1]} : vector<8x512xf32> to vector<8x128xf32>
    %51 = math.tanh %50 : vector<8x128xf32>
    %52 = arith.mulf %48, %15 : vector<8x128xf32>
    %53 = arith.mulf %47, %51 : vector<8x128xf32>
    %54 = arith.addf %52, %53 : vector<8x128xf32>
    %55 = math.tanh %54 : vector<8x128xf32>
    %56 = arith.mulf %49, %55 : vector<8x128xf32>
    %57 = arith.truncf %56 : vector<8x128xf32> to vector<8x128xbf16>
    %c0_20 = arith.constant 0 : index
    %c0_21 = arith.constant 0 : index
    %c0_22 = arith.constant 0 : index
    %58 = vector.load %arg6[%c0_20, %c0_21, %c0_22] : memref<10x128x128xbf16, #tpu.memory_space<vmem>>, vector<1x128x128xbf16>
    %59 = vector.shape_cast %58 : vector<1x128x128xbf16> to vector<128x128xbf16>
    %cst_23 = arith.constant dense<0.000000e+00> : vector<8x128xf32>
    %60 = tpu.matmul %57, %59, %cst_23 {dimension_numbers = #tpu.dot_dimension_numbers<[1], [0], [0], [1], [0, 0, 1, 1], [], []>} : vector<8x128xbf16>, vector<128x128xbf16>, vector<8x128xf32> -> vector<8x128xf32>
    %61 = arith.addf %16, %60 : vector<8x128xf32>
    %62 = vector.extract_strided_slice %6 {offsets = [8, 0], sizes = [8, 512], strides = [1, 1]} : vector<80x512xf32> to vector<8x512xf32>
    %63 = arith.truncf %36 : vector<8x128xf32> to vector<8x128xbf16>
    %cst_24 = arith.constant dense<0.000000e+00> : vector<8x512xf32>
    %64 = tpu.matmul %63, %7, %cst_24 {dimension_numbers = #tpu.dot_dimension_numbers<[1], [0], [0], [1], [0, 0, 1, 1], [], []>} : vector<8x128xbf16>, vector<128x512xbf16>, vector<8x512xf32> -> vector<8x512xf32>
    %65 = arith.addf %62, %64 : vector<8x512xf32>
    %66 = vector.extract_strided_slice %65 {offsets = [0, 0], sizes = [8, 384], strides = [1, 1]} : vector<8x512xf32> to vector<8x384xf32>
    %67 = arith.negf %66 : vector<8x384xf32>
    %68 = math.exp %67 : vector<8x384xf32>
    %cst_25 = arith.constant 1.000000e+00 : f32
    %69 = vector.broadcast %cst_25 : f32 to vector<8x384xf32>
    %70 = arith.addf %69, %68 : vector<8x384xf32>
    %71 = arith.divf %69, %70 : vector<8x384xf32>
    %72 = vector.extract_strided_slice %71 {offsets = [0, 0], sizes = [8, 128], strides = [1, 1]} : vector<8x384xf32> to vector<8x128xf32>
    %73 = vector.extract_strided_slice %71 {offsets = [0, 128], sizes = [8, 128], strides = [1, 1]} : vector<8x384xf32> to vector<8x128xf32>
    %74 = vector.extract_strided_slice %71 {offsets = [0, 256], sizes = [8, 128], strides = [1, 1]} : vector<8x384xf32> to vector<8x128xf32>
    %75 = vector.extract_strided_slice %65 {offsets = [0, 384], sizes = [8, 128], strides = [1, 1]} : vector<8x512xf32> to vector<8x128xf32>
    %76 = math.tanh %75 : vector<8x128xf32>
    %77 = arith.mulf %73, %34 : vector<8x128xf32>
    %78 = arith.mulf %72, %76 : vector<8x128xf32>
    %79 = arith.addf %77, %78 : vector<8x128xf32>
    %80 = math.tanh %79 : vector<8x128xf32>
    %81 = arith.mulf %74, %80 : vector<8x128xf32>
    %82 = tpu.concatenate %81, %56 in 1 : vector<8x128xf32>, vector<8x128xf32> -> vector<8x256xf32>
    %83 = arith.truncf %82 : vector<8x256xf32> to vector<8x256xbf16>
    %cst_26 = arith.constant dense<0.000000e+00> : vector<8x512xf32>
    %84 = tpu.matmul %83, %8, %cst_26 {dimension_numbers = #tpu.dot_dimension_numbers<[1], [0], [0], [1], [0, 0, 1, 1], [], []>} : vector<8x256xbf16>, vector<256x512xbf16>, vector<8x512xf32> -> vector<8x512xf32>
    %85 = arith.addf %84, %11 : vector<8x512xf32>
    %86 = vector.extract_strided_slice %85 {offsets = [0, 0], sizes = [8, 384], strides = [1, 1]} : vector<8x512xf32> to vector<8x384xf32>
    %87 = arith.negf %86 : vector<8x384xf32>
    %88 = math.exp %87 : vector<8x384xf32>
    %cst_27 = arith.constant 1.000000e+00 : f32
    %89 = vector.broadcast %cst_27 : f32 to vector<8x384xf32>
    %90 = arith.addf %89, %88 : vector<8x384xf32>
    %91 = arith.divf %89, %90 : vector<8x384xf32>
    %92 = vector.extract_strided_slice %91 {offsets = [0, 0], sizes = [8, 128], strides = [1, 1]} : vector<8x384xf32> to vector<8x128xf32>
    %93 = vector.extract_strided_slice %91 {offsets = [0, 128], sizes = [8, 128], strides = [1, 1]} : vector<8x384xf32> to vector<8x128xf32>
    %94 = vector.extract_strided_slice %91 {offsets = [0, 256], sizes = [8, 128], strides = [1, 1]} : vector<8x384xf32> to vector<8x128xf32>
    %95 = vector.extract_strided_slice %85 {offsets = [0, 384], sizes = [8, 128], strides = [1, 1]} : vector<8x512xf32> to vector<8x128xf32>
    %96 = math.tanh %95 : vector<8x128xf32>
    %97 = arith.mulf %93, %54 : vector<8x128xf32>
    %98 = arith.mulf %92, %96 : vector<8x128xf32>
    %99 = arith.addf %97, %98 : vector<8x128xf32>
    %100 = math.tanh %99 : vector<8x128xf32>
    %101 = arith.mulf %94, %100 : vector<8x128xf32>
    %102 = arith.truncf %101 : vector<8x128xf32> to vector<8x128xbf16>
    %c1 = arith.constant 1 : index
    %c0_28 = arith.constant 0 : index
    %c0_29 = arith.constant 0 : index
    %103 = vector.load %arg6[%c1, %c0_28, %c0_29] : memref<10x128x128xbf16, #tpu.memory_space<vmem>>, vector<1x128x128xbf16>
    %104 = vector.shape_cast %103 : vector<1x128x128xbf16> to vector<128x128xbf16>
    %cst_30 = arith.constant dense<0.000000e+00> : vector<8x128xf32>
    %105 = tpu.matmul %102, %104, %cst_30 {dimension_numbers = #tpu.dot_dimension_numbers<[1], [0], [0], [1], [0, 0, 1, 1], [], []>} : vector<8x128xbf16>, vector<128x128xbf16>, vector<8x128xf32> -> vector<8x128xf32>
    %106 = arith.addf %61, %105 : vector<8x128xf32>
    %107 = vector.extract_strided_slice %6 {offsets = [16, 0], sizes = [8, 512], strides = [1, 1]} : vector<80x512xf32> to vector<8x512xf32>
    %108 = arith.truncf %81 : vector<8x128xf32> to vector<8x128xbf16>
    %cst_31 = arith.constant dense<0.000000e+00> : vector<8x512xf32>
    %109 = tpu.matmul %108, %7, %cst_31 {dimension_numbers = #tpu.dot_dimension_numbers<[1], [0], [0], [1], [0, 0, 1, 1], [], []>} : vector<8x128xbf16>, vector<128x512xbf16>, vector<8x512xf32> -> vector<8x512xf32>
    %110 = arith.addf %107, %109 : vector<8x512xf32>
    %111 = vector.extract_strided_slice %110 {offsets = [0, 0], sizes = [8, 384], strides = [1, 1]} : vector<8x512xf32> to vector<8x384xf32>
    %112 = arith.negf %111 : vector<8x384xf32>
    %113 = math.exp %112 : vector<8x384xf32>
    %cst_32 = arith.constant 1.000000e+00 : f32
    %114 = vector.broadcast %cst_32 : f32 to vector<8x384xf32>
    %115 = arith.addf %114, %113 : vector<8x384xf32>
    %116 = arith.divf %114, %115 : vector<8x384xf32>
    %117 = vector.extract_strided_slice %116 {offsets = [0, 0], sizes = [8, 128], strides = [1, 1]} : vector<8x384xf32> to vector<8x128xf32>
    %118 = vector.extract_strided_slice %116 {offsets = [0, 128], sizes = [8, 128], strides = [1, 1]} : vector<8x384xf32> to vector<8x128xf32>
    %119 = vector.extract_strided_slice %116 {offsets = [0, 256], sizes = [8, 128], strides = [1, 1]} : vector<8x384xf32> to vector<8x128xf32>
    %120 = vector.extract_strided_slice %110 {offsets = [0, 384], sizes = [8, 128], strides = [1, 1]} : vector<8x512xf32> to vector<8x128xf32>
    %121 = math.tanh %120 : vector<8x128xf32>
    %122 = arith.mulf %118, %79 : vector<8x128xf32>
    %123 = arith.mulf %117, %121 : vector<8x128xf32>
    %124 = arith.addf %122, %123 : vector<8x128xf32>
    %125 = math.tanh %124 : vector<8x128xf32>
    %126 = arith.mulf %119, %125 : vector<8x128xf32>
    %127 = tpu.concatenate %126, %101 in 1 : vector<8x128xf32>, vector<8x128xf32> -> vector<8x256xf32>
    %128 = arith.truncf %127 : vector<8x256xf32> to vector<8x256xbf16>
    %cst_33 = arith.constant dense<0.000000e+00> : vector<8x512xf32>
    %129 = tpu.matmul %128, %8, %cst_33 {dimension_numbers = #tpu.dot_dimension_numbers<[1], [0], [0], [1], [0, 0, 1, 1], [], []>} : vector<8x256xbf16>, vector<256x512xbf16>, vector<8x512xf32> -> vector<8x512xf32>
    %130 = arith.addf %129, %11 : vector<8x512xf32>
    %131 = vector.extract_strided_slice %130 {offsets = [0, 0], sizes = [8, 384], strides = [1, 1]} : vector<8x512xf32> to vector<8x384xf32>
    %132 = arith.negf %131 : vector<8x384xf32>
    %133 = math.exp %132 : vector<8x384xf32>
    %cst_34 = arith.constant 1.000000e+00 : f32
    %134 = vector.broadcast %cst_34 : f32 to vector<8x384xf32>
    %135 = arith.addf %134, %133 : vector<8x384xf32>
    %136 = arith.divf %134, %135 : vector<8x384xf32>
    %137 = vector.extract_strided_slice %136 {offsets = [0, 0], sizes = [8, 128], strides = [1, 1]} : vector<8x384xf32> to vector<8x128xf32>
    %138 = vector.extract_strided_slice %136 {offsets = [0, 128], sizes = [8, 128], strides = [1, 1]} : vector<8x384xf32> to vector<8x128xf32>
    %139 = vector.extract_strided_slice %136 {offsets = [0, 256], sizes = [8, 128], strides = [1, 1]} : vector<8x384xf32> to vector<8x128xf32>
    %140 = vector.extract_strided_slice %130 {offsets = [0, 384], sizes = [8, 128], strides = [1, 1]} : vector<8x512xf32> to vector<8x128xf32>
    %141 = math.tanh %140 : vector<8x128xf32>
    %142 = arith.mulf %138, %99 : vector<8x128xf32>
    %143 = arith.mulf %137, %141 : vector<8x128xf32>
    %144 = arith.addf %142, %143 : vector<8x128xf32>
    %145 = math.tanh %144 : vector<8x128xf32>
    %146 = arith.mulf %139, %145 : vector<8x128xf32>
    %147 = arith.truncf %146 : vector<8x128xf32> to vector<8x128xbf16>
    %c2 = arith.constant 2 : index
    %c0_35 = arith.constant 0 : index
    %c0_36 = arith.constant 0 : index
    %148 = vector.load %arg6[%c2, %c0_35, %c0_36] : memref<10x128x128xbf16, #tpu.memory_space<vmem>>, vector<1x128x128xbf16>
    %149 = vector.shape_cast %148 : vector<1x128x128xbf16> to vector<128x128xbf16>
    %cst_37 = arith.constant dense<0.000000e+00> : vector<8x128xf32>
    %150 = tpu.matmul %147, %149, %cst_37 {dimension_numbers = #tpu.dot_dimension_numbers<[1], [0], [0], [1], [0, 0, 1, 1], [], []>} : vector<8x128xbf16>, vector<128x128xbf16>, vector<8x128xf32> -> vector<8x128xf32>
    %151 = arith.addf %106, %150 : vector<8x128xf32>
    %152 = vector.extract_strided_slice %6 {offsets = [24, 0], sizes = [8, 512], strides = [1, 1]} : vector<80x512xf32> to vector<8x512xf32>
    %153 = arith.truncf %126 : vector<8x128xf32> to vector<8x128xbf16>
    %cst_38 = arith.constant dense<0.000000e+00> : vector<8x512xf32>
    %154 = tpu.matmul %153, %7, %cst_38 {dimension_numbers = #tpu.dot_dimension_numbers<[1], [0], [0], [1], [0, 0, 1, 1], [], []>} : vector<8x128xbf16>, vector<128x512xbf16>, vector<8x512xf32> -> vector<8x512xf32>
    %155 = arith.addf %152, %154 : vector<8x512xf32>
    %156 = vector.extract_strided_slice %155 {offsets = [0, 0], sizes = [8, 384], strides = [1, 1]} : vector<8x512xf32> to vector<8x384xf32>
    %157 = arith.negf %156 : vector<8x384xf32>
    %158 = math.exp %157 : vector<8x384xf32>
    %cst_39 = arith.constant 1.000000e+00 : f32
    %159 = vector.broadcast %cst_39 : f32 to vector<8x384xf32>
    %160 = arith.addf %159, %158 : vector<8x384xf32>
    %161 = arith.divf %159, %160 : vector<8x384xf32>
    %162 = vector.extract_strided_slice %161 {offsets = [0, 0], sizes = [8, 128], strides = [1, 1]} : vector<8x384xf32> to vector<8x128xf32>
    %163 = vector.extract_strided_slice %161 {offsets = [0, 128], sizes = [8, 128], strides = [1, 1]} : vector<8x384xf32> to vector<8x128xf32>
    %164 = vector.extract_strided_slice %161 {offsets = [0, 256], sizes = [8, 128], strides = [1, 1]} : vector<8x384xf32> to vector<8x128xf32>
    %165 = vector.extract_strided_slice %155 {offsets = [0, 384], sizes = [8, 128], strides = [1, 1]} : vector<8x512xf32> to vector<8x128xf32>
    %166 = math.tanh %165 : vector<8x128xf32>
    %167 = arith.mulf %163, %124 : vector<8x128xf32>
    %168 = arith.mulf %162, %166 : vector<8x128xf32>
    %169 = arith.addf %167, %168 : vector<8x128xf32>
    %170 = math.tanh %169 : vector<8x128xf32>
    %171 = arith.mulf %164, %170 : vector<8x128xf32>
    %172 = tpu.concatenate %171, %146 in 1 : vector<8x128xf32>, vector<8x128xf32> -> vector<8x256xf32>
    %173 = arith.truncf %172 : vector<8x256xf32> to vector<8x256xbf16>
    %cst_40 = arith.constant dense<0.000000e+00> : vector<8x512xf32>
    %174 = tpu.matmul %173, %8, %cst_40 {dimension_numbers = #tpu.dot_dimension_numbers<[1], [0], [0], [1], [0, 0, 1, 1], [], []>} : vector<8x256xbf16>, vector<256x512xbf16>, vector<8x512xf32> -> vector<8x512xf32>
    %175 = arith.addf %174, %11 : vector<8x512xf32>
    %176 = vector.extract_strided_slice %175 {offsets = [0, 0], sizes = [8, 384], strides = [1, 1]} : vector<8x512xf32> to vector<8x384xf32>
    %177 = arith.negf %176 : vector<8x384xf32>
    %178 = math.exp %177 : vector<8x384xf32>
    %cst_41 = arith.constant 1.000000e+00 : f32
    %179 = vector.broadcast %cst_41 : f32 to vector<8x384xf32>
    %180 = arith.addf %179, %178 : vector<8x384xf32>
    %181 = arith.divf %179, %180 : vector<8x384xf32>
    %182 = vector.extract_strided_slice %181 {offsets = [0, 0], sizes = [8, 128], strides = [1, 1]} : vector<8x384xf32> to vector<8x128xf32>
    %183 = vector.extract_strided_slice %181 {offsets = [0, 128], sizes = [8, 128], strides = [1, 1]} : vector<8x384xf32> to vector<8x128xf32>
    %184 = vector.extract_strided_slice %181 {offsets = [0, 256], sizes = [8, 128], strides = [1, 1]} : vector<8x384xf32> to vector<8x128xf32>
    %185 = vector.extract_strided_slice %175 {offsets = [0, 384], sizes = [8, 128], strides = [1, 1]} : vector<8x512xf32> to vector<8x128xf32>
    %186 = math.tanh %185 : vector<8x128xf32>
    %187 = arith.mulf %183, %144 : vector<8x128xf32>
    %188 = arith.mulf %182, %186 : vector<8x128xf32>
    %189 = arith.addf %187, %188 : vector<8x128xf32>
    %190 = math.tanh %189 : vector<8x128xf32>
    %191 = arith.mulf %184, %190 : vector<8x128xf32>
    %192 = arith.truncf %191 : vector<8x128xf32> to vector<8x128xbf16>
    %c3 = arith.constant 3 : index
    %c0_42 = arith.constant 0 : index
    %c0_43 = arith.constant 0 : index
    %193 = vector.load %arg6[%c3, %c0_42, %c0_43] : memref<10x128x128xbf16, #tpu.memory_space<vmem>>, vector<1x128x128xbf16>
    %194 = vector.shape_cast %193 : vector<1x128x128xbf16> to vector<128x128xbf16>
    %cst_44 = arith.constant dense<0.000000e+00> : vector<8x128xf32>
    %195 = tpu.matmul %192, %194, %cst_44 {dimension_numbers = #tpu.dot_dimension_numbers<[1], [0], [0], [1], [0, 0, 1, 1], [], []>} : vector<8x128xbf16>, vector<128x128xbf16>, vector<8x128xf32> -> vector<8x128xf32>
    %196 = arith.addf %151, %195 : vector<8x128xf32>
    %197 = vector.extract_strided_slice %6 {offsets = [32, 0], sizes = [8, 512], strides = [1, 1]} : vector<80x512xf32> to vector<8x512xf32>
    %198 = arith.truncf %171 : vector<8x128xf32> to vector<8x128xbf16>
    %cst_45 = arith.constant dense<0.000000e+00> : vector<8x512xf32>
    %199 = tpu.matmul %198, %7, %cst_45 {dimension_numbers = #tpu.dot_dimension_numbers<[1], [0], [0], [1], [0, 0, 1, 1], [], []>} : vector<8x128xbf16>, vector<128x512xbf16>, vector<8x512xf32> -> vector<8x512xf32>
    %200 = arith.addf %197, %199 : vector<8x512xf32>
    %201 = vector.extract_strided_slice %200 {offsets = [0, 0], sizes = [8, 384], strides = [1, 1]} : vector<8x512xf32> to vector<8x384xf32>
    %202 = arith.negf %201 : vector<8x384xf32>
    %203 = math.exp %202 : vector<8x384xf32>
    %cst_46 = arith.constant 1.000000e+00 : f32
    %204 = vector.broadcast %cst_46 : f32 to vector<8x384xf32>
    %205 = arith.addf %204, %203 : vector<8x384xf32>
    %206 = arith.divf %204, %205 : vector<8x384xf32>
    %207 = vector.extract_strided_slice %206 {offsets = [0, 0], sizes = [8, 128], strides = [1, 1]} : vector<8x384xf32> to vector<8x128xf32>
    %208 = vector.extract_strided_slice %206 {offsets = [0, 128], sizes = [8, 128], strides = [1, 1]} : vector<8x384xf32> to vector<8x128xf32>
    %209 = vector.extract_strided_slice %206 {offsets = [0, 256], sizes = [8, 128], strides = [1, 1]} : vector<8x384xf32> to vector<8x128xf32>
    %210 = vector.extract_strided_slice %200 {offsets = [0, 384], sizes = [8, 128], strides = [1, 1]} : vector<8x512xf32> to vector<8x128xf32>
    %211 = math.tanh %210 : vector<8x128xf32>
    %212 = arith.mulf %208, %169 : vector<8x128xf32>
    %213 = arith.mulf %207, %211 : vector<8x128xf32>
    %214 = arith.addf %212, %213 : vector<8x128xf32>
    %215 = math.tanh %214 : vector<8x128xf32>
    %216 = arith.mulf %209, %215 : vector<8x128xf32>
    %217 = tpu.concatenate %216, %191 in 1 : vector<8x128xf32>, vector<8x128xf32> -> vector<8x256xf32>
    %218 = arith.truncf %217 : vector<8x256xf32> to vector<8x256xbf16>
    %cst_47 = arith.constant dense<0.000000e+00> : vector<8x512xf32>
    %219 = tpu.matmul %218, %8, %cst_47 {dimension_numbers = #tpu.dot_dimension_numbers<[1], [0], [0], [1], [0, 0, 1, 1], [], []>} : vector<8x256xbf16>, vector<256x512xbf16>, vector<8x512xf32> -> vector<8x512xf32>
    %220 = arith.addf %219, %11 : vector<8x512xf32>
    %221 = vector.extract_strided_slice %220 {offsets = [0, 0], sizes = [8, 384], strides = [1, 1]} : vector<8x512xf32> to vector<8x384xf32>
    %222 = arith.negf %221 : vector<8x384xf32>
    %223 = math.exp %222 : vector<8x384xf32>
    %cst_48 = arith.constant 1.000000e+00 : f32
    %224 = vector.broadcast %cst_48 : f32 to vector<8x384xf32>
    %225 = arith.addf %224, %223 : vector<8x384xf32>
    %226 = arith.divf %224, %225 : vector<8x384xf32>
    %227 = vector.extract_strided_slice %226 {offsets = [0, 0], sizes = [8, 128], strides = [1, 1]} : vector<8x384xf32> to vector<8x128xf32>
    %228 = vector.extract_strided_slice %226 {offsets = [0, 128], sizes = [8, 128], strides = [1, 1]} : vector<8x384xf32> to vector<8x128xf32>
    %229 = vector.extract_strided_slice %226 {offsets = [0, 256], sizes = [8, 128], strides = [1, 1]} : vector<8x384xf32> to vector<8x128xf32>
    %230 = vector.extract_strided_slice %220 {offsets = [0, 384], sizes = [8, 128], strides = [1, 1]} : vector<8x512xf32> to vector<8x128xf32>
    %231 = math.tanh %230 : vector<8x128xf32>
    %232 = arith.mulf %228, %189 : vector<8x128xf32>
    %233 = arith.mulf %227, %231 : vector<8x128xf32>
    %234 = arith.addf %232, %233 : vector<8x128xf32>
    %235 = math.tanh %234 : vector<8x128xf32>
    %236 = arith.mulf %229, %235 : vector<8x128xf32>
    %237 = arith.truncf %236 : vector<8x128xf32> to vector<8x128xbf16>
    %c4 = arith.constant 4 : index
    %c0_49 = arith.constant 0 : index
    %c0_50 = arith.constant 0 : index
    %238 = vector.load %arg6[%c4, %c0_49, %c0_50] : memref<10x128x128xbf16, #tpu.memory_space<vmem>>, vector<1x128x128xbf16>
    %239 = vector.shape_cast %238 : vector<1x128x128xbf16> to vector<128x128xbf16>
    %cst_51 = arith.constant dense<0.000000e+00> : vector<8x128xf32>
    %240 = tpu.matmul %237, %239, %cst_51 {dimension_numbers = #tpu.dot_dimension_numbers<[1], [0], [0], [1], [0, 0, 1, 1], [], []>} : vector<8x128xbf16>, vector<128x128xbf16>, vector<8x128xf32> -> vector<8x128xf32>
    %241 = arith.addf %196, %240 : vector<8x128xf32>
    %242 = vector.extract_strided_slice %6 {offsets = [40, 0], sizes = [8, 512], strides = [1, 1]} : vector<80x512xf32> to vector<8x512xf32>
    %243 = arith.truncf %216 : vector<8x128xf32> to vector<8x128xbf16>
    %cst_52 = arith.constant dense<0.000000e+00> : vector<8x512xf32>
    %244 = tpu.matmul %243, %7, %cst_52 {dimension_numbers = #tpu.dot_dimension_numbers<[1], [0], [0], [1], [0, 0, 1, 1], [], []>} : vector<8x128xbf16>, vector<128x512xbf16>, vector<8x512xf32> -> vector<8x512xf32>
    %245 = arith.addf %242, %244 : vector<8x512xf32>
    %246 = vector.extract_strided_slice %245 {offsets = [0, 0], sizes = [8, 384], strides = [1, 1]} : vector<8x512xf32> to vector<8x384xf32>
    %247 = arith.negf %246 : vector<8x384xf32>
    %248 = math.exp %247 : vector<8x384xf32>
    %cst_53 = arith.constant 1.000000e+00 : f32
    %249 = vector.broadcast %cst_53 : f32 to vector<8x384xf32>
    %250 = arith.addf %249, %248 : vector<8x384xf32>
    %251 = arith.divf %249, %250 : vector<8x384xf32>
    %252 = vector.extract_strided_slice %251 {offsets = [0, 0], sizes = [8, 128], strides = [1, 1]} : vector<8x384xf32> to vector<8x128xf32>
    %253 = vector.extract_strided_slice %251 {offsets = [0, 128], sizes = [8, 128], strides = [1, 1]} : vector<8x384xf32> to vector<8x128xf32>
    %254 = vector.extract_strided_slice %251 {offsets = [0, 256], sizes = [8, 128], strides = [1, 1]} : vector<8x384xf32> to vector<8x128xf32>
    %255 = vector.extract_strided_slice %245 {offsets = [0, 384], sizes = [8, 128], strides = [1, 1]} : vector<8x512xf32> to vector<8x128xf32>
    %256 = math.tanh %255 : vector<8x128xf32>
    %257 = arith.mulf %253, %214 : vector<8x128xf32>
    %258 = arith.mulf %252, %256 : vector<8x128xf32>
    %259 = arith.addf %257, %258 : vector<8x128xf32>
    %260 = math.tanh %259 : vector<8x128xf32>
    %261 = arith.mulf %254, %260 : vector<8x128xf32>
    %262 = tpu.concatenate %261, %236 in 1 : vector<8x128xf32>, vector<8x128xf32> -> vector<8x256xf32>
    %263 = arith.truncf %262 : vector<8x256xf32> to vector<8x256xbf16>
    %cst_54 = arith.constant dense<0.000000e+00> : vector<8x512xf32>
    %264 = tpu.matmul %263, %8, %cst_54 {dimension_numbers = #tpu.dot_dimension_numbers<[1], [0], [0], [1], [0, 0, 1, 1], [], []>} : vector<8x256xbf16>, vector<256x512xbf16>, vector<8x512xf32> -> vector<8x512xf32>
    %265 = arith.addf %264, %11 : vector<8x512xf32>
    %266 = vector.extract_strided_slice %265 {offsets = [0, 0], sizes = [8, 384], strides = [1, 1]} : vector<8x512xf32> to vector<8x384xf32>
    %267 = arith.negf %266 : vector<8x384xf32>
    %268 = math.exp %267 : vector<8x384xf32>
    %cst_55 = arith.constant 1.000000e+00 : f32
    %269 = vector.broadcast %cst_55 : f32 to vector<8x384xf32>
    %270 = arith.addf %269, %268 : vector<8x384xf32>
    %271 = arith.divf %269, %270 : vector<8x384xf32>
    %272 = vector.extract_strided_slice %271 {offsets = [0, 0], sizes = [8, 128], strides = [1, 1]} : vector<8x384xf32> to vector<8x128xf32>
    %273 = vector.extract_strided_slice %271 {offsets = [0, 128], sizes = [8, 128], strides = [1, 1]} : vector<8x384xf32> to vector<8x128xf32>
    %274 = vector.extract_strided_slice %271 {offsets = [0, 256], sizes = [8, 128], strides = [1, 1]} : vector<8x384xf32> to vector<8x128xf32>
    %275 = vector.extract_strided_slice %265 {offsets = [0, 384], sizes = [8, 128], strides = [1, 1]} : vector<8x512xf32> to vector<8x128xf32>
    %276 = math.tanh %275 : vector<8x128xf32>
    %277 = arith.mulf %273, %234 : vector<8x128xf32>
    %278 = arith.mulf %272, %276 : vector<8x128xf32>
    %279 = arith.addf %277, %278 : vector<8x128xf32>
    %280 = math.tanh %279 : vector<8x128xf32>
    %281 = arith.mulf %274, %280 : vector<8x128xf32>
    %282 = arith.truncf %281 : vector<8x128xf32> to vector<8x128xbf16>
    %c5 = arith.constant 5 : index
    %c0_56 = arith.constant 0 : index
    %c0_57 = arith.constant 0 : index
    %283 = vector.load %arg6[%c5, %c0_56, %c0_57] : memref<10x128x128xbf16, #tpu.memory_space<vmem>>, vector<1x128x128xbf16>
    %284 = vector.shape_cast %283 : vector<1x128x128xbf16> to vector<128x128xbf16>
    %cst_58 = arith.constant dense<0.000000e+00> : vector<8x128xf32>
    %285 = tpu.matmul %282, %284, %cst_58 {dimension_numbers = #tpu.dot_dimension_numbers<[1], [0], [0], [1], [0, 0, 1, 1], [], []>} : vector<8x128xbf16>, vector<128x128xbf16>, vector<8x128xf32> -> vector<8x128xf32>
    %286 = arith.addf %241, %285 : vector<8x128xf32>
    %287 = vector.extract_strided_slice %6 {offsets = [48, 0], sizes = [8, 512], strides = [1, 1]} : vector<80x512xf32> to vector<8x512xf32>
    %288 = arith.truncf %261 : vector<8x128xf32> to vector<8x128xbf16>
    %cst_59 = arith.constant dense<0.000000e+00> : vector<8x512xf32>
    %289 = tpu.matmul %288, %7, %cst_59 {dimension_numbers = #tpu.dot_dimension_numbers<[1], [0], [0], [1], [0, 0, 1, 1], [], []>} : vector<8x128xbf16>, vector<128x512xbf16>, vector<8x512xf32> -> vector<8x512xf32>
    %290 = arith.addf %287, %289 : vector<8x512xf32>
    %291 = vector.extract_strided_slice %290 {offsets = [0, 0], sizes = [8, 384], strides = [1, 1]} : vector<8x512xf32> to vector<8x384xf32>
    %292 = arith.negf %291 : vector<8x384xf32>
    %293 = math.exp %292 : vector<8x384xf32>
    %cst_60 = arith.constant 1.000000e+00 : f32
    %294 = vector.broadcast %cst_60 : f32 to vector<8x384xf32>
    %295 = arith.addf %294, %293 : vector<8x384xf32>
    %296 = arith.divf %294, %295 : vector<8x384xf32>
    %297 = vector.extract_strided_slice %296 {offsets = [0, 0], sizes = [8, 128], strides = [1, 1]} : vector<8x384xf32> to vector<8x128xf32>
    %298 = vector.extract_strided_slice %296 {offsets = [0, 128], sizes = [8, 128], strides = [1, 1]} : vector<8x384xf32> to vector<8x128xf32>
    %299 = vector.extract_strided_slice %296 {offsets = [0, 256], sizes = [8, 128], strides = [1, 1]} : vector<8x384xf32> to vector<8x128xf32>
    %300 = vector.extract_strided_slice %290 {offsets = [0, 384], sizes = [8, 128], strides = [1, 1]} : vector<8x512xf32> to vector<8x128xf32>
    %301 = math.tanh %300 : vector<8x128xf32>
    %302 = arith.mulf %298, %259 : vector<8x128xf32>
    %303 = arith.mulf %297, %301 : vector<8x128xf32>
    %304 = arith.addf %302, %303 : vector<8x128xf32>
    %305 = math.tanh %304 : vector<8x128xf32>
    %306 = arith.mulf %299, %305 : vector<8x128xf32>
    %307 = tpu.concatenate %306, %281 in 1 : vector<8x128xf32>, vector<8x128xf32> -> vector<8x256xf32>
    %308 = arith.truncf %307 : vector<8x256xf32> to vector<8x256xbf16>
    %cst_61 = arith.constant dense<0.000000e+00> : vector<8x512xf32>
    %309 = tpu.matmul %308, %8, %cst_61 {dimension_numbers = #tpu.dot_dimension_numbers<[1], [0], [0], [1], [0, 0, 1, 1], [], []>} : vector<8x256xbf16>, vector<256x512xbf16>, vector<8x512xf32> -> vector<8x512xf32>
    %310 = arith.addf %309, %11 : vector<8x512xf32>
    %311 = vector.extract_strided_slice %310 {offsets = [0, 0], sizes = [8, 384], strides = [1, 1]} : vector<8x512xf32> to vector<8x384xf32>
    %312 = arith.negf %311 : vector<8x384xf32>
    %313 = math.exp %312 : vector<8x384xf32>
    %cst_62 = arith.constant 1.000000e+00 : f32
    %314 = vector.broadcast %cst_62 : f32 to vector<8x384xf32>
    %315 = arith.addf %314, %313 : vector<8x384xf32>
    %316 = arith.divf %314, %315 : vector<8x384xf32>
    %317 = vector.extract_strided_slice %316 {offsets = [0, 0], sizes = [8, 128], strides = [1, 1]} : vector<8x384xf32> to vector<8x128xf32>
    %318 = vector.extract_strided_slice %316 {offsets = [0, 128], sizes = [8, 128], strides = [1, 1]} : vector<8x384xf32> to vector<8x128xf32>
    %319 = vector.extract_strided_slice %316 {offsets = [0, 256], sizes = [8, 128], strides = [1, 1]} : vector<8x384xf32> to vector<8x128xf32>
    %320 = vector.extract_strided_slice %310 {offsets = [0, 384], sizes = [8, 128], strides = [1, 1]} : vector<8x512xf32> to vector<8x128xf32>
    %321 = math.tanh %320 : vector<8x128xf32>
    %322 = arith.mulf %318, %279 : vector<8x128xf32>
    %323 = arith.mulf %317, %321 : vector<8x128xf32>
    %324 = arith.addf %322, %323 : vector<8x128xf32>
    %325 = math.tanh %324 : vector<8x128xf32>
    %326 = arith.mulf %319, %325 : vector<8x128xf32>
    %327 = arith.truncf %326 : vector<8x128xf32> to vector<8x128xbf16>
    %c6 = arith.constant 6 : index
    %c0_63 = arith.constant 0 : index
    %c0_64 = arith.constant 0 : index
    %328 = vector.load %arg6[%c6, %c0_63, %c0_64] : memref<10x128x128xbf16, #tpu.memory_space<vmem>>, vector<1x128x128xbf16>
    %329 = vector.shape_cast %328 : vector<1x128x128xbf16> to vector<128x128xbf16>
    %cst_65 = arith.constant dense<0.000000e+00> : vector<8x128xf32>
    %330 = tpu.matmul %327, %329, %cst_65 {dimension_numbers = #tpu.dot_dimension_numbers<[1], [0], [0], [1], [0, 0, 1, 1], [], []>} : vector<8x128xbf16>, vector<128x128xbf16>, vector<8x128xf32> -> vector<8x128xf32>
    %331 = arith.addf %286, %330 : vector<8x128xf32>
    %332 = vector.extract_strided_slice %6 {offsets = [56, 0], sizes = [8, 512], strides = [1, 1]} : vector<80x512xf32> to vector<8x512xf32>
    %333 = arith.truncf %306 : vector<8x128xf32> to vector<8x128xbf16>
    %cst_66 = arith.constant dense<0.000000e+00> : vector<8x512xf32>
    %334 = tpu.matmul %333, %7, %cst_66 {dimension_numbers = #tpu.dot_dimension_numbers<[1], [0], [0], [1], [0, 0, 1, 1], [], []>} : vector<8x128xbf16>, vector<128x512xbf16>, vector<8x512xf32> -> vector<8x512xf32>
    %335 = arith.addf %332, %334 : vector<8x512xf32>
    %336 = vector.extract_strided_slice %335 {offsets = [0, 0], sizes = [8, 384], strides = [1, 1]} : vector<8x512xf32> to vector<8x384xf32>
    %337 = arith.negf %336 : vector<8x384xf32>
    %338 = math.exp %337 : vector<8x384xf32>
    %cst_67 = arith.constant 1.000000e+00 : f32
    %339 = vector.broadcast %cst_67 : f32 to vector<8x384xf32>
    %340 = arith.addf %339, %338 : vector<8x384xf32>
    %341 = arith.divf %339, %340 : vector<8x384xf32>
    %342 = vector.extract_strided_slice %341 {offsets = [0, 0], sizes = [8, 128], strides = [1, 1]} : vector<8x384xf32> to vector<8x128xf32>
    %343 = vector.extract_strided_slice %341 {offsets = [0, 128], sizes = [8, 128], strides = [1, 1]} : vector<8x384xf32> to vector<8x128xf32>
    %344 = vector.extract_strided_slice %341 {offsets = [0, 256], sizes = [8, 128], strides = [1, 1]} : vector<8x384xf32> to vector<8x128xf32>
    %345 = vector.extract_strided_slice %335 {offsets = [0, 384], sizes = [8, 128], strides = [1, 1]} : vector<8x512xf32> to vector<8x128xf32>
    %346 = math.tanh %345 : vector<8x128xf32>
    %347 = arith.mulf %343, %304 : vector<8x128xf32>
    %348 = arith.mulf %342, %346 : vector<8x128xf32>
    %349 = arith.addf %347, %348 : vector<8x128xf32>
    %350 = math.tanh %349 : vector<8x128xf32>
    %351 = arith.mulf %344, %350 : vector<8x128xf32>
    %352 = tpu.concatenate %351, %326 in 1 : vector<8x128xf32>, vector<8x128xf32> -> vector<8x256xf32>
    %353 = arith.truncf %352 : vector<8x256xf32> to vector<8x256xbf16>
    %cst_68 = arith.constant dense<0.000000e+00> : vector<8x512xf32>
    %354 = tpu.matmul %353, %8, %cst_68 {dimension_numbers = #tpu.dot_dimension_numbers<[1], [0], [0], [1], [0, 0, 1, 1], [], []>} : vector<8x256xbf16>, vector<256x512xbf16>, vector<8x512xf32> -> vector<8x512xf32>
    %355 = arith.addf %354, %11 : vector<8x512xf32>
    %356 = vector.extract_strided_slice %355 {offsets = [0, 0], sizes = [8, 384], strides = [1, 1]} : vector<8x512xf32> to vector<8x384xf32>
    %357 = arith.negf %356 : vector<8x384xf32>
    %358 = math.exp %357 : vector<8x384xf32>
    %cst_69 = arith.constant 1.000000e+00 : f32
    %359 = vector.broadcast %cst_69 : f32 to vector<8x384xf32>
    %360 = arith.addf %359, %358 : vector<8x384xf32>
    %361 = arith.divf %359, %360 : vector<8x384xf32>
    %362 = vector.extract_strided_slice %361 {offsets = [0, 0], sizes = [8, 128], strides = [1, 1]} : vector<8x384xf32> to vector<8x128xf32>
    %363 = vector.extract_strided_slice %361 {offsets = [0, 128], sizes = [8, 128], strides = [1, 1]} : vector<8x384xf32> to vector<8x128xf32>
    %364 = vector.extract_strided_slice %361 {offsets = [0, 256], sizes = [8, 128], strides = [1, 1]} : vector<8x384xf32> to vector<8x128xf32>
    %365 = vector.extract_strided_slice %355 {offsets = [0, 384], sizes = [8, 128], strides = [1, 1]} : vector<8x512xf32> to vector<8x128xf32>
    %366 = math.tanh %365 : vector<8x128xf32>
    %367 = arith.mulf %363, %324 : vector<8x128xf32>
    %368 = arith.mulf %362, %366 : vector<8x128xf32>
    %369 = arith.addf %367, %368 : vector<8x128xf32>
    %370 = math.tanh %369 : vector<8x128xf32>
    %371 = arith.mulf %364, %370 : vector<8x128xf32>
    %372 = arith.truncf %371 : vector<8x128xf32> to vector<8x128xbf16>
    %c7 = arith.constant 7 : index
    %c0_70 = arith.constant 0 : index
    %c0_71 = arith.constant 0 : index
    %373 = vector.load %arg6[%c7, %c0_70, %c0_71] : memref<10x128x128xbf16, #tpu.memory_space<vmem>>, vector<1x128x128xbf16>
    %374 = vector.shape_cast %373 : vector<1x128x128xbf16> to vector<128x128xbf16>
    %cst_72 = arith.constant dense<0.000000e+00> : vector<8x128xf32>
    %375 = tpu.matmul %372, %374, %cst_72 {dimension_numbers = #tpu.dot_dimension_numbers<[1], [0], [0], [1], [0, 0, 1, 1], [], []>} : vector<8x128xbf16>, vector<128x128xbf16>, vector<8x128xf32> -> vector<8x128xf32>
    %376 = arith.addf %331, %375 : vector<8x128xf32>
    %377 = vector.extract_strided_slice %6 {offsets = [64, 0], sizes = [8, 512], strides = [1, 1]} : vector<80x512xf32> to vector<8x512xf32>
    %378 = arith.truncf %351 : vector<8x128xf32> to vector<8x128xbf16>
    %cst_73 = arith.constant dense<0.000000e+00> : vector<8x512xf32>
    %379 = tpu.matmul %378, %7, %cst_73 {dimension_numbers = #tpu.dot_dimension_numbers<[1], [0], [0], [1], [0, 0, 1, 1], [], []>} : vector<8x128xbf16>, vector<128x512xbf16>, vector<8x512xf32> -> vector<8x512xf32>
    %380 = arith.addf %377, %379 : vector<8x512xf32>
    %381 = vector.extract_strided_slice %380 {offsets = [0, 0], sizes = [8, 384], strides = [1, 1]} : vector<8x512xf32> to vector<8x384xf32>
    %382 = arith.negf %381 : vector<8x384xf32>
    %383 = math.exp %382 : vector<8x384xf32>
    %cst_74 = arith.constant 1.000000e+00 : f32
    %384 = vector.broadcast %cst_74 : f32 to vector<8x384xf32>
    %385 = arith.addf %384, %383 : vector<8x384xf32>
    %386 = arith.divf %384, %385 : vector<8x384xf32>
    %387 = vector.extract_strided_slice %386 {offsets = [0, 0], sizes = [8, 128], strides = [1, 1]} : vector<8x384xf32> to vector<8x128xf32>
    %388 = vector.extract_strided_slice %386 {offsets = [0, 128], sizes = [8, 128], strides = [1, 1]} : vector<8x384xf32> to vector<8x128xf32>
    %389 = vector.extract_strided_slice %386 {offsets = [0, 256], sizes = [8, 128], strides = [1, 1]} : vector<8x384xf32> to vector<8x128xf32>
    %390 = vector.extract_strided_slice %380 {offsets = [0, 384], sizes = [8, 128], strides = [1, 1]} : vector<8x512xf32> to vector<8x128xf32>
    %391 = math.tanh %390 : vector<8x128xf32>
    %392 = arith.mulf %388, %349 : vector<8x128xf32>
    %393 = arith.mulf %387, %391 : vector<8x128xf32>
    %394 = arith.addf %392, %393 : vector<8x128xf32>
    %395 = math.tanh %394 : vector<8x128xf32>
    %396 = arith.mulf %389, %395 : vector<8x128xf32>
    %397 = tpu.concatenate %396, %371 in 1 : vector<8x128xf32>, vector<8x128xf32> -> vector<8x256xf32>
    %398 = arith.truncf %397 : vector<8x256xf32> to vector<8x256xbf16>
    %cst_75 = arith.constant dense<0.000000e+00> : vector<8x512xf32>
    %399 = tpu.matmul %398, %8, %cst_75 {dimension_numbers = #tpu.dot_dimension_numbers<[1], [0], [0], [1], [0, 0, 1, 1], [], []>} : vector<8x256xbf16>, vector<256x512xbf16>, vector<8x512xf32> -> vector<8x512xf32>
    %400 = arith.addf %399, %11 : vector<8x512xf32>
    %401 = vector.extract_strided_slice %400 {offsets = [0, 0], sizes = [8, 384], strides = [1, 1]} : vector<8x512xf32> to vector<8x384xf32>
    %402 = arith.negf %401 : vector<8x384xf32>
    %403 = math.exp %402 : vector<8x384xf32>
    %cst_76 = arith.constant 1.000000e+00 : f32
    %404 = vector.broadcast %cst_76 : f32 to vector<8x384xf32>
    %405 = arith.addf %404, %403 : vector<8x384xf32>
    %406 = arith.divf %404, %405 : vector<8x384xf32>
    %407 = vector.extract_strided_slice %406 {offsets = [0, 0], sizes = [8, 128], strides = [1, 1]} : vector<8x384xf32> to vector<8x128xf32>
    %408 = vector.extract_strided_slice %406 {offsets = [0, 128], sizes = [8, 128], strides = [1, 1]} : vector<8x384xf32> to vector<8x128xf32>
    %409 = vector.extract_strided_slice %406 {offsets = [0, 256], sizes = [8, 128], strides = [1, 1]} : vector<8x384xf32> to vector<8x128xf32>
    %410 = vector.extract_strided_slice %400 {offsets = [0, 384], sizes = [8, 128], strides = [1, 1]} : vector<8x512xf32> to vector<8x128xf32>
    %411 = math.tanh %410 : vector<8x128xf32>
    %412 = arith.mulf %408, %369 : vector<8x128xf32>
    %413 = arith.mulf %407, %411 : vector<8x128xf32>
    %414 = arith.addf %412, %413 : vector<8x128xf32>
    %415 = math.tanh %414 : vector<8x128xf32>
    %416 = arith.mulf %409, %415 : vector<8x128xf32>
    %417 = arith.truncf %416 : vector<8x128xf32> to vector<8x128xbf16>
    %c8 = arith.constant 8 : index
    %c0_77 = arith.constant 0 : index
    %c0_78 = arith.constant 0 : index
    %418 = vector.load %arg6[%c8, %c0_77, %c0_78] : memref<10x128x128xbf16, #tpu.memory_space<vmem>>, vector<1x128x128xbf16>
    %419 = vector.shape_cast %418 : vector<1x128x128xbf16> to vector<128x128xbf16>
    %cst_79 = arith.constant dense<0.000000e+00> : vector<8x128xf32>
    %420 = tpu.matmul %417, %419, %cst_79 {dimension_numbers = #tpu.dot_dimension_numbers<[1], [0], [0], [1], [0, 0, 1, 1], [], []>} : vector<8x128xbf16>, vector<128x128xbf16>, vector<8x128xf32> -> vector<8x128xf32>
    %421 = arith.addf %376, %420 : vector<8x128xf32>
    %422 = vector.extract_strided_slice %6 {offsets = [72, 0], sizes = [8, 512], strides = [1, 1]} : vector<80x512xf32> to vector<8x512xf32>
    %423 = arith.truncf %396 : vector<8x128xf32> to vector<8x128xbf16>
    %cst_80 = arith.constant dense<0.000000e+00> : vector<8x512xf32>
    %424 = tpu.matmul %423, %7, %cst_80 {dimension_numbers = #tpu.dot_dimension_numbers<[1], [0], [0], [1], [0, 0, 1, 1], [], []>} : vector<8x128xbf16>, vector<128x512xbf16>, vector<8x512xf32> -> vector<8x512xf32>
    %425 = arith.addf %422, %424 : vector<8x512xf32>
    %426 = vector.extract_strided_slice %425 {offsets = [0, 0], sizes = [8, 384], strides = [1, 1]} : vector<8x512xf32> to vector<8x384xf32>
    %427 = arith.negf %426 : vector<8x384xf32>
    %428 = math.exp %427 : vector<8x384xf32>
    %cst_81 = arith.constant 1.000000e+00 : f32
    %429 = vector.broadcast %cst_81 : f32 to vector<8x384xf32>
    %430 = arith.addf %429, %428 : vector<8x384xf32>
    %431 = arith.divf %429, %430 : vector<8x384xf32>
    %432 = vector.extract_strided_slice %431 {offsets = [0, 0], sizes = [8, 128], strides = [1, 1]} : vector<8x384xf32> to vector<8x128xf32>
    %433 = vector.extract_strided_slice %431 {offsets = [0, 128], sizes = [8, 128], strides = [1, 1]} : vector<8x384xf32> to vector<8x128xf32>
    %434 = vector.extract_strided_slice %431 {offsets = [0, 256], sizes = [8, 128], strides = [1, 1]} : vector<8x384xf32> to vector<8x128xf32>
    %435 = vector.extract_strided_slice %425 {offsets = [0, 384], sizes = [8, 128], strides = [1, 1]} : vector<8x512xf32> to vector<8x128xf32>
    %436 = math.tanh %435 : vector<8x128xf32>
    %437 = arith.mulf %433, %394 : vector<8x128xf32>
    %438 = arith.mulf %432, %436 : vector<8x128xf32>
    %439 = arith.addf %437, %438 : vector<8x128xf32>
    %440 = math.tanh %439 : vector<8x128xf32>
    %441 = arith.mulf %434, %440 : vector<8x128xf32>
    %442 = tpu.concatenate %441, %416 in 1 : vector<8x128xf32>, vector<8x128xf32> -> vector<8x256xf32>
    %443 = arith.truncf %442 : vector<8x256xf32> to vector<8x256xbf16>
    %cst_82 = arith.constant dense<0.000000e+00> : vector<8x512xf32>
    %444 = tpu.matmul %443, %8, %cst_82 {dimension_numbers = #tpu.dot_dimension_numbers<[1], [0], [0], [1], [0, 0, 1, 1], [], []>} : vector<8x256xbf16>, vector<256x512xbf16>, vector<8x512xf32> -> vector<8x512xf32>
    %445 = arith.addf %444, %11 : vector<8x512xf32>
    %446 = vector.extract_strided_slice %445 {offsets = [0, 0], sizes = [8, 384], strides = [1, 1]} : vector<8x512xf32> to vector<8x384xf32>
    %447 = arith.negf %446 : vector<8x384xf32>
    %448 = math.exp %447 : vector<8x384xf32>
    %cst_83 = arith.constant 1.000000e+00 : f32
    %449 = vector.broadcast %cst_83 : f32 to vector<8x384xf32>
    %450 = arith.addf %449, %448 : vector<8x384xf32>
    %451 = arith.divf %449, %450 : vector<8x384xf32>
    %452 = vector.extract_strided_slice %451 {offsets = [0, 0], sizes = [8, 128], strides = [1, 1]} : vector<8x384xf32> to vector<8x128xf32>
    %453 = vector.extract_strided_slice %451 {offsets = [0, 128], sizes = [8, 128], strides = [1, 1]} : vector<8x384xf32> to vector<8x128xf32>
    %454 = vector.extract_strided_slice %451 {offsets = [0, 256], sizes = [8, 128], strides = [1, 1]} : vector<8x384xf32> to vector<8x128xf32>
    %455 = vector.extract_strided_slice %445 {offsets = [0, 384], sizes = [8, 128], strides = [1, 1]} : vector<8x512xf32> to vector<8x128xf32>
    %456 = math.tanh %455 : vector<8x128xf32>
    %457 = arith.mulf %453, %414 : vector<8x128xf32>
    %458 = arith.mulf %452, %456 : vector<8x128xf32>
    %459 = arith.addf %457, %458 : vector<8x128xf32>
    %460 = math.tanh %459 : vector<8x128xf32>
    %461 = arith.mulf %454, %460 : vector<8x128xf32>
    %462 = arith.truncf %461 : vector<8x128xf32> to vector<8x128xbf16>
    %c9 = arith.constant 9 : index
    %c0_84 = arith.constant 0 : index
    %c0_85 = arith.constant 0 : index
    %463 = vector.load %arg6[%c9, %c0_84, %c0_85] : memref<10x128x128xbf16, #tpu.memory_space<vmem>>, vector<1x128x128xbf16>
    %464 = vector.shape_cast %463 : vector<1x128x128xbf16> to vector<128x128xbf16>
    %cst_86 = arith.constant dense<0.000000e+00> : vector<8x128xf32>
    %465 = tpu.matmul %462, %464, %cst_86 {dimension_numbers = #tpu.dot_dimension_numbers<[1], [0], [0], [1], [0, 0, 1, 1], [], []>} : vector<8x128xbf16>, vector<128x128xbf16>, vector<8x128xf32> -> vector<8x128xf32>
    %466 = arith.addf %421, %465 : vector<8x128xf32>
    %c0_87 = arith.constant 0 : index
    %c0_88 = arith.constant 0 : index
    %467 = vector.load %arg7[%c0_87, %c0_88] : memref<1x128xf32, #tpu.memory_space<vmem>>, vector<1x128xf32>
    %468 = vector.broadcast %467 : vector<1x128xf32> to vector<8x128xf32>
    %469 = arith.addf %466, %468 : vector<8x128xf32>
    %cst_89 = arith.constant 0.000000e+00 : f32
    %470 = vector.broadcast %cst_89 : f32 to vector<8x128xf32>
    %471 = arith.maximumf %469, %470 : vector<8x128xf32>
    %472 = arith.truncf %471 : vector<8x128xf32> to vector<8x128xbf16>
    %c0_90 = arith.constant 0 : index
    %c0_91 = arith.constant 0 : index
    %473 = vector.load %arg8[%c0_90, %c0_91] : memref<128x128xbf16, #tpu.memory_space<vmem>>, vector<128x128xbf16>
    %cst_92 = arith.constant dense<0.000000e+00> : vector<8x128xf32>
    %474 = tpu.matmul %472, %473, %cst_92 {dimension_numbers = #tpu.dot_dimension_numbers<[1], [0], [0], [1], [0, 0, 1, 1], [], []>} : vector<8x128xbf16>, vector<128x128xbf16>, vector<8x128xf32> -> vector<8x128xf32>
    %c0_93 = arith.constant 0 : index
    %c0_94 = arith.constant 0 : index
    %475 = vector.load %arg9[%c0_93, %c0_94] : memref<1x128xf32, #tpu.memory_space<vmem>>, vector<1x128xf32>
    %476 = vector.broadcast %475 : vector<1x128xf32> to vector<8x128xf32>
    %477 = arith.addf %474, %476 : vector<8x128xf32>
    %c0_95 = arith.constant 0 : index
    %c0_96 = arith.constant 0 : index
    %478 = vector.load %arg10[%c0_95, %c0_96] : memref<8x128xf32, #tpu.memory_space<vmem>>, vector<8x128xf32>
    tpu.vector_store %arg10[%c0_95, %c0_96], %477 {strides = array<i32>} : memref<8x128xf32, #tpu.memory_space<vmem>>, vector<8x128xf32>,
    return
  }
}

</mosaic_0001>

<bundles_post_ra>
// kernel: deepfake_detector_forward.1
= control target key start
LH: loop header
LB: loop body
LE: loop exit
PB: predicated region body
PF: predicated region fallthrough
CT: control target
= control target key end

     0   :  { %15 = vsyncpa [#allocation3], 0  ;;  %s8164_s0 = inlined_call_operand.vmem [shape: f32[80,32], index: 0, kind: input, shape index: {}]   ;;  %s8165_s1 = inlined_call_operand.vmem [shape: bf16[32,512], index: 1, kind: input, shape index: {}]   ;;  %s8166_s2 = inlined_call_operand.hbm [shape: bf16[128,512], index: 2, kind: input, shape index: {}]   ;;  %s8167_s3 = inlined_call_operand.vmem [shape: f32[1,512], index: 3, kind: input, shape index: {}]   ;;  %s8168_s4 = inlined_call_operand.hbm [shape: bf16[256,512], index: 4, kind: input, shape index: {}]   ;;  %s8169_s5 = inlined_call_operand.vmem [shape: f32[1,512], index: 5, kind: input, shape index: {}]   ;;  %s8170_s6 = inlined_call_operand.hbm [shape: bf16[10,128,128], index: 6, kind: input, shape index: {}]   ;;  %s8171_s7 = inlined_call_operand.vmem [shape: f32[1,128], index: 7, kind: input, shape index: {}]   ;;  %s8172_s8 = inlined_call_operand.vmem [shape: bf16[128,128], index: 8, kind: input, shape index: {}]   ;;  %s8173_s9 = inlined_call_operand.vmem [shape: f32[1,128], index: 9, kind: input, shape index: {}]   ;;  %s8174_s10 = inlined_call_operand.vmem [shape: f32[8,128], index: 10, kind: output, shape index: {}]  }
   0x1   :  { %16 = vsyncpa [#allocation5], 0  ;;  %s5843_s13 = smov [#allocation4]   ;;  %s5844_s15 = smov [#allocation2]  }
   0x2   :  { %s40_s14 = sshll.u32 %s5843_s13, 4  ;;  %s26_s16 = sshll.u32 %s5844_s15, 4  ;;  %s41_s14 = int_to_ptr.vmem [resolvable:$true] %s40_s14  ;;  %s5909_s16 = int_to_ptr.vmem [resolvable:$true] %s26_s16 }
   0x3   :  { %s5773_s19 = scalar_lea.hbm %s8168_s4, 8192 }
   0x4   :  { %p5774_p0 = scmp.ne.s32.totalorder %s8168_s4, %s5773_s19  ;;  %p5777_p1 = scmp.lt.u32.totalorder %s5773_s19, %s8168_s4 }
   0x6   :  { %p5779_p2 = pnand %p5777_p1, %p5774_p0 }
   0x8   :  { %5782 = shalt.err (!%p5779_p2)
}
   0x9   :  { %s5783_s24 = scalar_lea.vmem %s41_s14, 8192  ;;  %p5788_p4 = scmp.lt.s32.totalorder %s41_s14, %s41_s14 }
   0xa   :  { %p5784_p3 = scmp.ne.s32.totalorder %s41_s14, %s5783_s24  ;;  %p5789_p5 = scmp.lt.s32.totalorder %s5783_s24, %s5783_s24 }
   0xc   :  { %p5790_p6 = por %p5789_p5, %p5788_p4 }
   0xe   :  { %p5791_p7 = pnand %p5790_p6, %p5784_p3 }
  0x10   :  { %5794 = shalt.err (!%p5791_p7)
}
  0x11   :  { %s5845_s25 = smov 256   ;;  %s5846_s26 = smov 16  }
  0x12   :  { %46 = dma.hbm_to_vmem [thread:$0]  %s8168_s4, 8192, %s41_s14, [#allocation5], %s5845_s25, %s5845_s25, %s5846_s26  }
  0x13   :  { %s5795_s11 = scalar_lea.hbm %s8166_s2, 4096 }
  0x14   :  { %p5796_p8 = scmp.ne.s32.totalorder %s8166_s2, %s5795_s11  ;;  %p5799_p9 = scmp.lt.u32.totalorder %s5795_s11, %s8166_s2 }
  0x16   :  { %p5801_p10 = pnand %p5799_p9, %p5796_p8 }
  0x18   :  { %5804 = shalt.err (!%p5801_p10)
}
  0x19   :  { %s5805_s18 = scalar_lea.vmem %s5909_s16, 4096  ;;  %p5810_p12 = scmp.lt.s32.totalorder %s5909_s16, %s5909_s16 }
  0x1a   :  { %p5806_p11 = scmp.ne.s32.totalorder %s5909_s16, %s5805_s18  ;;  %p5811_p13 = scmp.lt.s32.totalorder %s5805_s18, %s5805_s18 }
  0x1c   :  { %p5812_p0 = por %p5811_p13, %p5810_p12 }
  0x1e   :  { %p5813_p1 = pnand %p5812_p0, %p5806_p11 }
  0x20   :  { %5816 = shalt.err (!%p5813_p1)
}
  0x21   :  { %32 = dma.hbm_to_vmem [thread:$0]  %s8166_s2, 4096, %s5909_s16, [#allocation3], %s5845_s25, %s5845_s25, %s5846_s26  }
  0x22   :  { %s5847_s19 = smov [#allocation6]   ;;  %s5817_s23 = scalar_lea.hbm %s8170_s6, 10240 }
  0x23   :  { %s54_s20 = sshll.u32 %s5847_s19, 4  ;;  %p5818_p2 = scmp.ne.s32.totalorder %s8170_s6, %s5817_s23  ;;  %s55_s20 = int_to_ptr.vmem [resolvable:$true] %s54_s20 }
  0x24   :  { %p5821_p3 = scmp.lt.u32.totalorder %s5817_s23, %s8170_s6 }
  0x26   :  { %p5823_p4 = pnand %p5821_p3, %p5818_p2 }
  0x28   :  { %5826 = shalt.err (!%p5823_p4)
}
  0x29   :  { %s5827_s30 = scalar_lea.vmem %s55_s20, 10240  ;;  %p5832_p6 = scmp.lt.s32.totalorder %s55_s20, %s55_s20 }
  0x2a   :  { %p5828_p5 = scmp.ne.s32.totalorder %s55_s20, %s5827_s30  ;;  %p5833_p7 = scmp.lt.s32.totalorder %s5827_s30, %s5827_s30 }
  0x2c   :  { %p5834_p8 = por %p5833_p7, %p5832_p6 }
  0x2e   :  { %p5835_p9 = pnand %p5834_p8, %p5828_p5 }
  0x30   :  { %5838 = shalt.err (!%p5835_p9)
}
  0x31   :  { %s5848_s2 = smov 64   ;;  %s5849_s16 = smov 4  }
  0x32   :  { %60 = dma.hbm_to_vmem [thread:$0]  %s8170_s6, 10240, %s55_s20, [#allocation5], %s5848_s2, %s5848_s2, %s5849_s16  }
  0x33   :  { %5839 = dma.done.wait [#allocation3], 4096  }
  0x34   :  { %5840 = vsyncadd [#allocation3], 4294963200 }
  0x35   :  { %5841 = dma.done.wait [#allocation5], 18432  }
  0x36   :  { %5842 = vsyncadd [#allocation5], 4294948864  ;;  %v8175_v0 = vmov 0   ;;  %v4906_v1 = vld [vmem:[%s8165_s1 + $0x4] ss:$16 sps:$4 sm:$0xff]   ;;  %v78_v6 = vld [vmem:[%s8164_s0 + $0x8] sm:$0xff] }
  0x37   :  { %210 = vmatprep.mubr.bf16.mxu0 %v8175_v0  ;;  %250 = vmatprep.mubr.bf16.mxu1 %v8175_v0  ;;  %v4908_v2 = vld [vmem:[%s8165_s1] ss:$16 sps:$4 sm:$0xff]   ;;  %v4909_v3 = vld [vmem:[%s8165_s1 + $0x24] ss:$16 sps:$4 sm:$0xff]   ;;  %v86_v8 = vld [vmem:[%s8164_s0 + $0x48] sm:$0xff]  ;;  %vm162_vm0 = vcmask 261120  }
  0x38   :  { %178 = vmatprep.subr.bf16.mxu0 %v4906_v1  ;;  %4891 = vmatprep.subr.bf16.mxu1 %v4906_v1  ;;  %v4911_v4 = vld [vmem:[%s8165_s1 + $0x20] ss:$16 sps:$4 sm:$0xff]   ;;  %v4914_v9 = vld [vmem:[%s8165_s1 + $0xc] ss:$16 sps:$4 sm:$0xff]   ;;  %v4912_v12 = vld [vmem:[%s8165_s1 + $0x8] ss:$16 sps:$4 sm:$0xff]  }
  0x39   :  { %v77_v5 = vld [vmem:[%s8164_s0] sm:$0xff]  ;;  %179 = vmatpush1.bf16.msra.mxu0 %v4908_v2  ;;  %4893 = vmatpush1.bf16.msra.mxu1 %v4908_v2  ;;  %v4920_v15 = vld [vmem:[%s8165_s1 + $0x2c] ss:$16 sps:$4 sm:$0xff]   ;;  %v4918_v17 = vld [vmem:[%s8165_s1 + $0x28] ss:$16 sps:$4 sm:$0xff]   ;;  %vm5853_vm1 = vmmov 0  }
  0x3a   :  { %v85_v7 = vld [vmem:[%s8164_s0 + $0x40] sm:$0xff]  ;;  %180 = vmatprep.subr.bf16.mxu0 %v4909_v3  ;;  %4892 = vmatprep.subr.bf16.mxu1 %v4909_v3  ;;  %v87_v10 = vpack.c.bf16 %v78_v6, %v77_v5  ;;  %v79_v19 = vld [vmem:[%s8164_s0 + $0x10] sm:$0xff]  ;;  %v80_v20 = vld [vmem:[%s8164_s0 + $0x18] sm:$0xff] }
  0x3b   :  { %v5981_v11 = vpack.c.bf16 %v86_v8, %v85_v7  ;;  %v5986_v13 = vld [vmem:[#allocation2 + $0x4] ss:$16 sps:$4 sm:$0xff]   ;;  %v4917_v14 = vld [vmem:[#allocation2] ss:$16 sps:$4 sm:$0xff]   ;;  %v6004_v22 = vld [vmem:[#allocation2 + $0xc] ss:$16 sps:$4 sm:$0xff]   ;;  %v88_v23 = vpack.c.bf16 %v80_v20, %v79_v19 }
  0x3c   :  { %v4921_v16 = vld [vmem:[#allocation2 + $0x24] ss:$16 sps:$4 sm:$0xff]   ;;  %v4923_v18 = vld [vmem:[#allocation2 + $0x20] ss:$16 sps:$4 sm:$0xff]   ;;  %v4929_v25 = vld [vmem:[#allocation2 + $0x8] ss:$16 sps:$4 sm:$0xff]  }
  0x3d   :  { %181 = vmatpush1.bf16.msra.mxu0 %v4911_v4  ;;  %4894 = vmatpush1.bf16.msra.mxu1 %v4911_v4  ;;  %v4924_v21 = vld [vmem:[#allocation2 + $0x44] ss:$16 sps:$4 sm:$0xff]   ;;  %v4928_v24 = vld [vmem:[#allocation2 + $0x40] ss:$16 sps:$4 sm:$0xff]   ;;  %v4933_v27 = vld [vmem:[#allocation2 + $0x2c] ss:$16 sps:$4 sm:$0xff]  }
  0x3e   :  { %261 = vmatprep.subr.bf16.mxu1 %v4914_v9  ;;  %622 = vmatprep.subr.bf16.mxu0 %v5986_v13  ;;  %v4930_v26 = vld [vmem:[#allocation2 + $0x64] ss:$16 sps:$4 sm:$0xff]   ;;  %v4932_v28 = vld [vmem:[#allocation2 + $0x60] ss:$16 sps:$4 sm:$0xff]   ;;  %v4935_v29 = vld [vmem:[#allocation2 + $0x28] ss:$16 sps:$4 sm:$0xff]  }
  0x3f   :  { %v81_v30 = vld [vmem:[%s8164_s0 + $0x20] sm:$0xff]  ;;  %v82_v31 = vld [vmem:[%s8164_s0 + $0x28] sm:$0xff]  ;;  %v83_v40 = vld [vmem:[%s8164_s0 + $0x30] sm:$0xff] }
  0x40   :  { %4316 = vmatmul.mubr.msk.bf16.vlgmr.msra.gmra.mrb[0].mxu0 %vm162_vm0, %v87_v10  ;;  %4320 = vmatmul.mubr.msk.bf16.vlgmr.msra.gmra.mrb[0].mxu1 %vm162_vm0, %v5981_v11  ;;  %v4936_v32 = vld [vmem:[#allocation2 + $0x84] ss:$16 sps:$4 sm:$0xff]   ;;  %v4939_v33 = vld [vmem:[#allocation2 + $0x4c] ss:$16 sps:$4 sm:$0xff]   ;;  %v89_v34 = vpack.c.bf16 %v82_v31, %v81_v30  ;;  %v4938_v35 = vld [vmem:[#allocation2 + $0x80] ss:$16 sps:$4 sm:$0xff]  }
  0x41   :  { %262 = vmatpush1.bf16.msra.mxu1 %v4912_v12  ;;  %623 = vmatpush1.bf16.msra.mxu0 %v4917_v14  ;;  %v4941_v36 = vld [vmem:[#allocation2 + $0x48] ss:$16 sps:$4 sm:$0xff]   ;;  %v4942_v37 = vld [vmem:[#allocation2 + $0xa4] ss:$16 sps:$4 sm:$0xff]   ;;  %v4944_v38 = vld [vmem:[#allocation2 + $0xa0] ss:$16 sps:$4 sm:$0xff]  }
  0x42   :  { %263 = vmatprep.subr.bf16.mxu1 %v4920_v15  ;;  %624 = vmatprep.subr.bf16.mxu0 %v4921_v16  ;;  %v4945_v39 = vld [vmem:[#allocation2 + $0x6c] ss:$16 sps:$4 sm:$0xff]   ;;  %v4949_v42 = vld [vmem:[#allocation2 + $0x68] ss:$16 sps:$4 sm:$0xff]   ;;  %v4947_v43 = vld [vmem:[#allocation2 + $0xc4] ss:$16 sps:$4 sm:$0xff]  }
  0x43   :  { %220 = vmatprep.mubr.bf16.mxu0 %v8175_v0  ;;  %293 = vmatprep.mubr.bf16.mxu1 %v8175_v0  ;;  %v84_v41 = vld [vmem:[%s8164_s0 + $0x38] sm:$0xff]  ;;  %v4950_v45 = vld [vmem:[#allocation2 + $0xc0] ss:$16 sps:$4 sm:$0xff]   ;;  %v4951_v47 = vld [vmem:[#allocation2 + $0xe4] ss:$16 sps:$4 sm:$0xff]  }
  0x44   :  { %v4953_v44 = vld [vmem:[#allocation2 + $0x8c] ss:$16 sps:$4 sm:$0xff]   ;;  %v90_v46 = vpack.c.bf16 %v84_v41, %v83_v40  ;;  %v4956_v48 = vld [vmem:[#allocation2 + $0x88] ss:$16 sps:$4 sm:$0xff]   ;;  %v4955_v50 = vld [vmem:[#allocation2 + $0xe0] ss:$16 sps:$4 sm:$0xff]  }
  0x45   :  { %264 = vmatpush1.bf16.msra.mxu1 %v4918_v17  ;;  %625 = vmatpush1.bf16.msra.mxu0 %v4923_v18  ;;  %v4957_v49 = vld [vmem:[#allocation2 + $0xac] ss:$16 sps:$4 sm:$0xff]   ;;  %v4959_v51 = vld [vmem:[#allocation2 + $0xa8] ss:$16 sps:$4 sm:$0xff]   ;;  %v6040_v56 = vld [vmem:[#allocation4 + $0x4] ss:$16 sps:$4 sm:$0xff]  }
  0x46   :  { %626 = vmatprep.subr.bf16.mxu0 %v4924_v21  ;;  %663 = vmatprep.subr.bf16.mxu1 %v6004_v22  ;;  %v4960_v52 = vld [vmem:[#allocation2 + $0xcc] ss:$16 sps:$4 sm:$0xff]   ;;  %v4962_v53 = vld [vmem:[#allocation2 + $0xc8] ss:$16 sps:$4 sm:$0xff]   ;;  %v6044_v58 = vld [vmem:[#allocation4] ss:$16 sps:$4 sm:$0xff]  }
  0x47   :  { %v4963_v54 = vld [vmem:[#allocation2 + $0xec] ss:$16 sps:$4 sm:$0xff]   ;;  %v4965_v55 = vld [vmem:[#allocation2 + $0xe8] ss:$16 sps:$4 sm:$0xff]   ;;  %v6052_v60 = vld [vmem:[#allocation4 + $0x24] ss:$16 sps:$4 sm:$0xff]  }
  0x48   :  { %4317 = vmatmul.mubr.msk.bf16.gmra.mrb[4].mxu0 %vm162_vm0, %v88_v23  ;;  %4321 = vmatmul.mubr.msk.bf16.vlgmr.msra.gmra.mrb[4].mxu1 %vm162_vm0, %v87_v10  ;;  %v6042_v57 = vld [vmem:[#allocation4 + $0xc] ss:$16 sps:$4 sm:$0xff]   ;;  %v6046_v59 = vld [vmem:[#allocation4 + $0x8] ss:$16 sps:$4 sm:$0xff]   ;;  %v6056_v62 = vld [vmem:[#allocation4 + $0x20] ss:$16 sps:$4 sm:$0xff]  }
  0x49   :  { %627 = vmatpush1.bf16.msra.mxu0 %v4928_v24  ;;  %664 = vmatpush1.bf16.msra.mxu1 %v4929_v25  ;;  %v6054_v61 = vld [vmem:[#allocation4 + $0x2c] ss:$16 sps:$4 sm:$0xff]   ;;  %v6058_v63 = vld [vmem:[#allocation4 + $0x28] ss:$16 sps:$4 sm:$0xff]   ;;  %v6064_v1 = vld [vmem:[#allocation4 + $0x44] ss:$16 sps:$4 sm:$0xff]  }
  0x4a   :  { %628 = vmatprep.subr.bf16.mxu0 %v4930_v26  ;;  %665 = vmatprep.subr.bf16.mxu1 %v4933_v27  ;;  %v6066_v2 = vld [vmem:[#allocation4 + $0x4c] ss:$16 sps:$4 sm:$0xff]   ;;  %v6068_v3 = vld [vmem:[#allocation4 + $0x40] ss:$16 sps:$4 sm:$0xff]   ;;  %v6070_v4 = vld [vmem:[#allocation4 + $0x48] ss:$16 sps:$4 sm:$0xff]  }
  0x4b   :  { %230 = vmatprep.mubr.bf16.mxu0 %v8175_v0  ;;  %303 = vmatprep.mubr.bf16.mxu1 %v8175_v0  ;;  %v6076_v5 = vld [vmem:[#allocation4 + $0x64] ss:$16 sps:$4 sm:$0xff]   ;;  %v6078_v6 = vld [vmem:[#allocation4 + $0x6c] ss:$16 sps:$4 sm:$0xff]   ;;  %v6080_v7 = vld [vmem:[#allocation4 + $0x60] ss:$16 sps:$4 sm:$0xff]  }
  0x4c   :  { %v6082_v8 = vld [vmem:[#allocation4 + $0x68] ss:$16 sps:$4 sm:$0xff]   ;;  %v6088_v9 = vld [vmem:[#allocation4 + $0x84] ss:$16 sps:$4 sm:$0xff]   ;;  %v6090_v10 = vld [vmem:[#allocation4 + $0x8c] ss:$16 sps:$4 sm:$0xff]  }
  0x4d   :  { %629 = vmatpush1.bf16.msra.mxu0 %v4932_v28  ;;  %666 = vmatpush1.bf16.msra.mxu1 %v4935_v29  ;;  %v6094_v12 = vld [vmem:[#allocation4 + $0x88] ss:$16 sps:$4 sm:$0xff]   ;;  %v6100_v14 = vld [vmem:[#allocation4 + $0xa4] ss:$16 sps:$4 sm:$0xff]   ;;  %v6102_v15 = vld [vmem:[#allocation4 + $0xac] ss:$16 sps:$4 sm:$0xff]  }
  0x4e   :  { %630 = vmatprep.subr.bf16.mxu0 %v4936_v32  ;;  %667 = vmatprep.subr.bf16.mxu1 %v4939_v33  ;;  %v6104_v16 = vld [vmem:[#allocation4 + $0xa0] ss:$16 sps:$4 sm:$0xff]   ;;  %v6106_v17 = vld [vmem:[#allocation4 + $0xa8] ss:$16 sps:$4 sm:$0xff]   ;;  %v6112_v18 = vld [vmem:[#allocation4 + $0xc4] ss:$16 sps:$4 sm:$0xff]  }
  0x4f   :  { %v6114_v19 = vld [vmem:[#allocation4 + $0xcc] ss:$16 sps:$4 sm:$0xff]   ;;  %v6116_v20 = vld [vmem:[#allocation4 + $0xc0] ss:$16 sps:$4 sm:$0xff]   ;;  %v6118_v21 = vld [vmem:[#allocation4 + $0xc8] ss:$16 sps:$4 sm:$0xff]  }
  0x50   :  { %4318 = vmatmul.mubr.msk.bf16.gmra.mrb[8].mxu0 %vm162_vm0, %v89_v34  ;;  %4322 = vmatmul.mubr.msk.bf16.gmra.mrb[8].mxu1 %vm162_vm0, %v88_v23  ;;  %v6124_v23 = vld [vmem:[#allocation4 + $0xe4] ss:$16 sps:$4 sm:$0xff]   ;;  %v6126_v24 = vld [vmem:[#allocation4 + $0xec] ss:$16 sps:$4 sm:$0xff]   ;;  %v6128_v25 = vld [vmem:[#allocation4 + $0xe0] ss:$16 sps:$4 sm:$0xff]  }
  0x51   :  { %631 = vmatpush1.bf16.msra.mxu0 %v4938_v35  ;;  %668 = vmatpush1.bf16.msra.mxu1 %v4941_v36  ;;  %v6130_v26 = vld [vmem:[#allocation4 + $0xe8] ss:$16 sps:$4 sm:$0xff]   ;;  %v6136_v27 = vld [vmem:[#allocation4 + $0x104] ss:$16 sps:$4 sm:$0xff]   ;;  %v6138_v28 = vld [vmem:[#allocation4 + $0x10c] ss:$16 sps:$4 sm:$0xff]  }
  0x52   :  { %632 = vmatprep.subr.bf16.mxu0 %v4942_v37  ;;  %240 = vmatprep.mubr.bf16.mxu0 %v8175_v0  ;;  %v6140_v29 = vld [vmem:[#allocation4 + $0x100] ss:$16 sps:$4 sm:$0xff]   ;;  %v6142_v30 = vld [vmem:[#allocation4 + $0x108] ss:$16 sps:$4 sm:$0xff]   ;;  %v6148_v31 = vld [vmem:[#allocation4 + $0x124] ss:$16 sps:$4 sm:$0xff]  }
  0x53   :  { %313 = vmatprep.mubr.bf16.mxu1 %v8175_v0  ;;  %669 = vmatprep.subr.bf16.mxu1 %v4945_v39  ;;  %v6150_v32 = vld [vmem:[#allocation4 + $0x12c] ss:$16 sps:$4 sm:$0xff]   ;;  %v6152_v33 = vld [vmem:[#allocation4 + $0x120] ss:$16 sps:$4 sm:$0xff]   ;;  %v6160_v35 = vld [vmem:[#allocation4 + $0x144] ss:$16 sps:$4 sm:$0xff]  }
  0x54   :  { %v6162_v36 = vld [vmem:[#allocation4 + $0x14c] ss:$16 sps:$4 sm:$0xff]   ;;  %v6164_v37 = vld [vmem:[#allocation4 + $0x140] ss:$16 sps:$4 sm:$0xff]   ;;  %v6172_v39 = vld [vmem:[#allocation4 + $0x164] ss:$16 sps:$4 sm:$0xff]  }
  0x55   :  { %633 = vmatpush1.bf16.msra.mxu0 %v4944_v38  ;;  %670 = vmatpush1.bf16.msra.mxu1 %v4949_v42  ;;  %8543 = vst [vmem:[#allocation9_spill] sm:$0xff] %v6164_v37  ;;  %v6166_v38 = vld [vmem:[#allocation4 + $0x148] ss:$16 sps:$4 sm:$0xff]   ;;  %8545 = vst [vmem:[#allocation11_spill] sm:$0xff] %v6172_v39  ;;  %v6174_v40 = vld [vmem:[#allocation4 + $0x16c] ss:$16 sps:$4 sm:$0xff]  }
  0x56   :  { %634 = vmatprep.subr.bf16.mxu0 %v4947_v43  ;;  %671 = vmatprep.subr.bf16.mxu1 %v4953_v44  ;;  %8544 = vst [vmem:[#allocation10_spill] sm:$0xff] %v6166_v38  ;;  %8546 = vst [vmem:[#allocation12_spill] sm:$0xff] %v6174_v40  ;;  %v6176_v41 = vld [vmem:[#allocation4 + $0x160] ss:$16 sps:$4 sm:$0xff]   ;;  %v6178_v42 = vld [vmem:[#allocation4 + $0x168] ss:$16 sps:$4 sm:$0xff]  }
  0x57   :  { %8547 = vst [vmem:[#allocation13_spill] sm:$0xff] %v6176_v41  ;;  %8548 = vst [vmem:[#allocation14_spill] sm:$0xff] %v6178_v42  ;;  %v6184_v43 = vld [vmem:[#allocation4 + $0x184] ss:$16 sps:$4 sm:$0xff]   ;;  %v6186_v44 = vld [vmem:[#allocation4 + $0x18c] ss:$16 sps:$4 sm:$0xff]  }
  0x58   :  { %4319 = vmatmul.mubr.msk.bf16.gmra.mrb[12].mxu0 %vm162_vm0, %v90_v46  ;;  %4323 = vmatmul.mubr.msk.bf16.gmra.mrb[12].mxu1 %vm162_vm0, %v89_v34  ;;  %v6154_v34 = vld [vmem:[#allocation4 + $0x128] ss:$16 sps:$4 sm:$0xff]   ;;  %8549 = vst [vmem:[#allocation15_spill] sm:$0xff] %v6184_v43  ;;  %8550 = vst [vmem:[#allocation16_spill] sm:$0xff] %v6186_v44 }
  0x59   :  { %635 = vmatpush1.bf16.msra.mxu0 %v4950_v45  ;;  %672 = vmatpush1.bf16.msra.mxu1 %v4956_v48  ;;  %v6188_v45 = vld [vmem:[#allocation4 + $0x180] ss:$16 sps:$4 sm:$0xff]   ;;  %v6198_v48 = vld [vmem:[#allocation4 + $0x1ac] ss:$16 sps:$4 sm:$0xff]  }
  0x5a   :  { %636 = vmatprep.subr.bf16.mxu0 %v4951_v47  ;;  %323 = vmatprep.mubr.bf16.mxu1 %v8175_v0  ;;  %8551 = vst [vmem:[#allocation17_spill] sm:$0xff] %v6188_v45  ;;  %v6196_v47 = vld [vmem:[#allocation4 + $0x1a4] ss:$16 sps:$4 sm:$0xff]   ;;  %8554 = vst [vmem:[#allocation20_spill] sm:$0xff] %v6198_v48 }
  0x5b   :  { %654 = vmatprep.mubr.bf16.mxu0 %v8175_v0  ;;  %673 = vmatprep.subr.bf16.mxu1 %v4957_v49  ;;  %8553 = vst [vmem:[#allocation19_spill] sm:$0xff] %v6196_v47  ;;  %v6200_v49 = vld [vmem:[#allocation4 + $0x1a0] ss:$16 sps:$4 sm:$0xff]  }
  0x5c   :  { %8555 = vst [vmem:[#allocation21_spill] sm:$0xff] %v6200_v49 }
  0x5d   :  { %637 = vmatpush1.bf16.msra.mxu0 %v4955_v50  ;;  %674 = vmatpush1.bf16.msra.mxu1 %v4959_v51  ;;  %v6202_v50 = vld [vmem:[#allocation4 + $0x1a8] ss:$16 sps:$4 sm:$0xff]   ;;  %v6204_v51 = vld [vmem:[#allocation4 + $0x1c4] ss:$16 sps:$4 sm:$0xff]  }
  0x5e   :  { %675 = vmatprep.subr.bf16.mxu1 %v4960_v52  ;;  %1054 = vmatprep.subr.bf16.mxu0 %v6040_v56  ;;  %8556 = vst [vmem:[#allocation22_spill] sm:$0xff] %v6202_v50  ;;  %8557 = vst [vmem:[#allocation23_spill] sm:$0xff] %v6204_v51  ;;  %v6206_v52 = vld [vmem:[#allocation4 + $0x1cc] ss:$16 sps:$4 sm:$0xff]  }
  0x5f   :  { %8558 = vst [vmem:[#allocation24_spill] sm:$0xff] %v6206_v52 }
  0x60   :  { %4324 = vmatmul.mubr.msk.bf16.gmra.mrb[16].mxu1 %vm162_vm0, %v90_v46  ;;  %655 = vmatmul.mubr.bf16.vlgmr.msra.gmra.mrb[16].mxu0 %v8175_v0  ;;  %v6190_v46 = vld [vmem:[#allocation4 + $0x188] ss:$16 sps:$4 sm:$0xff]  }
  0x61   :  { %333 = vmatprep.mubr.bf16.mxu1 %v8175_v0  ;;  %676 = vmatpush1.bf16.msra.mxu1 %v4962_v53  ;;  %8552 = vst [vmem:[#allocation18_spill] sm:$0xff] %v6190_v46  ;;  %v6212_v53 = vld [vmem:[#allocation4 + $0x1c0] ss:$16 sps:$4 sm:$0xff]  }
  0x62   :  { %677 = vmatprep.subr.bf16.mxu1 %v4963_v54  ;;  %1055 = vmatpush1.bf16.msra.mxu0 %v6044_v58  ;;  %8559 = vst [vmem:[#allocation25_spill] sm:$0xff] %v6212_v53  ;;  %v6214_v54 = vld [vmem:[#allocation4 + $0x1c8] ss:$16 sps:$4 sm:$0xff]  }
  0x63   :  { %1056 = vmatprep.subr.bf16.mxu0 %v6052_v60  ;;  %8560 = vst [vmem:[#allocation26_spill] sm:$0xff] %v6214_v54 }
  0x65   :  { %678 = vmatpush1.bf16.msra.mxu1 %v4965_v55  ;;  %v6218_v55 = vld [vmem:[#allocation4 + $0x1e4] ss:$16 sps:$4 sm:$0xff]  }
  0x66   :  { %1095 = vmatprep.subr.bf16.mxu1 %v6042_v57  ;;  %1057 = vmatpush1.bf16.msra.mxu0 %v6056_v62  ;;  %8561 = vst [vmem:[#allocation27_spill] sm:$0xff] %v6218_v55 }
  0x67   :  { %1058 = vmatprep.subr.bf16.mxu0 %v6064_v1 }
  0x68   :  { %4325 = vmatmul.mubr.msk.bf16.gmra.mrb[20].mxu1 %vm162_vm0, %v5981_v11  ;;  %v6092_v11 = vld [vmem:[#allocation4 + $0x80] ss:$16 sps:$4 sm:$0xff]  }
  0x69   :  { %695 = vmatprep.mubr.bf16.mxu1 %v8175_v0 }
  0x6a   :  { %1059 = vmatpush1.bf16.msra.mxu0 %v6068_v3 }
  0x6b   :  { %1060 = vmatprep.subr.bf16.mxu0 %v6076_v5 }
  0x6e   :  { %1061 = vmatpush1.bf16.msra.mxu0 %v6080_v7 }
  0x6f   :  { %1062 = vmatprep.subr.bf16.mxu0 %v6088_v9 }
  0x70   :  { %696 = vmatmul.mubr.bf16.vlgmr.msra.gmra.mrb[24].mxu1 %v8175_v0  ;;  %v6220_v0 = vld [vmem:[#allocation4 + $0x1ec] ss:$16 sps:$4 sm:$0xff]  }
  0x71   :  { %1096 = vmatpush1.bf16.msra.mxu1 %v6046_v59  ;;  %8562 = vst [vmem:[#allocation28_spill] sm:$0xff] %v6220_v0 }
  0x72   :  { %1097 = vmatprep.subr.bf16.mxu1 %v6054_v61  ;;  %1063 = vmatpush1.bf16.msra.mxu0 %v6092_v11 }
  0x73   :  { %1064 = vmatprep.subr.bf16.mxu0 %v6100_v14 }
  0x75   :  { %1098 = vmatpush1.bf16.msra.mxu1 %v6058_v63 }
  0x76   :  { %1099 = vmatprep.subr.bf16.mxu1 %v6066_v2  ;;  %1065 = vmatpush1.bf16.msra.mxu0 %v6104_v16 }
  0x77   :  { %1066 = vmatprep.subr.bf16.mxu0 %v6112_v18 }
  0x79   :  { %1100 = vmatpush1.bf16.msra.mxu1 %v6070_v4 }
  0x7a   :  { %1101 = vmatprep.subr.bf16.mxu1 %v6078_v6  ;;  %1067 = vmatpush1.bf16.msra.mxu0 %v6116_v20 }
  0x7b   :  { %1068 = vmatprep.subr.bf16.mxu0 %v6124_v23 }
  0x7d   :  { %1102 = vmatpush1.bf16.msra.mxu1 %v6082_v8 }
  0x7e   :  { %1103 = vmatprep.subr.bf16.mxu1 %v6090_v10  ;;  %1069 = vmatpush1.bf16.msra.mxu0 %v6128_v25 }
  0x7f   :  { %1070 = vmatprep.subr.bf16.mxu0 %v6136_v27 }
  0x81   :  { %1104 = vmatpush1.bf16.msra.mxu1 %v6094_v12 }
  0x82   :  { %1105 = vmatprep.subr.bf16.mxu1 %v6102_v15  ;;  %1071 = vmatpush1.bf16.msra.mxu0 %v6140_v29 }
  0x83   :  { %1072 = vmatprep.subr.bf16.mxu0 %v6148_v31 }
  0x85   :  { %1106 = vmatpush1.bf16.msra.mxu1 %v6106_v17 }
  0x86   :  { %1107 = vmatprep.subr.bf16.mxu1 %v6114_v19  ;;  %1073 = vmatpush1.bf16.msra.mxu0 %v6152_v33 }
  0x87   :  { %1074 = vmatprep.subr.bf16.mxu0 %v6160_v35 }
  0x89   :  { %1108 = vmatpush1.bf16.msra.mxu1 %v6118_v21 }
  0x8a   :  { %1109 = vmatprep.subr.bf16.mxu1 %v6126_v24  ;;  %1075 = vmatpush1.bf16.msra.mxu0 %v6164_v37 }
  0x8b   :  { %1076 = vmatprep.subr.bf16.mxu0 %v6172_v39 }
  0x8d   :  { %1110 = vmatpush1.bf16.msra.mxu1 %v6130_v26 }
  0x8e   :  { %1111 = vmatprep.subr.bf16.mxu1 %v6138_v28  ;;  %1077 = vmatpush1.bf16.msra.mxu0 %v6176_v41 }
  0x8f   :  { %1078 = vmatprep.subr.bf16.mxu0 %v6184_v43 }
  0x91   :  { %1112 = vmatpush1.bf16.msra.mxu1 %v6142_v30 }
  0x92   :  { %1113 = vmatprep.subr.bf16.mxu1 %v6150_v32  ;;  %1079 = vmatpush1.bf16.msra.mxu0 %v6188_v45  ;;  %v5851_v45 = vmov 0.0|0.0  }
  0x93   :  { %1080 = vmatprep.subr.bf16.mxu0 %v6196_v47  ;;  %1086 = vmatprep.mubr.bf16.mxu0 %v5851_v45 }
  0x94   :  { %1127 = vmatprep.mubr.bf16.mxu1 %v5851_v45  ;;  %v102_v45 = vlaneseq }
  0x95   :  { %1114 = vmatpush1.bf16.msra.mxu1 %v6154_v34 }
  0x96   :  { %1115 = vmatprep.subr.bf16.mxu1 %v6162_v36  ;;  %1081 = vmatpush1.bf16.msra.mxu0 %v6200_v49  ;;  %v6224_v49 = vld [vmem:[#allocation4 + $0x1e0] ss:$16 sps:$4 sm:$0xff]  }
  0x97   :  { %1082 = vmatprep.subr.bf16.mxu0 %v6204_v51  ;;  %8563 = vst [vmem:[#allocation29_spill] sm:$0xff] %v6224_v49  ;;  %v100_v51 = vld [vmem:[%s8167_s3] sm:$0xf] }
  0x99   :  { %1116 = vmatpush1.bf16.msra.mxu1 %v6166_v38 }
  0x9a   :  { %1117 = vmatprep.subr.bf16.mxu1 %v6174_v40  ;;  %1083 = vmatpush1.bf16.msra.mxu0 %v6212_v53  ;;  %v6234_v53 = vshrl.u32 %v102_v45, 7 }
  0x9b   :  { %1084 = vmatprep.subr.bf16.mxu0 %v6218_v55 }
  0x9c   :  { %8565 = vst [vmem:[#allocation31_spill] sm:$0xff] %v6234_v53  ;;  %v8200_v55 = vsub.s32 1, %v6234_v53 }
  0x9d   :  { %1118 = vmatpush1.bf16.msra.mxu1 %v6178_v42 }
  0x9e   :  { %1119 = vmatprep.subr.bf16.mxu1 %v6186_v44  ;;  %1085 = vmatpush1.bf16.msra.mxu0 %v6224_v49 }
  0x9f   :  { %1177 = vmatprep.subr.bf16.mxu0 %v5986_v13  ;;  %v6247_v13 = vrot.slane %v100_v51, %v8200_v55 }
  0xa1   :  { %1120 = vmatpush1.bf16.msra.mxu1 %v6190_v46 }
  0xa2   :  { %1121 = vmatprep.subr.bf16.mxu1 %v6198_v48 }
  0xa5   :  { %1122 = vmatpush1.bf16.msra.mxu1 %v6202_v50  ;;  %v6226_v50 = vld [vmem:[#allocation4 + $0x1e8] ss:$16 sps:$4 sm:$0xff]  }
  0xa6   :  { %1123 = vmatprep.subr.bf16.mxu1 %v6206_v52  ;;  %8564 = vst [vmem:[#allocation30_spill] sm:$0xff] %v6226_v50 }
  0xa9   :  { %1124 = vmatpush1.bf16.msra.mxu1 %v6214_v54  ;;  %v8198_v54 = vsub.s32 0, %v6234_v53 }
  0xaa   :  { %1125 = vmatprep.subr.bf16.mxu1 %v6220_v0 }
  0xab   :  { %v6243_v49 = vrot.slane %v100_v51, %v8198_v54 }
  0xad   :  { %1126 = vmatpush1.bf16.msra.mxu1 %v6226_v50 }
  0xae   :  { %1218 = vmatprep.subr.bf16.mxu1 %v6004_v22 }
 0x113   :  { %v6249_v22 = vpop.f32.mrb[0].mxu0  ;;  %v252_v45 = vpop.f32.mrb[0].mxu1 }
 0x114   :  { %v6252_v50 = vadd.f32 %v252_v45, %v6243_v49  ;;  %v214_v0 = vpop.f32.mrb[1].mxu0  ;;  %v254_v52 = vpop.f32.mrb[1].mxu1 }
 0x115   :  { %v6255_v47 = vadd.f32 %v254_v52, %v6247_v13  ;;  %v216_v48 = vpop.f32.mrb[2].mxu0  ;;  %v256_v46 = vpop.f32.mrb[2].mxu1  ;;  %v8212_v52 = vsub.s32 3, %v6234_v53 }
 0x116   :  { %8566 = vst [vmem:[#allocation32_spill] sm:$0xff] %v6252_v50  ;;  %v6258_v54 = vadd.f32 %v216_v48, %v6243_v49  ;;  %v6261_v43 = vadd.f32 %v256_v46, %v6243_v49  ;;  %v218_v55 = vpop.f32.mrb[3].mxu0  ;;  %v258_v44 = vpop.f32.mrb[3].mxu1  ;;  %v8207_v50 = vsub.s32 2, %v6234_v53 }
 0x117   :  { %8567 = vst [vmem:[#allocation33_spill] sm:$0xff] %v6255_v47  ;;  %v6264_v41 = vadd.f32 %v218_v55, %v6247_v13  ;;  %v6267_v45 = vadd.f32 %v258_v44, %v6247_v13 }
 0x118   :  { %8568 = vst [vmem:[#allocation34_spill] sm:$0xff] %v6258_v54  ;;  %8569 = vst [vmem:[#allocation35_spill] sm:$0xff] %v6261_v43  ;;  %v6278_v46 = vrot.slane %v100_v51, %v8207_v50 }
 0x119   :  { %8570 = vst [vmem:[#allocation36_spill] sm:$0xff] %v6264_v41  ;;  %8571 = vst [vmem:[#allocation37_spill] sm:$0xff] %v6267_v45  ;;  %v6287_v45 = vrot.slane %v100_v51, %v8212_v52 }
 0x11b   :  { %v222_v47 = vpop.f32.mrb[4].mxu0  ;;  %v6271_v42 = vpop.f32.mrb[4].mxu1 }
 0x11c   :  { %v6274_v48 = vadd.f32 %v222_v47, %v6243_v49  ;;  %v224_v43 = vpop.f32.mrb[5].mxu0  ;;  %v6280_v55 = vpop.f32.mrb[5].mxu1 }
 0x11d   :  { %v6283_v44 = vadd.f32 %v224_v43, %v6247_v13  ;;  %v226_v41 = vpop.f32.mrb[6].mxu0  ;;  %v299_v54 = vpop.f32.mrb[6].mxu1 }
 0x11e   :  { %8572 = vst [vmem:[#allocation38_spill] sm:$0xff] %v6274_v48  ;;  %v6290_v39 = vadd.f32 %v226_v41, %v6243_v49  ;;  %v6293_v47 = vadd.f32 %v299_v54, %v6278_v46  ;;  %v228_v50 = vpop.f32.mrb[7].mxu0  ;;  %v301_v48 = vpop.f32.mrb[7].mxu1 }
 0x11f   :  { %8573 = vst [vmem:[#allocation39_spill] sm:$0xff] %v6283_v44  ;;  %v6296_v40 = vadd.f32 %v228_v50, %v6247_v13  ;;  %v6299_v43 = vadd.f32 %v301_v48, %v6287_v45 }
 0x120   :  { %8574 = vst [vmem:[#allocation40_spill] sm:$0xff] %v6290_v39  ;;  %8575 = vst [vmem:[#allocation41_spill] sm:$0xff] %v6293_v47 }
 0x121   :  { %8576 = vst [vmem:[#allocation42_spill] sm:$0xff] %v6296_v40  ;;  %8577 = vst [vmem:[#allocation43_spill] sm:$0xff] %v6299_v43 }
 0x123   :  { %v232_v44 = vpop.f32.mrb[8].mxu0  ;;  %v305_v53 = vpop.f32.mrb[8].mxu1 }
 0x124   :  { %v6302_v51 = vadd.f32 %v232_v44, %v6243_v49  ;;  %v6305_v52 = vadd.f32 %v305_v53, %v6278_v46  ;;  %v234_v41 = vpop.f32.mrb[9].mxu0  ;;  %v307_v39 = vpop.f32.mrb[9].mxu1 }
 0x125   :  { %v6308_v54 = vadd.f32 %v234_v41, %v6247_v13  ;;  %v6311_v47 = vadd.f32 %v307_v39, %v6287_v45  ;;  %v236_v50 = vpop.f32.mrb[10].mxu0  ;;  %v309_v40 = vpop.f32.mrb[10].mxu1 }
 0x126   :  { %8578 = vst [vmem:[#allocation44_spill] sm:$0xff] %v6302_v51  ;;  %8579 = vst [vmem:[#allocation45_spill] sm:$0xff] %v6305_v52  ;;  %v6314_v48 = vadd.f32 %v236_v50, %v6243_v49  ;;  %v6317_v43 = vadd.f32 %v309_v40, %v6278_v46  ;;  %v238_v44 = vpop.f32.mrb[11].mxu0  ;;  %v311_v51 = vpop.f32.mrb[11].mxu1 }
 0x127   :  { %8580 = vst [vmem:[#allocation46_spill] sm:$0xff] %v6308_v54  ;;  %8581 = vst [vmem:[#allocation47_spill] sm:$0xff] %v6311_v47  ;;  %v6320_v53 = vadd.f32 %v238_v44, %v6247_v13  ;;  %v6323_v52 = vadd.f32 %v311_v51, %v6287_v45 }
 0x128   :  { %8582 = vst [vmem:[#allocation48_spill] sm:$0xff] %v6314_v48  ;;  %8583 = vst [vmem:[#allocation49_spill] sm:$0xff] %v6317_v43 }
 0x129   :  { %8584 = vst [vmem:[#allocation50_spill] sm:$0xff] %v6320_v53  ;;  %8585 = vst [vmem:[#allocation51_spill] sm:$0xff] %v6323_v52 }
 0x12b   :  { %v242_v41 = vpop.f32.mrb[12].mxu0  ;;  %v315_v54 = vpop.f32.mrb[12].mxu1 }
 0x12c   :  { %v6326_v39 = vadd.f32 %v242_v41, %v6243_v49  ;;  %v6329_v47 = vadd.f32 %v315_v54, %v6278_v46  ;;  %v244_v50 = vpop.f32.mrb[13].mxu0  ;;  %v317_v48 = vpop.f32.mrb[13].mxu1 }
 0x12d   :  { %v6332_v40 = vadd.f32 %v244_v50, %v6247_v13  ;;  %v6335_v43 = vadd.f32 %v317_v48, %v6287_v45  ;;  %v246_v44 = vpop.f32.mrb[14].mxu0  ;;  %v319_v53 = vpop.f32.mrb[14].mxu1  ;;  %v213_v48 = vadd.f32 %v6249_v22, %v6243_v49  ;;  %v215_v50 = vadd.f32 %v214_v0, %v6247_v13 }
 0x12e   :  { %8586 = vst [vmem:[#allocation52_spill] sm:$0xff] %v6326_v39  ;;  %8587 = vst [vmem:[#allocation53_spill] sm:$0xff] %v6329_v47  ;;  %v6338_v51 = vadd.f32 %v246_v44, %v6243_v49  ;;  %v6341_v52 = vadd.f32 %v319_v53, %v6278_v46  ;;  %v248_v41 = vpop.f32.mrb[15].mxu0  ;;  %v321_v39 = vpop.f32.mrb[15].mxu1 }
 0x12f   :  { %8588 = vst [vmem:[#allocation54_spill] sm:$0xff] %v6332_v40  ;;  %8589 = vst [vmem:[#allocation55_spill] sm:$0xff] %v6335_v43  ;;  %v6344_v54 = vadd.f32 %v248_v41, %v6247_v13  ;;  %v6347_v47 = vadd.f32 %v321_v39, %v6287_v45 }
 0x130   :  { %8590 = vst [vmem:[#allocation56_spill] sm:$0xff] %v6338_v51  ;;  %8591 = vst [vmem:[#allocation57_spill] sm:$0xff] %v6341_v52 }
 0x131   :  { %8592 = vst [vmem:[#allocation58_spill] sm:$0xff] %v6344_v54  ;;  %8593 = vst [vmem:[#allocation59_spill] sm:$0xff] %v6347_v47 }
 0x133   :  { %v325_v40 = vpop.f32.mrb[16].mxu1  ;;  %v656_v43 = vpop.f32.mrb[16].mxu0 }
 0x134   :  { %v6353_v44 = vadd.f32 %v325_v40, %v6278_v46  ;;  %v704_v53 = vadd.f32 %v656_v43, %v213_v48  ;;  %v327_v51 = vpop.f32.mrb[17].mxu1  ;;  %v658_v52 = vpop.f32.mrb[17].mxu0 }
 0x135   :  { %v6356_v37 = vadd.f32 %v327_v51, %v6287_v45  ;;  %v705_v41 = vadd.f32 %v658_v52, %v215_v50  ;;  %v329_v54 = vpop.f32.mrb[18].mxu1  ;;  %v660_v39 = vpop.f32.mrb[18].mxu0 }
 0x136   :  { %8594 = vst [vmem:[#allocation60_spill] sm:$0xff] %v6353_v44  ;;  %v4358_v47 = vmul.f32 -1.442695, %v704_v53  ;;  %v6359_v38 = vadd.f32 %v329_v54, %v6278_v46  ;;  %v331_v49 = vpop.f32.mrb[19].mxu1  ;;  %v661_v0 = vpop.f32.mrb[19].mxu0 }
 0x137   :  { %8595 = vst [vmem:[#allocation61_spill] sm:$0xff] %v6356_v37  ;;  %v4359_v13 = vmul.f32 -1.442695, %v705_v41  ;;  %v6362_v22 = vadd.f32 %v331_v49, %v6287_v45  ;;  %v298_v49 = vadd.f32 %v6280_v55, %v6287_v45  ;;  %v6443_v44 = vld [vmem:[#allocation2 + $0xa4] ss:$16 sps:$4 sm:$0xff]  }
 0x138   :  { %8596 = vst [vmem:[#allocation62_spill] sm:$0xff] %v6359_v38  ;;  %5150 = vpow2.f32 %v4358_v47  ;;  %v296_v47 = vadd.f32 %v6271_v42, %v6278_v46  ;;  %8612 = vst [vmem:[#allocation77_spill] sm:$0xff] %v6443_v44 }
 0x139   :  { %8597 = vst [vmem:[#allocation63_spill] sm:$0xff] %v6362_v22  ;;  %5152 = vpow2.f32 %v4359_v13 }
 0x13b   :  { %v335_v43 = vpop.f32.mrb[20].mxu1 }
 0x13c   :  { %v6365_v40 = vadd.f32 %v335_v43, %v6278_v46  ;;  %v337_v51 = vpop.f32.mrb[21].mxu1 }
 0x13d   :  { %v6368_v52 = vadd.f32 %v337_v51, %v6287_v45  ;;  %v339_v48 = vpop.f32.mrb[22].mxu1 }
 0x13e   :  { %8598 = vst [vmem:[#allocation64_spill] sm:$0xff] %v6365_v40  ;;  %v6371_v54 = vadd.f32 %v339_v48, %v6278_v46  ;;  %v341_v50 = vpop.f32.mrb[23].mxu1 }
 0x13f   :  { %8599 = vst [vmem:[#allocation65_spill] sm:$0xff] %v6368_v52  ;;  %v6374_v53 = vadd.f32 %v341_v50, %v6287_v45 }
 0x140   :  { %8600 = vst [vmem:[#allocation66_spill] sm:$0xff] %v6371_v54 }
 0x141   :  { %8601 = vst [vmem:[#allocation67_spill] sm:$0xff] %v6374_v53 }
 0x142   :  { %v5151_v41 = vpop.eup %5150 }
 0x143   :  { %v5153_v39 = vpop.eup %5152  ;;  %v717_v0 = vadd.f32 1.0, %v5151_v41  ;;  %v697_v13 = vpop.f32.mrb[24].mxu1 }
 0x144   :  { %v718_v43 = vadd.f32 1.0, %v5153_v39  ;;  %v706_v51 = vadd.f32 %v697_v13, %v296_v47  ;;  %v699_v52 = vpop.f32.mrb[25].mxu1  ;;  %v6401_v39 = vld [vmem:[#allocation2 + $0x20] ss:$16 sps:$4 sm:$0xff]   ;;  %v6410_v13 = vld [vmem:[#allocation2 + $0x4c] ss:$16 sps:$4 sm:$0xff]  }
 0x145   :  { %5154 = vrcp.f32 %v717_v0  ;;  %v707_v48 = vadd.f32 %v699_v52, %v298_v49  ;;  %v701_v54 = vpop.f32.mrb[26].mxu1  ;;  %8605 = vst [vmem:[#allocation70_spill] sm:$0xff] %v6401_v39  ;;  %v6404_v49 = vld [vmem:[#allocation2 + $0x28] ss:$16 sps:$4 sm:$0xff]   ;;  %v6407_v0 = vld [vmem:[#allocation2 + $0x44] ss:$16 sps:$4 sm:$0xff]  }
 0x146   :  { %5156 = vrcp.f32 %v718_v43  ;;  %v4360_v40 = vmul.f32 -1.442695, %v706_v51  ;;  %v702_v50 = vpop.f32.mrb[27].mxu1  ;;  %8606 = vst [vmem:[#allocation71_spill] sm:$0xff] %v6407_v0  ;;  %v6413_v43 = vld [vmem:[#allocation2 + $0x40] ss:$16 sps:$4 sm:$0xff]  }
 0x147   :  { %5158 = vtanh.f32 %v707_v48  ;;  %8607 = vst [vmem:[#allocation72_spill] sm:$0xff] %v6413_v43  ;;  %v6416_v51 = vld [vmem:[#allocation2 + $0x48] ss:$16 sps:$4 sm:$0xff]   ;;  %v6419_v48 = vld [vmem:[#allocation2 + $0x64] ss:$16 sps:$4 sm:$0xff]  }
 0x148   :  { %5160 = vpow2.f32 %v4360_v40  ;;  %v6387_v40 = vld [vmem:[#allocation2] ss:$16 sps:$4 sm:$0xff]   ;;  %8608 = vst [vmem:[#allocation73_spill] sm:$0xff] %v6419_v48  ;;  %v6422_v50 = vld [vmem:[#allocation2 + $0x6c] ss:$16 sps:$4 sm:$0xff]  }
 0x149   :  { %8602 = vst [vmem:[#allocation68_spill] sm:$0xff] %v6387_v40 }
 0x14f   :  { %v5155_v53 = vpop.eup %5154 }
 0x150   :  { %v5157_v22 = vpop.eup %5156 }
 0x151   :  { %v5159_v42 = vpop.eup %5158  ;;  %v727_v46 = vmul.f32 0.0, %v5157_v22  ;;  %v6390_v22 = vld [vmem:[#allocation2 + $0x8] ss:$16 sps:$4 sm:$0xff]  }
 0x152   :  { %v5161_v38 = vpop.eup %5160  ;;  %v728_v37 = vmul.f32 %v5159_v42, %v5155_v53  ;;  %v8604_v53 = vmov 0   ;;  %v6425_v42 = vld [vmem:[#allocation2 + $0x60] ss:$16 sps:$4 sm:$0xff]  }
 0x153   :  { %v719_v45 = vadd.f32 1.0, %v5161_v38  ;;  %v6396_v38 = vld [vmem:[#allocation2 + $0x2c] ss:$16 sps:$4 sm:$0xff]   ;;  %8609 = vst [vmem:[#allocation74_spill] sm:$0xff] %v6425_v42 }
 0x154   :  { %v6380_v55 = vadd.f32 %v728_v37, %v727_v46  ;;  %v6393_v37 = vld [vmem:[#allocation2 + $0x24] ss:$16 sps:$4 sm:$0xff]   ;;  %v6428_v46 = vld [vmem:[#allocation2 + $0x68] ss:$16 sps:$4 sm:$0xff]  }
 0x155   :  { %5162 = vrcp.f32 %v719_v45  ;;  %8603 = vst [vmem:[#allocation69_spill] sm:$0xff] %v6393_v37  ;;  %v6431_v45 = vld [vmem:[#allocation2 + $0x84] ss:$16 sps:$4 sm:$0xff]  }
 0x156   :  { %5164 = vtanh.f32 %v6380_v55  ;;  %8610 = vst [vmem:[#allocation75_spill] sm:$0xff] %v6431_v45 }
 0x15f   :  { %v5163_v41 = vpop.eup %5162 }
 0x160   :  { %v5165_v52 = vpop.eup %5164 }
 0x161   :  { %v731_v54 = vmul.f32 %v5165_v52, %v5163_v41  ;;  %v6434_v41 = vld [vmem:[#allocation2 + $0x8c] ss:$16 sps:$4 sm:$0xff]   ;;  %v6437_v52 = vld [vmem:[#allocation2 + $0x80] ss:$16 sps:$4 sm:$0xff]  }
 0x162   :  { %8611 = vst [vmem:[#allocation76_spill] sm:$0xff] %v6437_v52 }
 0x163   :  { %v6383_v47 = vpack.c.bf16 %v731_v54, %v731_v54  ;;  %v6440_v54 = vld [vmem:[#allocation2 + $0x88] ss:$16 sps:$4 sm:$0xff]  }
 0x165   :  { %1087 = vmatmul.mubr.bf16.vlgmr.msra.gmra.mrb[20].mxu0 %v6383_v47  ;;  %1128 = vmatmul.mubr.bf16.vlgmr.msra.gmra.mrb[28].mxu1 %v6383_v47 }
 0x166   :  { %1178 = vmatpush1.bf16.msra.mxu0 %v6387_v40  ;;  %1219 = vmatpush1.bf16.msra.mxu1 %v6390_v22 }
 0x167   :  { %1179 = vmatprep.subr.bf16.mxu0 %v6393_v37  ;;  %1220 = vmatprep.subr.bf16.mxu1 %v6396_v38  ;;  %v6476_v37 = vld [vmem:[#allocation2 + $0xe8] ss:$16 sps:$4 sm:$0xff]  }
 0x168   :  { %1209 = vmatprep.mubr.bf16.mxu0 %v8604_v53  ;;  %1250 = vmatprep.mubr.bf16.mxu1 %v8604_v53 }
 0x16a   :  { %1180 = vmatpush1.bf16.msra.mxu0 %v6401_v39  ;;  %1221 = vmatpush1.bf16.msra.mxu1 %v6404_v49  ;;  %v6470_v39 = vld [vmem:[#allocation2 + $0xec] ss:$16 sps:$4 sm:$0xff]  }
 0x16b   :  { %1181 = vmatprep.subr.bf16.mxu0 %v6407_v0  ;;  %1222 = vmatprep.subr.bf16.mxu1 %v6410_v13  ;;  %v6464_v0 = vld [vmem:[#allocation2 + $0xc8] ss:$16 sps:$4 sm:$0xff]  }
 0x16e   :  { %1182 = vmatpush1.bf16.msra.mxu0 %v6413_v43  ;;  %1223 = vmatpush1.bf16.msra.mxu1 %v6416_v51  ;;  %v6458_v43 = vld [vmem:[#allocation2 + $0xcc] ss:$16 sps:$4 sm:$0xff]  }
 0x16f   :  { %1183 = vmatprep.subr.bf16.mxu0 %v6419_v48  ;;  %1224 = vmatprep.subr.bf16.mxu1 %v6422_v50  ;;  %v6452_v48 = vld [vmem:[#allocation2 + $0xa8] ss:$16 sps:$4 sm:$0xff]  }
 0x172   :  { %1184 = vmatpush1.bf16.msra.mxu0 %v6425_v42  ;;  %1225 = vmatpush1.bf16.msra.mxu1 %v6428_v46  ;;  %v6446_v42 = vld [vmem:[#allocation2 + $0xac] ss:$16 sps:$4 sm:$0xff]  }
 0x173   :  { %1185 = vmatprep.subr.bf16.mxu0 %v6431_v45  ;;  %1226 = vmatprep.subr.bf16.mxu1 %v6434_v41  ;;  %v6449_v45 = vld [vmem:[#allocation2 + $0xa0] ss:$16 sps:$4 sm:$0xff]  }
 0x174   :  { %8613 = vst [vmem:[#allocation78_spill] sm:$0xff] %v6449_v45 }
 0x176   :  { %1186 = vmatpush1.bf16.msra.mxu0 %v6437_v52  ;;  %1227 = vmatpush1.bf16.msra.mxu1 %v6440_v54  ;;  %v6455_v52 = vld [vmem:[#allocation2 + $0xc4] ss:$16 sps:$4 sm:$0xff]  }
 0x177   :  { %1187 = vmatprep.subr.bf16.mxu0 %v6443_v44  ;;  %1228 = vmatprep.subr.bf16.mxu1 %v6446_v42  ;;  %8614 = vst [vmem:[#allocation79_spill] sm:$0xff] %v6455_v52  ;;  %v6461_v44 = vld [vmem:[#allocation2 + $0xc0] ss:$16 sps:$4 sm:$0xff]  }
 0x178   :  { %8615 = vst [vmem:[#allocation80_spill] sm:$0xff] %v6461_v44 }
 0x17a   :  { %1188 = vmatpush1.bf16.msra.mxu0 %v6449_v45  ;;  %1229 = vmatpush1.bf16.msra.mxu1 %v6452_v48  ;;  %v6467_v45 = vld [vmem:[#allocation2 + $0xe4] ss:$16 sps:$4 sm:$0xff]  }
 0x17b   :  { %1189 = vmatprep.subr.bf16.mxu0 %v6455_v52  ;;  %1230 = vmatprep.subr.bf16.mxu1 %v6458_v43  ;;  %8616 = vst [vmem:[#allocation81_spill] sm:$0xff] %v6467_v45  ;;  %v6473_v52 = vld [vmem:[#allocation2 + $0xe0] ss:$16 sps:$4 sm:$0xff]  }
 0x17c   :  { %8617 = vst [vmem:[#allocation82_spill] sm:$0xff] %v6473_v52 }
 0x17e   :  { %1190 = vmatpush1.bf16.msra.mxu0 %v6461_v44  ;;  %1231 = vmatpush1.bf16.msra.mxu1 %v6464_v0 }
 0x17f   :  { %1191 = vmatprep.subr.bf16.mxu0 %v6467_v45  ;;  %1232 = vmatprep.subr.bf16.mxu1 %v6470_v39 }
 0x182   :  { %1192 = vmatpush1.bf16.msra.mxu0 %v6473_v52  ;;  %1233 = vmatpush1.bf16.msra.mxu1 %v6476_v37 }
 0x183   :  { %1329 = vmatprep.subr.bf16.mxu1 %v6042_v57  ;;  %1288 = vmatprep.subr.bf16.mxu0 %v6040_v56  ;;  %v8618_v56 = vld [vmem:[#allocation10_spill] sm:$0xff] }
 0x185   :  { %1210 = vmatmul.mubr.bf16.vlgmr.msra.gmra.mrb[24].mxu0 %v6383_v47  ;;  %1251 = vmatmul.mubr.bf16.vlgmr.msra.gmra.mrb[32].mxu1 %v6383_v47  ;;  %v8639_v47 = vld [vmem:[#allocation29_spill] sm:$0xff] }
 0x186   :  { %1330 = vmatpush1.bf16.msra.mxu1 %v6046_v59  ;;  %1289 = vmatpush1.bf16.msra.mxu0 %v6044_v58  ;;  %v8619_v58 = vld [vmem:[#allocation9_spill] sm:$0xff] }
 0x187   :  { %1331 = vmatprep.subr.bf16.mxu1 %v6054_v61  ;;  %1290 = vmatprep.subr.bf16.mxu0 %v6052_v60  ;;  %v8620_v60 = vld [vmem:[#allocation12_spill] sm:$0xff] }
 0x18a   :  { %1332 = vmatpush1.bf16.msra.mxu1 %v6058_v63  ;;  %1291 = vmatpush1.bf16.msra.mxu0 %v6056_v62  ;;  %v8621_v62 = vld [vmem:[#allocation11_spill] sm:$0xff] }
 0x18b   :  { %1333 = vmatprep.subr.bf16.mxu1 %v6066_v2  ;;  %1292 = vmatprep.subr.bf16.mxu0 %v6064_v1  ;;  %v8622_v1 = vld [vmem:[#allocation14_spill] sm:$0xff] }
 0x18e   :  { %1334 = vmatpush1.bf16.msra.mxu1 %v6070_v4  ;;  %1293 = vmatpush1.bf16.msra.mxu0 %v6068_v3  ;;  %v8623_v3 = vld [vmem:[#allocation13_spill] sm:$0xff] }
 0x18f   :  { %1335 = vmatprep.subr.bf16.mxu1 %v6078_v6  ;;  %1294 = vmatprep.subr.bf16.mxu0 %v6076_v5  ;;  %v8624_v5 = vld [vmem:[#allocation16_spill] sm:$0xff] }
 0x192   :  { %1336 = vmatpush1.bf16.msra.mxu1 %v6082_v8  ;;  %1295 = vmatpush1.bf16.msra.mxu0 %v6080_v7  ;;  %v8625_v7 = vld [vmem:[#allocation15_spill] sm:$0xff] }
 0x193   :  { %1337 = vmatprep.subr.bf16.mxu1 %v6090_v10  ;;  %1296 = vmatprep.subr.bf16.mxu0 %v6088_v9  ;;  %v8626_v9 = vld [vmem:[#allocation18_spill] sm:$0xff] }
 0x196   :  { %1338 = vmatpush1.bf16.msra.mxu1 %v6094_v12  ;;  %1297 = vmatpush1.bf16.msra.mxu0 %v6092_v11  ;;  %v8627_v11 = vld [vmem:[#allocation17_spill] sm:$0xff] }
 0x197   :  { %1339 = vmatprep.subr.bf16.mxu1 %v6102_v15  ;;  %1298 = vmatprep.subr.bf16.mxu0 %v6100_v14  ;;  %v8628_v14 = vld [vmem:[#allocation20_spill] sm:$0xff] }
 0x19a   :  { %1340 = vmatpush1.bf16.msra.mxu1 %v6106_v17  ;;  %1299 = vmatpush1.bf16.msra.mxu0 %v6104_v16  ;;  %v8629_v16 = vld [vmem:[#allocation19_spill] sm:$0xff] }
 0x19b   :  { %1341 = vmatprep.subr.bf16.mxu1 %v6114_v19  ;;  %1300 = vmatprep.subr.bf16.mxu0 %v6112_v18  ;;  %v8630_v18 = vld [vmem:[#allocation22_spill] sm:$0xff] }
 0x19e   :  { %1342 = vmatpush1.bf16.msra.mxu1 %v6118_v21  ;;  %1301 = vmatpush1.bf16.msra.mxu0 %v6116_v20  ;;  %v8631_v20 = vld [vmem:[#allocation21_spill] sm:$0xff] }
 0x19f   :  { %1343 = vmatprep.subr.bf16.mxu1 %v6126_v24  ;;  %1302 = vmatprep.subr.bf16.mxu0 %v6124_v23  ;;  %v8632_v23 = vld [vmem:[#allocation24_spill] sm:$0xff] }
 0x1a2   :  { %1344 = vmatpush1.bf16.msra.mxu1 %v6130_v26  ;;  %1303 = vmatpush1.bf16.msra.mxu0 %v6128_v25  ;;  %v8633_v25 = vld [vmem:[#allocation23_spill] sm:$0xff] }
 0x1a3   :  { %1345 = vmatprep.subr.bf16.mxu1 %v6138_v28  ;;  %1304 = vmatprep.subr.bf16.mxu0 %v6136_v27  ;;  %v8634_v27 = vld [vmem:[#allocation26_spill] sm:$0xff] }
 0x1a6   :  { %1346 = vmatpush1.bf16.msra.mxu1 %v6142_v30  ;;  %1305 = vmatpush1.bf16.msra.mxu0 %v6140_v29  ;;  %v8635_v29 = vld [vmem:[#allocation25_spill] sm:$0xff] }
 0x1a7   :  { %1347 = vmatprep.subr.bf16.mxu1 %v6150_v32  ;;  %1306 = vmatprep.subr.bf16.mxu0 %v6148_v31  ;;  %v8636_v31 = vld [vmem:[#allocation28_spill] sm:$0xff] }
 0x1aa   :  { %1348 = vmatpush1.bf16.msra.mxu1 %v6154_v34  ;;  %1307 = vmatpush1.bf16.msra.mxu0 %v6152_v33  ;;  %v8637_v33 = vld [vmem:[#allocation27_spill] sm:$0xff] }
 0x1ab   :  { %1349 = vmatprep.subr.bf16.mxu1 %v6162_v36  ;;  %1308 = vmatprep.subr.bf16.mxu0 %v6160_v35  ;;  %v8638_v35 = vld [vmem:[#allocation30_spill] sm:$0xff] }
 0x1ae   :  { %1350 = vmatpush1.bf16.msra.mxu1 %v8618_v56  ;;  %1309 = vmatpush1.bf16.msra.mxu0 %v8619_v58  ;;  %v8240_v58 = vmov 0.0  }
 0x1af   :  { %1351 = vmatprep.subr.bf16.mxu1 %v8620_v60  ;;  %1310 = vmatprep.subr.bf16.mxu0 %v8621_v62  ;;  %v440_v62 = vld [vmem:[%s8169_s5] sm:$0xf] }
 0x1b2   :  { %1352 = vmatpush1.bf16.msra.mxu1 %v8622_v1  ;;  %1311 = vmatpush1.bf16.msra.mxu0 %v8623_v3  ;;  %v8640_v3 = vld [vmem:[#allocation31_spill] sm:$0xff] }
 0x1b3   :  { %1353 = vmatprep.subr.bf16.mxu1 %v8624_v5  ;;  %1312 = vmatprep.subr.bf16.mxu0 %v8625_v7  ;;  %v8641_v7 = vsub.s32 0, %v8640_v3 }
 0x1b6   :  { %1354 = vmatpush1.bf16.msra.mxu1 %v8626_v9  ;;  %1313 = vmatpush1.bf16.msra.mxu0 %v8627_v11  ;;  %v6552_v11 = vrot.slane %v440_v62, %v8641_v7  ;;  %v8645_v7 = vsub.s32 2, %v8640_v3 }
 0x1b7   :  { %1355 = vmatprep.subr.bf16.mxu1 %v8628_v14  ;;  %1314 = vmatprep.subr.bf16.mxu0 %v8629_v16  ;;  %v8643_v16 = vsub.s32 1, %v8640_v3 }
 0x1b8   :  { %8642 = vst [vmem:[#allocation10_spill] sm:$0xff] %v6552_v11 }
 0x1ba   :  { %1356 = vmatpush1.bf16.msra.mxu1 %v8630_v18  ;;  %1315 = vmatpush1.bf16.msra.mxu0 %v8631_v20  ;;  %v6556_v20 = vrot.slane %v440_v62, %v8643_v16  ;;  %v8647_v16 = vsub.s32 3, %v8640_v3 }
 0x1bb   :  { %1357 = vmatprep.subr.bf16.mxu1 %v8632_v23  ;;  %1316 = vmatprep.subr.bf16.mxu0 %v8633_v25  ;;  %v6562_v23 = vrot.slane %v440_v62, %v8645_v7 }
 0x1bc   :  { %8644 = vst [vmem:[#allocation9_spill] sm:$0xff] %v6556_v20  ;;  %v6566_v18 = vrot.slane %v440_v62, %v8647_v16 }
 0x1bd   :  { %8646 = vst [vmem:[#allocation12_spill] sm:$0xff] %v6562_v23 }
 0x1be   :  { %1358 = vmatpush1.bf16.msra.mxu1 %v8634_v27  ;;  %1317 = vmatpush1.bf16.msra.mxu0 %v8635_v29  ;;  %8648 = vst [vmem:[#allocation11_spill] sm:$0xff] %v6566_v18 }
 0x1bf   :  { %1359 = vmatprep.subr.bf16.mxu1 %v8636_v31  ;;  %1318 = vmatprep.subr.bf16.mxu0 %v8637_v33 }
 0x1c2   :  { %1360 = vmatpush1.bf16.msra.mxu1 %v8638_v35  ;;  %1319 = vmatpush1.bf16.msra.mxu0 %v8639_v47 }
 0x1c3   :  { %4691 = vmatprep.subr.bf16.mxu1 %v8240_v58  ;;  %4671 = vmatprep.subr.bf16.mxu0 %v8240_v58 }
 0x238   :  { %v1088_v25 = vpop.f32.mrb[20].mxu0  ;;  %v1129_v29 = vpop.f32.mrb[28].mxu1 }
 0x239   :  { %v1089_v33 = vadd.f32 %v1088_v25, %v6552_v11  ;;  %v1090_v47 = vpop.f32.mrb[21].mxu0  ;;  %v1131_v52 = vpop.f32.mrb[29].mxu1  ;;  %v1130_v25 = vadd.f32 %v1129_v29, %v6562_v23 }
 0x23a   :  { %v1091_v58 = vadd.f32 %v1090_v47, %v6556_v20  ;;  %v1092_v45 = vpop.f32.mrb[22].mxu0  ;;  %v1133_v44 = vpop.f32.mrb[30].mxu1  ;;  %v1132_v47 = vadd.f32 %v1131_v52, %v6566_v18  ;;  %v8649_v52 = vld [vmem:[#allocation34_spill] sm:$0xff] }
 0x23b   :  { %v4425_v40 = vmul.f32 -1.442695, %v1089_v33  ;;  %v1093_v35 = vpop.f32.mrb[23].mxu0  ;;  %v1134_v31 = vpop.f32.mrb[31].mxu1  ;;  %v4427_v45 = vmul.f32 -1.442695, %v1130_v25 }
 0x23c   :  { %v4426_v27 = vmul.f32 -1.442695, %v1091_v58 }
 0x23d   :  { %5166 = vpow2.f32 %v4425_v40 }
 0x23e   :  { %5168 = vpow2.f32 %v4426_v27 }
 0x23f   :  { %5170 = vtanh.f32 %v1132_v47 }
 0x240   :  { %5172 = vpow2.f32 %v4427_v45 }
 0x247   :  { %v5167_v44 = vpop.eup %5166 }
 0x248   :  { %v1145_v33 = vadd.f32 1.0, %v5167_v44  ;;  %v5169_v31 = vpop.eup %5168  ;;  %v8650_v44 = vld [vmem:[#allocation41_spill] sm:$0xff] }
 0x249   :  { %v1146_v40 = vadd.f32 1.0, %v5169_v31  ;;  %v5171_v35 = vpop.eup %5170 }
 0x24a   :  { %5174 = vrcp.f32 %v1145_v33  ;;  %v5173_v58 = vpop.eup %5172  ;;  %v8651_v33 = vld [vmem:[#allocation36_spill] sm:$0xff] }
 0x24b   :  { %5176 = vrcp.f32 %v1146_v40  ;;  %v1147_v62 = vadd.f32 1.0, %v5173_v58  ;;  %v8652_v40 = vld [vmem:[#allocation43_spill] sm:$0xff] }
 0x24d   :  { %5178 = vrcp.f32 %v1147_v62 }
 0x254   :  { %v5175_v27 = vpop.eup %5174 }
 0x255   :  { %v1156_v7 = vmul.f32 %v5175_v27, %v5171_v35  ;;  %v5177_v3 = vpop.eup %5176 }
 0x256   :  { %v1155_v16 = vmul.f32 0.0, %v5177_v3 }
 0x258   :  { %v1211_v20 = vpop.f32.mrb[24].mxu0  ;;  %v1252_v29 = vpop.f32.mrb[32].mxu1  ;;  %v6570_v23 = vadd.f32 %v1156_v7, %v1155_v16 }
 0x259   :  { %v1259_v25 = vadd.f32 %v1211_v20, %v8649_v52  ;;  %v1261_v47 = vadd.f32 %v1252_v29, %v8650_v44  ;;  %v1213_v18 = vpop.f32.mrb[25].mxu0  ;;  %v1254_v45 = vpop.f32.mrb[33].mxu1 }
 0x25a   :  { %v1260_v31 = vadd.f32 %v1213_v18, %v8651_v33  ;;  %v1262_v11 = vadd.f32 %v1254_v45, %v8652_v40  ;;  %v1215_v14 = vpop.f32.mrb[26].mxu0  ;;  %v1256_v35 = vpop.f32.mrb[34].mxu1  ;;  %5180 = vtanh.f32 %v6570_v23 }
 0x25b   :  { %v4428_v27 = vmul.f32 -1.442695, %v1259_v25  ;;  %v1216_v58 = vpop.f32.mrb[27].mxu0  ;;  %v1257_v3 = vpop.f32.mrb[35].mxu1  ;;  %v4430_v29 = vmul.f32 -1.442695, %v1261_v47 }
 0x25c   :  { %v4429_v7 = vmul.f32 -1.442695, %v1260_v31  ;;  %v5179_v20 = vpop.eup %5178 }
 0x25d   :  { %5182 = vpow2.f32 %v4428_v27 }
 0x25e   :  { %5184 = vpow2.f32 %v4429_v7 }
 0x25f   :  { %5186 = vtanh.f32 %v1262_v11 }
 0x260   :  { %5188 = vpow2.f32 %v4430_v29  ;;  %v5063_v29 = vld [vmem:[#allocation6 + $0x8] sm:$0xff]  }
 0x264   :  { %v5181_v16 = vpop.eup %5180 }
 0x265   :  { %v1159_v52 = vmul.f32 %v5181_v16, %v5179_v20  ;;  %v5062_v20 = vld [vmem:[#allocation6] sm:$0xff]  }
 0x267   :  { %v5183_v44 = vpop.eup %5182  ;;  %v1160_v18 = vpack.c.bf16 %v1159_v52, %v1159_v52  ;;  %v8653_v52 = vmov 0.0  }
 0x268   :  { %v1272_v62 = vadd.f32 1.0, %v5183_v44  ;;  %v5185_v33 = vpop.eup %5184  ;;  %v5065_v44 = vld [vmem:[#allocation6 + $0x18] sm:$0xff]  }
 0x269   :  { %v1273_v14 = vadd.f32 1.0, %v5185_v33  ;;  %1320 = vmatprep.mubr.bf16.mxu0 %v1160_v18  ;;  %1361 = vmatprep.mubr.bf16.mxu1 %v1160_v18  ;;  %v5187_v25 = vpop.eup %5186  ;;  %v5067_v33 = vld [vmem:[#allocation6 + $0x28] sm:$0xff]  }
 0x26a   :  { %5190 = vrcp.f32 %v1272_v62  ;;  %v5189_v45 = vpop.eup %5188  ;;  %v5066_v62 = vld [vmem:[#allocation6 + $0x20] sm:$0xff]  }
 0x26b   :  { %5192 = vrcp.f32 %v1273_v14  ;;  %v1274_v27 = vadd.f32 1.0, %v5189_v45  ;;  %v5068_v14 = vld [vmem:[#allocation6 + $0x30] sm:$0xff]   ;;  %v6596_v45 = vld [vmem:[#allocation2 + $0xc] ss:$16 sps:$4 sm:$0xff]  }
 0x26c   :  { %8654 = vst [vmem:[#allocation14_spill] sm:$0xff] %v6596_v45 }
 0x26d   :  { %5194 = vrcp.f32 %v1274_v27 }
 0x274   :  { %v5191_v31 = vpop.eup %5190 }
 0x275   :  { %v1283_v40 = vmul.f32 %v5191_v31, %v5187_v25  ;;  %v5193_v35 = vpop.eup %5192  ;;  %v5069_v25 = vld [vmem:[#allocation6 + $0x38] sm:$0xff]  }
 0x276   :  { %v1282_v47 = vmul.f32 %v5193_v35, %v6380_v55  ;;  %v5064_v55 = vld [vmem:[#allocation6 + $0x10] sm:$0xff]  }
 0x277   :  { %v5195_v11 = vpop.eup %5194 }
 0x278   :  { %v6578_v58 = vadd.f32 %v1283_v40, %v1282_v47 }
 0x27a   :  { %5196 = vtanh.f32 %v6578_v58 }
 0x284   :  { %v5197_v3 = vpop.eup %5196 }
 0x285   :  { %v1286_v7 = vmul.f32 %v5197_v3, %v5195_v11 }
 0x287   :  { %v6581_v16 = vpack.c.bf16 %v1286_v7, %v1286_v7 }
 0x289   :  { %1321 = vmatmul.mubr.bf16.vlgmr.msra.gmra.mrb[28].mxu0 %v6581_v16  ;;  %1362 = vmatmul.mubr.bf16.vlgmr.msra.gmra.mrb[36].mxu1 %v6581_v16 }
 0x28a   :  { %4692 = vmatpush3.bf16.msra.mxu1 %v5062_v20  ;;  %4707 = vmatprep.mubr.msk.bf16.mxu1 %vm5853_vm1, %v8653_v52 }
 0x28b   :  { %4693 = vmatprep.subr.bf16.mxu1 %v8653_v52  ;;  %4687 = vmatprep.mubr.msk.bf16.mxu0 %vm5853_vm1, %v8653_v52 }
 0x28e   :  { %4694 = vmatpush3.bf16.msra.mxu1 %v5063_v29 }
 0x28f   :  { %4695 = vmatprep.subr.bf16.mxu1 %v8653_v52 }
 0x292   :  { %4696 = vmatpush3.bf16.msra.mxu1 %v5064_v55 }
 0x293   :  { %4697 = vmatprep.subr.bf16.mxu1 %v8653_v52 }
 0x296   :  { %4698 = vmatpush3.bf16.msra.mxu1 %v5065_v44 }
 0x297   :  { %4699 = vmatprep.subr.bf16.mxu1 %v8653_v52 }
 0x29a   :  { %4700 = vmatpush3.bf16.msra.mxu1 %v5066_v62  ;;  %v8667_v62 = vld [vmem:[#allocation68_spill] sm:$0xff] }
 0x29b   :  { %4701 = vmatprep.subr.bf16.mxu1 %v8653_v52 }
 0x29e   :  { %4702 = vmatpush3.bf16.msra.mxu1 %v5067_v33  ;;  %v8669_v33 = vld [vmem:[#allocation70_spill] sm:$0xff] }
 0x29f   :  { %4703 = vmatprep.subr.bf16.mxu1 %v8653_v52 }
 0x2a2   :  { %4704 = vmatpush3.bf16.msra.mxu1 %v5068_v14  ;;  %v8670_v14 = vld [vmem:[#allocation71_spill] sm:$0xff] }
 0x2a3   :  { %4705 = vmatprep.subr.bf16.mxu1 %v8653_v52 }
 0x2a6   :  { %4706 = vmatpush3.bf16.msra.mxu1 %v5069_v25  ;;  %v8671_v25 = vld [vmem:[#allocation72_spill] sm:$0xff] }
 0x2a7   :  { %1629 = vmatprep.subr.bf16.mxu1 %v6596_v45 }
 0x2a9   :  { %4708 = vmatmul.mubr.bf16.vlgmr.msra.gmra.mrb[40].mxu1 %v1160_v18 }
 0x2aa   :  { %1630 = vmatpush1.bf16.msra.mxu1 %v6390_v22  ;;  %1661 = vmatprep.mubr.bf16.mxu1 %v8604_v53  ;;  %v8663_v22 = vld [vmem:[#allocation9_spill] sm:$0xff] }
 0x2ab   :  { %1631 = vmatprep.subr.bf16.mxu1 %v6396_v38 }
 0x2ae   :  { %1632 = vmatpush1.bf16.msra.mxu1 %v6404_v49 }
 0x2af   :  { %1633 = vmatprep.subr.bf16.mxu1 %v6410_v13 }
 0x2b2   :  { %1634 = vmatpush1.bf16.msra.mxu1 %v6416_v51  ;;  %v8664_v51 = vld [vmem:[#allocation12_spill] sm:$0xff] }
 0x2b3   :  { %1635 = vmatprep.subr.bf16.mxu1 %v6422_v50  ;;  %v8665_v50 = vld [vmem:[#allocation11_spill] sm:$0xff] }
 0x2b6   :  { %1636 = vmatpush1.bf16.msra.mxu1 %v6428_v46 }
 0x2b7   :  { %1637 = vmatprep.subr.bf16.mxu1 %v6434_v41 }
 0x2ba   :  { %1638 = vmatpush1.bf16.msra.mxu1 %v6440_v54 }
 0x2bb   :  { %1639 = vmatprep.subr.bf16.mxu1 %v6446_v42 }
 0x2be   :  { %1640 = vmatpush1.bf16.msra.mxu1 %v6452_v48 }
 0x2bf   :  { %1641 = vmatprep.subr.bf16.mxu1 %v6458_v43 }
 0x2c2   :  { %1642 = vmatpush1.bf16.msra.mxu1 %v6464_v0 }
 0x2c3   :  { %1643 = vmatprep.subr.bf16.mxu1 %v6470_v39 }
 0x2c6   :  { %1644 = vmatpush1.bf16.msra.mxu1 %v6476_v37 }
 0x2c7   :  { %1740 = vmatprep.subr.bf16.mxu1 %v6042_v57  ;;  %v5070_v57 = vld [vmem:[#allocation6 + $0x40] sm:$0xff]  }
 0x2c8   :  { %4672 = vmatpush3.bf16.msra.mxu0 %v5070_v57  ;;  %v8672_v57 = vld [vmem:[#allocation73_spill] sm:$0xff] }
 0x2c9   :  { %1662 = vmatmul.mubr.bf16.vlgmr.msra.gmra.mrb[44].mxu1 %v6581_v16  ;;  %4673 = vmatprep.subr.bf16.mxu0 %v8653_v52 }
 0x2ca   :  { %1741 = vmatpush1.bf16.msra.mxu1 %v6046_v59  ;;  %v5071_v59 = vld [vmem:[#allocation6 + $0x48] sm:$0xff]  }
 0x2cb   :  { %1742 = vmatprep.subr.bf16.mxu1 %v6054_v61  ;;  %v5072_v61 = vld [vmem:[#allocation6 + $0x50] sm:$0xff]  }
 0x2cc   :  { %4674 = vmatpush3.bf16.msra.mxu0 %v5071_v59  ;;  %v8673_v59 = vld [vmem:[#allocation74_spill] sm:$0xff] }
 0x2cd   :  { %4675 = vmatprep.subr.bf16.mxu0 %v8653_v52 }
 0x2ce   :  { %1743 = vmatpush1.bf16.msra.mxu1 %v6058_v63  ;;  %v5073_v63 = vld [vmem:[#allocation6 + $0x58] sm:$0xff]  }
 0x2cf   :  { %1744 = vmatprep.subr.bf16.mxu1 %v6066_v2  ;;  %v8655_v2 = vld [vmem:[#allocation20_spill] sm:$0xff] }
 0x2d0   :  { %4676 = vmatpush3.bf16.msra.mxu0 %v5072_v61 }
 0x2d1   :  { %4677 = vmatprep.subr.bf16.mxu0 %v8653_v52 }
 0x2d2   :  { %1745 = vmatpush1.bf16.msra.mxu1 %v6070_v4  ;;  %v5074_v4 = vld [vmem:[#allocation6 + $0x60] sm:$0xff]  }
 0x2d3   :  { %1746 = vmatprep.subr.bf16.mxu1 %v6078_v6  ;;  %v8656_v6 = vld [vmem:[#allocation22_spill] sm:$0xff] }
 0x2d4   :  { %4678 = vmatpush3.bf16.msra.mxu0 %v5073_v63  ;;  %v8674_v63 = vld [vmem:[#allocation75_spill] sm:$0xff] }
 0x2d5   :  { %4679 = vmatprep.subr.bf16.mxu0 %v8653_v52 }
 0x2d6   :  { %1747 = vmatpush1.bf16.msra.mxu1 %v6082_v8  ;;  %v5075_v8 = vld [vmem:[#allocation6 + $0x68] sm:$0xff]  }
 0x2d7   :  { %1748 = vmatprep.subr.bf16.mxu1 %v6090_v10  ;;  %v8657_v10 = vld [vmem:[#allocation24_spill] sm:$0xff] }
 0x2d8   :  { %4680 = vmatpush3.bf16.msra.mxu0 %v5074_v4 }
 0x2d9   :  { %4681 = vmatprep.subr.bf16.mxu0 %v8653_v52 }
 0x2da   :  { %1749 = vmatpush1.bf16.msra.mxu1 %v6094_v12  ;;  %v5076_v12 = vld [vmem:[#allocation6 + $0x70] sm:$0xff]  }
 0x2db   :  { %1750 = vmatprep.subr.bf16.mxu1 %v6102_v15  ;;  %v8658_v15 = vld [vmem:[#allocation26_spill] sm:$0xff] }
 0x2dc   :  { %4682 = vmatpush3.bf16.msra.mxu0 %v5075_v8  ;;  %v8676_v8 = vld [vmem:[#allocation47_spill] sm:$0xff] }
 0x2dd   :  { %4683 = vmatprep.subr.bf16.mxu0 %v8653_v52 }
 0x2de   :  { %1751 = vmatpush1.bf16.msra.mxu1 %v6106_v17  ;;  %v8659_v17 = vld [vmem:[#allocation28_spill] sm:$0xff] }
 0x2df   :  { %1752 = vmatprep.subr.bf16.mxu1 %v6114_v19  ;;  %v5077_v19 = vld [vmem:[#allocation6 + $0x78] sm:$0xff]  }
 0x2e0   :  { %4684 = vmatpush3.bf16.msra.mxu0 %v5076_v12 }
 0x2e1   :  { %4685 = vmatprep.subr.bf16.mxu0 %v8653_v52 }
 0x2e2   :  { %1753 = vmatpush1.bf16.msra.mxu1 %v6118_v21  ;;  %v8660_v21 = vld [vmem:[#allocation30_spill] sm:$0xff] }
 0x2e3   :  { %1754 = vmatprep.subr.bf16.mxu1 %v6126_v24  ;;  %v6655_v24 = vld [vmem:[#allocation2 + $0x4] ss:$16 sps:$4 sm:$0xff]  }
 0x2e4   :  { %8661 = vst [vmem:[#allocation13_spill] sm:$0xff] %v6655_v24  ;;  %4686 = vmatpush3.bf16.msra.mxu0 %v5077_v19  ;;  %v8678_v19 = vld [vmem:[#allocation77_spill] sm:$0xff] }
 0x2e5   :  { %1588 = vmatprep.subr.bf16.mxu0 %v6655_v24 }
 0x2e6   :  { %1755 = vmatpush1.bf16.msra.mxu1 %v6130_v26 }
 0x2e7   :  { %1756 = vmatprep.subr.bf16.mxu1 %v6138_v28 }
 0x2ea   :  { %1757 = vmatpush1.bf16.msra.mxu1 %v6142_v30  ;;  %v8662_v30 = vld [vmem:[#allocation10_spill] sm:$0xff] }
 0x2eb   :  { %1758 = vmatprep.subr.bf16.mxu1 %v6150_v32 }
 0x2ee   :  { %1759 = vmatpush1.bf16.msra.mxu1 %v6154_v34 }
 0x2ef   :  { %1760 = vmatprep.subr.bf16.mxu1 %v6162_v36 }
 0x2f2   :  { %1761 = vmatpush1.bf16.msra.mxu1 %v8618_v56 }
 0x2f3   :  { %1762 = vmatprep.subr.bf16.mxu1 %v8620_v60 }
 0x2f6   :  { %1763 = vmatpush1.bf16.msra.mxu1 %v8622_v1 }
 0x2f7   :  { %1764 = vmatprep.subr.bf16.mxu1 %v8624_v5 }
 0x2fa   :  { %1765 = vmatpush1.bf16.msra.mxu1 %v8626_v9 }
 0x2fb   :  { %1766 = vmatprep.subr.bf16.mxu1 %v8655_v2  ;;  %v8675_v2 = vld [vmem:[#allocation45_spill] sm:$0xff] }
 0x2fe   :  { %1767 = vmatpush1.bf16.msra.mxu1 %v8656_v6 }
 0x2ff   :  { %1768 = vmatprep.subr.bf16.mxu1 %v8657_v10 }
 0x302   :  { %1769 = vmatpush1.bf16.msra.mxu1 %v8658_v15  ;;  %v8677_v15 = vld [vmem:[#allocation76_spill] sm:$0xff] }
 0x303   :  { %1770 = vmatprep.subr.bf16.mxu1 %v8659_v17 }
 0x306   :  { %1771 = vmatpush1.bf16.msra.mxu1 %v8660_v21  ;;  %v8679_v21 = vld [vmem:[#allocation78_spill] sm:$0xff] }
 0x307   :  { %1912 = vmatprep.subr.bf16.mxu1 %v6655_v24 }
 0x35c   :  { %v1322_v26 = vpop.f32.mrb[28].mxu0  ;;  %v1363_v28 = vpop.f32.mrb[36].mxu1 }
 0x35d   :  { %v1323_v32 = vadd.f32 %v1322_v26, %v8662_v30  ;;  %v1324_v34 = vpop.f32.mrb[29].mxu0  ;;  %v1365_v36 = vpop.f32.mrb[37].mxu1  ;;  %v1364_v48 = vadd.f32 %v1363_v28, %v8664_v51  ;;  %v8680_v26 = vld [vmem:[#allocation79_spill] sm:$0xff]  ;;  %v8681_v28 = vld [vmem:[#allocation80_spill] sm:$0xff] }
 0x35e   :  { %v1325_v37 = vadd.f32 %v1324_v34, %v8663_v22  ;;  %v1326_v38 = vpop.f32.mrb[30].mxu0  ;;  %v1367_v39 = vpop.f32.mrb[38].mxu1  ;;  %v1366_v42 = vadd.f32 %v1365_v36, %v8665_v50  ;;  %v8683_v34 = vld [vmem:[#allocation82_spill] sm:$0xff]  ;;  %v6691_v36 = vld [vmem:[#allocation4 + $0x4] ss:$16 sps:$4 sm:$0xff]  }
 0x35f   :  { %v4431_v49 = vmul.f32 -1.442695, %v1323_v32  ;;  %v1327_v0 = vpop.f32.mrb[31].mxu0  ;;  %v1368_v13 = vpop.f32.mrb[39].mxu1  ;;  %v4433_v46 = vmul.f32 -1.442695, %v1364_v48 }
 0x360   :  { %v4432_v43 = vmul.f32 -1.442695, %v1325_v37  ;;  %v8682_v32 = vld [vmem:[#allocation81_spill] sm:$0xff]  ;;  %v8690_v50 = vld [vmem:[#allocation38_spill] sm:$0xff]  ;;  %v8691_v30 = vld [vmem:[#allocation39_spill] sm:$0xff] }
 0x361   :  { %5198 = vpow2.f32 %v4431_v49  ;;  %v6695_v37 = vld [vmem:[#allocation4] ss:$16 sps:$4 sm:$0xff]   ;;  %v6698_v38 = vld [vmem:[#allocation4 + $0x24] ss:$16 sps:$4 sm:$0xff]  }
 0x362   :  { %5200 = vpow2.f32 %v4432_v43  ;;  %v6701_v39 = vld [vmem:[#allocation4 + $0x20] ss:$16 sps:$4 sm:$0xff]   ;;  %v6704_v49 = vld [vmem:[#allocation4 + $0x44] ss:$16 sps:$4 sm:$0xff]  }
 0x363   :  { %5202 = vtanh.f32 %v1366_v42  ;;  %v6707_v0 = vld [vmem:[#allocation4 + $0x40] ss:$16 sps:$4 sm:$0xff]   ;;  %v6716_v43 = vld [vmem:[#allocation4 + $0x84] ss:$16 sps:$4 sm:$0xff]  }
 0x364   :  { %5204 = vpow2.f32 %v4433_v46  ;;  %v6713_v13 = vld [vmem:[#allocation4 + $0x60] ss:$16 sps:$4 sm:$0xff]   ;;  %v6722_v42 = vld [vmem:[#allocation4 + $0xa4] ss:$16 sps:$4 sm:$0xff]  }
 0x365   :  { %v6719_v48 = vld [vmem:[#allocation4 + $0x80] ss:$16 sps:$4 sm:$0xff]  }
 0x366   :  { %v6725_v46 = vld [vmem:[#allocation4 + $0xa0] ss:$16 sps:$4 sm:$0xff]  }
 0x36b   :  { %v5199_v41 = vpop.eup %5198 }
 0x36c   :  { %v1379_v54 = vadd.f32 1.0, %v5199_v41  ;;  %v5201_v56 = vpop.eup %5200  ;;  %v6728_v41 = vld [vmem:[#allocation4 + $0xc4] ss:$16 sps:$4 sm:$0xff]  }
 0x36d   :  { %v1380_v60 = vadd.f32 1.0, %v5201_v56  ;;  %v5203_v1 = vpop.eup %5202  ;;  %v6734_v56 = vld [vmem:[#allocation4 + $0xe4] ss:$16 sps:$4 sm:$0xff]  }
 0x36e   :  { %5206 = vrcp.f32 %v1379_v54  ;;  %v5205_v5 = vpop.eup %5204  ;;  %v6731_v54 = vld [vmem:[#allocation4 + $0xc0] ss:$16 sps:$4 sm:$0xff]  }
 0x36f   :  { %5208 = vrcp.f32 %v1380_v60  ;;  %v1381_v40 = vadd.f32 1.0, %v5205_v5  ;;  %v6737_v60 = vld [vmem:[#allocation4 + $0xe0] ss:$16 sps:$4 sm:$0xff]  }
 0x370   :  { %v6743_v5 = vld [vmem:[#allocation4 + $0x100] ss:$16 sps:$4 sm:$0xff]  }
 0x371   :  { %5210 = vrcp.f32 %v1381_v40  ;;  %v6755_v40 = vld [vmem:[#allocation4 + $0x140] ss:$16 sps:$4 sm:$0xff]  }
 0x378   :  { %v5207_v9 = vpop.eup %5206 }
 0x379   :  { %v1390_v18 = vmul.f32 %v5207_v9, %v5203_v1  ;;  %v5209_v31 = vpop.eup %5208  ;;  %v6740_v1 = vld [vmem:[#allocation4 + $0x104] ss:$16 sps:$4 sm:$0xff]  }
 0x37a   :  { %v1389_v35 = vmul.f32 %v5209_v31, %v6570_v23  ;;  %v8668_v23 = vld [vmem:[#allocation69_spill] sm:$0xff] }
 0x37b   :  { %v5211_v20 = vpop.eup %5210  ;;  %v6746_v9 = vld [vmem:[#allocation4 + $0x124] ss:$16 sps:$4 sm:$0xff]  }
 0x37c   :  { %v6664_v27 = vpop.f32.mrb[40].mxu1  ;;  %v6666_v47 = vadd.f32 %v1390_v18, %v1389_v35  ;;  %v6749_v18 = vld [vmem:[#allocation4 + $0x120] ss:$16 sps:$4 sm:$0xff]   ;;  %v6752_v31 = vld [vmem:[#allocation4 + $0x144] ss:$16 sps:$4 sm:$0xff]  }
 0x37d   :  { %v4709_v11 = vpop.f32.mrb[41].mxu1  ;;  %v6758_v35 = vld [vmem:[#allocation4 + $0x164] ss:$16 sps:$4 sm:$0xff]  }
 0x37e   :  { %8666 = vst [vmem:[#allocation16_spill] sm:$0xff] %v6666_v47  ;;  %v1585_v3 = vpop.f32.mrb[42].mxu1  ;;  %5212 = vtanh.f32 %v6666_v47  ;;  %v6761_v11 = vld [vmem:[#allocation4 + $0x160] ss:$16 sps:$4 sm:$0xff]  }
 0x37f   :  { %v4710_v7 = vpop.f32.mrb[43].mxu1  ;;  %v6764_v3 = vld [vmem:[#allocation4 + $0x184] ss:$16 sps:$4 sm:$0xff]  }
 0x380   :  { %v6767_v7 = vld [vmem:[#allocation4 + $0x180] ss:$16 sps:$4 sm:$0xff]  }
 0x388   :  { %v5213_v29 = vpop.eup %5212 }
 0x389   :  { %v1393_v55 = vmul.f32 %v5213_v29, %v5211_v20  ;;  %v6770_v20 = vld [vmem:[#allocation4 + $0x1a4] ss:$16 sps:$4 sm:$0xff]   ;;  %v6773_v29 = vld [vmem:[#allocation4 + $0x1a0] ss:$16 sps:$4 sm:$0xff]  }
 0x38a   :  { %8684 = vst [vmem:[#allocation15_spill] sm:$0xff] %v6770_v20  ;;  %8685 = vst [vmem:[#allocation18_spill] sm:$0xff] %v6773_v29 }
 0x38b   :  { %v1394_v44 = vpack.c.bf16 %v1393_v55, %v1393_v55  ;;  %v6776_v55 = vld [vmem:[#allocation4 + $0x1c4] ss:$16 sps:$4 sm:$0xff]  }
 0x38c   :  { %8686 = vst [vmem:[#allocation17_spill] sm:$0xff] %v6776_v55 }
 0x38d   :  { %4688 = vmatmul.mubr.bf16.vlgmr.msra.gmra.mrb[32].mxu0 %v1394_v44  ;;  %1772 = vmatprep.mubr.bf16.mxu1 %v1394_v44 }
 0x38e   :  { %1589 = vmatpush1.bf16.msra.mxu0 %v8667_v62  ;;  %1620 = vmatprep.mubr.bf16.mxu0 %v8604_v53 }
 0x38f   :  { %1590 = vmatprep.subr.bf16.mxu0 %v8668_v23 }
 0x392   :  { %1591 = vmatpush1.bf16.msra.mxu0 %v8669_v33 }
 0x393   :  { %1592 = vmatprep.subr.bf16.mxu0 %v8670_v14 }
 0x396   :  { %1593 = vmatpush1.bf16.msra.mxu0 %v8671_v25 }
 0x397   :  { %1594 = vmatprep.subr.bf16.mxu0 %v8672_v57 }
 0x39a   :  { %1595 = vmatpush1.bf16.msra.mxu0 %v8673_v59 }
 0x39b   :  { %1596 = vmatprep.subr.bf16.mxu0 %v8674_v63 }
 0x39c   :  { %v1663_v61 = vpop.f32.mrb[44].mxu1 }
 0x39d   :  { %v6679_v4 = vadd.f32 %v1663_v61, %v8675_v2  ;;  %v1665_v6 = vpop.f32.mrb[45].mxu1  ;;  %v6782_v61 = vld [vmem:[#allocation4 + $0x1e4] ss:$16 sps:$4 sm:$0xff]   ;;  %v6785_v2 = vld [vmem:[#allocation4 + $0x1e0] ss:$16 sps:$4 sm:$0xff]  }
 0x39e   :  { %v6682_v10 = vadd.f32 %v1665_v6, %v8676_v8  ;;  %v1667_v12 = vpop.f32.mrb[46].mxu1  ;;  %1597 = vmatpush1.bf16.msra.mxu0 %v8677_v15  ;;  %8688 = vst [vmem:[#allocation21_spill] sm:$0xff] %v6782_v61  ;;  %8689 = vst [vmem:[#allocation23_spill] sm:$0xff] %v6785_v2 }
 0x39f   :  { %v1668_v17 = vpop.f32.mrb[47].mxu1  ;;  %1598 = vmatprep.subr.bf16.mxu0 %v8678_v19 }
 0x3a2   :  { %1599 = vmatpush1.bf16.msra.mxu0 %v8679_v21 }
 0x3a3   :  { %1600 = vmatprep.subr.bf16.mxu0 %v8680_v26 }
 0x3a6   :  { %1601 = vmatpush1.bf16.msra.mxu0 %v8681_v28 }
 0x3a7   :  { %1602 = vmatprep.subr.bf16.mxu0 %v8682_v32 }
 0x3aa   :  { %1603 = vmatpush1.bf16.msra.mxu0 %v8683_v34 }
 0x3ab   :  { %1699 = vmatprep.subr.bf16.mxu0 %v6691_v36 }
 0x3ad   :  { %1621 = vmatmul.mubr.bf16.vlgmr.msra.gmra.mrb[36].mxu0 %v6581_v16  ;;  %v6710_v16 = vld [vmem:[#allocation4 + $0x64] ss:$16 sps:$4 sm:$0xff]  }
 0x3ae   :  { %1731 = vmatprep.mubr.bf16.mxu0 %v1394_v44  ;;  %1700 = vmatpush1.bf16.msra.mxu0 %v6695_v37  ;;  %v6779_v44 = vld [vmem:[#allocation4 + $0x1c0] ss:$16 sps:$4 sm:$0xff]  }
 0x3af   :  { %1701 = vmatprep.subr.bf16.mxu0 %v6698_v38  ;;  %8687 = vst [vmem:[#allocation19_spill] sm:$0xff] %v6779_v44 }
 0x3b2   :  { %1702 = vmatpush1.bf16.msra.mxu0 %v6701_v39 }
 0x3b3   :  { %1703 = vmatprep.subr.bf16.mxu0 %v6704_v49 }
 0x3b6   :  { %1704 = vmatpush1.bf16.msra.mxu0 %v6707_v0 }
 0x3b7   :  { %1705 = vmatprep.subr.bf16.mxu0 %v6710_v16 }
 0x3ba   :  { %1706 = vmatpush1.bf16.msra.mxu0 %v6713_v13 }
 0x3bb   :  { %1707 = vmatprep.subr.bf16.mxu0 %v6716_v43 }
 0x3be   :  { %1708 = vmatpush1.bf16.msra.mxu0 %v6719_v48 }
 0x3bf   :  { %1709 = vmatprep.subr.bf16.mxu0 %v6722_v42 }
 0x3c2   :  { %1710 = vmatpush1.bf16.msra.mxu0 %v6725_v46 }
 0x3c3   :  { %1711 = vmatprep.subr.bf16.mxu0 %v6728_v41 }
 0x3c6   :  { %1712 = vmatpush1.bf16.msra.mxu0 %v6731_v54 }
 0x3c7   :  { %1713 = vmatprep.subr.bf16.mxu0 %v6734_v56 }
 0x3ca   :  { %1714 = vmatpush1.bf16.msra.mxu0 %v6737_v60 }
 0x3cb   :  { %1715 = vmatprep.subr.bf16.mxu0 %v6740_v1 }
 0x3ce   :  { %1716 = vmatpush1.bf16.msra.mxu0 %v6743_v5 }
 0x3cf   :  { %1717 = vmatprep.subr.bf16.mxu0 %v6746_v9 }
 0x3d2   :  { %1718 = vmatpush1.bf16.msra.mxu0 %v6749_v18 }
 0x3d3   :  { %1719 = vmatprep.subr.bf16.mxu0 %v6752_v31 }
 0x3d6   :  { %1720 = vmatpush1.bf16.msra.mxu0 %v6755_v40 }
 0x3d7   :  { %1721 = vmatprep.subr.bf16.mxu0 %v6758_v35 }
 0x3da   :  { %1722 = vmatpush1.bf16.msra.mxu0 %v6761_v11 }
 0x3db   :  { %1723 = vmatprep.subr.bf16.mxu0 %v6764_v3 }
 0x3de   :  { %1724 = vmatpush1.bf16.msra.mxu0 %v6767_v7 }
 0x3df   :  { %1725 = vmatprep.subr.bf16.mxu0 %v6770_v20 }
 0x3e2   :  { %1726 = vmatpush1.bf16.msra.mxu0 %v6773_v29 }
 0x3e3   :  { %1727 = vmatprep.subr.bf16.mxu0 %v6776_v55 }
 0x3e6   :  { %1728 = vmatpush1.bf16.msra.mxu0 %v6779_v44 }
 0x3e7   :  { %1729 = vmatprep.subr.bf16.mxu0 %v6782_v61 }
 0x3ea   :  { %1730 = vmatpush1.bf16.msra.mxu0 %v6785_v2  ;;  %v4452_v2 = vmul.f32 -1.442695, %v6679_v4 }
 0x3eb   :  { %4711 = vmatprep.subr.bf16.mxu0 %v8653_v52 }
 0x460   :  { %v1494_v6 = vpop.f32.mrb[32].mxu0 }
 0x461   :  { %v6790_v8 = vadd.f32 %v6664_v27, %v1494_v6  ;;  %v4689_v12 = vpop.f32.mrb[33].mxu0 }
 0x462   :  { %v1497_v17 = vpop.f32.mrb[34].mxu0 }
 0x463   :  { %v4690_v24 = vpop.f32.mrb[35].mxu0 }
 0x480   :  { %v1622_v47 = vpop.f32.mrb[36].mxu0 }
 0x481   :  { %v1670_v51 = vadd.f32 %v1622_v47, %v8690_v50  ;;  %v1624_v22 = vpop.f32.mrb[37].mxu0 }
 0x482   :  { %v1671_v45 = vadd.f32 %v1624_v22, %v8691_v30  ;;  %v1626_v61 = vpop.f32.mrb[38].mxu0 }
 0x483   :  { %v4450_v44 = vmul.f32 -1.442695, %v1670_v51  ;;  %v1627_v55 = vpop.f32.mrb[39].mxu0 }
 0x484   :  { %v4451_v29 = vmul.f32 -1.442695, %v1671_v45 }
 0x485   :  { %5214 = vpow2.f32 %v4450_v44 }
 0x486   :  { %5216 = vpow2.f32 %v4451_v29 }
 0x487   :  { %5218 = vpow2.f32 %v4452_v2  ;;  %v8699_v2 = vld [vmem:[#allocation10_spill] sm:$0xff] }
 0x488   :  { %5220 = vtanh.f32 %v6682_v10 }
 0x48f   :  { %v5215_v20 = vpop.eup %5214 }
 0x490   :  { %v5217_v27 = vpop.eup %5216  ;;  %v1683_v6 = vadd.f32 1.0, %v5215_v20 }
 0x491   :  { %v1684_v24 = vadd.f32 1.0, %v5217_v27  ;;  %v5219_v50 = vpop.eup %5218 }
 0x492   :  { %5222 = vrcp.f32 %v1683_v6  ;;  %v5221_v47 = vpop.eup %5220  ;;  %v1685_v51 = vadd.f32 1.0, %v5219_v50  ;;  %v8700_v6 = vld [vmem:[#allocation9_spill] sm:$0xff] }
 0x493   :  { %5224 = vrcp.f32 %v1684_v24 }
 0x494   :  { %5226 = vrcp.f32 %v1685_v51 }
 0x49c   :  { %v5223_v30 = vpop.eup %5222 }
 0x49d   :  { %v5225_v22 = vpop.eup %5224  ;;  %v1694_v55 = vmul.f32 %v5223_v30, %v5221_v47 }
 0x49e   :  { %v1693_v45 = vmul.f32 %v5225_v22, %v6578_v58  ;;  %v5227_v4 = vpop.eup %5226  ;;  %v8692_v58 = vld [vmem:[#allocation15_spill] sm:$0xff] }
 0x4a0   :  { %v6797_v29 = vadd.f32 %v1694_v55, %v1693_v45  ;;  %v8701_v45 = vld [vmem:[#allocation12_spill] sm:$0xff] }
 0x4a2   :  { %5228 = vtanh.f32 %v6797_v29 }
 0x4ac   :  { %v5229_v20 = vpop.eup %5228 }
 0x4ad   :  { %v1697_v44 = vmul.f32 %v5229_v20, %v5227_v4  ;;  %v8702_v20 = vld [vmem:[#allocation11_spill] sm:$0xff] }
 0x4af   :  { %v6800_v10 = vpack.c.bf16 %v1697_v44, %v1697_v44 }
 0x4b1   :  { %1732 = vmatmul.mubr.bf16.vlgmr.msra.gmra.mrb[40].mxu0 %v6800_v10  ;;  %1773 = vmatmul.mubr.bf16.vlgmr.msra.gmra.mrb[48].mxu1 %v6800_v10 }
 0x4b2   :  { %1913 = vmatpush1.bf16.msra.mxu1 %v8667_v62  ;;  %1944 = vmatprep.mubr.bf16.mxu1 %v8604_v53  ;;  %v8693_v62 = vld [vmem:[#allocation18_spill] sm:$0xff] }
 0x4b3   :  { %1914 = vmatprep.subr.bf16.mxu1 %v8668_v23  ;;  %4727 = vmatprep.mubr.msk.bf16.mxu0 %vm5853_vm1, %v8653_v52  ;;  %v8694_v23 = vld [vmem:[#allocation17_spill] sm:$0xff] }
 0x4b6   :  { %1915 = vmatpush1.bf16.msra.mxu1 %v8669_v33  ;;  %v8695_v33 = vld [vmem:[#allocation19_spill] sm:$0xff] }
 0x4b7   :  { %1916 = vmatprep.subr.bf16.mxu1 %v8670_v14  ;;  %v8696_v14 = vld [vmem:[#allocation21_spill] sm:$0xff] }
 0x4ba   :  { %1917 = vmatpush1.bf16.msra.mxu1 %v8671_v25  ;;  %v8697_v25 = vld [vmem:[#allocation23_spill] sm:$0xff] }
 0x4bb   :  { %1918 = vmatprep.subr.bf16.mxu1 %v8672_v57  ;;  %v5078_v57 = vld [vmem:[#allocation6 + $0x80] sm:$0xff]  }
 0x4bc   :  { %4712 = vmatpush3.bf16.msra.mxu0 %v5078_v57 }
 0x4bd   :  { %4713 = vmatprep.subr.bf16.mxu0 %v8653_v52 }
 0x4be   :  { %1919 = vmatpush1.bf16.msra.mxu1 %v8673_v59  ;;  %v5079_v59 = vld [vmem:[#allocation6 + $0x88] sm:$0xff]  }
 0x4bf   :  { %1920 = vmatprep.subr.bf16.mxu1 %v8674_v63  ;;  %v5080_v63 = vld [vmem:[#allocation6 + $0x90] sm:$0xff]  }
 0x4c0   :  { %4714 = vmatpush3.bf16.msra.mxu0 %v5079_v59 }
 0x4c1   :  { %4715 = vmatprep.subr.bf16.mxu0 %v8653_v52 }
 0x4c2   :  { %1921 = vmatpush1.bf16.msra.mxu1 %v8677_v15  ;;  %v5081_v15 = vld [vmem:[#allocation6 + $0x98] sm:$0xff]  }
 0x4c3   :  { %1922 = vmatprep.subr.bf16.mxu1 %v8678_v19  ;;  %v5082_v19 = vld [vmem:[#allocation6 + $0xa0] sm:$0xff]  }
 0x4c4   :  { %4716 = vmatpush3.bf16.msra.mxu0 %v5080_v63 }
 0x4c5   :  { %4717 = vmatprep.subr.bf16.mxu0 %v8653_v52 }
 0x4c6   :  { %1923 = vmatpush1.bf16.msra.mxu1 %v8679_v21  ;;  %v5083_v21 = vld [vmem:[#allocation6 + $0xa8] sm:$0xff]  }
 0x4c7   :  { %1924 = vmatprep.subr.bf16.mxu1 %v8680_v26  ;;  %v5084_v26 = vld [vmem:[#allocation6 + $0xb0] sm:$0xff]  }
 0x4c8   :  { %4718 = vmatpush3.bf16.msra.mxu0 %v5081_v15 }
 0x4c9   :  { %4719 = vmatprep.subr.bf16.mxu0 %v8653_v52 }
 0x4ca   :  { %1925 = vmatpush1.bf16.msra.mxu1 %v8681_v28  ;;  %v5085_v28 = vld [vmem:[#allocation6 + $0xb8] sm:$0xff]  }
 0x4cb   :  { %1926 = vmatprep.subr.bf16.mxu1 %v8682_v32  ;;  %v8698_v32 = vld [vmem:[#allocation14_spill] sm:$0xff] }
 0x4cc   :  { %4720 = vmatpush3.bf16.msra.mxu0 %v5082_v19 }
 0x4cd   :  { %4721 = vmatprep.subr.bf16.mxu0 %v8653_v52 }
 0x4ce   :  { %1927 = vmatpush1.bf16.msra.mxu1 %v8683_v34 }
 0x4cf   :  { %2023 = vmatprep.subr.bf16.mxu1 %v6691_v36 }
 0x4d0   :  { %4722 = vmatpush3.bf16.msra.mxu0 %v5083_v21 }
 0x4d1   :  { %1945 = vmatmul.mubr.bf16.vlgmr.msra.gmra.mrb[52].mxu1 %v6800_v10  ;;  %4723 = vmatprep.subr.bf16.mxu0 %v8653_v52 }
 0x4d2   :  { %2024 = vmatpush1.bf16.msra.mxu1 %v6695_v37 }
 0x4d3   :  { %2025 = vmatprep.subr.bf16.mxu1 %v6698_v38 }
 0x4d4   :  { %4724 = vmatpush3.bf16.msra.mxu0 %v5084_v26 }
 0x4d5   :  { %4725 = vmatprep.subr.bf16.mxu0 %v8653_v52 }
 0x4d6   :  { %2026 = vmatpush1.bf16.msra.mxu1 %v6701_v39 }
 0x4d7   :  { %2027 = vmatprep.subr.bf16.mxu1 %v6704_v49 }
 0x4d8   :  { %4726 = vmatpush3.bf16.msra.mxu0 %v5085_v28 }
 0x4d9   :  { %1953 = vmatprep.subr.bf16.mxu0 %v8698_v32 }
 0x4da   :  { %2028 = vmatpush1.bf16.msra.mxu1 %v6707_v0 }
 0x4db   :  { %2029 = vmatprep.subr.bf16.mxu1 %v6710_v16 }
 0x4de   :  { %2030 = vmatpush1.bf16.msra.mxu1 %v6713_v13 }
 0x4df   :  { %2031 = vmatprep.subr.bf16.mxu1 %v6716_v43 }
 0x4e2   :  { %2032 = vmatpush1.bf16.msra.mxu1 %v6719_v48 }
 0x4e3   :  { %2033 = vmatprep.subr.bf16.mxu1 %v6722_v42 }
 0x4e6   :  { %2034 = vmatpush1.bf16.msra.mxu1 %v6725_v46 }
 0x4e7   :  { %2035 = vmatprep.subr.bf16.mxu1 %v6728_v41 }
 0x4ea   :  { %2036 = vmatpush1.bf16.msra.mxu1 %v6731_v54 }
 0x4eb   :  { %2037 = vmatprep.subr.bf16.mxu1 %v6734_v56 }
 0x4ee   :  { %2038 = vmatpush1.bf16.msra.mxu1 %v6737_v60 }
 0x4ef   :  { %2039 = vmatprep.subr.bf16.mxu1 %v6740_v1 }
 0x4f2   :  { %2040 = vmatpush1.bf16.msra.mxu1 %v6743_v5 }
 0x4f3   :  { %2041 = vmatprep.subr.bf16.mxu1 %v6746_v9 }
 0x4f6   :  { %2042 = vmatpush1.bf16.msra.mxu1 %v6749_v18 }
 0x4f7   :  { %2043 = vmatprep.subr.bf16.mxu1 %v6752_v31 }
 0x4fa   :  { %2044 = vmatpush1.bf16.msra.mxu1 %v6755_v40 }
 0x4fb   :  { %2045 = vmatprep.subr.bf16.mxu1 %v6758_v35 }
 0x4fe   :  { %2046 = vmatpush1.bf16.msra.mxu1 %v6761_v11 }
 0x4ff   :  { %2047 = vmatprep.subr.bf16.mxu1 %v6764_v3 }
 0x502   :  { %2048 = vmatpush1.bf16.msra.mxu1 %v6767_v7 }
 0x503   :  { %2049 = vmatprep.subr.bf16.mxu1 %v8692_v58 }
 0x506   :  { %2050 = vmatpush1.bf16.msra.mxu1 %v8693_v62 }
 0x507   :  { %2051 = vmatprep.subr.bf16.mxu1 %v8694_v23 }
 0x50a   :  { %2052 = vmatpush1.bf16.msra.mxu1 %v8695_v33 }
 0x50b   :  { %2053 = vmatprep.subr.bf16.mxu1 %v8696_v14 }
 0x50e   :  { %2054 = vmatpush1.bf16.msra.mxu1 %v8697_v25 }
 0x50f   :  { %4731 = vmatprep.subr.bf16.mxu1 %v8653_v52 }
 0x584   :  { %v1733_v34 = vpop.f32.mrb[40].mxu0  ;;  %v1774_v61 = vpop.f32.mrb[48].mxu1 }
 0x585   :  { %v1734_v12 = vadd.f32 %v1733_v34, %v8699_v2  ;;  %v1735_v17 = vpop.f32.mrb[41].mxu0  ;;  %v1776_v27 = vpop.f32.mrb[49].mxu1  ;;  %v1775_v4 = vadd.f32 %v1774_v61, %v8701_v45 }
 0x586   :  { %v1736_v24 = vadd.f32 %v1735_v17, %v8700_v6  ;;  %v1737_v50 = vpop.f32.mrb[42].mxu0  ;;  %v1778_v47 = vpop.f32.mrb[50].mxu1  ;;  %v1777_v44 = vadd.f32 %v1776_v27, %v8702_v20  ;;  %v8704_v27 = vld [vmem:[#allocation40_spill] sm:$0xff] }
 0x587   :  { %v4453_v30 = vmul.f32 -1.442695, %v1734_v12  ;;  %v1738_v22 = vpop.f32.mrb[43].mxu0  ;;  %v1779_v51 = vpop.f32.mrb[51].mxu1  ;;  %v4455_v57 = vmul.f32 -1.442695, %v1775_v4 }
 0x588   :  { %v4454_v55 = vmul.f32 -1.442695, %v1736_v24  ;;  %v8703_v24 = vld [vmem:[#allocation16_spill] sm:$0xff]  ;;  %v8705_v51 = vld [vmem:[#allocation42_spill] sm:$0xff] }
 0x589   :  { %5230 = vpow2.f32 %v4453_v30 }
 0x58a   :  { %5232 = vpow2.f32 %v4454_v55 }
 0x58b   :  { %5234 = vtanh.f32 %v1777_v44 }
 0x58c   :  { %5236 = vpow2.f32 %v4455_v57 }
 0x593   :  { %v5231_v59 = vpop.eup %5230 }
 0x594   :  { %v1790_v63 = vadd.f32 1.0, %v5231_v59  ;;  %v5233_v15 = vpop.eup %5232 }
 0x595   :  { %v1791_v19 = vadd.f32 1.0, %v5233_v15  ;;  %v5235_v21 = vpop.eup %5234 }
 0x596   :  { %5238 = vrcp.f32 %v1790_v63  ;;  %v5237_v26 = vpop.eup %5236 }
 0x597   :  { %5240 = vrcp.f32 %v1791_v19  ;;  %v1792_v17 = vadd.f32 1.0, %v5237_v26  ;;  %v6878_v19 = vld [vmem:[#allocation2 + $0x8] ss:$16 sps:$4 sm:$0xff]  }
 0x598   :  { %v6885_v26 = vld [vmem:[#allocation2 + $0x28] ss:$16 sps:$4 sm:$0xff]  }
 0x599   :  { %5242 = vrcp.f32 %v1792_v17  ;;  %v6897_v17 = vld [vmem:[#allocation2 + $0x68] ss:$16 sps:$4 sm:$0xff]  }
 0x59a   :  { %8708 = vst [vmem:[#allocation29_spill] sm:$0xff] %v6897_v17 }
 0x5a0   :  { %v5239_v28 = vpop.eup %5238 }
 0x5a1   :  { %v1801_v34 = vmul.f32 %v5239_v28, %v5235_v21  ;;  %v5241_v12 = vpop.eup %5240  ;;  %v6882_v21 = vld [vmem:[#allocation2 + $0x2c] ss:$16 sps:$4 sm:$0xff]  }
 0x5a2   :  { %v1800_v50 = vmul.f32 %v5241_v12, %v8703_v24  ;;  %v6888_v28 = vld [vmem:[#allocation2 + $0x4c] ss:$16 sps:$4 sm:$0xff]  }
 0x5a3   :  { %v5243_v57 = vpop.eup %5242  ;;  %v6894_v12 = vld [vmem:[#allocation2 + $0x6c] ss:$16 sps:$4 sm:$0xff]  }
 0x5a4   :  { %v1946_v61 = vpop.f32.mrb[52].mxu1  ;;  %v6869_v47 = vadd.f32 %v1801_v34, %v1800_v50  ;;  %v6891_v34 = vld [vmem:[#allocation2 + $0x48] ss:$16 sps:$4 sm:$0xff]   ;;  %8707 = vst [vmem:[#allocation27_spill] sm:$0xff] %v6894_v12  ;;  %v6900_v24 = vld [vmem:[#allocation2 + $0x8c] ss:$16 sps:$4 sm:$0xff]  }
 0x5a5   :  { %v6872_v30 = vadd.f32 %v1946_v61, %v8704_v27  ;;  %v1948_v22 = vpop.f32.mrb[53].mxu1  ;;  %8706 = vst [vmem:[#allocation25_spill] sm:$0xff] %v6891_v34  ;;  %8709 = vst [vmem:[#allocation31_spill] sm:$0xff] %v6900_v24  ;;  %v6903_v50 = vld [vmem:[#allocation2 + $0x88] ss:$16 sps:$4 sm:$0xff]  }
 0x5a6   :  { %v6875_v55 = vadd.f32 %v1948_v22, %v8705_v51  ;;  %v1950_v4 = vpop.f32.mrb[54].mxu1  ;;  %5244 = vtanh.f32 %v6869_v47  ;;  %8710 = vst [vmem:[#allocation34_spill] sm:$0xff] %v6903_v50  ;;  %v6906_v61 = vld [vmem:[#allocation2 + $0xac] ss:$16 sps:$4 sm:$0xff]   ;;  %v6909_v27 = vld [vmem:[#allocation2 + $0xa8] ss:$16 sps:$4 sm:$0xff]  }
 0x5a7   :  { %v1951_v44 = vpop.f32.mrb[55].mxu1  ;;  %8711 = vst [vmem:[#allocation41_spill] sm:$0xff] %v6906_v61  ;;  %8712 = vst [vmem:[#allocation36_spill] sm:$0xff] %v6909_v27  ;;  %v6912_v22 = vld [vmem:[#allocation2 + $0xcc] ss:$16 sps:$4 sm:$0xff]  }
 0x5a8   :  { %8713 = vst [vmem:[#allocation43_spill] sm:$0xff] %v6912_v22  ;;  %v6915_v51 = vld [vmem:[#allocation2 + $0xc8] ss:$16 sps:$4 sm:$0xff]   ;;  %v6918_v4 = vld [vmem:[#allocation2 + $0xec] ss:$16 sps:$4 sm:$0xff]  }
 0x5a9   :  { %8714 = vst [vmem:[#allocation20_spill] sm:$0xff] %v6915_v51  ;;  %8715 = vst [vmem:[#allocation22_spill] sm:$0xff] %v6918_v4  ;;  %v6921_v44 = vld [vmem:[#allocation2 + $0xe8] ss:$16 sps:$4 sm:$0xff]  }
 0x5aa   :  { %8716 = vst [vmem:[#allocation24_spill] sm:$0xff] %v6921_v44 }
 0x5b0   :  { %v5245_v59 = vpop.eup %5244 }
 0x5b1   :  { %v1804_v63 = vmul.f32 %v5245_v59, %v5243_v57  ;;  %v6924_v57 = vld [vmem:[#allocation4 + $0xc] ss:$16 sps:$4 sm:$0xff]   ;;  %v6928_v59 = vld [vmem:[#allocation4 + $0x8] ss:$16 sps:$4 sm:$0xff]  }
 0x5b2   :  { %8717 = vst [vmem:[#allocation26_spill] sm:$0xff] %v6924_v57  ;;  %8718 = vst [vmem:[#allocation28_spill] sm:$0xff] %v6928_v59 }
 0x5b3   :  { %v1805_v15 = vpack.c.bf16 %v1804_v63, %v1804_v63  ;;  %v6931_v63 = vld [vmem:[#allocation4 + $0x2c] ss:$16 sps:$4 sm:$0xff]  }
 0x5b4   :  { %8719 = vst [vmem:[#allocation30_spill] sm:$0xff] %v6931_v63 }
 0x5b5   :  { %4728 = vmatmul.mubr.bf16.vlgmr.msra.gmra.mrb[44].mxu0 %v1805_v15  ;;  %2055 = vmatprep.mubr.bf16.mxu1 %v1805_v15 }
 0x5b6   :  { %1954 = vmatpush1.bf16.msra.mxu0 %v6878_v19  ;;  %1985 = vmatprep.mubr.bf16.mxu0 %v8604_v53 }
 0x5b7   :  { %1955 = vmatprep.subr.bf16.mxu0 %v6882_v21 }
 0x5ba   :  { %1956 = vmatpush1.bf16.msra.mxu0 %v6885_v26 }
 0x5bb   :  { %1957 = vmatprep.subr.bf16.mxu0 %v6888_v28 }
 0x5be   :  { %1958 = vmatpush1.bf16.msra.mxu0 %v6891_v34 }
 0x5bf   :  { %1959 = vmatprep.subr.bf16.mxu0 %v6894_v12 }
 0x5c2   :  { %1960 = vmatpush1.bf16.msra.mxu0 %v6897_v17  ;;  %v8751_v17 = vld [vmem:[#allocation49_spill] sm:$0xff] }
 0x5c3   :  { %1961 = vmatprep.subr.bf16.mxu0 %v6900_v24 }
 0x5c6   :  { %1962 = vmatpush1.bf16.msra.mxu0 %v6903_v50 }
 0x5c7   :  { %1963 = vmatprep.subr.bf16.mxu0 %v6906_v61 }
 0x5ca   :  { %1964 = vmatpush1.bf16.msra.mxu0 %v6909_v27  ;;  %v4465_v27 = vmul.f32 -1.442695, %v6875_v55 }
 0x5cb   :  { %1965 = vmatprep.subr.bf16.mxu0 %v6912_v22 }
 0x5cc   :  { %5246 = vpow2.f32 %v4465_v27 }
 0x5ce   :  { %1966 = vmatpush1.bf16.msra.mxu0 %v6915_v51 }
 0x5cf   :  { %1967 = vmatprep.subr.bf16.mxu0 %v6918_v4  ;;  %v6934_v4 = vld [vmem:[#allocation4 + $0x28] ss:$16 sps:$4 sm:$0xff]  }
 0x5d0   :  { %8720 = vst [vmem:[#allocation68_spill] sm:$0xff] %v6934_v4 }
 0x5d2   :  { %1968 = vmatpush1.bf16.msra.mxu0 %v6921_v44  ;;  %v6937_v44 = vld [vmem:[#allocation4 + $0x4c] ss:$16 sps:$4 sm:$0xff]  }
 0x5d3   :  { %2064 = vmatprep.subr.bf16.mxu0 %v6924_v57  ;;  %8721 = vst [vmem:[#allocation69_spill] sm:$0xff] %v6937_v44  ;;  %v6940_v57 = vld [vmem:[#allocation4 + $0x48] ss:$16 sps:$4 sm:$0xff]  }
 0x5d4   :  { %8722 = vst [vmem:[#allocation70_spill] sm:$0xff] %v6940_v57 }
 0x5d5   :  { %1986 = vmatmul.mubr.bf16.vlgmr.msra.gmra.mrb[48].mxu0 %v6800_v10  ;;  %v6943_v10 = vld [vmem:[#allocation4 + $0x6c] ss:$16 sps:$4 sm:$0xff]  }
 0x5d6   :  { %2096 = vmatprep.mubr.bf16.mxu0 %v1805_v15  ;;  %2065 = vmatpush1.bf16.msra.mxu0 %v6928_v59  ;;  %8723 = vst [vmem:[#allocation71_spill] sm:$0xff] %v6943_v10  ;;  %v6946_v15 = vld [vmem:[#allocation4 + $0x68] ss:$16 sps:$4 sm:$0xff]  }
 0x5d7   :  { %2066 = vmatprep.subr.bf16.mxu0 %v6931_v63  ;;  %8724 = vst [vmem:[#allocation72_spill] sm:$0xff] %v6946_v15  ;;  %v6949_v63 = vld [vmem:[#allocation4 + $0x8c] ss:$16 sps:$4 sm:$0xff]  }
 0x5d8   :  { %8725 = vst [vmem:[#allocation73_spill] sm:$0xff] %v6949_v63 }
 0x5da   :  { %2067 = vmatpush1.bf16.msra.mxu0 %v6934_v4  ;;  %v6952_v4 = vld [vmem:[#allocation4 + $0x88] ss:$16 sps:$4 sm:$0xff]  }
 0x5db   :  { %2068 = vmatprep.subr.bf16.mxu0 %v6937_v44  ;;  %8726 = vst [vmem:[#allocation74_spill] sm:$0xff] %v6952_v4  ;;  %v6955_v44 = vld [vmem:[#allocation4 + $0xac] ss:$16 sps:$4 sm:$0xff]  }
 0x5dc   :  { %8727 = vst [vmem:[#allocation75_spill] sm:$0xff] %v6955_v44 }
 0x5de   :  { %2069 = vmatpush1.bf16.msra.mxu0 %v6940_v57  ;;  %v6958_v57 = vld [vmem:[#allocation4 + $0xa8] ss:$16 sps:$4 sm:$0xff]  }
 0x5df   :  { %2070 = vmatprep.subr.bf16.mxu0 %v6943_v10  ;;  %8728 = vst [vmem:[#allocation45_spill] sm:$0xff] %v6958_v57  ;;  %v6961_v10 = vld [vmem:[#allocation4 + $0xcc] ss:$16 sps:$4 sm:$0xff]  }
 0x5e0   :  { %8729 = vst [vmem:[#allocation47_spill] sm:$0xff] %v6961_v10 }
 0x5e2   :  { %2071 = vmatpush1.bf16.msra.mxu0 %v6946_v15  ;;  %v6964_v15 = vld [vmem:[#allocation4 + $0xc8] ss:$16 sps:$4 sm:$0xff]  }
 0x5e3   :  { %2072 = vmatprep.subr.bf16.mxu0 %v6949_v63  ;;  %8730 = vst [vmem:[#allocation76_spill] sm:$0xff] %v6964_v15  ;;  %v6967_v63 = vld [vmem:[#allocation4 + $0xec] ss:$16 sps:$4 sm:$0xff]  }
 0x5e4   :  { %8731 = vst [vmem:[#allocation77_spill] sm:$0xff] %v6967_v63 }
 0x5e6   :  { %2073 = vmatpush1.bf16.msra.mxu0 %v6952_v4  ;;  %v6970_v4 = vld [vmem:[#allocation4 + $0xe8] ss:$16 sps:$4 sm:$0xff]  }
 0x5e7   :  { %2074 = vmatprep.subr.bf16.mxu0 %v6955_v44  ;;  %8732 = vst [vmem:[#allocation78_spill] sm:$0xff] %v6970_v4  ;;  %v6973_v44 = vld [vmem:[#allocation4 + $0x10c] ss:$16 sps:$4 sm:$0xff]  }
 0x5e8   :  { %8733 = vst [vmem:[#allocation79_spill] sm:$0xff] %v6973_v44 }
 0x5ea   :  { %2075 = vmatpush1.bf16.msra.mxu0 %v6958_v57  ;;  %v6976_v57 = vld [vmem:[#allocation4 + $0x108] ss:$16 sps:$4 sm:$0xff]  }
 0x5eb   :  { %2076 = vmatprep.subr.bf16.mxu0 %v6961_v10  ;;  %8734 = vst [vmem:[#allocation80_spill] sm:$0xff] %v6976_v57  ;;  %v6979_v10 = vld [vmem:[#allocation4 + $0x12c] ss:$16 sps:$4 sm:$0xff]  }
 0x5ec   :  { %8735 = vst [vmem:[#allocation81_spill] sm:$0xff] %v6979_v10 }
 0x5ee   :  { %2077 = vmatpush1.bf16.msra.mxu0 %v6964_v15  ;;  %v6982_v15 = vld [vmem:[#allocation4 + $0x128] ss:$16 sps:$4 sm:$0xff]  }
 0x5ef   :  { %2078 = vmatprep.subr.bf16.mxu0 %v6967_v63  ;;  %8736 = vst [vmem:[#allocation82_spill] sm:$0xff] %v6982_v15  ;;  %v6985_v63 = vld [vmem:[#allocation4 + $0x14c] ss:$16 sps:$4 sm:$0xff]  }
 0x5f0   :  { %8737 = vst [vmem:[#allocation38_spill] sm:$0xff] %v6985_v63 }
 0x5f2   :  { %2079 = vmatpush1.bf16.msra.mxu0 %v6970_v4  ;;  %v6988_v4 = vld [vmem:[#allocation4 + $0x148] ss:$16 sps:$4 sm:$0xff]  }
 0x5f3   :  { %2080 = vmatprep.subr.bf16.mxu0 %v6973_v44  ;;  %8738 = vst [vmem:[#allocation39_spill] sm:$0xff] %v6988_v4  ;;  %v6991_v44 = vld [vmem:[#allocation4 + $0x16c] ss:$16 sps:$4 sm:$0xff]  }
 0x5f4   :  { %8739 = vst [vmem:[#allocation15_spill] sm:$0xff] %v6991_v44 }
 0x5f6   :  { %2081 = vmatpush1.bf16.msra.mxu0 %v6976_v57  ;;  %v6994_v57 = vld [vmem:[#allocation4 + $0x168] ss:$16 sps:$4 sm:$0xff]  }
 0x5f7   :  { %2082 = vmatprep.subr.bf16.mxu0 %v6979_v10  ;;  %8740 = vst [vmem:[#allocation18_spill] sm:$0xff] %v6994_v57  ;;  %v6997_v10 = vld [vmem:[#allocation4 + $0x18c] ss:$16 sps:$4 sm:$0xff]  }
 0x5f8   :  { %8741 = vst [vmem:[#allocation17_spill] sm:$0xff] %v6997_v10 }
 0x5fa   :  { %2083 = vmatpush1.bf16.msra.mxu0 %v6982_v15  ;;  %v7000_v15 = vld [vmem:[#allocation4 + $0x188] ss:$16 sps:$4 sm:$0xff]  }
 0x5fb   :  { %2084 = vmatprep.subr.bf16.mxu0 %v6985_v63  ;;  %8742 = vst [vmem:[#allocation19_spill] sm:$0xff] %v7000_v15  ;;  %v7003_v63 = vld [vmem:[#allocation4 + $0x1ac] ss:$16 sps:$4 sm:$0xff]  }
 0x5fc   :  { %8743 = vst [vmem:[#allocation21_spill] sm:$0xff] %v7003_v63 }
 0x5fe   :  { %2085 = vmatpush1.bf16.msra.mxu0 %v6988_v4  ;;  %v7006_v4 = vld [vmem:[#allocation4 + $0x1a8] ss:$16 sps:$4 sm:$0xff]  }
 0x5ff   :  { %2086 = vmatprep.subr.bf16.mxu0 %v6991_v44  ;;  %8744 = vst [vmem:[#allocation23_spill] sm:$0xff] %v7006_v4  ;;  %v7009_v44 = vld [vmem:[#allocation4 + $0x1cc] ss:$16 sps:$4 sm:$0xff]  }
 0x600   :  { %8745 = vst [vmem:[#allocation14_spill] sm:$0xff] %v7009_v44 }
 0x602   :  { %2087 = vmatpush1.bf16.msra.mxu0 %v6994_v57  ;;  %v7012_v57 = vld [vmem:[#allocation4 + $0x1c8] ss:$16 sps:$4 sm:$0xff]  }
 0x603   :  { %2088 = vmatprep.subr.bf16.mxu0 %v6997_v10  ;;  %8746 = vst [vmem:[#allocation10_spill] sm:$0xff] %v7012_v57  ;;  %v7015_v10 = vld [vmem:[#allocation4 + $0x1ec] ss:$16 sps:$4 sm:$0xff]  }
 0x604   :  { %8747 = vst [vmem:[#allocation9_spill] sm:$0xff] %v7015_v10 }
 0x606   :  { %2089 = vmatpush1.bf16.msra.mxu0 %v7000_v15  ;;  %v7018_v15 = vld [vmem:[#allocation4 + $0x1e8] ss:$16 sps:$4 sm:$0xff]  }
 0x607   :  { %2090 = vmatprep.subr.bf16.mxu0 %v7003_v63  ;;  %8748 = vst [vmem:[#allocation12_spill] sm:$0xff] %v7018_v15  ;;  %v8749_v63 = vld [vmem:[#allocation13_spill] sm:$0xff] }
 0x60a   :  { %2091 = vmatpush1.bf16.msra.mxu0 %v7006_v4 }
 0x60b   :  { %2092 = vmatprep.subr.bf16.mxu0 %v7009_v44 }
 0x60e   :  { %2093 = vmatpush1.bf16.msra.mxu0 %v7012_v57  ;;  %v4464_v57 = vmul.f32 -1.442695, %v6872_v30 }
 0x60f   :  { %2094 = vmatprep.subr.bf16.mxu0 %v7015_v10  ;;  %v5247_v10 = vpop.eup %5246 }
 0x610   :  { %5248 = vpow2.f32 %v4464_v57  ;;  %v2008_v50 = vadd.f32 1.0, %v5247_v10 }
 0x612   :  { %2095 = vmatpush1.bf16.msra.mxu0 %v7018_v15  ;;  %5250 = vrcp.f32 %v2008_v50 }
 0x613   :  { %2236 = vmatprep.subr.bf16.mxu0 %v8749_v63 }
 0x61a   :  { %v5249_v61 = vpop.eup %5248 }
 0x61b   :  { %v2007_v24 = vadd.f32 1.0, %v5249_v61 }
 0x61c   :  { %v5251_v30 = vpop.eup %5250 }
 0x61d   :  { %5252 = vrcp.f32 %v2007_v24  ;;  %v2017_v10 = vmul.f32 %v5251_v30, %v6797_v29  ;;  %v7041_v29 = vld [vmem:[#allocation2 + $0x24] ss:$16 sps:$4 sm:$0xff]  }
 0x61e   :  { %v7067_v30 = vld [vmem:[#allocation2 + $0xa4] ss:$16 sps:$4 sm:$0xff]  }
 0x627   :  { %v5253_v55 = vpop.eup %5252 }
 0x688   :  { %v1905_v59 = vpop.f32.mrb[44].mxu0 }
 0x689   :  { %v7023_v4 = vadd.f32 %v1905_v59, %v6790_v8  ;;  %v4729_v51 = vpop.f32.mrb[45].mxu0  ;;  %v8752_v8 = vld [vmem:[#allocation51_spill] sm:$0xff] }
 0x68a   :  { %v1908_v44 = vpop.f32.mrb[46].mxu0 }
 0x68b   :  { %8750 = vst [vmem:[#allocation11_spill] sm:$0xff] %v7023_v4  ;;  %v4730_v22 = vpop.f32.mrb[47].mxu0 }
 0x6a8   :  { %v1987_v15 = vpop.f32.mrb[48].mxu0 }
 0x6a9   :  { %v1996_v63 = vadd.f32 %v1987_v15, %v8751_v17  ;;  %v1989_v12 = vpop.f32.mrb[49].mxu0  ;;  %v7037_v15 = vld [vmem:[#allocation2] ss:$16 sps:$4 sm:$0xff]  }
 0x6aa   :  { %v1997_v59 = vadd.f32 %v1989_v12, %v8752_v8  ;;  %v1991_v51 = vpop.f32.mrb[50].mxu0  ;;  %v7052_v8 = vld [vmem:[#allocation2 + $0x40] ss:$16 sps:$4 sm:$0xff]  }
 0x6ab   :  { %v4466_v22 = vmul.f32 -1.442695, %v1996_v63  ;;  %v1992_v44 = vpop.f32.mrb[51].mxu0  ;;  %v7049_v63 = vld [vmem:[#allocation2 + $0x44] ss:$16 sps:$4 sm:$0xff]  }
 0x6ac   :  { %5254 = vtanh.f32 %v1997_v59  ;;  %v7055_v59 = vld [vmem:[#allocation2 + $0x64] ss:$16 sps:$4 sm:$0xff]   ;;  %v7058_v51 = vld [vmem:[#allocation2 + $0x60] ss:$16 sps:$4 sm:$0xff]  }
 0x6ad   :  { %5256 = vpow2.f32 %v4466_v22  ;;  %v7061_v22 = vld [vmem:[#allocation2 + $0x84] ss:$16 sps:$4 sm:$0xff]   ;;  %v7064_v44 = vld [vmem:[#allocation2 + $0x80] ss:$16 sps:$4 sm:$0xff]  }
 0x6b6   :  { %v5255_v27 = vpop.eup %5254 }
 0x6b7   :  { %v5257_v57 = vpop.eup %5256  ;;  %v2018_v61 = vmul.f32 %v5255_v27, %v5253_v55  ;;  %v7070_v55 = vld [vmem:[#allocation2 + $0xa0] ss:$16 sps:$4 sm:$0xff]   ;;  %v7073_v27 = vld [vmem:[#allocation2 + $0xc4] ss:$16 sps:$4 sm:$0xff]  }
 0x6b8   :  { %v2009_v4 = vadd.f32 1.0, %v5257_v57  ;;  %v7076_v57 = vld [vmem:[#allocation2 + $0xc0] ss:$16 sps:$4 sm:$0xff]  }
 0x6b9   :  { %v7030_v34 = vadd.f32 %v2018_v61, %v2017_v10  ;;  %v7079_v10 = vld [vmem:[#allocation2 + $0xe4] ss:$16 sps:$4 sm:$0xff]   ;;  %v7082_v61 = vld [vmem:[#allocation2 + $0xe0] ss:$16 sps:$4 sm:$0xff]  }
 0x6ba   :  { %5258 = vrcp.f32 %v2009_v4  ;;  %v7046_v4 = vld [vmem:[#allocation2 + $0x20] ss:$16 sps:$4 sm:$0xff]  }
 0x6bb   :  { %5260 = vtanh.f32 %v7030_v34 }
 0x6c4   :  { %v5259_v12 = vpop.eup %5258 }
 0x6c5   :  { %v5261_v17 = vpop.eup %5260 }
 0x6c6   :  { %v2021_v24 = vmul.f32 %v5261_v17, %v5259_v12 }
 0x6c8   :  { %v7033_v50 = vpack.c.bf16 %v2021_v24, %v2021_v24 }
 0x6ca   :  { %2056 = vmatmul.mubr.bf16.vlgmr.msra.gmra.mrb[56].mxu1 %v7033_v50  ;;  %2097 = vmatmul.mubr.bf16.vlgmr.msra.gmra.mrb[52].mxu0 %v7033_v50 }
 0x6cb   :  { %2237 = vmatpush1.bf16.msra.mxu0 %v7037_v15  ;;  %2268 = vmatprep.mubr.bf16.mxu0 %v8604_v53 }
 0x6cc   :  { %2238 = vmatprep.subr.bf16.mxu0 %v7041_v29  ;;  %4747 = vmatprep.mubr.msk.bf16.mxu1 %vm5853_vm1, %v8653_v52 }
 0x6cf   :  { %2239 = vmatpush1.bf16.msra.mxu0 %v7046_v4 }
 0x6d0   :  { %2240 = vmatprep.subr.bf16.mxu0 %v7049_v63 }
 0x6d3   :  { %2241 = vmatpush1.bf16.msra.mxu0 %v7052_v8 }
 0x6d4   :  { %2242 = vmatprep.subr.bf16.mxu0 %v7055_v59 }
 0x6d7   :  { %2243 = vmatpush1.bf16.msra.mxu0 %v7058_v51 }
 0x6d8   :  { %2244 = vmatprep.subr.bf16.mxu0 %v7061_v22 }
 0x6db   :  { %2245 = vmatpush1.bf16.msra.mxu0 %v7064_v44 }
 0x6dc   :  { %2246 = vmatprep.subr.bf16.mxu0 %v7067_v30 }
 0x6df   :  { %2247 = vmatpush1.bf16.msra.mxu0 %v7070_v55 }
 0x6e0   :  { %2248 = vmatprep.subr.bf16.mxu0 %v7073_v27 }
 0x6e3   :  { %2249 = vmatpush1.bf16.msra.mxu0 %v7076_v57 }
 0x6e4   :  { %2250 = vmatprep.subr.bf16.mxu0 %v7079_v10 }
 0x6e7   :  { %2251 = vmatpush1.bf16.msra.mxu0 %v7082_v61 }
 0x6e8   :  { %2347 = vmatprep.subr.bf16.mxu0 %v6691_v36  ;;  %v5086_v36 = vld [vmem:[#allocation6 + $0xc0] sm:$0xff]  }
 0x6e9   :  { %4732 = vmatpush3.bf16.msra.mxu1 %v5086_v36  ;;  %v8753_v36 = vld [vmem:[#allocation44_spill] sm:$0xff] }
 0x6ea   :  { %2269 = vmatmul.mubr.bf16.vlgmr.msra.gmra.mrb[56].mxu0 %v7033_v50  ;;  %4733 = vmatprep.subr.bf16.mxu1 %v8653_v52 }
 0x6eb   :  { %2348 = vmatpush1.bf16.msra.mxu0 %v6695_v37  ;;  %v5087_v37 = vld [vmem:[#allocation6 + $0xc8] sm:$0xff]  }
 0x6ec   :  { %2349 = vmatprep.subr.bf16.mxu0 %v6698_v38  ;;  %v5088_v38 = vld [vmem:[#allocation6 + $0xd0] sm:$0xff]  }
 0x6ed   :  { %4734 = vmatpush3.bf16.msra.mxu1 %v5087_v37 }
 0x6ee   :  { %4735 = vmatprep.subr.bf16.mxu1 %v8653_v52 }
 0x6ef   :  { %2350 = vmatpush1.bf16.msra.mxu0 %v6701_v39  ;;  %v5089_v39 = vld [vmem:[#allocation6 + $0xd8] sm:$0xff]  }
 0x6f0   :  { %2351 = vmatprep.subr.bf16.mxu0 %v6704_v49  ;;  %v5090_v49 = vld [vmem:[#allocation6 + $0xe0] sm:$0xff]  }
 0x6f1   :  { %4736 = vmatpush3.bf16.msra.mxu1 %v5088_v38 }
 0x6f2   :  { %4737 = vmatprep.subr.bf16.mxu1 %v8653_v52 }
 0x6f3   :  { %2352 = vmatpush1.bf16.msra.mxu0 %v6707_v0  ;;  %v5091_v0 = vld [vmem:[#allocation6 + $0xe8] sm:$0xff]  }
 0x6f4   :  { %2353 = vmatprep.subr.bf16.mxu0 %v6710_v16  ;;  %v5092_v16 = vld [vmem:[#allocation6 + $0xf0] sm:$0xff]  }
 0x6f5   :  { %4738 = vmatpush3.bf16.msra.mxu1 %v5089_v39  ;;  %v8754_v39 = vld [vmem:[#allocation46_spill] sm:$0xff] }
 0x6f6   :  { %4739 = vmatprep.subr.bf16.mxu1 %v8653_v52 }
 0x6f7   :  { %2354 = vmatpush1.bf16.msra.mxu0 %v6713_v13  ;;  %v5093_v13 = vld [vmem:[#allocation6 + $0xf8] sm:$0xff]  }
 0x6f8   :  { %2355 = vmatprep.subr.bf16.mxu0 %v6716_v43 }
 0x6f9   :  { %4740 = vmatpush3.bf16.msra.mxu1 %v5090_v49 }
 0x6fa   :  { %4741 = vmatprep.subr.bf16.mxu1 %v8653_v52 }
 0x6fb   :  { %2356 = vmatpush1.bf16.msra.mxu0 %v6719_v48 }
 0x6fc   :  { %2357 = vmatprep.subr.bf16.mxu0 %v6722_v42 }
 0x6fd   :  { %4742 = vmatpush3.bf16.msra.mxu1 %v5091_v0 }
 0x6fe   :  { %4743 = vmatprep.subr.bf16.mxu1 %v8653_v52 }
 0x6ff   :  { %2358 = vmatpush1.bf16.msra.mxu0 %v6725_v46 }
 0x700   :  { %2359 = vmatprep.subr.bf16.mxu0 %v6728_v41 }
 0x701   :  { %4744 = vmatpush3.bf16.msra.mxu1 %v5092_v16 }
 0x702   :  { %4745 = vmatprep.subr.bf16.mxu1 %v8653_v52 }
 0x703   :  { %2360 = vmatpush1.bf16.msra.mxu0 %v6731_v54 }
 0x704   :  { %2361 = vmatprep.subr.bf16.mxu0 %v6734_v56 }
 0x705   :  { %4746 = vmatpush3.bf16.msra.mxu1 %v5093_v13 }
 0x706   :  { %2277 = vmatprep.subr.bf16.mxu1 %v8698_v32 }
 0x707   :  { %2362 = vmatpush1.bf16.msra.mxu0 %v6737_v60 }
 0x708   :  { %2363 = vmatprep.subr.bf16.mxu0 %v6740_v1 }
 0x70b   :  { %2364 = vmatpush1.bf16.msra.mxu0 %v6743_v5 }
 0x70c   :  { %2365 = vmatprep.subr.bf16.mxu0 %v6746_v9 }
 0x70f   :  { %2366 = vmatpush1.bf16.msra.mxu0 %v6749_v18 }
 0x710   :  { %2367 = vmatprep.subr.bf16.mxu0 %v6752_v31 }
 0x713   :  { %2368 = vmatpush1.bf16.msra.mxu0 %v6755_v40 }
 0x714   :  { %2369 = vmatprep.subr.bf16.mxu0 %v6758_v35 }
 0x717   :  { %2370 = vmatpush1.bf16.msra.mxu0 %v6761_v11 }
 0x718   :  { %2371 = vmatprep.subr.bf16.mxu0 %v6764_v3 }
 0x71b   :  { %2372 = vmatpush1.bf16.msra.mxu0 %v6767_v7 }
 0x71c   :  { %2373 = vmatprep.subr.bf16.mxu0 %v8692_v58 }
 0x71f   :  { %2374 = vmatpush1.bf16.msra.mxu0 %v8693_v62 }
 0x720   :  { %2375 = vmatprep.subr.bf16.mxu0 %v8694_v23 }
 0x723   :  { %2376 = vmatpush1.bf16.msra.mxu0 %v8695_v33 }
 0x724   :  { %2377 = vmatprep.subr.bf16.mxu0 %v8696_v14 }
 0x727   :  { %2378 = vmatpush1.bf16.msra.mxu0 %v8697_v25 }
 0x728   :  { %4751 = vmatprep.subr.bf16.mxu0 %v8653_v52 }
 0x79d   :  { %v2057_v43 = vpop.f32.mrb[56].mxu1  ;;  %v2098_v48 = vpop.f32.mrb[52].mxu0 }
 0x79e   :  { %v2058_v42 = vadd.f32 %v2057_v43, %v8699_v2  ;;  %v2059_v46 = vpop.f32.mrb[57].mxu1  ;;  %v2100_v41 = vpop.f32.mrb[53].mxu0  ;;  %v2099_v31 = vadd.f32 %v2098_v48, %v8701_v45 }
 0x79f   :  { %v2060_v54 = vadd.f32 %v2059_v46, %v8700_v6  ;;  %v2061_v56 = vpop.f32.mrb[58].mxu1  ;;  %v2102_v60 = vpop.f32.mrb[54].mxu0  ;;  %v2101_v40 = vadd.f32 %v2100_v41, %v8702_v20  ;;  %v8756_v46 = vld [vmem:[#allocation27_spill] sm:$0xff]  ;;  %v8757_v41 = vld [vmem:[#allocation29_spill] sm:$0xff] }
 0x7a0   :  { %v4467_v1 = vmul.f32 -1.442695, %v2058_v42  ;;  %v2062_v5 = vpop.f32.mrb[59].mxu1  ;;  %v2103_v9 = vpop.f32.mrb[55].mxu0  ;;  %v4469_v35 = vmul.f32 -1.442695, %v2099_v31 }
 0x7a1   :  { %v4468_v18 = vmul.f32 -1.442695, %v2060_v54  ;;  %v8758_v54 = vld [vmem:[#allocation31_spill] sm:$0xff]  ;;  %v8759_v56 = vld [vmem:[#allocation34_spill] sm:$0xff]  ;;  %v8760_v60 = vld [vmem:[#allocation41_spill] sm:$0xff] }
 0x7a2   :  { %5262 = vpow2.f32 %v4467_v1  ;;  %v8761_v1 = vld [vmem:[#allocation36_spill] sm:$0xff]  ;;  %v8762_v5 = vld [vmem:[#allocation43_spill] sm:$0xff] }
 0x7a3   :  { %5264 = vpow2.f32 %v4468_v18  ;;  %v8763_v9 = vld [vmem:[#allocation20_spill] sm:$0xff]  ;;  %v8764_v18 = vld [vmem:[#allocation22_spill] sm:$0xff] }
 0x7a4   :  { %5266 = vtanh.f32 %v2101_v40  ;;  %v8765_v31 = vld [vmem:[#allocation24_spill] sm:$0xff]  ;;  %v8766_v40 = vld [vmem:[#allocation26_spill] sm:$0xff] }
 0x7a5   :  { %5268 = vpow2.f32 %v4469_v35  ;;  %v8767_v35 = vld [vmem:[#allocation28_spill] sm:$0xff] }
 0x7ac   :  { %v5263_v11 = vpop.eup %5262 }
 0x7ad   :  { %v2114_v3 = vadd.f32 1.0, %v5263_v11  ;;  %v5265_v7 = vpop.eup %5264  ;;  %v8768_v11 = vld [vmem:[#allocation30_spill] sm:$0xff] }
 0x7ae   :  { %v2115_v58 = vadd.f32 1.0, %v5265_v7  ;;  %v5267_v62 = vpop.eup %5266  ;;  %v8770_v7 = vld [vmem:[#allocation69_spill] sm:$0xff] }
 0x7af   :  { %5270 = vrcp.f32 %v2114_v3  ;;  %v5269_v23 = vpop.eup %5268  ;;  %v8769_v3 = vld [vmem:[#allocation68_spill] sm:$0xff] }
 0x7b0   :  { %5272 = vrcp.f32 %v2115_v58  ;;  %v2116_v32 = vadd.f32 1.0, %v5269_v23  ;;  %v8771_v58 = vld [vmem:[#allocation70_spill] sm:$0xff]  ;;  %v8773_v23 = vld [vmem:[#allocation72_spill] sm:$0xff] }
 0x7b2   :  { %5274 = vrcp.f32 %v2116_v32  ;;  %v8778_v32 = vld [vmem:[#allocation47_spill] sm:$0xff] }
 0x7b9   :  { %v5271_v33 = vpop.eup %5270 }
 0x7ba   :  { %v2125_v14 = vmul.f32 %v5271_v33, %v5267_v62  ;;  %v5273_v25 = vpop.eup %5272  ;;  %v8772_v62 = vld [vmem:[#allocation71_spill] sm:$0xff]  ;;  %v8774_v33 = vld [vmem:[#allocation73_spill] sm:$0xff] }
 0x7bb   :  { %v2124_v12 = vmul.f32 %v5273_v25, %v6869_v47  ;;  %v8755_v47 = vld [vmem:[#allocation25_spill] sm:$0xff] }
 0x7bc   :  { %v5275_v13 = vpop.eup %5274  ;;  %v8777_v25 = vld [vmem:[#allocation45_spill] sm:$0xff] }
 0x7bd   :  { %v2270_v17 = vpop.f32.mrb[56].mxu0  ;;  %v7132_v24 = vadd.f32 %v2125_v14, %v2124_v12  ;;  %v8775_v14 = vld [vmem:[#allocation74_spill] sm:$0xff]  ;;  %v8779_v12 = vld [vmem:[#allocation76_spill] sm:$0xff] }
 0x7be   :  { %v7135_v37 = vadd.f32 %v2270_v17, %v8753_v36  ;;  %v2272_v38 = vpop.f32.mrb[57].mxu0  ;;  %v8780_v17 = vld [vmem:[#allocation77_spill] sm:$0xff]  ;;  %v8781_v36 = vld [vmem:[#allocation78_spill] sm:$0xff] }
 0x7bf   :  { %v7138_v49 = vadd.f32 %v2272_v38, %v8754_v39  ;;  %v2274_v0 = vpop.f32.mrb[58].mxu0  ;;  %5276 = vtanh.f32 %v7132_v24  ;;  %v8782_v38 = vld [vmem:[#allocation79_spill] sm:$0xff]  ;;  %v8783_v39 = vld [vmem:[#allocation80_spill] sm:$0xff] }
 0x7c0   :  { %v2275_v16 = vpop.f32.mrb[59].mxu0  ;;  %v8784_v0 = vld [vmem:[#allocation81_spill] sm:$0xff] }
 0x7c1   :  { %v8785_v16 = vld [vmem:[#allocation82_spill] sm:$0xff] }
 0x7c9   :  { %v5277_v43 = vpop.eup %5276 }
 0x7ca   :  { %v2128_v48 = vmul.f32 %v5277_v43, %v5275_v13  ;;  %v8786_v13 = vld [vmem:[#allocation38_spill] sm:$0xff]  ;;  %v8787_v43 = vld [vmem:[#allocation39_spill] sm:$0xff] }
 0x7cc   :  { %v2129_v42 = vpack.c.bf16 %v2128_v48, %v2128_v48  ;;  %v8788_v48 = vld [vmem:[#allocation15_spill] sm:$0xff] }
 0x7ce   :  { %4748 = vmatmul.mubr.bf16.vlgmr.msra.gmra.mrb[60].mxu1 %v2129_v42  ;;  %2379 = vmatprep.mubr.bf16.mxu0 %v2129_v42 }
 0x7cf   :  { %2278 = vmatpush1.bf16.msra.mxu1 %v6878_v19  ;;  %2309 = vmatprep.mubr.bf16.mxu1 %v8604_v53 }
 0x7d0   :  { %2279 = vmatprep.subr.bf16.mxu1 %v6882_v21 }
 0x7d3   :  { %2280 = vmatpush1.bf16.msra.mxu1 %v6885_v26 }
 0x7d4   :  { %2281 = vmatprep.subr.bf16.mxu1 %v6888_v28 }
 0x7d7   :  { %2282 = vmatpush1.bf16.msra.mxu1 %v8755_v47 }
 0x7d8   :  { %2283 = vmatprep.subr.bf16.mxu1 %v8756_v46 }
 0x7db   :  { %2284 = vmatpush1.bf16.msra.mxu1 %v8757_v41 }
 0x7dc   :  { %2285 = vmatprep.subr.bf16.mxu1 %v8758_v54 }
 0x7df   :  { %2286 = vmatpush1.bf16.msra.mxu1 %v8759_v56 }
 0x7e0   :  { %2287 = vmatprep.subr.bf16.mxu1 %v8760_v60 }
 0x7e3   :  { %2288 = vmatpush1.bf16.msra.mxu1 %v8761_v1 }
 0x7e4   :  { %2289 = vmatprep.subr.bf16.mxu1 %v8762_v5 }
 0x7e7   :  { %2290 = vmatpush1.bf16.msra.mxu1 %v8763_v9 }
 0x7e8   :  { %2291 = vmatprep.subr.bf16.mxu1 %v8764_v18 }
 0x7eb   :  { %2292 = vmatpush1.bf16.msra.mxu1 %v8765_v31 }
 0x7ec   :  { %2388 = vmatprep.subr.bf16.mxu1 %v8766_v40 }
 0x7ee   :  { %2310 = vmatmul.mubr.bf16.vlgmr.msra.gmra.mrb[64].mxu1 %v7033_v50  ;;  %v8776_v50 = vld [vmem:[#allocation75_spill] sm:$0xff] }
 0x7ef   :  { %2420 = vmatprep.mubr.bf16.mxu1 %v2129_v42  ;;  %2389 = vmatpush1.bf16.msra.mxu1 %v8767_v35  ;;  %v8789_v42 = vld [vmem:[#allocation18_spill] sm:$0xff] }
 0x7f0   :  { %2390 = vmatprep.subr.bf16.mxu1 %v8768_v11 }
 0x7f3   :  { %2391 = vmatpush1.bf16.msra.mxu1 %v8769_v3 }
 0x7f4   :  { %2392 = vmatprep.subr.bf16.mxu1 %v8770_v7 }
 0x7f7   :  { %2393 = vmatpush1.bf16.msra.mxu1 %v8771_v58 }
 0x7f8   :  { %2394 = vmatprep.subr.bf16.mxu1 %v8772_v62 }
 0x7fb   :  { %2395 = vmatpush1.bf16.msra.mxu1 %v8773_v23 }
 0x7fc   :  { %2396 = vmatprep.subr.bf16.mxu1 %v8774_v33 }
 0x7ff   :  { %2397 = vmatpush1.bf16.msra.mxu1 %v8775_v14  ;;  %v8801_v14 = vld [vmem:[#allocation53_spill] sm:$0xff] }
 0x800   :  { %2398 = vmatprep.subr.bf16.mxu1 %v8776_v50 }
 0x803   :  { %2399 = vmatpush1.bf16.msra.mxu1 %v8777_v25 }
 0x804   :  { %2400 = vmatprep.subr.bf16.mxu1 %v8778_v32 }
 0x807   :  { %2401 = vmatpush1.bf16.msra.mxu1 %v8779_v12  ;;  %v8790_v12 = vld [vmem:[#allocation17_spill] sm:$0xff] }
 0x808   :  { %2402 = vmatprep.subr.bf16.mxu1 %v8780_v17  ;;  %v8791_v17 = vld [vmem:[#allocation19_spill] sm:$0xff] }
 0x80b   :  { %2403 = vmatpush1.bf16.msra.mxu1 %v8781_v36  ;;  %v8792_v36 = vld [vmem:[#allocation21_spill] sm:$0xff] }
 0x80c   :  { %2404 = vmatprep.subr.bf16.mxu1 %v8782_v38  ;;  %v8793_v38 = vld [vmem:[#allocation23_spill] sm:$0xff] }
 0x80f   :  { %2405 = vmatpush1.bf16.msra.mxu1 %v8783_v39  ;;  %v8794_v39 = vld [vmem:[#allocation14_spill] sm:$0xff] }
 0x810   :  { %2406 = vmatprep.subr.bf16.mxu1 %v8784_v0  ;;  %v8795_v0 = vld [vmem:[#allocation10_spill] sm:$0xff] }
 0x813   :  { %2407 = vmatpush1.bf16.msra.mxu1 %v8785_v16  ;;  %v8796_v16 = vld [vmem:[#allocation9_spill] sm:$0xff] }
 0x814   :  { %2408 = vmatprep.subr.bf16.mxu1 %v8786_v13  ;;  %v8797_v13 = vld [vmem:[#allocation12_spill] sm:$0xff] }
 0x817   :  { %2409 = vmatpush1.bf16.msra.mxu1 %v8787_v43  ;;  %v7190_v43 = vld [vmem:[#allocation2 + $0x4] ss:$16 sps:$4 sm:$0xff]  }
 0x818   :  { %2410 = vmatprep.subr.bf16.mxu1 %v8788_v48  ;;  %8798 = vst [vmem:[#allocation16_spill] sm:$0xff] %v7190_v43 }
 0x81b   :  { %2411 = vmatpush1.bf16.msra.mxu1 %v8789_v42 }
 0x81c   :  { %2412 = vmatprep.subr.bf16.mxu1 %v8790_v12  ;;  %v8799_v12 = vld [vmem:[#allocation11_spill] sm:$0xff] }
 0x81f   :  { %2413 = vmatpush1.bf16.msra.mxu1 %v8791_v17 }
 0x820   :  { %2414 = vmatprep.subr.bf16.mxu1 %v8792_v36 }
 0x823   :  { %2415 = vmatpush1.bf16.msra.mxu1 %v8793_v38  ;;  %v4479_v38 = vmul.f32 -1.442695, %v7138_v49 }
 0x824   :  { %2416 = vmatprep.subr.bf16.mxu1 %v8794_v39  ;;  %v4478_v39 = vmul.f32 -1.442695, %v7135_v37 }
 0x825   :  { %5278 = vpow2.f32 %v4479_v38 }
 0x826   :  { %5280 = vpow2.f32 %v4478_v39 }
 0x827   :  { %2417 = vmatpush1.bf16.msra.mxu1 %v8795_v0 }
 0x828   :  { %2418 = vmatprep.subr.bf16.mxu1 %v8796_v16 }
 0x82b   :  { %2419 = vmatpush1.bf16.msra.mxu1 %v8797_v13 }
 0x82c   :  { %2560 = vmatprep.subr.bf16.mxu1 %v7190_v43 }
 0x82f   :  { %v5279_v16 = vpop.eup %5278 }
 0x830   :  { %v5281_v0 = vpop.eup %5280  ;;  %v2332_v13 = vadd.f32 1.0, %v5279_v16 }
 0x831   :  { %v2331_v25 = vadd.f32 1.0, %v5281_v0 }
 0x832   :  { %5282 = vrcp.f32 %v2332_v13  ;;  %v7230_v13 = vld [vmem:[#allocation4] ss:$16 sps:$4 sm:$0xff]  }
 0x833   :  { %5284 = vrcp.f32 %v2331_v25  ;;  %8803 = vst [vmem:[#allocation42_spill] sm:$0xff] %v7230_v13 }
 0x83c   :  { %v5283_v37 = vpop.eup %5282 }
 0x83d   :  { %v5285_v49 = vpop.eup %5284  ;;  %v2341_v16 = vmul.f32 %v5283_v37, %v7030_v34  ;;  %v7226_v34 = vld [vmem:[#allocation4 + $0x4] ss:$16 sps:$4 sm:$0xff]   ;;  %v7254_v37 = vld [vmem:[#allocation4 + $0x80] ss:$16 sps:$4 sm:$0xff]  }
 0x83e   :  { %8811 = vst [vmem:[#allocation29_spill] sm:$0xff] %v7254_v37 }
 0x8a1   :  { %v2229_v42 = vpop.f32.mrb[60].mxu1 }
 0x8a2   :  { %v7194_v48 = vadd.f32 %v2229_v42, %v8799_v12  ;;  %v4749_v17 = vpop.f32.mrb[61].mxu1  ;;  %v8802_v12 = vld [vmem:[#allocation55_spill] sm:$0xff] }
 0x8a3   :  { %v2232_v36 = vpop.f32.mrb[62].mxu1 }
 0x8a4   :  { %8800 = vst [vmem:[#allocation40_spill] sm:$0xff] %v7194_v48  ;;  %v4750_v32 = vpop.f32.mrb[63].mxu1 }
 0x8c1   :  { %v2311_v50 = vpop.f32.mrb[64].mxu1 }
 0x8c2   :  { %v2320_v43 = vadd.f32 %v2311_v50, %v8801_v14  ;;  %v2313_v33 = vpop.f32.mrb[65].mxu1 }
 0x8c3   :  { %v2321_v42 = vadd.f32 %v2313_v33, %v8802_v12  ;;  %v2315_v17 = vpop.f32.mrb[66].mxu1  ;;  %v7239_v12 = vld [vmem:[#allocation4 + $0x44] ss:$16 sps:$4 sm:$0xff]  }
 0x8c4   :  { %v4480_v32 = vmul.f32 -1.442695, %v2320_v43  ;;  %v2316_v36 = vpop.f32.mrb[67].mxu1  ;;  %v7233_v43 = vld [vmem:[#allocation4 + $0x24] ss:$16 sps:$4 sm:$0xff]   ;;  %8806 = vst [vmem:[#allocation51_spill] sm:$0xff] %v7239_v12 }
 0x8c5   :  { %5286 = vtanh.f32 %v2321_v42  ;;  %8804 = vst [vmem:[#allocation13_spill] sm:$0xff] %v7233_v43  ;;  %v7242_v42 = vld [vmem:[#allocation4 + $0x40] ss:$16 sps:$4 sm:$0xff]   ;;  %v7245_v17 = vld [vmem:[#allocation4 + $0x64] ss:$16 sps:$4 sm:$0xff]  }
 0x8c6   :  { %5288 = vpow2.f32 %v4480_v32  ;;  %8807 = vst [vmem:[#allocation44_spill] sm:$0xff] %v7242_v42  ;;  %8808 = vst [vmem:[#allocation46_spill] sm:$0xff] %v7245_v17  ;;  %v7248_v32 = vld [vmem:[#allocation4 + $0x60] ss:$16 sps:$4 sm:$0xff]   ;;  %v7251_v36 = vld [vmem:[#allocation4 + $0x84] ss:$16 sps:$4 sm:$0xff]  }
 0x8c7   :  { %8809 = vst [vmem:[#allocation25_spill] sm:$0xff] %v7248_v32  ;;  %8810 = vst [vmem:[#allocation27_spill] sm:$0xff] %v7251_v36 }
 0x8cf   :  { %v5287_v38 = vpop.eup %5286 }
 0x8d0   :  { %v5289_v39 = vpop.eup %5288  ;;  %v2342_v0 = vmul.f32 %v5287_v38, %v5285_v49  ;;  %v7257_v49 = vld [vmem:[#allocation4 + $0xa4] ss:$16 sps:$4 sm:$0xff]   ;;  %v7260_v38 = vld [vmem:[#allocation4 + $0xa0] ss:$16 sps:$4 sm:$0xff]  }
 0x8d1   :  { %v2333_v48 = vadd.f32 1.0, %v5289_v39  ;;  %8812 = vst [vmem:[#allocation31_spill] sm:$0xff] %v7257_v49  ;;  %8813 = vst [vmem:[#allocation34_spill] sm:$0xff] %v7260_v38  ;;  %v7263_v39 = vld [vmem:[#allocation4 + $0xc4] ss:$16 sps:$4 sm:$0xff]  }
 0x8d2   :  { %v7201_v23 = vadd.f32 %v2342_v0, %v2341_v16  ;;  %8814 = vst [vmem:[#allocation41_spill] sm:$0xff] %v7263_v39  ;;  %v7266_v16 = vld [vmem:[#allocation4 + $0xc0] ss:$16 sps:$4 sm:$0xff]   ;;  %v7269_v0 = vld [vmem:[#allocation4 + $0xe4] ss:$16 sps:$4 sm:$0xff]  }
 0x8d3   :  { %5290 = vrcp.f32 %v2333_v48  ;;  %v7236_v48 = vld [vmem:[#allocation4 + $0x20] ss:$16 sps:$4 sm:$0xff]   ;;  %8815 = vst [vmem:[#allocation36_spill] sm:$0xff] %v7266_v16  ;;  %8816 = vst [vmem:[#allocation43_spill] sm:$0xff] %v7269_v0 }
 0x8d4   :  { %5292 = vtanh.f32 %v7201_v23  ;;  %8805 = vst [vmem:[#allocation49_spill] sm:$0xff] %v7236_v48 }
 0x8dd   :  { %v5291_v33 = vpop.eup %5290 }
 0x8de   :  { %v5293_v14 = vpop.eup %5292 }
 0x8df   :  { %v2345_v50 = vmul.f32 %v5293_v14, %v5291_v33  ;;  %v7272_v33 = vld [vmem:[#allocation4 + $0xe0] ss:$16 sps:$4 sm:$0xff]   ;;  %v7275_v14 = vld [vmem:[#allocation4 + $0x104] ss:$16 sps:$4 sm:$0xff]  }
 0x8e0   :  { %8817 = vst [vmem:[#allocation20_spill] sm:$0xff] %v7272_v33  ;;  %8818 = vst [vmem:[#allocation22_spill] sm:$0xff] %v7275_v14 }
 0x8e1   :  { %v7204_v25 = vpack.c.bf16 %v2345_v50, %v2345_v50  ;;  %v7278_v50 = vld [vmem:[#allocation4 + $0x100] ss:$16 sps:$4 sm:$0xff]  }
 0x8e2   :  { %8819 = vst [vmem:[#allocation24_spill] sm:$0xff] %v7278_v50 }
 0x8e3   :  { %2380 = vmatmul.mubr.bf16.vlgmr.msra.gmra.mrb[60].mxu0 %v7204_v25  ;;  %2421 = vmatmul.mubr.bf16.vlgmr.msra.gmra.mrb[68].mxu1 %v7204_v25 }
 0x8e4   :  { %2561 = vmatpush1.bf16.msra.mxu1 %v7037_v15  ;;  %2592 = vmatprep.mubr.bf16.mxu1 %v8604_v53 }
 0x8e5   :  { %2562 = vmatprep.subr.bf16.mxu1 %v7041_v29  ;;  %4767 = vmatprep.mubr.msk.bf16.mxu0 %vm5853_vm1, %v8653_v52 }
 0x8e8   :  { %2563 = vmatpush1.bf16.msra.mxu1 %v7046_v4 }
 0x8e9   :  { %2564 = vmatprep.subr.bf16.mxu1 %v7049_v63 }
 0x8ec   :  { %2565 = vmatpush1.bf16.msra.mxu1 %v7052_v8 }
 0x8ed   :  { %2566 = vmatprep.subr.bf16.mxu1 %v7055_v59 }
 0x8f0   :  { %2567 = vmatpush1.bf16.msra.mxu1 %v7058_v51 }
 0x8f1   :  { %2568 = vmatprep.subr.bf16.mxu1 %v7061_v22 }
 0x8f4   :  { %2569 = vmatpush1.bf16.msra.mxu1 %v7064_v44 }
 0x8f5   :  { %2570 = vmatprep.subr.bf16.mxu1 %v7067_v30 }
 0x8f8   :  { %2571 = vmatpush1.bf16.msra.mxu1 %v7070_v55 }
 0x8f9   :  { %2572 = vmatprep.subr.bf16.mxu1 %v7073_v27 }
 0x8fc   :  { %2573 = vmatpush1.bf16.msra.mxu1 %v7076_v57 }
 0x8fd   :  { %2574 = vmatprep.subr.bf16.mxu1 %v7079_v10 }
 0x900   :  { %2575 = vmatpush1.bf16.msra.mxu1 %v7082_v61 }
 0x901   :  { %2671 = vmatprep.subr.bf16.mxu1 %v7226_v34 }
 0x903   :  { %2593 = vmatmul.mubr.bf16.vlgmr.msra.gmra.mrb[72].mxu1 %v7204_v25 }
 0x904   :  { %2672 = vmatpush1.bf16.msra.mxu1 %v7230_v13 }
 0x905   :  { %2673 = vmatprep.subr.bf16.mxu1 %v7233_v43 }
 0x908   :  { %2674 = vmatpush1.bf16.msra.mxu1 %v7236_v48 }
 0x909   :  { %2675 = vmatprep.subr.bf16.mxu1 %v7239_v12 }
 0x90c   :  { %2676 = vmatpush1.bf16.msra.mxu1 %v7242_v42 }
 0x90d   :  { %2677 = vmatprep.subr.bf16.mxu1 %v7245_v17 }
 0x910   :  { %2678 = vmatpush1.bf16.msra.mxu1 %v7248_v32 }
 0x911   :  { %2679 = vmatprep.subr.bf16.mxu1 %v7251_v36 }
 0x914   :  { %2680 = vmatpush1.bf16.msra.mxu1 %v7254_v37 }
 0x915   :  { %2681 = vmatprep.subr.bf16.mxu1 %v7257_v49 }
 0x918   :  { %2682 = vmatpush1.bf16.msra.mxu1 %v7260_v38 }
 0x919   :  { %2683 = vmatprep.subr.bf16.mxu1 %v7263_v39  ;;  %v7281_v39 = vld [vmem:[#allocation4 + $0x124] ss:$16 sps:$4 sm:$0xff]  }
 0x91a   :  { %8820 = vst [vmem:[#allocation26_spill] sm:$0xff] %v7281_v39 }
 0x91c   :  { %2684 = vmatpush1.bf16.msra.mxu1 %v7266_v16  ;;  %v7284_v16 = vld [vmem:[#allocation4 + $0x120] ss:$16 sps:$4 sm:$0xff]  }
 0x91d   :  { %2685 = vmatprep.subr.bf16.mxu1 %v7269_v0  ;;  %8821 = vst [vmem:[#allocation28_spill] sm:$0xff] %v7284_v16  ;;  %v7287_v0 = vld [vmem:[#allocation4 + $0x144] ss:$16 sps:$4 sm:$0xff]  }
 0x91e   :  { %8822 = vst [vmem:[#allocation30_spill] sm:$0xff] %v7287_v0 }
 0x920   :  { %2686 = vmatpush1.bf16.msra.mxu1 %v7272_v33  ;;  %v7290_v33 = vld [vmem:[#allocation4 + $0x140] ss:$16 sps:$4 sm:$0xff]  }
 0x921   :  { %2687 = vmatprep.subr.bf16.mxu1 %v7275_v14  ;;  %8823 = vst [vmem:[#allocation68_spill] sm:$0xff] %v7290_v33  ;;  %v7293_v14 = vld [vmem:[#allocation4 + $0x164] ss:$16 sps:$4 sm:$0xff]  }
 0x922   :  { %8824 = vst [vmem:[#allocation69_spill] sm:$0xff] %v7293_v14 }
 0x924   :  { %2688 = vmatpush1.bf16.msra.mxu1 %v7278_v50  ;;  %v7296_v50 = vld [vmem:[#allocation4 + $0x160] ss:$16 sps:$4 sm:$0xff]  }
 0x925   :  { %2689 = vmatprep.subr.bf16.mxu1 %v7281_v39  ;;  %8825 = vst [vmem:[#allocation70_spill] sm:$0xff] %v7296_v50  ;;  %v7299_v39 = vld [vmem:[#allocation4 + $0x184] ss:$16 sps:$4 sm:$0xff]  }
 0x926   :  { %8826 = vst [vmem:[#allocation71_spill] sm:$0xff] %v7299_v39 }
 0x928   :  { %2690 = vmatpush1.bf16.msra.mxu1 %v7284_v16  ;;  %v7302_v16 = vld [vmem:[#allocation4 + $0x180] ss:$16 sps:$4 sm:$0xff]  }
 0x929   :  { %2691 = vmatprep.subr.bf16.mxu1 %v7287_v0  ;;  %8827 = vst [vmem:[#allocation11_spill] sm:$0xff] %v7302_v16  ;;  %v7305_v0 = vld [vmem:[#allocation4 + $0x1a4] ss:$16 sps:$4 sm:$0xff]  }
 0x92a   :  { %8828 = vst [vmem:[#allocation53_spill] sm:$0xff] %v7305_v0 }
 0x92c   :  { %2692 = vmatpush1.bf16.msra.mxu1 %v7290_v33  ;;  %v7308_v33 = vld [vmem:[#allocation4 + $0x1a0] ss:$16 sps:$4 sm:$0xff]  }
 0x92d   :  { %2693 = vmatprep.subr.bf16.mxu1 %v7293_v14  ;;  %8829 = vst [vmem:[#allocation55_spill] sm:$0xff] %v7308_v33  ;;  %v7311_v14 = vld [vmem:[#allocation4 + $0x1c4] ss:$16 sps:$4 sm:$0xff]  }
 0x92e   :  { %8830 = vst [vmem:[#allocation83_spill] sm:$0xff] %v7311_v14 }
 0x930   :  { %2694 = vmatpush1.bf16.msra.mxu1 %v7296_v50  ;;  %v7314_v50 = vld [vmem:[#allocation4 + $0x1c0] ss:$16 sps:$4 sm:$0xff]  }
 0x931   :  { %2695 = vmatprep.subr.bf16.mxu1 %v7299_v39  ;;  %8831 = vst [vmem:[#allocation84_spill] sm:$0xff] %v7314_v50  ;;  %v7317_v39 = vld [vmem:[#allocation4 + $0x1e4] ss:$16 sps:$4 sm:$0xff]  }
 0x932   :  { %8832 = vst [vmem:[#allocation85_spill] sm:$0xff] %v7317_v39 }
 0x934   :  { %2696 = vmatpush1.bf16.msra.mxu1 %v7302_v16  ;;  %v7320_v16 = vld [vmem:[#allocation4 + $0x1e0] ss:$16 sps:$4 sm:$0xff]  }
 0x935   :  { %2697 = vmatprep.subr.bf16.mxu1 %v7305_v0  ;;  %8833 = vst [vmem:[#allocation86_spill] sm:$0xff] %v7320_v16  ;;  %v5094_v0 = vld [vmem:[#allocation6 + $0x100] sm:$0xff]  }
 0x936   :  { %4752 = vmatpush3.bf16.msra.mxu0 %v5094_v0  ;;  %v5100_v0 = vld [vmem:[#allocation6 + $0x130] sm:$0xff]  }
 0x937   :  { %4753 = vmatprep.subr.bf16.mxu0 %v8653_v52 }
 0x938   :  { %2698 = vmatpush1.bf16.msra.mxu1 %v7308_v33  ;;  %v5095_v33 = vld [vmem:[#allocation6 + $0x108] sm:$0xff]  }
 0x939   :  { %2699 = vmatprep.subr.bf16.mxu1 %v7311_v14  ;;  %v5096_v14 = vld [vmem:[#allocation6 + $0x110] sm:$0xff]  }
 0x93a   :  { %4754 = vmatpush3.bf16.msra.mxu0 %v5095_v33  ;;  %v5101_v33 = vld [vmem:[#allocation6 + $0x138] sm:$0xff]  }
 0x93b   :  { %4755 = vmatprep.subr.bf16.mxu0 %v8653_v52 }
 0x93c   :  { %2700 = vmatpush1.bf16.msra.mxu1 %v7314_v50  ;;  %v5097_v50 = vld [vmem:[#allocation6 + $0x118] sm:$0xff]  }
 0x93d   :  { %2701 = vmatprep.subr.bf16.mxu1 %v7317_v39  ;;  %v5098_v39 = vld [vmem:[#allocation6 + $0x120] sm:$0xff]  }
 0x93e   :  { %4756 = vmatpush3.bf16.msra.mxu0 %v5096_v14  ;;  %v7331_v14 = vld [vmem:[#allocation2 + $0xc] ss:$16 sps:$4 sm:$0xff]  }
 0x93f   :  { %4757 = vmatprep.subr.bf16.mxu0 %v8653_v52  ;;  %8834 = vst [vmem:[#allocation87_spill] sm:$0xff] %v7331_v14 }
 0x940   :  { %2702 = vmatpush1.bf16.msra.mxu1 %v7320_v16  ;;  %v5099_v16 = vld [vmem:[#allocation6 + $0x128] sm:$0xff]  }
 0x941   :  { %4771 = vmatprep.subr.bf16.mxu1 %v8653_v52 }
 0x942   :  { %4758 = vmatpush3.bf16.msra.mxu0 %v5097_v50 }
 0x943   :  { %4759 = vmatprep.subr.bf16.mxu0 %v8653_v52 }
 0x946   :  { %4760 = vmatpush3.bf16.msra.mxu0 %v5098_v39 }
 0x947   :  { %4761 = vmatprep.subr.bf16.mxu0 %v8653_v52 }
 0x94a   :  { %4762 = vmatpush3.bf16.msra.mxu0 %v5099_v16 }
 0x94b   :  { %4763 = vmatprep.subr.bf16.mxu0 %v8653_v52 }
 0x94e   :  { %4764 = vmatpush3.bf16.msra.mxu0 %v5100_v0 }
 0x94f   :  { %4765 = vmatprep.subr.bf16.mxu0 %v8653_v52 }
 0x952   :  { %4766 = vmatpush3.bf16.msra.mxu0 %v5101_v33 }
 0x953   :  { %2601 = vmatprep.subr.bf16.mxu0 %v7331_v14 }
 0x9b6   :  { %v2381_v50 = vpop.f32.mrb[60].mxu0  ;;  %v2422_v38 = vpop.f32.mrb[68].mxu1 }
 0x9b7   :  { %v2382_v39 = vadd.f32 %v2381_v50, %v8699_v2  ;;  %v2383_v49 = vpop.f32.mrb[61].mxu0  ;;  %v2424_v37 = vpop.f32.mrb[69].mxu1  ;;  %v2423_v33 = vadd.f32 %v2422_v38, %v8701_v45 }
 0x9b8   :  { %v2384_v16 = vadd.f32 %v2383_v49, %v8700_v6  ;;  %v2385_v36 = vpop.f32.mrb[62].mxu0  ;;  %v2426_v32 = vpop.f32.mrb[70].mxu1  ;;  %v2425_v14 = vadd.f32 %v2424_v37, %v8702_v20  ;;  %v8835_v37 = vld [vmem:[#allocation48_spill] sm:$0xff] }
 0x9b9   :  { %v4481_v17 = vmul.f32 -1.442695, %v2382_v39  ;;  %v2386_v0 = vpop.f32.mrb[63].mxu0  ;;  %v2427_v42 = vpop.f32.mrb[71].mxu1  ;;  %v4483_v48 = vmul.f32 -1.442695, %v2423_v33 }
 0x9ba   :  { %v4482_v12 = vmul.f32 -1.442695, %v2384_v16 }
 0x9bb   :  { %5294 = vpow2.f32 %v4481_v17 }
 0x9bc   :  { %5296 = vpow2.f32 %v4482_v12 }
 0x9bd   :  { %5298 = vtanh.f32 %v2425_v14 }
 0x9be   :  { %5300 = vpow2.f32 %v4483_v48  ;;  %v8836_v48 = vld [vmem:[#allocation50_spill] sm:$0xff] }
 0x9c5   :  { %v5295_v43 = vpop.eup %5294 }
 0x9c6   :  { %v2438_v13 = vadd.f32 1.0, %v5295_v43  ;;  %v5297_v50 = vpop.eup %5296 }
 0x9c7   :  { %v2439_v49 = vadd.f32 1.0, %v5297_v50  ;;  %v5299_v32 = vpop.eup %5298 }
 0x9c8   :  { %5302 = vrcp.f32 %v2438_v13  ;;  %v5301_v36 = vpop.eup %5300 }
 0x9c9   :  { %5304 = vrcp.f32 %v2439_v49  ;;  %v2440_v17 = vadd.f32 1.0, %v5301_v36 }
 0x9cb   :  { %5306 = vrcp.f32 %v2440_v17 }
 0x9d2   :  { %v5303_v39 = vpop.eup %5302 }
 0x9d3   :  { %v2449_v42 = vmul.f32 %v5303_v39, %v5299_v32  ;;  %v5305_v16 = vpop.eup %5304 }
 0x9d4   :  { %v2448_v12 = vmul.f32 %v5305_v16, %v7132_v24  ;;  %v8841_v24 = vld [vmem:[#allocation45_spill] sm:$0xff]  ;;  %v8862_v16 = vld [vmem:[#allocation16_spill] sm:$0xff] }
 0x9d5   :  { %v5307_v49 = vpop.eup %5306 }
 0x9d6   :  { %v2594_v38 = vpop.f32.mrb[72].mxu1  ;;  %v7339_v0 = vadd.f32 %v2449_v42, %v2448_v12  ;;  %v8861_v42 = vld [vmem:[#allocation12_spill] sm:$0xff] }
 0x9d7   :  { %v7342_v33 = vadd.f32 %v2594_v38, %v8835_v37  ;;  %v2596_v43 = vpop.f32.mrb[73].mxu1  ;;  %v8863_v12 = vld [vmem:[#allocation40_spill] sm:$0xff] }
 0x9d8   :  { %v7345_v13 = vadd.f32 %v2596_v43, %v8836_v48  ;;  %v2598_v14 = vpop.f32.mrb[74].mxu1  ;;  %5308 = vtanh.f32 %v7339_v0 }
 0x9d9   :  { %v2599_v50 = vpop.f32.mrb[75].mxu1 }
 0x9da   :  { %v4493_v14 = vmul.f32 -1.442695, %v7345_v13  ;;  %v4492_v50 = vmul.f32 -1.442695, %v7342_v33 }
 0x9dc   :  { %5310 = vpow2.f32 %v4493_v14  ;;  %v8893_v14 = vld [vmem:[#allocation83_spill] sm:$0xff] }
 0x9dd   :  { %5312 = vpow2.f32 %v4492_v50  ;;  %v8894_v50 = vld [vmem:[#allocation84_spill] sm:$0xff] }
 0x9e2   :  { %v5309_v32 = vpop.eup %5308 }
 0x9e3   :  { %v2452_v36 = vmul.f32 %v5309_v32, %v5307_v49 }
 0x9e5   :  { %v2453_v39 = vpack.c.bf16 %v2452_v36, %v2452_v36 }
 0x9e6   :  { %v5311_v49 = vpop.eup %5310 }
 0x9e7   :  { %4768 = vmatmul.mubr.bf16.vlgmr.msra.gmra.mrb[64].mxu0 %v2453_v39  ;;  %2703 = vmatprep.mubr.bf16.mxu1 %v2453_v39  ;;  %v5313_v32 = vpop.eup %5312  ;;  %v2656_v36 = vadd.f32 1.0, %v5311_v49  ;;  %v8895_v49 = vld [vmem:[#allocation85_spill] sm:$0xff] }
 0x9e8   :  { %2602 = vmatpush1.bf16.msra.mxu0 %v6878_v19  ;;  %2633 = vmatprep.mubr.bf16.mxu0 %v8604_v53  ;;  %v8837_v19 = vld [vmem:[#allocation72_spill] sm:$0xff] }
 0x9e9   :  { %2603 = vmatprep.subr.bf16.mxu0 %v6882_v21  ;;  %v8838_v21 = vld [vmem:[#allocation73_spill] sm:$0xff]  ;;  %5314 = vrcp.f32 %v2656_v36 }
 0x9ea   :  { %v5102_v36 = vld [vmem:[#allocation6 + $0x140] sm:$0xff]  }
 0x9ec   :  { %2604 = vmatpush1.bf16.msra.mxu0 %v6885_v26  ;;  %v8839_v26 = vld [vmem:[#allocation74_spill] sm:$0xff] }
 0x9ed   :  { %2605 = vmatprep.subr.bf16.mxu0 %v6888_v28  ;;  %v8840_v28 = vld [vmem:[#allocation75_spill] sm:$0xff] }
 0x9f0   :  { %2606 = vmatpush1.bf16.msra.mxu0 %v8755_v47  ;;  %v8842_v47 = vld [vmem:[#allocation47_spill] sm:$0xff] }
 0x9f1   :  { %2607 = vmatprep.subr.bf16.mxu0 %v8756_v46  ;;  %v8843_v46 = vld [vmem:[#allocation76_spill] sm:$0xff] }
 0x9f3   :  { %v5315_v33 = vpop.eup %5314 }
 0x9f4   :  { %2608 = vmatpush1.bf16.msra.mxu0 %v8757_v41  ;;  %v8844_v41 = vld [vmem:[#allocation77_spill] sm:$0xff] }
 0x9f5   :  { %2609 = vmatprep.subr.bf16.mxu0 %v8758_v54  ;;  %v8845_v54 = vld [vmem:[#allocation78_spill] sm:$0xff] }
 0x9f8   :  { %2610 = vmatpush1.bf16.msra.mxu0 %v8759_v56  ;;  %v8846_v56 = vld [vmem:[#allocation79_spill] sm:$0xff] }
 0x9f9   :  { %2611 = vmatprep.subr.bf16.mxu0 %v8760_v60  ;;  %v8847_v60 = vld [vmem:[#allocation80_spill] sm:$0xff] }
 0x9fc   :  { %2612 = vmatpush1.bf16.msra.mxu0 %v8761_v1  ;;  %v8848_v1 = vld [vmem:[#allocation81_spill] sm:$0xff] }
 0x9fd   :  { %2613 = vmatprep.subr.bf16.mxu0 %v8762_v5  ;;  %v8849_v5 = vld [vmem:[#allocation82_spill] sm:$0xff] }
 0xa00   :  { %2614 = vmatpush1.bf16.msra.mxu0 %v8763_v9  ;;  %v8850_v9 = vld [vmem:[#allocation38_spill] sm:$0xff] }
 0xa01   :  { %2615 = vmatprep.subr.bf16.mxu0 %v8764_v18  ;;  %v8851_v18 = vld [vmem:[#allocation39_spill] sm:$0xff] }
 0xa04   :  { %2616 = vmatpush1.bf16.msra.mxu0 %v8765_v31  ;;  %v8852_v31 = vld [vmem:[#allocation15_spill] sm:$0xff] }
 0xa05   :  { %2712 = vmatprep.subr.bf16.mxu0 %v8766_v40  ;;  %v8853_v40 = vld [vmem:[#allocation18_spill] sm:$0xff] }
 0xa07   :  { %2634 = vmatmul.mubr.bf16.vlgmr.msra.gmra.mrb[68].mxu0 %v7204_v25  ;;  %v8860_v25 = vld [vmem:[#allocation9_spill] sm:$0xff] }
 0xa08   :  { %2744 = vmatprep.mubr.bf16.mxu0 %v2453_v39  ;;  %2713 = vmatpush1.bf16.msra.mxu0 %v8767_v35  ;;  %v8854_v35 = vld [vmem:[#allocation17_spill] sm:$0xff]  ;;  %v2655_v39 = vadd.f32 1.0, %v5313_v32  ;;  %v8896_v32 = vld [vmem:[#allocation86_spill] sm:$0xff] }
 0xa09   :  { %2714 = vmatprep.subr.bf16.mxu0 %v8768_v11  ;;  %v8855_v11 = vld [vmem:[#allocation19_spill] sm:$0xff] }
 0xa0a   :  { %5316 = vrcp.f32 %v2655_v39  ;;  %v5103_v39 = vld [vmem:[#allocation6 + $0x148] sm:$0xff]  }
 0xa0c   :  { %2715 = vmatpush1.bf16.msra.mxu0 %v8769_v3  ;;  %v8856_v3 = vld [vmem:[#allocation21_spill] sm:$0xff] }
 0xa0d   :  { %2716 = vmatprep.subr.bf16.mxu0 %v8770_v7  ;;  %v8857_v7 = vld [vmem:[#allocation23_spill] sm:$0xff] }
 0xa10   :  { %2717 = vmatpush1.bf16.msra.mxu0 %v8771_v58  ;;  %v8858_v58 = vld [vmem:[#allocation14_spill] sm:$0xff] }
 0xa11   :  { %2718 = vmatprep.subr.bf16.mxu0 %v8772_v62  ;;  %v8859_v62 = vld [vmem:[#allocation10_spill] sm:$0xff] }
 0xa14   :  { %2719 = vmatpush1.bf16.msra.mxu0 %v8837_v19  ;;  %v5317_v13 = vpop.eup %5316 }
 0xa15   :  { %2720 = vmatprep.subr.bf16.mxu0 %v8838_v21  ;;  %v8864_v21 = vld [vmem:[#allocation57_spill] sm:$0xff] }
 0xa18   :  { %2721 = vmatpush1.bf16.msra.mxu0 %v8839_v26 }
 0xa19   :  { %2722 = vmatprep.subr.bf16.mxu0 %v8840_v28 }
 0xa1c   :  { %2723 = vmatpush1.bf16.msra.mxu0 %v8841_v24  ;;  %v8865_v24 = vld [vmem:[#allocation59_spill] sm:$0xff] }
 0xa1d   :  { %2724 = vmatprep.subr.bf16.mxu0 %v8842_v47 }
 0xa20   :  { %2725 = vmatpush1.bf16.msra.mxu0 %v8843_v46 }
 0xa21   :  { %2726 = vmatprep.subr.bf16.mxu0 %v8844_v41 }
 0xa24   :  { %2727 = vmatpush1.bf16.msra.mxu0 %v8845_v54 }
 0xa25   :  { %2728 = vmatprep.subr.bf16.mxu0 %v8846_v56 }
 0xa28   :  { %2729 = vmatpush1.bf16.msra.mxu0 %v8847_v60 }
 0xa29   :  { %2730 = vmatprep.subr.bf16.mxu0 %v8848_v1  ;;  %v2665_v1 = vmul.f32 %v5315_v33, %v7201_v23  ;;  %v8881_v23 = vld [vmem:[#allocation22_spill] sm:$0xff] }
 0xa2c   :  { %2731 = vmatpush1.bf16.msra.mxu0 %v8849_v5 }
 0xa2d   :  { %2732 = vmatprep.subr.bf16.mxu0 %v8850_v9 }
 0xa30   :  { %2733 = vmatpush1.bf16.msra.mxu0 %v8851_v18 }
 0xa31   :  { %2734 = vmatprep.subr.bf16.mxu0 %v8852_v31 }
 0xa34   :  { %2735 = vmatpush1.bf16.msra.mxu0 %v8853_v40 }
 0xa35   :  { %2736 = vmatprep.subr.bf16.mxu0 %v8854_v35 }
 0xa38   :  { %2737 = vmatpush1.bf16.msra.mxu0 %v8855_v11 }
 0xa39   :  { %2738 = vmatprep.subr.bf16.mxu0 %v8856_v3  ;;  %v8882_v3 = vld [vmem:[#allocation24_spill] sm:$0xff] }
 0xa3c   :  { %2739 = vmatpush1.bf16.msra.mxu0 %v8857_v7  ;;  %v8883_v7 = vld [vmem:[#allocation26_spill] sm:$0xff] }
 0xa3d   :  { %2740 = vmatprep.subr.bf16.mxu0 %v8858_v58  ;;  %v8884_v58 = vld [vmem:[#allocation28_spill] sm:$0xff] }
 0xa40   :  { %2741 = vmatpush1.bf16.msra.mxu0 %v8859_v62  ;;  %v8885_v62 = vld [vmem:[#allocation30_spill] sm:$0xff] }
 0xa41   :  { %2742 = vmatprep.subr.bf16.mxu0 %v8860_v25  ;;  %v8886_v25 = vld [vmem:[#allocation68_spill] sm:$0xff] }
 0xa44   :  { %2743 = vmatpush1.bf16.msra.mxu0 %v8861_v42  ;;  %v8887_v42 = vld [vmem:[#allocation69_spill] sm:$0xff] }
 0xa45   :  { %2884 = vmatprep.subr.bf16.mxu0 %v8862_v16 }
 0xaba   :  { %v2553_v17 = vpop.f32.mrb[64].mxu0 }
 0xabb   :  { %v7399_v38 = vadd.f32 %v2553_v17, %v8863_v12  ;;  %v4769_v37 = vpop.f32.mrb[65].mxu0  ;;  %v8888_v17 = vld [vmem:[#allocation70_spill] sm:$0xff]  ;;  %v8889_v12 = vld [vmem:[#allocation71_spill] sm:$0xff] }
 0xabc   :  { %v2556_v43 = vpop.f32.mrb[66].mxu0  ;;  %v8890_v37 = vld [vmem:[#allocation11_spill] sm:$0xff] }
 0xabd   :  { %v4770_v48 = vpop.f32.mrb[67].mxu0  ;;  %v8891_v43 = vld [vmem:[#allocation53_spill] sm:$0xff] }
 0xabe   :  { %v8892_v48 = vld [vmem:[#allocation55_spill] sm:$0xff] }
 0xada   :  { %v2635_v19 = vpop.f32.mrb[68].mxu0 }
 0xadb   :  { %v2644_v26 = vadd.f32 %v2635_v19, %v8864_v21  ;;  %v2637_v28 = vpop.f32.mrb[69].mxu0  ;;  %v5104_v19 = vld [vmem:[#allocation6 + $0x150] sm:$0xff]   ;;  %v5105_v21 = vld [vmem:[#allocation6 + $0x158] sm:$0xff]  }
 0xadc   :  { %v2645_v47 = vadd.f32 %v2637_v28, %v8865_v24  ;;  %v2639_v46 = vpop.f32.mrb[70].mxu0  ;;  %v5107_v28 = vld [vmem:[#allocation6 + $0x168] sm:$0xff]   ;;  %v5108_v24 = vld [vmem:[#allocation6 + $0x170] sm:$0xff]  }
 0xadd   :  { %v4494_v41 = vmul.f32 -1.442695, %v2644_v26  ;;  %v2640_v54 = vpop.f32.mrb[71].mxu0  ;;  %v5106_v26 = vld [vmem:[#allocation6 + $0x160] sm:$0xff]   ;;  %v8897_v46 = vld [vmem:[#allocation87_spill] sm:$0xff] }
 0xade   :  { %5318 = vtanh.f32 %v2645_v47  ;;  %v5109_v47 = vld [vmem:[#allocation6 + $0x178] sm:$0xff]  }
 0xadf   :  { %5320 = vpow2.f32 %v4494_v41 }
 0xae8   :  { %v5319_v56 = vpop.eup %5318 }
 0xae9   :  { %v5321_v60 = vpop.eup %5320  ;;  %v2666_v5 = vmul.f32 %v5319_v56, %v5317_v13 }
 0xaea   :  { %v2657_v9 = vadd.f32 1.0, %v5321_v60 }
 0xaeb   :  { %v7406_v18 = vadd.f32 %v2666_v5, %v2665_v1 }
 0xaec   :  { %5322 = vrcp.f32 %v2657_v9 }
 0xaed   :  { %5324 = vtanh.f32 %v7406_v18 }
 0xaf6   :  { %v5323_v31 = vpop.eup %5322 }
 0xaf7   :  { %v5325_v40 = vpop.eup %5324 }
 0xaf8   :  { %v2669_v35 = vmul.f32 %v5325_v40, %v5323_v31 }
 0xafa   :  { %v7409_v11 = vpack.c.bf16 %v2669_v35, %v2669_v35 }
 0xafc   :  { %2704 = vmatmul.mubr.bf16.vlgmr.msra.gmra.mrb[76].mxu1 %v7409_v11  ;;  %2745 = vmatmul.mubr.bf16.vlgmr.msra.gmra.mrb[72].mxu0 %v7409_v11 }
 0xafd   :  { %2885 = vmatpush1.bf16.msra.mxu0 %v7037_v15  ;;  %2916 = vmatprep.mubr.bf16.mxu0 %v8604_v53  ;;  %v8866_v15 = vld [vmem:[#allocation42_spill] sm:$0xff] }
 0xafe   :  { %2886 = vmatprep.subr.bf16.mxu0 %v7041_v29  ;;  %4787 = vmatprep.mubr.msk.bf16.mxu1 %vm5853_vm1, %v8653_v52  ;;  %v8867_v29 = vld [vmem:[#allocation13_spill] sm:$0xff] }
 0xaff   :  { %4772 = vmatpush3.bf16.msra.mxu1 %v5102_v36 }
 0xb00   :  { %4773 = vmatprep.subr.bf16.mxu1 %v8653_v52 }
 0xb01   :  { %2887 = vmatpush1.bf16.msra.mxu0 %v7046_v4  ;;  %v8868_v4 = vld [vmem:[#allocation49_spill] sm:$0xff] }
 0xb02   :  { %2888 = vmatprep.subr.bf16.mxu0 %v7049_v63  ;;  %v8869_v63 = vld [vmem:[#allocation51_spill] sm:$0xff] }
 0xb03   :  { %4774 = vmatpush3.bf16.msra.mxu1 %v5103_v39 }
 0xb04   :  { %4775 = vmatprep.subr.bf16.mxu1 %v8653_v52 }
 0xb05   :  { %2889 = vmatpush1.bf16.msra.mxu0 %v7052_v8  ;;  %v8870_v8 = vld [vmem:[#allocation44_spill] sm:$0xff] }
 0xb06   :  { %2890 = vmatprep.subr.bf16.mxu0 %v7055_v59  ;;  %v8871_v59 = vld [vmem:[#allocation46_spill] sm:$0xff] }
 0xb07   :  { %4776 = vmatpush3.bf16.msra.mxu1 %v5104_v19 }
 0xb08   :  { %4777 = vmatprep.subr.bf16.mxu1 %v8653_v52 }
 0xb09   :  { %2891 = vmatpush1.bf16.msra.mxu0 %v7058_v51  ;;  %v8872_v51 = vld [vmem:[#allocation25_spill] sm:$0xff] }
 0xb0a   :  { %2892 = vmatprep.subr.bf16.mxu0 %v7061_v22  ;;  %v8873_v22 = vld [vmem:[#allocation27_spill] sm:$0xff] }
 0xb0b   :  { %4778 = vmatpush3.bf16.msra.mxu1 %v5105_v21 }
 0xb0c   :  { %4779 = vmatprep.subr.bf16.mxu1 %v8653_v52 }
 0xb0d   :  { %2893 = vmatpush1.bf16.msra.mxu0 %v7064_v44  ;;  %v8874_v44 = vld [vmem:[#allocation29_spill] sm:$0xff] }
 0xb0e   :  { %2894 = vmatprep.subr.bf16.mxu0 %v7067_v30  ;;  %v8875_v30 = vld [vmem:[#allocation31_spill] sm:$0xff] }
 0xb0f   :  { %4780 = vmatpush3.bf16.msra.mxu1 %v5106_v26 }
 0xb10   :  { %4781 = vmatprep.subr.bf16.mxu1 %v8653_v52 }
 0xb11   :  { %2895 = vmatpush1.bf16.msra.mxu0 %v7070_v55  ;;  %v8876_v55 = vld [vmem:[#allocation34_spill] sm:$0xff] }
 0xb12   :  { %2896 = vmatprep.subr.bf16.mxu0 %v7073_v27  ;;  %v8877_v27 = vld [vmem:[#allocation41_spill] sm:$0xff] }
 0xb13   :  { %4782 = vmatpush3.bf16.msra.mxu1 %v5107_v28 }
 0xb14   :  { %4783 = vmatprep.subr.bf16.mxu1 %v8653_v52 }
 0xb15   :  { %2897 = vmatpush1.bf16.msra.mxu0 %v7076_v57  ;;  %v8878_v57 = vld [vmem:[#allocation36_spill] sm:$0xff] }
 0xb16   :  { %2898 = vmatprep.subr.bf16.mxu0 %v7079_v10  ;;  %v8879_v10 = vld [vmem:[#allocation43_spill] sm:$0xff] }
 0xb17   :  { %4784 = vmatpush3.bf16.msra.mxu1 %v5108_v24 }
 0xb18   :  { %4785 = vmatprep.subr.bf16.mxu1 %v8653_v52 }
 0xb19   :  { %2899 = vmatpush1.bf16.msra.mxu0 %v7082_v61  ;;  %v8880_v61 = vld [vmem:[#allocation20_spill] sm:$0xff] }
 0xb1a   :  { %2995 = vmatprep.subr.bf16.mxu0 %v7226_v34 }
 0xb1b   :  { %4786 = vmatpush3.bf16.msra.mxu1 %v5109_v47 }
 0xb1c   :  { %2917 = vmatmul.mubr.bf16.vlgmr.msra.gmra.mrb[76].mxu0 %v7409_v11  ;;  %2925 = vmatprep.subr.bf16.mxu1 %v8897_v46 }
 0xb1d   :  { %2996 = vmatpush1.bf16.msra.mxu0 %v8866_v15 }
 0xb1e   :  { %2997 = vmatprep.subr.bf16.mxu0 %v8867_v29 }
 0xb21   :  { %2998 = vmatpush1.bf16.msra.mxu0 %v8868_v4 }
 0xb22   :  { %2999 = vmatprep.subr.bf16.mxu0 %v8869_v63 }
 0xb25   :  { %3000 = vmatpush1.bf16.msra.mxu0 %v8870_v8 }
 0xb26   :  { %3001 = vmatprep.subr.bf16.mxu0 %v8871_v59 }
 0xb29   :  { %3002 = vmatpush1.bf16.msra.mxu0 %v8872_v51 }
 0xb2a   :  { %3003 = vmatprep.subr.bf16.mxu0 %v8873_v22 }
 0xb2d   :  { %3004 = vmatpush1.bf16.msra.mxu0 %v8874_v44 }
 0xb2e   :  { %3005 = vmatprep.subr.bf16.mxu0 %v8875_v30 }
 0xb31   :  { %3006 = vmatpush1.bf16.msra.mxu0 %v8876_v55 }
 0xb32   :  { %3007 = vmatprep.subr.bf16.mxu0 %v8877_v27 }
 0xb35   :  { %3008 = vmatpush1.bf16.msra.mxu0 %v8878_v57 }
 0xb36   :  { %3009 = vmatprep.subr.bf16.mxu0 %v8879_v10 }
 0xb39   :  { %3010 = vmatpush1.bf16.msra.mxu0 %v8880_v61 }
 0xb3a   :  { %3011 = vmatprep.subr.bf16.mxu0 %v8881_v23 }
 0xb3d   :  { %3012 = vmatpush1.bf16.msra.mxu0 %v8882_v3 }
 0xb3e   :  { %3013 = vmatprep.subr.bf16.mxu0 %v8883_v7 }
 0xb41   :  { %3014 = vmatpush1.bf16.msra.mxu0 %v8884_v58 }
 0xb42   :  { %3015 = vmatprep.subr.bf16.mxu0 %v8885_v62 }
 0xb45   :  { %3016 = vmatpush1.bf16.msra.mxu0 %v8886_v25 }
 0xb46   :  { %3017 = vmatprep.subr.bf16.mxu0 %v8887_v42 }
 0xb49   :  { %3018 = vmatpush1.bf16.msra.mxu0 %v8888_v17 }
 0xb4a   :  { %3019 = vmatprep.subr.bf16.mxu0 %v8889_v12 }
 0xb4d   :  { %3020 = vmatpush1.bf16.msra.mxu0 %v8890_v37 }
 0xb4e   :  { %3021 = vmatprep.subr.bf16.mxu0 %v8891_v43 }
 0xb51   :  { %3022 = vmatpush1.bf16.msra.mxu0 %v8892_v48 }
 0xb52   :  { %3023 = vmatprep.subr.bf16.mxu0 %v8893_v14 }
 0xb55   :  { %3024 = vmatpush1.bf16.msra.mxu0 %v8894_v50 }
 0xb56   :  { %3025 = vmatprep.subr.bf16.mxu0 %v8895_v49 }
 0xb59   :  { %3026 = vmatpush1.bf16.msra.mxu0 %v8896_v32 }
 0xb5a   :  { %4791 = vmatprep.subr.bf16.mxu0 %v8653_v52 }
 0xbcf   :  { %v2705_v41 = vpop.f32.mrb[76].mxu1  ;;  %v2746_v54 = vpop.f32.mrb[72].mxu0 }
 0xbd0   :  { %v2706_v33 = vadd.f32 %v2705_v41, %v8699_v2  ;;  %v2707_v13 = vpop.f32.mrb[77].mxu1  ;;  %v2748_v56 = vpop.f32.mrb[73].mxu0  ;;  %v2747_v36 = vadd.f32 %v2746_v54, %v8701_v45 }
 0xbd1   :  { %v2708_v60 = vadd.f32 %v2707_v13, %v8700_v6  ;;  %v2709_v1 = vpop.f32.mrb[78].mxu1  ;;  %v2750_v5 = vpop.f32.mrb[74].mxu0  ;;  %v2749_v39 = vadd.f32 %v2748_v56, %v8702_v20  ;;  %v8898_v56 = vld [vmem:[#allocation52_spill] sm:$0xff] }
 0xbd2   :  { %v4495_v9 = vmul.f32 -1.442695, %v2706_v33  ;;  %v2710_v31 = vpop.f32.mrb[79].mxu1  ;;  %v2751_v40 = vpop.f32.mrb[75].mxu0  ;;  %v4497_v19 = vmul.f32 -1.442695, %v2747_v36 }
 0xbd3   :  { %v4496_v35 = vmul.f32 -1.442695, %v2708_v60 }
 0xbd4   :  { %5326 = vpow2.f32 %v4495_v9 }
 0xbd5   :  { %5328 = vpow2.f32 %v4496_v35  ;;  %v8899_v35 = vld [vmem:[#allocation54_spill] sm:$0xff] }
 0xbd6   :  { %5330 = vtanh.f32 %v2749_v39 }
 0xbd7   :  { %5332 = vpow2.f32 %v4497_v19 }
 0xbde   :  { %v5327_v21 = vpop.eup %5326 }
 0xbdf   :  { %v2762_v26 = vadd.f32 1.0, %v5327_v21  ;;  %v5329_v28 = vpop.eup %5328 }
 0xbe0   :  { %v2763_v24 = vadd.f32 1.0, %v5329_v28  ;;  %v5331_v47 = vpop.eup %5330 }
 0xbe1   :  { %5334 = vrcp.f32 %v2762_v26  ;;  %v5333_v41 = vpop.eup %5332 }
 0xbe2   :  { %5336 = vrcp.f32 %v2763_v24  ;;  %v2764_v1 = vadd.f32 1.0, %v5333_v41  ;;  %v7494_v41 = vld [vmem:[#allocation2 + $0x28] ss:$16 sps:$4 sm:$0xff]  }
 0xbe4   :  { %5338 = vrcp.f32 %v2764_v1  ;;  %v7506_v1 = vld [vmem:[#allocation2 + $0x68] ss:$16 sps:$4 sm:$0xff]  }
 0xbe5   :  { %8902 = vst [vmem:[#allocation72_spill] sm:$0xff] %v7506_v1 }
 0xbeb   :  { %v5335_v33 = vpop.eup %5334 }
 0xbec   :  { %v2773_v13 = vmul.f32 %v5335_v33, %v5331_v47  ;;  %v5337_v60 = vpop.eup %5336  ;;  %v7491_v47 = vld [vmem:[#allocation2 + $0x2c] ss:$16 sps:$4 sm:$0xff]  }
 0xbed   :  { %v2772_v5 = vmul.f32 %v5337_v60, %v7339_v0  ;;  %v7487_v0 = vld [vmem:[#allocation2 + $0x8] ss:$16 sps:$4 sm:$0xff]   ;;  %v7497_v33 = vld [vmem:[#allocation2 + $0x4c] ss:$16 sps:$4 sm:$0xff]  }
 0xbee   :  { %v5339_v21 = vpop.eup %5338  ;;  %v7503_v60 = vld [vmem:[#allocation2 + $0x6c] ss:$16 sps:$4 sm:$0xff]  }
 0xbef   :  { %v2918_v54 = vpop.f32.mrb[76].mxu0  ;;  %v7478_v9 = vadd.f32 %v2773_v13, %v2772_v5  ;;  %v7500_v13 = vld [vmem:[#allocation2 + $0x48] ss:$16 sps:$4 sm:$0xff]   ;;  %8901 = vst [vmem:[#allocation50_spill] sm:$0xff] %v7503_v60  ;;  %v7509_v5 = vld [vmem:[#allocation2 + $0x8c] ss:$16 sps:$4 sm:$0xff]  }
 0xbf0   :  { %v7481_v31 = vadd.f32 %v2918_v54, %v8898_v56  ;;  %v2920_v40 = vpop.f32.mrb[77].mxu0  ;;  %8900 = vst [vmem:[#allocation48_spill] sm:$0xff] %v7500_v13  ;;  %8903 = vst [vmem:[#allocation73_spill] sm:$0xff] %v7509_v5  ;;  %v7512_v54 = vld [vmem:[#allocation2 + $0x88] ss:$16 sps:$4 sm:$0xff]  }
 0xbf1   :  { %v7484_v36 = vadd.f32 %v2920_v40, %v8899_v35  ;;  %v2922_v39 = vpop.f32.mrb[78].mxu0  ;;  %5340 = vtanh.f32 %v7478_v9  ;;  %8904 = vst [vmem:[#allocation74_spill] sm:$0xff] %v7512_v54  ;;  %v7515_v56 = vld [vmem:[#allocation2 + $0xac] ss:$16 sps:$4 sm:$0xff]   ;;  %v7518_v40 = vld [vmem:[#allocation2 + $0xa8] ss:$16 sps:$4 sm:$0xff]  }
 0xbf2   :  { %v2923_v19 = vpop.f32.mrb[79].mxu0  ;;  %8905 = vst [vmem:[#allocation75_spill] sm:$0xff] %v7515_v56  ;;  %8906 = vst [vmem:[#allocation45_spill] sm:$0xff] %v7518_v40  ;;  %v7521_v35 = vld [vmem:[#allocation2 + $0xcc] ss:$16 sps:$4 sm:$0xff]  }
 0xbf3   :  { %8907 = vst [vmem:[#allocation47_spill] sm:$0xff] %v7521_v35  ;;  %v7524_v39 = vld [vmem:[#allocation2 + $0xc8] ss:$16 sps:$4 sm:$0xff]   ;;  %v7527_v19 = vld [vmem:[#allocation2 + $0xec] ss:$16 sps:$4 sm:$0xff]  }
 0xbf4   :  { %8908 = vst [vmem:[#allocation76_spill] sm:$0xff] %v7524_v39  ;;  %8909 = vst [vmem:[#allocation77_spill] sm:$0xff] %v7527_v19 }
 0xbfb   :  { %v5341_v26 = vpop.eup %5340 }
 0xbfc   :  { %v2776_v28 = vmul.f32 %v5341_v26, %v5339_v21  ;;  %v7530_v21 = vld [vmem:[#allocation2 + $0xe8] ss:$16 sps:$4 sm:$0xff]   ;;  %v7533_v26 = vld [vmem:[#allocation4 + $0xc] ss:$16 sps:$4 sm:$0xff]  }
 0xbfd   :  { %8910 = vst [vmem:[#allocation78_spill] sm:$0xff] %v7530_v21  ;;  %8911 = vst [vmem:[#allocation79_spill] sm:$0xff] %v7533_v26 }
 0xbfe   :  { %v2777_v24 = vpack.c.bf16 %v2776_v28, %v2776_v28  ;;  %v7537_v28 = vld [vmem:[#allocation4 + $0x8] ss:$16 sps:$4 sm:$0xff]  }
 0xbff   :  { %8912 = vst [vmem:[#allocation80_spill] sm:$0xff] %v7537_v28 }
 0xc00   :  { %4788 = vmatmul.mubr.bf16.vlgmr.msra.gmra.mrb[80].mxu1 %v2777_v24  ;;  %3027 = vmatprep.mubr.bf16.mxu0 %v2777_v24 }
 0xc01   :  { %2926 = vmatpush1.bf16.msra.mxu1 %v7487_v0  ;;  %2957 = vmatprep.mubr.bf16.mxu1 %v8604_v53 }
 0xc02   :  { %2927 = vmatprep.subr.bf16.mxu1 %v7491_v47 }
 0xc05   :  { %2928 = vmatpush1.bf16.msra.mxu1 %v7494_v41 }
 0xc06   :  { %2929 = vmatprep.subr.bf16.mxu1 %v7497_v33 }
 0xc09   :  { %2930 = vmatpush1.bf16.msra.mxu1 %v7500_v13 }
 0xc0a   :  { %2931 = vmatprep.subr.bf16.mxu1 %v7503_v60 }
 0xc0d   :  { %2932 = vmatpush1.bf16.msra.mxu1 %v7506_v1  ;;  %v8944_v1 = vld [vmem:[#allocation60_spill] sm:$0xff] }
 0xc0e   :  { %2933 = vmatprep.subr.bf16.mxu1 %v7509_v5 }
 0xc11   :  { %2934 = vmatpush1.bf16.msra.mxu1 %v7512_v54 }
 0xc12   :  { %2935 = vmatprep.subr.bf16.mxu1 %v7515_v56 }
 0xc15   :  { %2936 = vmatpush1.bf16.msra.mxu1 %v7518_v40  ;;  %v4507_v40 = vmul.f32 -1.442695, %v7484_v36 }
 0xc16   :  { %2937 = vmatprep.subr.bf16.mxu1 %v7521_v35 }
 0xc17   :  { %5342 = vpow2.f32 %v4507_v40 }
 0xc19   :  { %2938 = vmatpush1.bf16.msra.mxu1 %v7524_v39  ;;  %v7540_v39 = vld [vmem:[#allocation4 + $0x2c] ss:$16 sps:$4 sm:$0xff]  }
 0xc1a   :  { %2939 = vmatprep.subr.bf16.mxu1 %v7527_v19  ;;  %8913 = vst [vmem:[#allocation81_spill] sm:$0xff] %v7540_v39  ;;  %v7543_v19 = vld [vmem:[#allocation4 + $0x28] ss:$16 sps:$4 sm:$0xff]  }
 0xc1b   :  { %8914 = vst [vmem:[#allocation82_spill] sm:$0xff] %v7543_v19 }
 0xc1d   :  { %2940 = vmatpush1.bf16.msra.mxu1 %v7530_v21  ;;  %v7546_v21 = vld [vmem:[#allocation4 + $0x4c] ss:$16 sps:$4 sm:$0xff]  }
 0xc1e   :  { %3036 = vmatprep.subr.bf16.mxu1 %v7533_v26  ;;  %8915 = vst [vmem:[#allocation38_spill] sm:$0xff] %v7546_v21  ;;  %v7549_v26 = vld [vmem:[#allocation4 + $0x48] ss:$16 sps:$4 sm:$0xff]  }
 0xc1f   :  { %8916 = vst [vmem:[#allocation39_spill] sm:$0xff] %v7549_v26 }
 0xc20   :  { %2958 = vmatmul.mubr.bf16.vlgmr.msra.gmra.mrb[84].mxu1 %v7409_v11  ;;  %v7552_v11 = vld [vmem:[#allocation4 + $0x6c] ss:$16 sps:$4 sm:$0xff]  }
 0xc21   :  { %3068 = vmatprep.mubr.bf16.mxu1 %v2777_v24  ;;  %3037 = vmatpush1.bf16.msra.mxu1 %v7537_v28  ;;  %8917 = vst [vmem:[#allocation15_spill] sm:$0xff] %v7552_v11  ;;  %v7555_v24 = vld [vmem:[#allocation4 + $0x68] ss:$16 sps:$4 sm:$0xff]  }
 0xc22   :  { %3038 = vmatprep.subr.bf16.mxu1 %v7540_v39  ;;  %8918 = vst [vmem:[#allocation18_spill] sm:$0xff] %v7555_v24  ;;  %v7558_v39 = vld [vmem:[#allocation4 + $0x8c] ss:$16 sps:$4 sm:$0xff]  }
 0xc23   :  { %8919 = vst [vmem:[#allocation17_spill] sm:$0xff] %v7558_v39 }
 0xc25   :  { %3039 = vmatpush1.bf16.msra.mxu1 %v7543_v19  ;;  %v7561_v19 = vld [vmem:[#allocation4 + $0x88] ss:$16 sps:$4 sm:$0xff]  }
 0xc26   :  { %3040 = vmatprep.subr.bf16.mxu1 %v7546_v21  ;;  %8920 = vst [vmem:[#allocation19_spill] sm:$0xff] %v7561_v19  ;;  %v7564_v21 = vld [vmem:[#allocation4 + $0xac] ss:$16 sps:$4 sm:$0xff]  }
 0xc27   :  { %8921 = vst [vmem:[#allocation21_spill] sm:$0xff] %v7564_v21 }
 0xc29   :  { %3041 = vmatpush1.bf16.msra.mxu1 %v7549_v26  ;;  %v7567_v26 = vld [vmem:[#allocation4 + $0xa8] ss:$16 sps:$4 sm:$0xff]  }
 0xc2a   :  { %3042 = vmatprep.subr.bf16.mxu1 %v7552_v11  ;;  %8922 = vst [vmem:[#allocation23_spill] sm:$0xff] %v7567_v26  ;;  %v7570_v11 = vld [vmem:[#allocation4 + $0xcc] ss:$16 sps:$4 sm:$0xff]  }
 0xc2b   :  { %8923 = vst [vmem:[#allocation14_spill] sm:$0xff] %v7570_v11 }
 0xc2d   :  { %3043 = vmatpush1.bf16.msra.mxu1 %v7555_v24  ;;  %v7573_v24 = vld [vmem:[#allocation4 + $0xc8] ss:$16 sps:$4 sm:$0xff]  }
 0xc2e   :  { %3044 = vmatprep.subr.bf16.mxu1 %v7558_v39  ;;  %8924 = vst [vmem:[#allocation10_spill] sm:$0xff] %v7573_v24  ;;  %v7576_v39 = vld [vmem:[#allocation4 + $0xec] ss:$16 sps:$4 sm:$0xff]  }
 0xc2f   :  { %8925 = vst [vmem:[#allocation9_spill] sm:$0xff] %v7576_v39 }
 0xc31   :  { %3045 = vmatpush1.bf16.msra.mxu1 %v7561_v19  ;;  %v7579_v19 = vld [vmem:[#allocation4 + $0xe8] ss:$16 sps:$4 sm:$0xff]  }
 0xc32   :  { %3046 = vmatprep.subr.bf16.mxu1 %v7564_v21  ;;  %8926 = vst [vmem:[#allocation12_spill] sm:$0xff] %v7579_v19  ;;  %v7582_v21 = vld [vmem:[#allocation4 + $0x10c] ss:$16 sps:$4 sm:$0xff]  }
 0xc33   :  { %8927 = vst [vmem:[#allocation16_spill] sm:$0xff] %v7582_v21 }
 0xc35   :  { %3047 = vmatpush1.bf16.msra.mxu1 %v7567_v26  ;;  %v7585_v26 = vld [vmem:[#allocation4 + $0x108] ss:$16 sps:$4 sm:$0xff]  }
 0xc36   :  { %3048 = vmatprep.subr.bf16.mxu1 %v7570_v11  ;;  %8928 = vst [vmem:[#allocation40_spill] sm:$0xff] %v7585_v26  ;;  %v7588_v11 = vld [vmem:[#allocation4 + $0x12c] ss:$16 sps:$4 sm:$0xff]  }
 0xc37   :  { %8929 = vst [vmem:[#allocation57_spill] sm:$0xff] %v7588_v11 }
 0xc39   :  { %3049 = vmatpush1.bf16.msra.mxu1 %v7573_v24  ;;  %v7591_v24 = vld [vmem:[#allocation4 + $0x128] ss:$16 sps:$4 sm:$0xff]  }
 0xc3a   :  { %3050 = vmatprep.subr.bf16.mxu1 %v7576_v39  ;;  %8930 = vst [vmem:[#allocation59_spill] sm:$0xff] %v7591_v24  ;;  %v7594_v39 = vld [vmem:[#allocation4 + $0x14c] ss:$16 sps:$4 sm:$0xff]  }
 0xc3b   :  { %8931 = vst [vmem:[#allocation42_spill] sm:$0xff] %v7594_v39 }
 0xc3d   :  { %3051 = vmatpush1.bf16.msra.mxu1 %v7579_v19  ;;  %v7597_v19 = vld [vmem:[#allocation4 + $0x148] ss:$16 sps:$4 sm:$0xff]  }
 0xc3e   :  { %3052 = vmatprep.subr.bf16.mxu1 %v7582_v21  ;;  %8932 = vst [vmem:[#allocation13_spill] sm:$0xff] %v7597_v19  ;;  %v7600_v21 = vld [vmem:[#allocation4 + $0x16c] ss:$16 sps:$4 sm:$0xff]  }
 0xc3f   :  { %8933 = vst [vmem:[#allocation49_spill] sm:$0xff] %v7600_v21 }
 0xc41   :  { %3053 = vmatpush1.bf16.msra.mxu1 %v7585_v26  ;;  %v7603_v26 = vld [vmem:[#allocation4 + $0x168] ss:$16 sps:$4 sm:$0xff]  }
 0xc42   :  { %3054 = vmatprep.subr.bf16.mxu1 %v7588_v11  ;;  %8934 = vst [vmem:[#allocation51_spill] sm:$0xff] %v7603_v26  ;;  %v7606_v11 = vld [vmem:[#allocation4 + $0x18c] ss:$16 sps:$4 sm:$0xff]  }
 0xc43   :  { %8935 = vst [vmem:[#allocation44_spill] sm:$0xff] %v7606_v11 }
 0xc45   :  { %3055 = vmatpush1.bf16.msra.mxu1 %v7591_v24  ;;  %v7609_v24 = vld [vmem:[#allocation4 + $0x188] ss:$16 sps:$4 sm:$0xff]  }
 0xc46   :  { %3056 = vmatprep.subr.bf16.mxu1 %v7594_v39  ;;  %8936 = vst [vmem:[#allocation46_spill] sm:$0xff] %v7609_v24  ;;  %v7612_v39 = vld [vmem:[#allocation4 + $0x1ac] ss:$16 sps:$4 sm:$0xff]  }
 0xc47   :  { %8937 = vst [vmem:[#allocation25_spill] sm:$0xff] %v7612_v39 }
 0xc49   :  { %3057 = vmatpush1.bf16.msra.mxu1 %v7597_v19  ;;  %v7615_v19 = vld [vmem:[#allocation4 + $0x1a8] ss:$16 sps:$4 sm:$0xff]  }
 0xc4a   :  { %3058 = vmatprep.subr.bf16.mxu1 %v7600_v21  ;;  %8938 = vst [vmem:[#allocation27_spill] sm:$0xff] %v7615_v19  ;;  %v7618_v21 = vld [vmem:[#allocation4 + $0x1cc] ss:$16 sps:$4 sm:$0xff]  }
 0xc4b   :  { %8939 = vst [vmem:[#allocation29_spill] sm:$0xff] %v7618_v21 }
 0xc4d   :  { %3059 = vmatpush1.bf16.msra.mxu1 %v7603_v26  ;;  %v7621_v26 = vld [vmem:[#allocation4 + $0x1c8] ss:$16 sps:$4 sm:$0xff]  }
 0xc4e   :  { %3060 = vmatprep.subr.bf16.mxu1 %v7606_v11  ;;  %8940 = vst [vmem:[#allocation31_spill] sm:$0xff] %v7621_v26  ;;  %v7624_v11 = vld [vmem:[#allocation4 + $0x1ec] ss:$16 sps:$4 sm:$0xff]  }
 0xc4f   :  { %8941 = vst [vmem:[#allocation34_spill] sm:$0xff] %v7624_v11 }
 0xc51   :  { %3061 = vmatpush1.bf16.msra.mxu1 %v7609_v24  ;;  %v7627_v24 = vld [vmem:[#allocation4 + $0x1e8] ss:$16 sps:$4 sm:$0xff]  }
 0xc52   :  { %3062 = vmatprep.subr.bf16.mxu1 %v7612_v39  ;;  %8942 = vst [vmem:[#allocation41_spill] sm:$0xff] %v7627_v24 }
 0xc55   :  { %3063 = vmatpush1.bf16.msra.mxu1 %v7615_v19 }
 0xc56   :  { %3064 = vmatprep.subr.bf16.mxu1 %v7618_v21 }
 0xc59   :  { %3065 = vmatpush1.bf16.msra.mxu1 %v7621_v26  ;;  %v4506_v26 = vmul.f32 -1.442695, %v7481_v31 }
 0xc5a   :  { %3066 = vmatprep.subr.bf16.mxu1 %v7624_v11  ;;  %v5343_v11 = vpop.eup %5342 }
 0xc5b   :  { %5344 = vpow2.f32 %v4506_v26  ;;  %v2980_v54 = vadd.f32 1.0, %v5343_v11 }
 0xc5d   :  { %3067 = vmatpush1.bf16.msra.mxu1 %v7627_v24  ;;  %5346 = vrcp.f32 %v2980_v54 }
 0xc5e   :  { %3208 = vmatprep.subr.bf16.mxu1 %v8862_v16 }
 0xc65   :  { %v5345_v56 = vpop.eup %5344 }
 0xc66   :  { %v2979_v5 = vadd.f32 1.0, %v5345_v56 }
 0xc67   :  { %v5347_v31 = vpop.eup %5346 }
 0xc68   :  { %5348 = vrcp.f32 %v2979_v5  ;;  %v2989_v11 = vmul.f32 %v5347_v31, %v7406_v18  ;;  %v7650_v18 = vld [vmem:[#allocation2 + $0x24] ss:$16 sps:$4 sm:$0xff]  }
 0xc69   :  { %v7676_v31 = vld [vmem:[#allocation2 + $0xa4] ss:$16 sps:$4 sm:$0xff]  }
 0xc72   :  { %v5349_v36 = vpop.eup %5348 }
 0xcd3   :  { %v2877_v39 = vpop.f32.mrb[80].mxu1 }
 0xcd4   :  { %v7632_v19 = vadd.f32 %v2877_v39, %v7399_v38  ;;  %v4789_v28 = vpop.f32.mrb[81].mxu1  ;;  %v8945_v38 = vld [vmem:[#allocation61_spill] sm:$0xff] }
 0xcd5   :  { %v2880_v21 = vpop.f32.mrb[82].mxu1 }
 0xcd6   :  { %8943 = vst [vmem:[#allocation36_spill] sm:$0xff] %v7632_v19  ;;  %v4790_v35 = vpop.f32.mrb[83].mxu1 }
 0xcf3   :  { %v2959_v24 = vpop.f32.mrb[84].mxu1 }
 0xcf4   :  { %v2968_v16 = vadd.f32 %v2959_v24, %v8944_v1  ;;  %v2961_v60 = vpop.f32.mrb[85].mxu1  ;;  %v7646_v24 = vld [vmem:[#allocation2] ss:$16 sps:$4 sm:$0xff]  }
 0xcf5   :  { %v2969_v39 = vadd.f32 %v2961_v60, %v8945_v38  ;;  %v2963_v28 = vpop.f32.mrb[86].mxu1  ;;  %v7661_v38 = vld [vmem:[#allocation2 + $0x40] ss:$16 sps:$4 sm:$0xff]  }
 0xcf6   :  { %v4508_v35 = vmul.f32 -1.442695, %v2968_v16  ;;  %v2964_v21 = vpop.f32.mrb[87].mxu1  ;;  %v7658_v16 = vld [vmem:[#allocation2 + $0x44] ss:$16 sps:$4 sm:$0xff]  }
 0xcf7   :  { %5350 = vtanh.f32 %v2969_v39  ;;  %v7664_v39 = vld [vmem:[#allocation2 + $0x64] ss:$16 sps:$4 sm:$0xff]   ;;  %v7667_v28 = vld [vmem:[#allocation2 + $0x60] ss:$16 sps:$4 sm:$0xff]  }
 0xcf8   :  { %5352 = vpow2.f32 %v4508_v35  ;;  %v7670_v35 = vld [vmem:[#allocation2 + $0x84] ss:$16 sps:$4 sm:$0xff]   ;;  %v7673_v21 = vld [vmem:[#allocation2 + $0x80] ss:$16 sps:$4 sm:$0xff]  }
 0xd01   :  { %v5351_v40 = vpop.eup %5350 }
 0xd02   :  { %v5353_v26 = vpop.eup %5352  ;;  %v2990_v56 = vmul.f32 %v5351_v40, %v5349_v36  ;;  %v7679_v36 = vld [vmem:[#allocation2 + $0xa0] ss:$16 sps:$4 sm:$0xff]   ;;  %v7682_v40 = vld [vmem:[#allocation2 + $0xc4] ss:$16 sps:$4 sm:$0xff]  }
 0xd03   :  { %v2981_v19 = vadd.f32 1.0, %v5353_v26  ;;  %v7685_v26 = vld [vmem:[#allocation2 + $0xc0] ss:$16 sps:$4 sm:$0xff]  }
 0xd04   :  { %v7639_v13 = vadd.f32 %v2990_v56, %v2989_v11  ;;  %v7688_v11 = vld [vmem:[#allocation2 + $0xe4] ss:$16 sps:$4 sm:$0xff]   ;;  %v7691_v56 = vld [vmem:[#allocation2 + $0xe0] ss:$16 sps:$4 sm:$0xff]  }
 0xd05   :  { %5354 = vrcp.f32 %v2981_v19  ;;  %v7655_v19 = vld [vmem:[#allocation2 + $0x20] ss:$16 sps:$4 sm:$0xff]  }
 0xd06   :  { %5356 = vtanh.f32 %v7639_v13 }
 0xd0f   :  { %v5355_v60 = vpop.eup %5354 }
 0xd10   :  { %v5357_v1 = vpop.eup %5356 }
 0xd11   :  { %v2993_v5 = vmul.f32 %v5357_v1, %v5355_v60 }
 0xd13   :  { %v7642_v54 = vpack.c.bf16 %v2993_v5, %v2993_v5 }
 0xd15   :  { %3028 = vmatmul.mubr.bf16.vlgmr.msra.gmra.mrb[80].mxu0 %v7642_v54  ;;  %3069 = vmatmul.mubr.bf16.vlgmr.msra.gmra.mrb[88].mxu1 %v7642_v54 }
 0xd16   :  { %3209 = vmatpush1.bf16.msra.mxu1 %v7646_v24  ;;  %3240 = vmatprep.mubr.bf16.mxu1 %v8604_v53 }
 0xd17   :  { %3210 = vmatprep.subr.bf16.mxu1 %v7650_v18  ;;  %4807 = vmatprep.mubr.msk.bf16.mxu0 %vm5853_vm1, %v8653_v52 }
 0xd1a   :  { %3211 = vmatpush1.bf16.msra.mxu1 %v7655_v19 }
 0xd1b   :  { %3212 = vmatprep.subr.bf16.mxu1 %v7658_v16 }
 0xd1e   :  { %3213 = vmatpush1.bf16.msra.mxu1 %v7661_v38 }
 0xd1f   :  { %3214 = vmatprep.subr.bf16.mxu1 %v7664_v39 }
 0xd22   :  { %3215 = vmatpush1.bf16.msra.mxu1 %v7667_v28 }
 0xd23   :  { %3216 = vmatprep.subr.bf16.mxu1 %v7670_v35 }
 0xd26   :  { %3217 = vmatpush1.bf16.msra.mxu1 %v7673_v21 }
 0xd27   :  { %3218 = vmatprep.subr.bf16.mxu1 %v7676_v31 }
 0xd2a   :  { %3219 = vmatpush1.bf16.msra.mxu1 %v7679_v36 }
 0xd2b   :  { %3220 = vmatprep.subr.bf16.mxu1 %v7682_v40 }
 0xd2e   :  { %3221 = vmatpush1.bf16.msra.mxu1 %v7685_v26 }
 0xd2f   :  { %3222 = vmatprep.subr.bf16.mxu1 %v7688_v11 }
 0xd32   :  { %3223 = vmatpush1.bf16.msra.mxu1 %v7691_v56 }
 0xd33   :  { %3319 = vmatprep.subr.bf16.mxu1 %v7226_v34  ;;  %v5110_v34 = vld [vmem:[#allocation6 + $0x180] sm:$0xff]  }
 0xd34   :  { %4792 = vmatpush3.bf16.msra.mxu0 %v5110_v34  ;;  %v8946_v34 = vld [vmem:[#allocation56_spill] sm:$0xff] }
 0xd35   :  { %3241 = vmatmul.mubr.bf16.vlgmr.msra.gmra.mrb[92].mxu1 %v7642_v54  ;;  %4793 = vmatprep.subr.bf16.mxu0 %v8653_v52 }
 0xd36   :  { %3320 = vmatpush1.bf16.msra.mxu1 %v8866_v15  ;;  %v5111_v15 = vld [vmem:[#allocation6 + $0x188] sm:$0xff]  }
 0xd37   :  { %3321 = vmatprep.subr.bf16.mxu1 %v8867_v29  ;;  %v5112_v29 = vld [vmem:[#allocation6 + $0x190] sm:$0xff]  }
 0xd38   :  { %4794 = vmatpush3.bf16.msra.mxu0 %v5111_v15 }
 0xd39   :  { %4795 = vmatprep.subr.bf16.mxu0 %v8653_v52 }
 0xd3a   :  { %3322 = vmatpush1.bf16.msra.mxu1 %v8868_v4  ;;  %v5113_v4 = vld [vmem:[#allocation6 + $0x198] sm:$0xff]  }
 0xd3b   :  { %3323 = vmatprep.subr.bf16.mxu1 %v8869_v63  ;;  %v5114_v63 = vld [vmem:[#allocation6 + $0x1a0] sm:$0xff]  }
 0xd3c   :  { %4796 = vmatpush3.bf16.msra.mxu0 %v5112_v29 }
 0xd3d   :  { %4797 = vmatprep.subr.bf16.mxu0 %v8653_v52 }
 0xd3e   :  { %3324 = vmatpush1.bf16.msra.mxu1 %v8870_v8  ;;  %v5115_v8 = vld [vmem:[#allocation6 + $0x1a8] sm:$0xff]  }
 0xd3f   :  { %3325 = vmatprep.subr.bf16.mxu1 %v8871_v59  ;;  %v5116_v59 = vld [vmem:[#allocation6 + $0x1b0] sm:$0xff]  }
 0xd40   :  { %4798 = vmatpush3.bf16.msra.mxu0 %v5113_v4  ;;  %v8947_v4 = vld [vmem:[#allocation58_spill] sm:$0xff] }
 0xd41   :  { %4799 = vmatprep.subr.bf16.mxu0 %v8653_v52 }
 0xd42   :  { %3326 = vmatpush1.bf16.msra.mxu1 %v8872_v51  ;;  %v5117_v51 = vld [vmem:[#allocation6 + $0x1b8] sm:$0xff]  }
 0xd43   :  { %3327 = vmatprep.subr.bf16.mxu1 %v8873_v22 }
 0xd44   :  { %4800 = vmatpush3.bf16.msra.mxu0 %v5114_v63 }
 0xd45   :  { %4801 = vmatprep.subr.bf16.mxu0 %v8653_v52 }
 0xd46   :  { %3328 = vmatpush1.bf16.msra.mxu1 %v8874_v44 }
 0xd47   :  { %3329 = vmatprep.subr.bf16.mxu1 %v8875_v30 }
 0xd48   :  { %4802 = vmatpush3.bf16.msra.mxu0 %v5115_v8 }
 0xd49   :  { %4803 = vmatprep.subr.bf16.mxu0 %v8653_v52 }
 0xd4a   :  { %3330 = vmatpush1.bf16.msra.mxu1 %v8876_v55 }
 0xd4b   :  { %3331 = vmatprep.subr.bf16.mxu1 %v8877_v27 }
 0xd4c   :  { %4804 = vmatpush3.bf16.msra.mxu0 %v5116_v59 }
 0xd4d   :  { %4805 = vmatprep.subr.bf16.mxu0 %v8653_v52 }
 0xd4e   :  { %3332 = vmatpush1.bf16.msra.mxu1 %v8878_v57 }
 0xd4f   :  { %3333 = vmatprep.subr.bf16.mxu1 %v8879_v10 }
 0xd50   :  { %4806 = vmatpush3.bf16.msra.mxu0 %v5117_v51 }
 0xd51   :  { %3249 = vmatprep.subr.bf16.mxu0 %v8897_v46 }
 0xd52   :  { %3334 = vmatpush1.bf16.msra.mxu1 %v8880_v61 }
 0xd53   :  { %3335 = vmatprep.subr.bf16.mxu1 %v8881_v23 }
 0xd56   :  { %3336 = vmatpush1.bf16.msra.mxu1 %v8882_v3 }
 0xd57   :  { %3337 = vmatprep.subr.bf16.mxu1 %v8883_v7 }
 0xd5a   :  { %3338 = vmatpush1.bf16.msra.mxu1 %v8884_v58 }
 0xd5b   :  { %3339 = vmatprep.subr.bf16.mxu1 %v8885_v62 }
 0xd5e   :  { %3340 = vmatpush1.bf16.msra.mxu1 %v8886_v25 }
 0xd5f   :  { %3341 = vmatprep.subr.bf16.mxu1 %v8887_v42 }
 0xd62   :  { %3342 = vmatpush1.bf16.msra.mxu1 %v8888_v17 }
 0xd63   :  { %3343 = vmatprep.subr.bf16.mxu1 %v8889_v12 }
 0xd66   :  { %3344 = vmatpush1.bf16.msra.mxu1 %v8890_v37 }
 0xd67   :  { %3345 = vmatprep.subr.bf16.mxu1 %v8891_v43 }
 0xd6a   :  { %3346 = vmatpush1.bf16.msra.mxu1 %v8892_v48 }
 0xd6b   :  { %3347 = vmatprep.subr.bf16.mxu1 %v8893_v14 }
 0xd6e   :  { %3348 = vmatpush1.bf16.msra.mxu1 %v8894_v50 }
 0xd6f   :  { %3349 = vmatprep.subr.bf16.mxu1 %v8895_v49 }
 0xd72   :  { %3350 = vmatpush1.bf16.msra.mxu1 %v8896_v32 }
 0xd73   :  { %4811 = vmatprep.subr.bf16.mxu1 %v8653_v52 }
 0xde8   :  { %v3029_v22 = vpop.f32.mrb[80].mxu0  ;;  %v3070_v44 = vpop.f32.mrb[88].mxu1 }
 0xde9   :  { %v3030_v30 = vadd.f32 %v3029_v22, %v8699_v2  ;;  %v3031_v55 = vpop.f32.mrb[81].mxu0  ;;  %v3072_v27 = vpop.f32.mrb[89].mxu1  ;;  %v3071_v62 = vadd.f32 %v3070_v44, %v8701_v45 }
 0xdea   :  { %v3032_v57 = vadd.f32 %v3031_v55, %v8700_v6  ;;  %v3033_v10 = vpop.f32.mrb[82].mxu0  ;;  %v3074_v61 = vpop.f32.mrb[90].mxu1  ;;  %v3073_v25 = vadd.f32 %v3072_v27, %v8702_v20  ;;  %v8949_v55 = vld [vmem:[#allocation50_spill] sm:$0xff]  ;;  %v8950_v27 = vld [vmem:[#allocation72_spill] sm:$0xff] }
 0xdeb   :  { %v4509_v23 = vmul.f32 -1.442695, %v3030_v30  ;;  %v3034_v3 = vpop.f32.mrb[83].mxu0  ;;  %v3075_v7 = vpop.f32.mrb[91].mxu1  ;;  %v4511_v42 = vmul.f32 -1.442695, %v3071_v62 }
 0xdec   :  { %v4510_v58 = vmul.f32 -1.442695, %v3032_v57  ;;  %v8951_v57 = vld [vmem:[#allocation73_spill] sm:$0xff]  ;;  %v8952_v10 = vld [vmem:[#allocation74_spill] sm:$0xff]  ;;  %v8953_v61 = vld [vmem:[#allocation75_spill] sm:$0xff] }
 0xded   :  { %5358 = vpow2.f32 %v4509_v23  ;;  %v8954_v23 = vld [vmem:[#allocation45_spill] sm:$0xff]  ;;  %v8955_v3 = vld [vmem:[#allocation47_spill] sm:$0xff]  ;;  %v8956_v7 = vld [vmem:[#allocation76_spill] sm:$0xff] }
 0xdee   :  { %5360 = vpow2.f32 %v4510_v58  ;;  %v8957_v58 = vld [vmem:[#allocation77_spill] sm:$0xff]  ;;  %v8958_v62 = vld [vmem:[#allocation78_spill] sm:$0xff] }
 0xdef   :  { %5362 = vtanh.f32 %v3073_v25  ;;  %v8959_v25 = vld [vmem:[#allocation79_spill] sm:$0xff] }
 0xdf0   :  { %5364 = vpow2.f32 %v4511_v42  ;;  %v8960_v42 = vld [vmem:[#allocation80_spill] sm:$0xff] }
 0xdf7   :  { %v5359_v17 = vpop.eup %5358 }
 0xdf8   :  { %v3086_v12 = vadd.f32 1.0, %v5359_v17  ;;  %v5361_v37 = vpop.eup %5360  ;;  %v8961_v17 = vld [vmem:[#allocation81_spill] sm:$0xff] }
 0xdf9   :  { %v3087_v43 = vadd.f32 1.0, %v5361_v37  ;;  %v5363_v48 = vpop.eup %5362  ;;  %v8963_v37 = vld [vmem:[#allocation38_spill] sm:$0xff] }
 0xdfa   :  { %5366 = vrcp.f32 %v3086_v12  ;;  %v5365_v14 = vpop.eup %5364  ;;  %v8962_v12 = vld [vmem:[#allocation82_spill] sm:$0xff] }
 0xdfb   :  { %5368 = vrcp.f32 %v3087_v43  ;;  %v3088_v46 = vadd.f32 1.0, %v5365_v14  ;;  %v8964_v43 = vld [vmem:[#allocation39_spill] sm:$0xff]  ;;  %v8966_v14 = vld [vmem:[#allocation18_spill] sm:$0xff] }
 0xdfd   :  { %5370 = vrcp.f32 %v3088_v46  ;;  %v8971_v46 = vld [vmem:[#allocation14_spill] sm:$0xff] }
 0xe04   :  { %v5367_v50 = vpop.eup %5366 }
 0xe05   :  { %v3097_v49 = vmul.f32 %v5367_v50, %v5363_v48  ;;  %v5369_v32 = vpop.eup %5368  ;;  %v8965_v48 = vld [vmem:[#allocation15_spill] sm:$0xff]  ;;  %v8967_v50 = vld [vmem:[#allocation17_spill] sm:$0xff] }
 0xe06   :  { %v3096_v60 = vmul.f32 %v5369_v32, %v7478_v9  ;;  %v8948_v9 = vld [vmem:[#allocation48_spill] sm:$0xff]  ;;  %v8970_v32 = vld [vmem:[#allocation23_spill] sm:$0xff] }
 0xe07   :  { %v5371_v51 = vpop.eup %5370 }
 0xe08   :  { %v3242_v1 = vpop.f32.mrb[92].mxu1  ;;  %v7741_v5 = vadd.f32 %v3097_v49, %v3096_v60  ;;  %v8968_v49 = vld [vmem:[#allocation19_spill] sm:$0xff]  ;;  %v8972_v60 = vld [vmem:[#allocation10_spill] sm:$0xff] }
 0xe09   :  { %v7744_v15 = vadd.f32 %v3242_v1, %v8946_v34  ;;  %v3244_v29 = vpop.f32.mrb[93].mxu1  ;;  %v8973_v1 = vld [vmem:[#allocation9_spill] sm:$0xff]  ;;  %v8974_v34 = vld [vmem:[#allocation12_spill] sm:$0xff] }
 0xe0a   :  { %v7747_v63 = vadd.f32 %v3244_v29, %v8947_v4  ;;  %v3246_v8 = vpop.f32.mrb[94].mxu1  ;;  %5372 = vtanh.f32 %v7741_v5  ;;  %v8975_v29 = vld [vmem:[#allocation16_spill] sm:$0xff] }
 0xe0b   :  { %v3247_v59 = vpop.f32.mrb[95].mxu1  ;;  %v8976_v4 = vld [vmem:[#allocation40_spill] sm:$0xff]  ;;  %v8977_v8 = vld [vmem:[#allocation57_spill] sm:$0xff] }
 0xe0c   :  { %v8978_v59 = vld [vmem:[#allocation59_spill] sm:$0xff] }
 0xe14   :  { %v5373_v22 = vpop.eup %5372 }
 0xe15   :  { %v3100_v44 = vmul.f32 %v5373_v22, %v5371_v51  ;;  %v8979_v51 = vld [vmem:[#allocation42_spill] sm:$0xff]  ;;  %v8980_v22 = vld [vmem:[#allocation13_spill] sm:$0xff] }
 0xe17   :  { %v3101_v30 = vpack.c.bf16 %v3100_v44, %v3100_v44  ;;  %v8981_v44 = vld [vmem:[#allocation49_spill] sm:$0xff] }
 0xe19   :  { %4808 = vmatmul.mubr.bf16.vlgmr.msra.gmra.mrb[84].mxu0 %v3101_v30  ;;  %3351 = vmatprep.mubr.bf16.mxu1 %v3101_v30 }
 0xe1a   :  { %3250 = vmatpush1.bf16.msra.mxu0 %v7487_v0  ;;  %3281 = vmatprep.mubr.bf16.mxu0 %v8604_v53 }
 0xe1b   :  { %3251 = vmatprep.subr.bf16.mxu0 %v7491_v47 }
 0xe1e   :  { %3252 = vmatpush1.bf16.msra.mxu0 %v7494_v41 }
 0xe1f   :  { %3253 = vmatprep.subr.bf16.mxu0 %v7497_v33 }
 0xe22   :  { %3254 = vmatpush1.bf16.msra.mxu0 %v8948_v9 }
 0xe23   :  { %3255 = vmatprep.subr.bf16.mxu0 %v8949_v55 }
 0xe26   :  { %3256 = vmatpush1.bf16.msra.mxu0 %v8950_v27 }
 0xe27   :  { %3257 = vmatprep.subr.bf16.mxu0 %v8951_v57 }
 0xe2a   :  { %3258 = vmatpush1.bf16.msra.mxu0 %v8952_v10 }
 0xe2b   :  { %3259 = vmatprep.subr.bf16.mxu0 %v8953_v61 }
 0xe2e   :  { %3260 = vmatpush1.bf16.msra.mxu0 %v8954_v23 }
 0xe2f   :  { %3261 = vmatprep.subr.bf16.mxu0 %v8955_v3 }
 0xe32   :  { %3262 = vmatpush1.bf16.msra.mxu0 %v8956_v7 }
 0xe33   :  { %3263 = vmatprep.subr.bf16.mxu0 %v8957_v58 }
 0xe36   :  { %3264 = vmatpush1.bf16.msra.mxu0 %v8958_v62 }
 0xe37   :  { %3360 = vmatprep.subr.bf16.mxu0 %v8959_v25 }
 0xe39   :  { %3282 = vmatmul.mubr.bf16.vlgmr.msra.gmra.mrb[88].mxu0 %v7642_v54  ;;  %v8969_v54 = vld [vmem:[#allocation21_spill] sm:$0xff] }
 0xe3a   :  { %3392 = vmatprep.mubr.bf16.mxu0 %v3101_v30  ;;  %3361 = vmatpush1.bf16.msra.mxu0 %v8960_v42  ;;  %v8982_v30 = vld [vmem:[#allocation51_spill] sm:$0xff] }
 0xe3b   :  { %3362 = vmatprep.subr.bf16.mxu0 %v8961_v17 }
 0xe3e   :  { %3363 = vmatpush1.bf16.msra.mxu0 %v8962_v12 }
 0xe3f   :  { %3364 = vmatprep.subr.bf16.mxu0 %v8963_v37 }
 0xe42   :  { %3365 = vmatpush1.bf16.msra.mxu0 %v8964_v43 }
 0xe43   :  { %3366 = vmatprep.subr.bf16.mxu0 %v8965_v48 }
 0xe46   :  { %3367 = vmatpush1.bf16.msra.mxu0 %v8966_v14 }
 0xe47   :  { %3368 = vmatprep.subr.bf16.mxu0 %v8967_v50 }
 0xe4a   :  { %3369 = vmatpush1.bf16.msra.mxu0 %v8968_v49  ;;  %v8994_v49 = vld [vmem:[#allocation62_spill] sm:$0xff] }
 0xe4b   :  { %3370 = vmatprep.subr.bf16.mxu0 %v8969_v54 }
 0xe4e   :  { %3371 = vmatpush1.bf16.msra.mxu0 %v8970_v32 }
 0xe4f   :  { %3372 = vmatprep.subr.bf16.mxu0 %v8971_v46 }
 0xe52   :  { %3373 = vmatpush1.bf16.msra.mxu0 %v8972_v60  ;;  %v8983_v60 = vld [vmem:[#allocation44_spill] sm:$0xff] }
 0xe53   :  { %3374 = vmatprep.subr.bf16.mxu0 %v8973_v1  ;;  %v8984_v1 = vld [vmem:[#allocation46_spill] sm:$0xff] }
 0xe56   :  { %3375 = vmatpush1.bf16.msra.mxu0 %v8974_v34  ;;  %v8985_v34 = vld [vmem:[#allocation25_spill] sm:$0xff] }
 0xe57   :  { %3376 = vmatprep.subr.bf16.mxu0 %v8975_v29  ;;  %v8986_v29 = vld [vmem:[#allocation27_spill] sm:$0xff] }
 0xe5a   :  { %3377 = vmatpush1.bf16.msra.mxu0 %v8976_v4  ;;  %v8987_v4 = vld [vmem:[#allocation29_spill] sm:$0xff] }
 0xe5b   :  { %3378 = vmatprep.subr.bf16.mxu0 %v8977_v8  ;;  %v8988_v8 = vld [vmem:[#allocation31_spill] sm:$0xff] }
 0xe5e   :  { %3379 = vmatpush1.bf16.msra.mxu0 %v8978_v59  ;;  %v8989_v59 = vld [vmem:[#allocation34_spill] sm:$0xff] }
 0xe5f   :  { %3380 = vmatprep.subr.bf16.mxu0 %v8979_v51  ;;  %v8990_v51 = vld [vmem:[#allocation41_spill] sm:$0xff] }
 0xe62   :  { %3381 = vmatpush1.bf16.msra.mxu0 %v8980_v22  ;;  %v7799_v22 = vld [vmem:[#allocation2 + $0x4] ss:$16 sps:$4 sm:$0xff]  }
 0xe63   :  { %3382 = vmatprep.subr.bf16.mxu0 %v8981_v44  ;;  %8991 = vst [vmem:[#allocation43_spill] sm:$0xff] %v7799_v22 }
 0xe66   :  { %3383 = vmatpush1.bf16.msra.mxu0 %v8982_v30 }
 0xe67   :  { %3384 = vmatprep.subr.bf16.mxu0 %v8983_v60  ;;  %v8992_v60 = vld [vmem:[#allocation36_spill] sm:$0xff] }
 0xe6a   :  { %3385 = vmatpush1.bf16.msra.mxu0 %v8984_v1 }
 0xe6b   :  { %3386 = vmatprep.subr.bf16.mxu0 %v8985_v34 }
 0xe6e   :  { %3387 = vmatpush1.bf16.msra.mxu0 %v8986_v29  ;;  %v4521_v29 = vmul.f32 -1.442695, %v7747_v63 }
 0xe6f   :  { %3388 = vmatprep.subr.bf16.mxu0 %v8987_v4  ;;  %v4520_v4 = vmul.f32 -1.442695, %v7744_v15 }
 0xe70   :  { %5374 = vpow2.f32 %v4521_v29 }
 0xe71   :  { %5376 = vpow2.f32 %v4520_v4 }
 0xe72   :  { %3389 = vmatpush1.bf16.msra.mxu0 %v8988_v8 }
 0xe73   :  { %3390 = vmatprep.subr.bf16.mxu0 %v8989_v59 }
 0xe76   :  { %3391 = vmatpush1.bf16.msra.mxu0 %v8990_v51 }
 0xe77   :  { %3532 = vmatprep.subr.bf16.mxu0 %v7799_v22 }
 0xe7a   :  { %v5375_v59 = vpop.eup %5374 }
 0xe7b   :  { %v5377_v8 = vpop.eup %5376  ;;  %v3304_v51 = vadd.f32 1.0, %v5375_v59 }
 0xe7c   :  { %v3303_v32 = vadd.f32 1.0, %v5377_v8 }
 0xe7d   :  { %5378 = vrcp.f32 %v3304_v51  ;;  %v7839_v51 = vld [vmem:[#allocation4] ss:$16 sps:$4 sm:$0xff]  }
 0xe7e   :  { %5380 = vrcp.f32 %v3303_v32  ;;  %8996 = vst [vmem:[#allocation22_spill] sm:$0xff] %v7839_v51 }
 0xe87   :  { %v5379_v15 = vpop.eup %5378 }
 0xe88   :  { %v5381_v63 = vpop.eup %5380  ;;  %v3313_v59 = vmul.f32 %v5379_v15, %v7639_v13  ;;  %v7835_v13 = vld [vmem:[#allocation4 + $0x4] ss:$16 sps:$4 sm:$0xff]   ;;  %v7863_v15 = vld [vmem:[#allocation4 + $0x80] ss:$16 sps:$4 sm:$0xff]  }
 0xe89   :  { %9004 = vst [vmem:[#allocation71_spill] sm:$0xff] %v7863_v15 }
 0xeec   :  { %v3201_v30 = vpop.f32.mrb[84].mxu0 }
 0xeed   :  { %v7803_v44 = vadd.f32 %v3201_v30, %v8992_v60  ;;  %v4809_v1 = vpop.f32.mrb[85].mxu0  ;;  %v8995_v60 = vld [vmem:[#allocation63_spill] sm:$0xff] }
 0xeee   :  { %v3204_v34 = vpop.f32.mrb[86].mxu0 }
 0xeef   :  { %8993 = vst [vmem:[#allocation20_spill] sm:$0xff] %v7803_v44  ;;  %v4810_v46 = vpop.f32.mrb[87].mxu0 }
 0xf0c   :  { %v3283_v54 = vpop.f32.mrb[88].mxu0 }
 0xf0d   :  { %v3292_v22 = vadd.f32 %v3283_v54, %v8994_v49  ;;  %v3285_v50 = vpop.f32.mrb[89].mxu0 }
 0xf0e   :  { %v3293_v30 = vadd.f32 %v3285_v50, %v8995_v60  ;;  %v3287_v1 = vpop.f32.mrb[90].mxu0  ;;  %v7848_v60 = vld [vmem:[#allocation4 + $0x44] ss:$16 sps:$4 sm:$0xff]  }
 0xf0f   :  { %v4522_v46 = vmul.f32 -1.442695, %v3292_v22  ;;  %v3288_v34 = vpop.f32.mrb[91].mxu0  ;;  %v7842_v22 = vld [vmem:[#allocation4 + $0x24] ss:$16 sps:$4 sm:$0xff]   ;;  %8999 = vst [vmem:[#allocation28_spill] sm:$0xff] %v7848_v60 }
 0xf10   :  { %5382 = vtanh.f32 %v3293_v30  ;;  %8997 = vst [vmem:[#allocation24_spill] sm:$0xff] %v7842_v22  ;;  %v7851_v30 = vld [vmem:[#allocation4 + $0x40] ss:$16 sps:$4 sm:$0xff]   ;;  %v7854_v1 = vld [vmem:[#allocation4 + $0x64] ss:$16 sps:$4 sm:$0xff]  }
 0xf11   :  { %5384 = vpow2.f32 %v4522_v46  ;;  %9000 = vst [vmem:[#allocation30_spill] sm:$0xff] %v7851_v30  ;;  %9001 = vst [vmem:[#allocation68_spill] sm:$0xff] %v7854_v1  ;;  %v7857_v46 = vld [vmem:[#allocation4 + $0x60] ss:$16 sps:$4 sm:$0xff]   ;;  %v7860_v34 = vld [vmem:[#allocation4 + $0x84] ss:$16 sps:$4 sm:$0xff]  }
 0xf12   :  { %9002 = vst [vmem:[#allocation69_spill] sm:$0xff] %v7857_v46  ;;  %9003 = vst [vmem:[#allocation70_spill] sm:$0xff] %v7860_v34 }
 0xf1a   :  { %v5383_v29 = vpop.eup %5382 }
 0xf1b   :  { %v5385_v4 = vpop.eup %5384  ;;  %v3314_v8 = vmul.f32 %v5383_v29, %v5381_v63  ;;  %v7866_v63 = vld [vmem:[#allocation4 + $0xa4] ss:$16 sps:$4 sm:$0xff]   ;;  %v7869_v29 = vld [vmem:[#allocation4 + $0xa0] ss:$16 sps:$4 sm:$0xff]  }
 0xf1c   :  { %v3305_v44 = vadd.f32 1.0, %v5385_v4  ;;  %9005 = vst [vmem:[#allocation11_spill] sm:$0xff] %v7866_v63  ;;  %9006 = vst [vmem:[#allocation53_spill] sm:$0xff] %v7869_v29  ;;  %v7872_v4 = vld [vmem:[#allocation4 + $0xc4] ss:$16 sps:$4 sm:$0xff]  }
 0xf1d   :  { %v7810_v14 = vadd.f32 %v3314_v8, %v3313_v59  ;;  %9007 = vst [vmem:[#allocation55_spill] sm:$0xff] %v7872_v4  ;;  %v7875_v59 = vld [vmem:[#allocation4 + $0xc0] ss:$16 sps:$4 sm:$0xff]   ;;  %v7878_v8 = vld [vmem:[#allocation4 + $0xe4] ss:$16 sps:$4 sm:$0xff]  }
 0xf1e   :  { %5386 = vrcp.f32 %v3305_v44  ;;  %v7845_v44 = vld [vmem:[#allocation4 + $0x20] ss:$16 sps:$4 sm:$0xff]   ;;  %9008 = vst [vmem:[#allocation83_spill] sm:$0xff] %v7875_v59  ;;  %9009 = vst [vmem:[#allocation84_spill] sm:$0xff] %v7878_v8 }
 0xf1f   :  { %5388 = vtanh.f32 %v7810_v14  ;;  %8998 = vst [vmem:[#allocation26_spill] sm:$0xff] %v7845_v44 }
 0xf28   :  { %v5387_v50 = vpop.eup %5386 }
 0xf29   :  { %v5389_v49 = vpop.eup %5388 }
 0xf2a   :  { %v3317_v54 = vmul.f32 %v5389_v49, %v5387_v50  ;;  %v7881_v50 = vld [vmem:[#allocation4 + $0xe0] ss:$16 sps:$4 sm:$0xff]   ;;  %v7884_v49 = vld [vmem:[#allocation4 + $0x104] ss:$16 sps:$4 sm:$0xff]  }
 0xf2b   :  { %9010 = vst [vmem:[#allocation85_spill] sm:$0xff] %v7881_v50  ;;  %9011 = vst [vmem:[#allocation86_spill] sm:$0xff] %v7884_v49 }
 0xf2c   :  { %v7813_v32 = vpack.c.bf16 %v3317_v54, %v3317_v54  ;;  %v7887_v54 = vld [vmem:[#allocation4 + $0x100] ss:$16 sps:$4 sm:$0xff]  }
 0xf2d   :  { %9012 = vst [vmem:[#allocation87_spill] sm:$0xff] %v7887_v54 }
 0xf2e   :  { %3352 = vmatmul.mubr.bf16.vlgmr.msra.gmra.mrb[96].mxu1 %v7813_v32  ;;  %3393 = vmatmul.mubr.bf16.vlgmr.msra.gmra.mrb[92].mxu0 %v7813_v32 }
 0xf2f   :  { %3533 = vmatpush1.bf16.msra.mxu0 %v7646_v24  ;;  %3564 = vmatprep.mubr.bf16.mxu0 %v8604_v53 }
 0xf30   :  { %3534 = vmatprep.subr.bf16.mxu0 %v7650_v18  ;;  %4827 = vmatprep.mubr.msk.bf16.mxu1 %vm5853_vm1, %v8653_v52 }
 0xf33   :  { %3535 = vmatpush1.bf16.msra.mxu0 %v7655_v19 }
 0xf34   :  { %3536 = vmatprep.subr.bf16.mxu0 %v7658_v16 }
 0xf37   :  { %3537 = vmatpush1.bf16.msra.mxu0 %v7661_v38 }
 0xf38   :  { %3538 = vmatprep.subr.bf16.mxu0 %v7664_v39 }
 0xf3b   :  { %3539 = vmatpush1.bf16.msra.mxu0 %v7667_v28 }
 0xf3c   :  { %3540 = vmatprep.subr.bf16.mxu0 %v7670_v35 }
 0xf3f   :  { %3541 = vmatpush1.bf16.msra.mxu0 %v7673_v21 }
 0xf40   :  { %3542 = vmatprep.subr.bf16.mxu0 %v7676_v31 }
 0xf43   :  { %3543 = vmatpush1.bf16.msra.mxu0 %v7679_v36 }
 0xf44   :  { %3544 = vmatprep.subr.bf16.mxu0 %v7682_v40 }
 0xf47   :  { %3545 = vmatpush1.bf16.msra.mxu0 %v7685_v26 }
 0xf48   :  { %3546 = vmatprep.subr.bf16.mxu0 %v7688_v11 }
 0xf4b   :  { %3547 = vmatpush1.bf16.msra.mxu0 %v7691_v56 }
 0xf4c   :  { %3643 = vmatprep.subr.bf16.mxu0 %v7835_v13 }
 0xf4e   :  { %3565 = vmatmul.mubr.bf16.vlgmr.msra.gmra.mrb[96].mxu0 %v7813_v32 }
 0xf4f   :  { %3644 = vmatpush1.bf16.msra.mxu0 %v7839_v51 }
 0xf50   :  { %3645 = vmatprep.subr.bf16.mxu0 %v7842_v22 }
 0xf53   :  { %3646 = vmatpush1.bf16.msra.mxu0 %v7845_v44 }
 0xf54   :  { %3647 = vmatprep.subr.bf16.mxu0 %v7848_v60 }
 0xf57   :  { %3648 = vmatpush1.bf16.msra.mxu0 %v7851_v30 }
 0xf58   :  { %3649 = vmatprep.subr.bf16.mxu0 %v7854_v1 }
 0xf5b   :  { %3650 = vmatpush1.bf16.msra.mxu0 %v7857_v46 }
 0xf5c   :  { %3651 = vmatprep.subr.bf16.mxu0 %v7860_v34 }
 0xf5f   :  { %3652 = vmatpush1.bf16.msra.mxu0 %v7863_v15 }
 0xf60   :  { %3653 = vmatprep.subr.bf16.mxu0 %v7866_v63 }
 0xf63   :  { %3654 = vmatpush1.bf16.msra.mxu0 %v7869_v29 }
 0xf64   :  { %3655 = vmatprep.subr.bf16.mxu0 %v7872_v4  ;;  %v7890_v4 = vld [vmem:[#allocation4 + $0x124] ss:$16 sps:$4 sm:$0xff]  }
 0xf65   :  { %9013 = vst [vmem:[#allocation52_spill] sm:$0xff] %v7890_v4 }
 0xf67   :  { %3656 = vmatpush1.bf16.msra.mxu0 %v7875_v59  ;;  %v7893_v59 = vld [vmem:[#allocation4 + $0x120] ss:$16 sps:$4 sm:$0xff]  }
 0xf68   :  { %3657 = vmatprep.subr.bf16.mxu0 %v7878_v8  ;;  %9014 = vst [vmem:[#allocation54_spill] sm:$0xff] %v7893_v59  ;;  %v7896_v8 = vld [vmem:[#allocation4 + $0x144] ss:$16 sps:$4 sm:$0xff]  }
 0xf69   :  { %9015 = vst [vmem:[#allocation60_spill] sm:$0xff] %v7896_v8 }
 0xf6b   :  { %3658 = vmatpush1.bf16.msra.mxu0 %v7881_v50  ;;  %v7899_v50 = vld [vmem:[#allocation4 + $0x140] ss:$16 sps:$4 sm:$0xff]  }
 0xf6c   :  { %3659 = vmatprep.subr.bf16.mxu0 %v7884_v49  ;;  %9016 = vst [vmem:[#allocation61_spill] sm:$0xff] %v7899_v50  ;;  %v7902_v49 = vld [vmem:[#allocation4 + $0x164] ss:$16 sps:$4 sm:$0xff]  }
 0xf6d   :  { %9017 = vst [vmem:[#allocation56_spill] sm:$0xff] %v7902_v49 }
 0xf6f   :  { %3660 = vmatpush1.bf16.msra.mxu0 %v7887_v54  ;;  %v7905_v54 = vld [vmem:[#allocation4 + $0x160] ss:$16 sps:$4 sm:$0xff]  }
 0xf70   :  { %3661 = vmatprep.subr.bf16.mxu0 %v7890_v4  ;;  %9018 = vst [vmem:[#allocation58_spill] sm:$0xff] %v7905_v54  ;;  %v7908_v4 = vld [vmem:[#allocation4 + $0x184] ss:$16 sps:$4 sm:$0xff]  }
 0xf71   :  { %9019 = vst [vmem:[#allocation48_spill] sm:$0xff] %v7908_v4 }
 0xf73   :  { %3662 = vmatpush1.bf16.msra.mxu0 %v7893_v59  ;;  %v7911_v59 = vld [vmem:[#allocation4 + $0x180] ss:$16 sps:$4 sm:$0xff]  }
 0xf74   :  { %3663 = vmatprep.subr.bf16.mxu0 %v7896_v8  ;;  %9020 = vst [vmem:[#allocation50_spill] sm:$0xff] %v7911_v59  ;;  %v7914_v8 = vld [vmem:[#allocation4 + $0x1a4] ss:$16 sps:$4 sm:$0xff]  }
 0xf75   :  { %9021 = vst [vmem:[#allocation72_spill] sm:$0xff] %v7914_v8 }
 0xf77   :  { %3664 = vmatpush1.bf16.msra.mxu0 %v7899_v50  ;;  %v7917_v50 = vld [vmem:[#allocation4 + $0x1a0] ss:$16 sps:$4 sm:$0xff]  }
 0xf78   :  { %3665 = vmatprep.subr.bf16.mxu0 %v7902_v49  ;;  %9022 = vst [vmem:[#allocation73_spill] sm:$0xff] %v7917_v50  ;;  %v7920_v49 = vld [vmem:[#allocation4 + $0x1c4] ss:$16 sps:$4 sm:$0xff]  }
 0xf79   :  { %9023 = vst [vmem:[#allocation74_spill] sm:$0xff] %v7920_v49 }
 0xf7b   :  { %3666 = vmatpush1.bf16.msra.mxu0 %v7905_v54  ;;  %v7923_v54 = vld [vmem:[#allocation4 + $0x1c0] ss:$16 sps:$4 sm:$0xff]  }
 0xf7c   :  { %3667 = vmatprep.subr.bf16.mxu0 %v7908_v4  ;;  %9024 = vst [vmem:[#allocation75_spill] sm:$0xff] %v7923_v54  ;;  %v7926_v4 = vld [vmem:[#allocation4 + $0x1e4] ss:$16 sps:$4 sm:$0xff]  }
 0xf7d   :  { %9025 = vst [vmem:[#allocation45_spill] sm:$0xff] %v7926_v4 }
 0xf7f   :  { %3668 = vmatpush1.bf16.msra.mxu0 %v7911_v59  ;;  %v7929_v59 = vld [vmem:[#allocation4 + $0x1e0] ss:$16 sps:$4 sm:$0xff]  }
 0xf80   :  { %3669 = vmatprep.subr.bf16.mxu0 %v7914_v8  ;;  %9026 = vst [vmem:[#allocation47_spill] sm:$0xff] %v7929_v59  ;;  %v5118_v8 = vld [vmem:[#allocation6 + $0x1c0] sm:$0xff]  }
 0xf81   :  { %4812 = vmatpush3.bf16.msra.mxu1 %v5118_v8  ;;  %v5124_v8 = vld [vmem:[#allocation6 + $0x1f0] sm:$0xff]  }
 0xf82   :  { %4813 = vmatprep.subr.bf16.mxu1 %v8653_v52 }
 0xf83   :  { %3670 = vmatpush1.bf16.msra.mxu0 %v7917_v50  ;;  %v5119_v50 = vld [vmem:[#allocation6 + $0x1c8] sm:$0xff]  }
 0xf84   :  { %3671 = vmatprep.subr.bf16.mxu0 %v7920_v49  ;;  %v5120_v49 = vld [vmem:[#allocation6 + $0x1d0] sm:$0xff]  }
 0xf85   :  { %4814 = vmatpush3.bf16.msra.mxu1 %v5119_v50  ;;  %v5125_v50 = vld [vmem:[#allocation6 + $0x1f8] sm:$0xff]  }
 0xf86   :  { %4815 = vmatprep.subr.bf16.mxu1 %v8653_v52 }
 0xf87   :  { %3672 = vmatpush1.bf16.msra.mxu0 %v7923_v54  ;;  %v5121_v54 = vld [vmem:[#allocation6 + $0x1d8] sm:$0xff]  }
 0xf88   :  { %3673 = vmatprep.subr.bf16.mxu0 %v7926_v4  ;;  %v5122_v4 = vld [vmem:[#allocation6 + $0x1e0] sm:$0xff]  }
 0xf89   :  { %4816 = vmatpush3.bf16.msra.mxu1 %v5120_v49  ;;  %v7940_v49 = vld [vmem:[#allocation2 + $0xc] ss:$16 sps:$4 sm:$0xff]  }
 0xf8a   :  { %4817 = vmatprep.subr.bf16.mxu1 %v8653_v52  ;;  %9027 = vst [vmem:[#allocation76_spill] sm:$0xff] %v7940_v49 }
 0xf8b   :  { %3674 = vmatpush1.bf16.msra.mxu0 %v7929_v59  ;;  %v5123_v59 = vld [vmem:[#allocation6 + $0x1e8] sm:$0xff]  }
 0xf8c   :  { %4831 = vmatprep.subr.bf16.mxu0 %v8653_v52 }
 0xf8d   :  { %4818 = vmatpush3.bf16.msra.mxu1 %v5121_v54 }
 0xf8e   :  { %4819 = vmatprep.subr.bf16.mxu1 %v8653_v52 }
 0xf91   :  { %4820 = vmatpush3.bf16.msra.mxu1 %v5122_v4 }
 0xf92   :  { %4821 = vmatprep.subr.bf16.mxu1 %v8653_v52 }
 0xf95   :  { %4822 = vmatpush3.bf16.msra.mxu1 %v5123_v59 }
 0xf96   :  { %4823 = vmatprep.subr.bf16.mxu1 %v8653_v52 }
 0xf99   :  { %4824 = vmatpush3.bf16.msra.mxu1 %v5124_v8 }
 0xf9a   :  { %4825 = vmatprep.subr.bf16.mxu1 %v8653_v52 }
 0xf9d   :  { %4826 = vmatpush3.bf16.msra.mxu1 %v5125_v50 }
 0xf9e   :  { %3573 = vmatprep.subr.bf16.mxu1 %v7940_v49 }
0x1001   :  { %v3353_v54 = vpop.f32.mrb[96].mxu1  ;;  %v3394_v29 = vpop.f32.mrb[92].mxu0 }
0x1002   :  { %v3354_v4 = vadd.f32 %v3353_v54, %v8699_v2  ;;  %v3355_v63 = vpop.f32.mrb[97].mxu1  ;;  %v3396_v15 = vpop.f32.mrb[93].mxu0  ;;  %v3395_v50 = vadd.f32 %v3394_v29, %v8701_v45 }
0x1003   :  { %v3356_v59 = vadd.f32 %v3355_v63, %v8700_v6  ;;  %v3357_v34 = vpop.f32.mrb[98].mxu1  ;;  %v3398_v46 = vpop.f32.mrb[94].mxu0  ;;  %v3397_v49 = vadd.f32 %v3396_v15, %v8702_v20  ;;  %v9028_v15 = vld [vmem:[#allocation32_spill] sm:$0xff] }
0x1004   :  { %v4523_v1 = vmul.f32 -1.442695, %v3354_v4  ;;  %v3358_v8 = vpop.f32.mrb[99].mxu1  ;;  %v3399_v30 = vpop.f32.mrb[95].mxu0  ;;  %v4525_v44 = vmul.f32 -1.442695, %v3395_v50 }
0x1005   :  { %v4524_v60 = vmul.f32 -1.442695, %v3356_v59 }
0x1006   :  { %5390 = vpow2.f32 %v4523_v1 }
0x1007   :  { %5392 = vpow2.f32 %v4524_v60 }
0x1008   :  { %5394 = vtanh.f32 %v3397_v49 }
0x1009   :  { %5396 = vpow2.f32 %v4525_v44  ;;  %v9029_v44 = vld [vmem:[#allocation33_spill] sm:$0xff] }
0x1010   :  { %v5391_v22 = vpop.eup %5390 }
0x1011   :  { %v3410_v51 = vadd.f32 1.0, %v5391_v22  ;;  %v5393_v54 = vpop.eup %5392 }
0x1012   :  { %v3411_v63 = vadd.f32 1.0, %v5393_v54  ;;  %v5395_v46 = vpop.eup %5394 }
0x1013   :  { %5398 = vrcp.f32 %v3410_v51  ;;  %v5397_v34 = vpop.eup %5396 }
0x1014   :  { %5400 = vrcp.f32 %v3411_v63  ;;  %v3412_v1 = vadd.f32 1.0, %v5397_v34 }
0x1016   :  { %5402 = vrcp.f32 %v3412_v1 }
0x101d   :  { %v5399_v4 = vpop.eup %5398 }
0x101e   :  { %v3421_v30 = vmul.f32 %v5399_v4, %v5395_v46  ;;  %v5401_v59 = vpop.eup %5400 }
0x101f   :  { %v3420_v60 = vmul.f32 %v5401_v59, %v7741_v5  ;;  %v9034_v5 = vld [vmem:[#allocation23_spill] sm:$0xff] }
0x1020   :  { %v5403_v63 = vpop.eup %5402  ;;  %v9055_v59 = vld [vmem:[#allocation43_spill] sm:$0xff] }
0x1021   :  { %v3566_v29 = vpop.f32.mrb[96].mxu0  ;;  %v7948_v8 = vadd.f32 %v3421_v30, %v3420_v60  ;;  %v9054_v30 = vld [vmem:[#allocation41_spill] sm:$0xff]  ;;  %v9056_v60 = vld [vmem:[#allocation20_spill] sm:$0xff] }
0x1022   :  { %v7951_v50 = vadd.f32 %v3566_v29, %v9028_v15  ;;  %v3568_v22 = vpop.f32.mrb[97].mxu0 }
0x1023   :  { %v7954_v51 = vadd.f32 %v3568_v22, %v9029_v44  ;;  %v3570_v49 = vpop.f32.mrb[98].mxu0  ;;  %5404 = vtanh.f32 %v7948_v8 }
0x1024   :  { %v3571_v54 = vpop.f32.mrb[99].mxu0 }
0x1025   :  { %v4535_v49 = vmul.f32 -1.442695, %v7954_v51  ;;  %v4534_v54 = vmul.f32 -1.442695, %v7951_v50 }
0x1027   :  { %5406 = vpow2.f32 %v4535_v49  ;;  %v9088_v49 = vld [vmem:[#allocation45_spill] sm:$0xff] }
0x1028   :  { %5408 = vpow2.f32 %v4534_v54  ;;  %v9089_v54 = vld [vmem:[#allocation47_spill] sm:$0xff] }
0x102d   :  { %v5405_v46 = vpop.eup %5404 }
0x102e   :  { %v3424_v34 = vmul.f32 %v5405_v46, %v5403_v63 }
0x1030   :  { %v3425_v4 = vpack.c.bf16 %v3424_v34, %v3424_v34 }
0x1031   :  { %v5407_v63 = vpop.eup %5406 }
0x1032   :  { %4828 = vmatmul.mubr.bf16.vlgmr.msra.gmra.mrb[100].mxu1 %v3425_v4  ;;  %3675 = vmatprep.mubr.bf16.mxu0 %v3425_v4  ;;  %v5409_v46 = vpop.eup %5408  ;;  %v3628_v34 = vadd.f32 1.0, %v5407_v63  ;;  %v5126_v63 = vld [vmem:[#allocation6 + $0x200] sm:$0xff]  }
0x1033   :  { %3574 = vmatpush1.bf16.msra.mxu1 %v7487_v0  ;;  %3605 = vmatprep.mubr.bf16.mxu1 %v8604_v53  ;;  %v9030_v0 = vld [vmem:[#allocation18_spill] sm:$0xff] }
0x1034   :  { %3575 = vmatprep.subr.bf16.mxu1 %v7491_v47  ;;  %v9031_v47 = vld [vmem:[#allocation17_spill] sm:$0xff]  ;;  %5410 = vrcp.f32 %v3628_v34  ;;  %v5128_v34 = vld [vmem:[#allocation6 + $0x210] sm:$0xff]  }
0x1037   :  { %3576 = vmatpush1.bf16.msra.mxu1 %v7494_v41  ;;  %v9032_v41 = vld [vmem:[#allocation19_spill] sm:$0xff] }
0x1038   :  { %3577 = vmatprep.subr.bf16.mxu1 %v7497_v33  ;;  %v9033_v33 = vld [vmem:[#allocation21_spill] sm:$0xff] }
0x103b   :  { %3578 = vmatpush1.bf16.msra.mxu1 %v8948_v9  ;;  %v9035_v9 = vld [vmem:[#allocation14_spill] sm:$0xff] }
0x103c   :  { %3579 = vmatprep.subr.bf16.mxu1 %v8949_v55  ;;  %v9036_v55 = vld [vmem:[#allocation10_spill] sm:$0xff] }
0x103e   :  { %v5411_v50 = vpop.eup %5410 }
0x103f   :  { %3580 = vmatpush1.bf16.msra.mxu1 %v8950_v27  ;;  %v9037_v27 = vld [vmem:[#allocation9_spill] sm:$0xff] }
0x1040   :  { %3581 = vmatprep.subr.bf16.mxu1 %v8951_v57  ;;  %v9038_v57 = vld [vmem:[#allocation12_spill] sm:$0xff] }
0x1043   :  { %3582 = vmatpush1.bf16.msra.mxu1 %v8952_v10  ;;  %v9039_v10 = vld [vmem:[#allocation16_spill] sm:$0xff] }
0x1044   :  { %3583 = vmatprep.subr.bf16.mxu1 %v8953_v61  ;;  %v9040_v61 = vld [vmem:[#allocation40_spill] sm:$0xff] }
0x1047   :  { %3584 = vmatpush1.bf16.msra.mxu1 %v8954_v23  ;;  %v9041_v23 = vld [vmem:[#allocation57_spill] sm:$0xff] }
0x1048   :  { %3585 = vmatprep.subr.bf16.mxu1 %v8955_v3  ;;  %v9042_v3 = vld [vmem:[#allocation59_spill] sm:$0xff] }
0x104b   :  { %3586 = vmatpush1.bf16.msra.mxu1 %v8956_v7  ;;  %v9043_v7 = vld [vmem:[#allocation42_spill] sm:$0xff] }
0x104c   :  { %3587 = vmatprep.subr.bf16.mxu1 %v8957_v58  ;;  %v9044_v58 = vld [vmem:[#allocation13_spill] sm:$0xff] }
0x104f   :  { %3588 = vmatpush1.bf16.msra.mxu1 %v8958_v62  ;;  %v9045_v62 = vld [vmem:[#allocation49_spill] sm:$0xff] }
0x1050   :  { %3684 = vmatprep.subr.bf16.mxu1 %v8959_v25  ;;  %v9046_v25 = vld [vmem:[#allocation51_spill] sm:$0xff] }
0x1052   :  { %3606 = vmatmul.mubr.bf16.vlgmr.msra.gmra.mrb[104].mxu1 %v7813_v32  ;;  %v9053_v32 = vld [vmem:[#allocation34_spill] sm:$0xff] }
0x1053   :  { %3716 = vmatprep.mubr.bf16.mxu1 %v3425_v4  ;;  %3685 = vmatpush1.bf16.msra.mxu1 %v8960_v42  ;;  %v9047_v42 = vld [vmem:[#allocation44_spill] sm:$0xff]  ;;  %v3627_v4 = vadd.f32 1.0, %v5409_v46  ;;  %v5127_v46 = vld [vmem:[#allocation6 + $0x208] sm:$0xff]  }
0x1054   :  { %3686 = vmatprep.subr.bf16.mxu1 %v8961_v17  ;;  %v9048_v17 = vld [vmem:[#allocation46_spill] sm:$0xff] }
0x1055   :  { %5412 = vrcp.f32 %v3627_v4  ;;  %v5129_v4 = vld [vmem:[#allocation6 + $0x218] sm:$0xff]  }
0x1057   :  { %3687 = vmatpush1.bf16.msra.mxu1 %v8962_v12  ;;  %v9049_v12 = vld [vmem:[#allocation25_spill] sm:$0xff] }
0x1058   :  { %3688 = vmatprep.subr.bf16.mxu1 %v8963_v37  ;;  %v9050_v37 = vld [vmem:[#allocation27_spill] sm:$0xff] }
0x105b   :  { %3689 = vmatpush1.bf16.msra.mxu1 %v8964_v43  ;;  %v9051_v43 = vld [vmem:[#allocation29_spill] sm:$0xff] }
0x105c   :  { %3690 = vmatprep.subr.bf16.mxu1 %v8965_v48  ;;  %v9052_v48 = vld [vmem:[#allocation31_spill] sm:$0xff] }
0x105f   :  { %3691 = vmatpush1.bf16.msra.mxu1 %v9030_v0  ;;  %v5413_v51 = vpop.eup %5412 }
0x1060   :  { %3692 = vmatprep.subr.bf16.mxu1 %v9031_v47  ;;  %v9057_v47 = vld [vmem:[#allocation64_spill] sm:$0xff] }
0x1063   :  { %3693 = vmatpush1.bf16.msra.mxu1 %v9032_v41 }
0x1064   :  { %3694 = vmatprep.subr.bf16.mxu1 %v9033_v33 }
0x1067   :  { %3695 = vmatpush1.bf16.msra.mxu1 %v9034_v5  ;;  %v9058_v5 = vld [vmem:[#allocation65_spill] sm:$0xff] }
0x1068   :  { %3696 = vmatprep.subr.bf16.mxu1 %v9035_v9 }
0x106b   :  { %3697 = vmatpush1.bf16.msra.mxu1 %v9036_v55 }
0x106c   :  { %3698 = vmatprep.subr.bf16.mxu1 %v9037_v27 }
0x106f   :  { %3699 = vmatpush1.bf16.msra.mxu1 %v9038_v57 }
0x1070   :  { %3700 = vmatprep.subr.bf16.mxu1 %v9039_v10 }
0x1073   :  { %3701 = vmatpush1.bf16.msra.mxu1 %v9040_v61 }
0x1074   :  { %3702 = vmatprep.subr.bf16.mxu1 %v9041_v23  ;;  %v3637_v23 = vmul.f32 %v5411_v50, %v7810_v14  ;;  %v9074_v14 = vld [vmem:[#allocation86_spill] sm:$0xff] }
0x1077   :  { %3703 = vmatpush1.bf16.msra.mxu1 %v9042_v3 }
0x1078   :  { %3704 = vmatprep.subr.bf16.mxu1 %v9043_v7 }
0x107b   :  { %3705 = vmatpush1.bf16.msra.mxu1 %v9044_v58 }
0x107c   :  { %3706 = vmatprep.subr.bf16.mxu1 %v9045_v62 }
0x107f   :  { %3707 = vmatpush1.bf16.msra.mxu1 %v9046_v25 }
0x1080   :  { %3708 = vmatprep.subr.bf16.mxu1 %v9047_v42 }
0x1083   :  { %3709 = vmatpush1.bf16.msra.mxu1 %v9048_v17 }
0x1084   :  { %3710 = vmatprep.subr.bf16.mxu1 %v9049_v12  ;;  %v9076_v12 = vld [vmem:[#allocation52_spill] sm:$0xff] }
0x1087   :  { %3711 = vmatpush1.bf16.msra.mxu1 %v9050_v37  ;;  %v9077_v37 = vld [vmem:[#allocation54_spill] sm:$0xff] }
0x1088   :  { %3712 = vmatprep.subr.bf16.mxu1 %v9051_v43  ;;  %v9078_v43 = vld [vmem:[#allocation60_spill] sm:$0xff] }
0x108b   :  { %3713 = vmatpush1.bf16.msra.mxu1 %v9052_v48  ;;  %v9079_v48 = vld [vmem:[#allocation61_spill] sm:$0xff] }
0x108c   :  { %3714 = vmatprep.subr.bf16.mxu1 %v9053_v32  ;;  %v9080_v32 = vld [vmem:[#allocation56_spill] sm:$0xff] }
0x108f   :  { %3715 = vmatpush1.bf16.msra.mxu1 %v9054_v30  ;;  %v9081_v30 = vld [vmem:[#allocation58_spill] sm:$0xff] }
0x1090   :  { %3856 = vmatprep.subr.bf16.mxu1 %v9055_v59  ;;  %v9082_v59 = vld [vmem:[#allocation48_spill] sm:$0xff] }
0x1105   :  { %v3525_v1 = vpop.f32.mrb[100].mxu1 }
0x1106   :  { %v8008_v29 = vadd.f32 %v3525_v1, %v9056_v60  ;;  %v4829_v15 = vpop.f32.mrb[101].mxu1  ;;  %v9083_v1 = vld [vmem:[#allocation50_spill] sm:$0xff]  ;;  %v9084_v60 = vld [vmem:[#allocation72_spill] sm:$0xff] }
0x1107   :  { %v3528_v22 = vpop.f32.mrb[102].mxu1  ;;  %v9085_v15 = vld [vmem:[#allocation73_spill] sm:$0xff] }
0x1108   :  { %v4830_v44 = vpop.f32.mrb[103].mxu1  ;;  %v9086_v22 = vld [vmem:[#allocation74_spill] sm:$0xff] }
0x1109   :  { %v9087_v44 = vld [vmem:[#allocation75_spill] sm:$0xff] }
0x1125   :  { %v3607_v0 = vpop.f32.mrb[104].mxu1 }
0x1126   :  { %v3616_v41 = vadd.f32 %v3607_v0, %v9057_v47  ;;  %v3609_v33 = vpop.f32.mrb[105].mxu1  ;;  %v5130_v0 = vld [vmem:[#allocation6 + $0x220] sm:$0xff]   ;;  %v5131_v47 = vld [vmem:[#allocation6 + $0x228] sm:$0xff]  }
0x1127   :  { %v3617_v9 = vadd.f32 %v3609_v33, %v9058_v5  ;;  %v3611_v55 = vpop.f32.mrb[106].mxu1  ;;  %v5133_v33 = vld [vmem:[#allocation6 + $0x238] sm:$0xff]  }
0x1128   :  { %v4536_v27 = vmul.f32 -1.442695, %v3616_v41  ;;  %v3612_v57 = vpop.f32.mrb[107].mxu1  ;;  %v5132_v41 = vld [vmem:[#allocation6 + $0x230] sm:$0xff]   ;;  %v9090_v5 = vld [vmem:[#allocation76_spill] sm:$0xff] }
0x1129   :  { %5414 = vtanh.f32 %v3617_v9 }
0x112a   :  { %5416 = vpow2.f32 %v4536_v27 }
0x1133   :  { %v5415_v10 = vpop.eup %5414 }
0x1134   :  { %v5417_v61 = vpop.eup %5416  ;;  %v3638_v3 = vmul.f32 %v5415_v10, %v5413_v51 }
0x1135   :  { %v3629_v7 = vadd.f32 1.0, %v5417_v61 }
0x1136   :  { %v8015_v58 = vadd.f32 %v3638_v3, %v3637_v23 }
0x1137   :  { %5418 = vrcp.f32 %v3629_v7 }
0x1138   :  { %5420 = vtanh.f32 %v8015_v58 }
0x1141   :  { %v5419_v62 = vpop.eup %5418 }
0x1142   :  { %v5421_v25 = vpop.eup %5420 }
0x1143   :  { %v3641_v42 = vmul.f32 %v5421_v25, %v5419_v62 }
0x1145   :  { %v8018_v17 = vpack.c.bf16 %v3641_v42, %v3641_v42 }
0x1147   :  { %3676 = vmatmul.mubr.bf16.vlgmr.msra.gmra.mrb[100].mxu0 %v8018_v17  ;;  %3717 = vmatmul.mubr.bf16.vlgmr.msra.gmra.mrb[108].mxu1 %v8018_v17 }
0x1148   :  { %3857 = vmatpush1.bf16.msra.mxu1 %v7646_v24  ;;  %3888 = vmatprep.mubr.bf16.mxu1 %v8604_v53  ;;  %v9059_v24 = vld [vmem:[#allocation22_spill] sm:$0xff] }
0x1149   :  { %3858 = vmatprep.subr.bf16.mxu1 %v7650_v18  ;;  %4847 = vmatprep.mubr.msk.bf16.mxu0 %vm5853_vm1, %v8653_v52  ;;  %v9060_v18 = vld [vmem:[#allocation24_spill] sm:$0xff] }
0x114a   :  { %4832 = vmatpush3.bf16.msra.mxu0 %v5126_v63  ;;  %v5733_v63 = vld [vmem:[#allocation2 + $0x8c] ss:$16 sps:$4 sm:$0xff]  }
0x114b   :  { %4833 = vmatprep.subr.bf16.mxu0 %v8653_v52 }
0x114c   :  { %3859 = vmatpush1.bf16.msra.mxu1 %v7655_v19  ;;  %v9061_v19 = vld [vmem:[#allocation26_spill] sm:$0xff] }
0x114d   :  { %3860 = vmatprep.subr.bf16.mxu1 %v7658_v16  ;;  %v9062_v16 = vld [vmem:[#allocation28_spill] sm:$0xff] }
0x114e   :  { %4834 = vmatpush3.bf16.msra.mxu0 %v5127_v46  ;;  %v5734_v46 = vld [vmem:[#allocation2 + $0x88] ss:$16 sps:$4 sm:$0xff]  }
0x114f   :  { %4835 = vmatprep.subr.bf16.mxu0 %v8653_v52 }
0x1150   :  { %3861 = vmatpush1.bf16.msra.mxu1 %v7661_v38  ;;  %v9063_v38 = vld [vmem:[#allocation30_spill] sm:$0xff] }
0x1151   :  { %3862 = vmatprep.subr.bf16.mxu1 %v7664_v39  ;;  %v9064_v39 = vld [vmem:[#allocation68_spill] sm:$0xff] }
0x1152   :  { %4836 = vmatpush3.bf16.msra.mxu0 %v5128_v34  ;;  %v5735_v34 = vld [vmem:[#allocation2 + $0xac] ss:$16 sps:$4 sm:$0xff]  }
0x1153   :  { %4837 = vmatprep.subr.bf16.mxu0 %v8653_v52 }
0x1154   :  { %3863 = vmatpush1.bf16.msra.mxu1 %v7667_v28  ;;  %v9065_v28 = vld [vmem:[#allocation69_spill] sm:$0xff] }
0x1155   :  { %3864 = vmatprep.subr.bf16.mxu1 %v7670_v35  ;;  %v9066_v35 = vld [vmem:[#allocation70_spill] sm:$0xff] }
0x1156   :  { %4838 = vmatpush3.bf16.msra.mxu0 %v5129_v4  ;;  %v5736_v4 = vld [vmem:[#allocation2 + $0xa8] ss:$16 sps:$4 sm:$0xff]  }
0x1157   :  { %4839 = vmatprep.subr.bf16.mxu0 %v8653_v52 }
0x1158   :  { %3865 = vmatpush1.bf16.msra.mxu1 %v7673_v21  ;;  %v9067_v21 = vld [vmem:[#allocation71_spill] sm:$0xff] }
0x1159   :  { %3866 = vmatprep.subr.bf16.mxu1 %v7676_v31  ;;  %v9068_v31 = vld [vmem:[#allocation11_spill] sm:$0xff] }
0x115a   :  { %4840 = vmatpush3.bf16.msra.mxu0 %v5130_v0  ;;  %v5738_v0 = vld [vmem:[#allocation2 + $0xc8] ss:$16 sps:$4 sm:$0xff]  }
0x115b   :  { %4841 = vmatprep.subr.bf16.mxu0 %v8653_v52 }
0x115c   :  { %3867 = vmatpush1.bf16.msra.mxu1 %v7679_v36  ;;  %v9069_v36 = vld [vmem:[#allocation53_spill] sm:$0xff] }
0x115d   :  { %3868 = vmatprep.subr.bf16.mxu1 %v7682_v40  ;;  %v9070_v40 = vld [vmem:[#allocation55_spill] sm:$0xff] }
0x115e   :  { %4842 = vmatpush3.bf16.msra.mxu0 %v5131_v47  ;;  %v5739_v47 = vld [vmem:[#allocation2 + $0xec] ss:$16 sps:$4 sm:$0xff]  }
0x115f   :  { %4843 = vmatprep.subr.bf16.mxu0 %v8653_v52 }
0x1160   :  { %3869 = vmatpush1.bf16.msra.mxu1 %v7685_v26  ;;  %v9071_v26 = vld [vmem:[#allocation83_spill] sm:$0xff] }
0x1161   :  { %3870 = vmatprep.subr.bf16.mxu1 %v7688_v11  ;;  %v9072_v11 = vld [vmem:[#allocation84_spill] sm:$0xff] }
0x1162   :  { %4844 = vmatpush3.bf16.msra.mxu0 %v5132_v41  ;;  %v5740_v41 = vld [vmem:[#allocation2 + $0xe8] ss:$16 sps:$4 sm:$0xff]  }
0x1163   :  { %4845 = vmatprep.subr.bf16.mxu0 %v8653_v52 }
0x1164   :  { %3871 = vmatpush1.bf16.msra.mxu1 %v7691_v56  ;;  %v9073_v56 = vld [vmem:[#allocation85_spill] sm:$0xff] }
0x1165   :  { %3967 = vmatprep.subr.bf16.mxu1 %v7835_v13  ;;  %v9075_v13 = vld [vmem:[#allocation87_spill] sm:$0xff] }
0x1166   :  { %4846 = vmatpush3.bf16.msra.mxu0 %v5133_v33  ;;  %v5741_v33 = vld [vmem:[#allocation4 + $0xc] ss:$16 sps:$4 sm:$0xff]  }
0x1167   :  { %3889 = vmatmul.mubr.bf16.vlgmr.msra.gmra.mrb[112].mxu1 %v8018_v17  ;;  %3897 = vmatprep.subr.bf16.mxu0 %v9090_v5  ;;  %v5742_v5 = vld [vmem:[#allocation4 + $0x8] ss:$16 sps:$4 sm:$0xff]  }
0x1168   :  { %3968 = vmatpush1.bf16.msra.mxu1 %v9059_v24 }
0x1169   :  { %3969 = vmatprep.subr.bf16.mxu1 %v9060_v18 }
0x116c   :  { %3970 = vmatpush1.bf16.msra.mxu1 %v9061_v19 }
0x116d   :  { %3971 = vmatprep.subr.bf16.mxu1 %v9062_v16 }
0x1170   :  { %3972 = vmatpush1.bf16.msra.mxu1 %v9063_v38 }
0x1171   :  { %3973 = vmatprep.subr.bf16.mxu1 %v9064_v39 }
0x1174   :  { %3974 = vmatpush1.bf16.msra.mxu1 %v9065_v28 }
0x1175   :  { %3975 = vmatprep.subr.bf16.mxu1 %v9066_v35 }
0x1178   :  { %3976 = vmatpush1.bf16.msra.mxu1 %v9067_v21 }
0x1179   :  { %3977 = vmatprep.subr.bf16.mxu1 %v9068_v31 }
0x117c   :  { %3978 = vmatpush1.bf16.msra.mxu1 %v9069_v36 }
0x117d   :  { %3979 = vmatprep.subr.bf16.mxu1 %v9070_v40 }
0x1180   :  { %3980 = vmatpush1.bf16.msra.mxu1 %v9071_v26 }
0x1181   :  { %3981 = vmatprep.subr.bf16.mxu1 %v9072_v11 }
0x1184   :  { %3982 = vmatpush1.bf16.msra.mxu1 %v9073_v56  ;;  %v9091_v56 = vld [vmem:[#allocation35_spill] sm:$0xff] }
0x1185   :  { %3983 = vmatprep.subr.bf16.mxu1 %v9074_v14 }
0x1188   :  { %3984 = vmatpush1.bf16.msra.mxu1 %v9075_v13 }
0x1189   :  { %3985 = vmatprep.subr.bf16.mxu1 %v9076_v12  ;;  %v9092_v12 = vld [vmem:[#allocation37_spill] sm:$0xff] }
0x118c   :  { %3986 = vmatpush1.bf16.msra.mxu1 %v9077_v37 }
0x118d   :  { %3987 = vmatprep.subr.bf16.mxu1 %v9078_v43 }
0x1190   :  { %3988 = vmatpush1.bf16.msra.mxu1 %v9079_v48 }
0x1191   :  { %3989 = vmatprep.subr.bf16.mxu1 %v9080_v32 }
0x1194   :  { %3990 = vmatpush1.bf16.msra.mxu1 %v9081_v30 }
0x1195   :  { %3991 = vmatprep.subr.bf16.mxu1 %v9082_v59 }
0x1198   :  { %3992 = vmatpush1.bf16.msra.mxu1 %v9083_v1 }
0x1199   :  { %3993 = vmatprep.subr.bf16.mxu1 %v9084_v60  ;;  %v5727_v60 = vld [vmem:[#allocation2 + $0x2c] ss:$16 sps:$4 sm:$0xff]  }
0x119c   :  { %3994 = vmatpush1.bf16.msra.mxu1 %v9085_v15  ;;  %v5728_v15 = vld [vmem:[#allocation2 + $0x28] ss:$16 sps:$4 sm:$0xff]  }
0x119d   :  { %3995 = vmatprep.subr.bf16.mxu1 %v9086_v22  ;;  %v5729_v22 = vld [vmem:[#allocation2 + $0x4c] ss:$16 sps:$4 sm:$0xff]  }
0x11a0   :  { %3996 = vmatpush1.bf16.msra.mxu1 %v9087_v44  ;;  %v5730_v44 = vld [vmem:[#allocation2 + $0x48] ss:$16 sps:$4 sm:$0xff]  }
0x11a1   :  { %3997 = vmatprep.subr.bf16.mxu1 %v9088_v49  ;;  %v5731_v49 = vld [vmem:[#allocation2 + $0x6c] ss:$16 sps:$4 sm:$0xff]  }
0x11a4   :  { %3998 = vmatpush1.bf16.msra.mxu1 %v9089_v54  ;;  %v5732_v54 = vld [vmem:[#allocation2 + $0x68] ss:$16 sps:$4 sm:$0xff]  }
0x11a5   :  { %4851 = vmatprep.subr.bf16.mxu1 %v8653_v52 }
0x121a   :  { %v3677_v9 = vpop.f32.mrb[100].mxu0  ;;  %v3718_v55 = vpop.f32.mrb[108].mxu1 }
0x121b   :  { %v3678_v27 = vadd.f32 %v3677_v9, %v8699_v2  ;;  %v3679_v57 = vpop.f32.mrb[101].mxu0  ;;  %v3720_v50 = vpop.f32.mrb[109].mxu1  ;;  %v3719_v25 = vadd.f32 %v3718_v55, %v8701_v45  ;;  %v5743_v9 = vld [vmem:[#allocation4 + $0x2c] ss:$16 sps:$4 sm:$0xff]   ;;  %v5744_v55 = vld [vmem:[#allocation4 + $0x28] ss:$16 sps:$4 sm:$0xff]  }
0x121c   :  { %v3680_v51 = vadd.f32 %v3679_v57, %v8700_v6  ;;  %v3681_v10 = vpop.f32.mrb[102].mxu0  ;;  %v3722_v61 = vpop.f32.mrb[110].mxu1  ;;  %v3721_v42 = vadd.f32 %v3720_v50, %v8702_v20  ;;  %v5746_v57 = vld [vmem:[#allocation4 + $0x48] ss:$16 sps:$4 sm:$0xff]   ;;  %v5747_v50 = vld [vmem:[#allocation4 + $0x6c] ss:$16 sps:$4 sm:$0xff]  }
0x121d   :  { %v4537_v23 = vmul.f32 -1.442695, %v3678_v27  ;;  %v3682_v3 = vpop.f32.mrb[103].mxu0  ;;  %v3723_v7 = vpop.f32.mrb[111].mxu1  ;;  %v4539_v24 = vmul.f32 -1.442695, %v3719_v25 }
0x121e   :  { %v4538_v62 = vmul.f32 -1.442695, %v3680_v51  ;;  %v5745_v27 = vld [vmem:[#allocation4 + $0x4c] ss:$16 sps:$4 sm:$0xff]   ;;  %v5748_v51 = vld [vmem:[#allocation4 + $0x68] ss:$16 sps:$4 sm:$0xff]  }
0x121f   :  { %5422 = vpow2.f32 %v4537_v23  ;;  %v5749_v10 = vld [vmem:[#allocation4 + $0x8c] ss:$16 sps:$4 sm:$0xff]   ;;  %v5750_v61 = vld [vmem:[#allocation4 + $0x88] ss:$16 sps:$4 sm:$0xff]  }
0x1220   :  { %5424 = vpow2.f32 %v4538_v62  ;;  %v5752_v23 = vld [vmem:[#allocation4 + $0xa8] ss:$16 sps:$4 sm:$0xff]   ;;  %v5753_v3 = vld [vmem:[#allocation4 + $0xcc] ss:$16 sps:$4 sm:$0xff]  }
0x1221   :  { %5426 = vtanh.f32 %v3721_v42  ;;  %v5754_v7 = vld [vmem:[#allocation4 + $0xc8] ss:$16 sps:$4 sm:$0xff]   ;;  %v5755_v62 = vld [vmem:[#allocation4 + $0xec] ss:$16 sps:$4 sm:$0xff]  }
0x1222   :  { %5428 = vpow2.f32 %v4539_v24  ;;  %v5756_v25 = vld [vmem:[#allocation4 + $0xe8] ss:$16 sps:$4 sm:$0xff]   ;;  %v5757_v42 = vld [vmem:[#allocation4 + $0x10c] ss:$16 sps:$4 sm:$0xff]  }
0x1223   :  { %v5758_v24 = vld [vmem:[#allocation4 + $0x108] ss:$16 sps:$4 sm:$0xff]  }
0x1229   :  { %v5423_v18 = vpop.eup %5422 }
0x122a   :  { %v3734_v19 = vadd.f32 1.0, %v5423_v18  ;;  %v5425_v16 = vpop.eup %5424  ;;  %v5759_v18 = vld [vmem:[#allocation4 + $0x12c] ss:$16 sps:$4 sm:$0xff]  }
0x122b   :  { %v3735_v38 = vadd.f32 1.0, %v5425_v16  ;;  %v5427_v39 = vpop.eup %5426  ;;  %v5761_v16 = vld [vmem:[#allocation4 + $0x14c] ss:$16 sps:$4 sm:$0xff]  }
0x122c   :  { %5430 = vrcp.f32 %v3734_v19  ;;  %v5429_v28 = vpop.eup %5428  ;;  %v5760_v19 = vld [vmem:[#allocation4 + $0x128] ss:$16 sps:$4 sm:$0xff]  }
0x122d   :  { %5432 = vrcp.f32 %v3735_v38  ;;  %v3736_v36 = vadd.f32 1.0, %v5429_v28  ;;  %v5762_v38 = vld [vmem:[#allocation4 + $0x148] ss:$16 sps:$4 sm:$0xff]  }
0x122e   :  { %v5764_v28 = vld [vmem:[#allocation4 + $0x168] ss:$16 sps:$4 sm:$0xff]  }
0x122f   :  { %5434 = vrcp.f32 %v3736_v36  ;;  %v5768_v36 = vld [vmem:[#allocation4 + $0x1a8] ss:$16 sps:$4 sm:$0xff]  }
0x1236   :  { %v5431_v35 = vpop.eup %5430 }
0x1237   :  { %v3745_v21 = vmul.f32 %v5431_v35, %v5427_v39  ;;  %v5433_v31 = vpop.eup %5432  ;;  %v5763_v39 = vld [vmem:[#allocation4 + $0x16c] ss:$16 sps:$4 sm:$0xff]  }
0x1238   :  { %v3744_v40 = vmul.f32 %v5433_v31, %v7948_v8  ;;  %v5726_v8 = vld [vmem:[#allocation2 + $0x8] ss:$16 sps:$4 sm:$0xff]   ;;  %v5765_v35 = vld [vmem:[#allocation4 + $0x18c] ss:$16 sps:$4 sm:$0xff]  }
0x1239   :  { %v5435_v32 = vpop.eup %5434  ;;  %v5767_v31 = vld [vmem:[#allocation4 + $0x1ac] ss:$16 sps:$4 sm:$0xff]  }
0x123a   :  { %v3890_v26 = vpop.f32.mrb[112].mxu1  ;;  %v8087_v11 = vadd.f32 %v3745_v21, %v3744_v40  ;;  %v5766_v21 = vld [vmem:[#allocation4 + $0x188] ss:$16 sps:$4 sm:$0xff]   ;;  %v5769_v40 = vld [vmem:[#allocation4 + $0x1cc] ss:$16 sps:$4 sm:$0xff]  }
0x123b   :  { %v8090_v14 = vadd.f32 %v3890_v26, %v9091_v56  ;;  %v3892_v13 = vpop.f32.mrb[113].mxu1  ;;  %v5770_v26 = vld [vmem:[#allocation4 + $0x1c8] ss:$16 sps:$4 sm:$0xff]   ;;  %v5771_v56 = vld [vmem:[#allocation4 + $0x1ec] ss:$16 sps:$4 sm:$0xff]  }
0x123c   :  { %v8093_v37 = vadd.f32 %v3892_v13, %v9092_v12  ;;  %v3894_v43 = vpop.f32.mrb[114].mxu1  ;;  %5436 = vtanh.f32 %v8087_v11  ;;  %v5772_v13 = vld [vmem:[#allocation4 + $0x1e8] ss:$16 sps:$4 sm:$0xff]  }
0x123d   :  { %v3895_v48 = vpop.f32.mrb[115].mxu1 }
0x1246   :  { %v5437_v30 = vpop.eup %5436 }
0x1247   :  { %v3748_v59 = vmul.f32 %v5437_v30, %v5435_v32 }
0x1249   :  { %v3749_v1 = vpack.c.bf16 %v3748_v59, %v3748_v59  ;;  %v4549_v59 = vmul.f32 -1.442695, %v8093_v37 }
0x124b   :  { %4848 = vmatmul.mubr.bf16.vlgmr.msra.gmra.mrb[104].mxu0 %v3749_v1  ;;  %3999 = vmatprep.mubr.bf16.mxu1 %v3749_v1  ;;  %5438 = vpow2.f32 %v4549_v59 }
0x124c   :  { %3898 = vmatpush1.bf16.msra.mxu0 %v5726_v8  ;;  %3929 = vmatprep.mubr.bf16.mxu0 %v8604_v53  ;;  %v5737_v53 = vld [vmem:[#allocation2 + $0xcc] ss:$16 sps:$4 sm:$0xff]  }
0x124d   :  { %3899 = vmatprep.subr.bf16.mxu0 %v5727_v60 }
0x1250   :  { %3900 = vmatpush1.bf16.msra.mxu0 %v5728_v15 }
0x1251   :  { %3901 = vmatprep.subr.bf16.mxu0 %v5729_v22 }
0x1254   :  { %3902 = vmatpush1.bf16.msra.mxu0 %v5730_v44 }
0x1255   :  { %3903 = vmatprep.subr.bf16.mxu0 %v5731_v49  ;;  %v5439_v8 = vpop.eup %5438  ;;  %v9093_v49 = vld [vmem:[#allocation66_spill] sm:$0xff] }
0x1256   :  { %v3952_v15 = vadd.f32 1.0, %v5439_v8 }
0x1258   :  { %3904 = vmatpush1.bf16.msra.mxu0 %v5732_v54 }
0x1259   :  { %3905 = vmatprep.subr.bf16.mxu0 %v5733_v63 }
0x125c   :  { %3906 = vmatpush1.bf16.msra.mxu0 %v5734_v46 }
0x125d   :  { %3907 = vmatprep.subr.bf16.mxu0 %v5735_v34 }
0x1260   :  { %3908 = vmatpush1.bf16.msra.mxu0 %v5736_v4 }
0x1261   :  { %3909 = vmatprep.subr.bf16.mxu0 %v5737_v53 }
0x1264   :  { %3910 = vmatpush1.bf16.msra.mxu0 %v5738_v0 }
0x1265   :  { %3911 = vmatprep.subr.bf16.mxu0 %v5739_v47 }
0x1268   :  { %3912 = vmatpush1.bf16.msra.mxu0 %v5740_v41 }
0x1269   :  { %4008 = vmatprep.subr.bf16.mxu0 %v5741_v33 }
0x126b   :  { %3930 = vmatmul.mubr.bf16.vlgmr.msra.gmra.mrb[108].mxu0 %v8018_v17  ;;  %v5751_v17 = vld [vmem:[#allocation4 + $0xac] ss:$16 sps:$4 sm:$0xff]  }
0x126c   :  { %4040 = vmatprep.mubr.bf16.mxu0 %v3749_v1  ;;  %4009 = vmatpush1.bf16.msra.mxu0 %v5742_v5  ;;  %v4548_v1 = vmul.f32 -1.442695, %v8090_v14 }
0x126d   :  { %4010 = vmatprep.subr.bf16.mxu0 %v5743_v9 }
0x126e   :  { %5440 = vpow2.f32 %v4548_v1 }
0x126f   :  { %5442 = vrcp.f32 %v3952_v15 }
0x1270   :  { %4011 = vmatpush1.bf16.msra.mxu0 %v5744_v55 }
0x1271   :  { %4012 = vmatprep.subr.bf16.mxu0 %v5745_v27 }
0x1274   :  { %4013 = vmatpush1.bf16.msra.mxu0 %v5746_v57 }
0x1275   :  { %4014 = vmatprep.subr.bf16.mxu0 %v5747_v50 }
0x1278   :  { %4015 = vmatpush1.bf16.msra.mxu0 %v5748_v51  ;;  %v5441_v60 = vpop.eup %5440  ;;  %v5134_v51 = vld [vmem:[#allocation6 + $0x240] sm:$0xff]  }
0x1279   :  { %4016 = vmatprep.subr.bf16.mxu0 %v5749_v10  ;;  %v3951_v22 = vadd.f32 1.0, %v5441_v60  ;;  %v5443_v14 = vpop.eup %5442  ;;  %v5136_v10 = vld [vmem:[#allocation6 + $0x250] sm:$0xff]  }
0x127a   :  { %v3961_v41 = vmul.f32 %v5443_v14, %v8015_v58  ;;  %v5135_v58 = vld [vmem:[#allocation6 + $0x248] sm:$0xff]  }
0x127b   :  { %5444 = vrcp.f32 %v3951_v22 }
0x127c   :  { %4017 = vmatpush1.bf16.msra.mxu0 %v5750_v61  ;;  %v5137_v61 = vld [vmem:[#allocation6 + $0x258] sm:$0xff]  }
0x127d   :  { %4018 = vmatprep.subr.bf16.mxu0 %v5751_v17  ;;  %v5138_v17 = vld [vmem:[#allocation6 + $0x260] sm:$0xff]  }
0x1280   :  { %4019 = vmatpush1.bf16.msra.mxu0 %v5752_v23  ;;  %v5139_v23 = vld [vmem:[#allocation6 + $0x268] sm:$0xff]  }
0x1281   :  { %4020 = vmatprep.subr.bf16.mxu0 %v5753_v3  ;;  %v5140_v3 = vld [vmem:[#allocation6 + $0x270] sm:$0xff]  }
0x1284   :  { %4021 = vmatpush1.bf16.msra.mxu0 %v5754_v7  ;;  %v5141_v7 = vld [vmem:[#allocation6 + $0x278] sm:$0xff]  }
0x1285   :  { %4022 = vmatprep.subr.bf16.mxu0 %v5755_v62  ;;  %v5445_v37 = vpop.eup %5444  ;;  %v5142_v62 = vld [vmem:[%s8172_s8] sm:$0xff]  }
0x1288   :  { %4023 = vmatpush1.bf16.msra.mxu0 %v5756_v25  ;;  %v5143_v25 = vld [vmem:[%s8172_s8 + $0x8] sm:$0xff]  }
0x1289   :  { %4024 = vmatprep.subr.bf16.mxu0 %v5757_v42  ;;  %v5144_v42 = vld [vmem:[%s8172_s8 + $0x10] sm:$0xff]  }
0x128c   :  { %4025 = vmatpush1.bf16.msra.mxu0 %v5758_v24  ;;  %v5145_v24 = vld [vmem:[%s8172_s8 + $0x18] sm:$0xff]  }
0x128d   :  { %4026 = vmatprep.subr.bf16.mxu0 %v5759_v18  ;;  %v5146_v18 = vld [vmem:[%s8172_s8 + $0x20] sm:$0xff]  }
0x1290   :  { %4027 = vmatpush1.bf16.msra.mxu0 %v5760_v19  ;;  %v5147_v19 = vld [vmem:[%s8172_s8 + $0x28] sm:$0xff]  }
0x1291   :  { %4028 = vmatprep.subr.bf16.mxu0 %v5761_v16 }
0x1294   :  { %4029 = vmatpush1.bf16.msra.mxu0 %v5762_v38 }
0x1295   :  { %4030 = vmatprep.subr.bf16.mxu0 %v5763_v39 }
0x1298   :  { %4031 = vmatpush1.bf16.msra.mxu0 %v5764_v28 }
0x1299   :  { %4032 = vmatprep.subr.bf16.mxu0 %v5765_v35 }
0x129c   :  { %4033 = vmatpush1.bf16.msra.mxu0 %v5766_v21 }
0x129d   :  { %4034 = vmatprep.subr.bf16.mxu0 %v5767_v31 }
0x12a0   :  { %4035 = vmatpush1.bf16.msra.mxu0 %v5768_v36 }
0x12a1   :  { %4036 = vmatprep.subr.bf16.mxu0 %v5769_v40 }
0x12a4   :  { %4037 = vmatpush1.bf16.msra.mxu0 %v5770_v26 }
0x12a5   :  { %4038 = vmatprep.subr.bf16.mxu0 %v5771_v56 }
0x12a8   :  { %4039 = vmatpush1.bf16.msra.mxu0 %v5772_v13 }
0x12a9   :  { %4871 = vmatprep.subr.bf16.mxu0 %v8653_v52 }
0x131e   :  { %v3849_v12 = vpop.f32.mrb[104].mxu0 }
0x131f   :  { %v8100_v43 = vadd.f32 %v3849_v12, %v8008_v29  ;;  %v4849_v48 = vpop.f32.mrb[105].mxu0  ;;  %v9094_v29 = vld [vmem:[#allocation67_spill] sm:$0xff] }
0x1320   :  { %v3852_v32 = vpop.f32.mrb[106].mxu0 }
0x1321   :  { %v4850_v30 = vpop.f32.mrb[107].mxu0 }
0x133e   :  { %v3931_v44 = vpop.f32.mrb[108].mxu0 }
0x133f   :  { %v3940_v54 = vadd.f32 %v3931_v44, %v9093_v49  ;;  %v3933_v63 = vpop.f32.mrb[109].mxu0 }
0x1340   :  { %v3941_v46 = vadd.f32 %v3933_v63, %v9094_v29  ;;  %v3935_v34 = vpop.f32.mrb[110].mxu0 }
0x1341   :  { %v4550_v4 = vmul.f32 -1.442695, %v3940_v54  ;;  %v3936_v53 = vpop.f32.mrb[111].mxu0  ;;  %v5149_v34 = vld [vmem:[%s8172_s8 + $0x38] sm:$0xff]  }
0x1342   :  { %5446 = vtanh.f32 %v3941_v46  ;;  %v5148_v46 = vld [vmem:[%s8172_s8 + $0x30] sm:$0xff]  }
0x1343   :  { %5448 = vpow2.f32 %v4550_v4  ;;  %v4562_v4 = vld [vmem:[%s8171_s7] ss:$0 sm:$0xff] }
0x134c   :  { %v5447_v0 = vpop.eup %5446 }
0x134d   :  { %v5449_v47 = vpop.eup %5448  ;;  %v3962_v33 = vmul.f32 %v5447_v0, %v5445_v37 }
0x134e   :  { %v3953_v5 = vadd.f32 1.0, %v5449_v47 }
0x134f   :  { %v3963_v9 = vadd.f32 %v3962_v33, %v3961_v41 }
0x1350   :  { %5450 = vrcp.f32 %v3953_v5 }
0x1351   :  { %5452 = vtanh.f32 %v3963_v9 }
0x135a   :  { %v5451_v55 = vpop.eup %5450 }
0x135b   :  { %v5453_v27 = vpop.eup %5452 }
0x135c   :  { %v3965_v57 = vmul.f32 %v5453_v27, %v5451_v55 }
0x135e   :  { %v3966_v50 = vpack.c.bf16 %v3965_v57, %v3965_v57 }
0x1360   :  { %4000 = vmatmul.mubr.bf16.vlgmr.msra.gmra.mrb[116].mxu1 %v3966_v50  ;;  %4041 = vmatmul.mubr.bf16.vlgmr.msra.gmra.mrb[112].mxu0 %v3966_v50 }
0x1361   :  { %4867 = vmatprep.mubr.msk.bf16.mxu1 %vm5853_vm1, %v8653_v52  ;;  %4887 = vmatprep.mubr.msk.bf16.mxu0 %vm5853_vm1, %v8653_v52 }
0x1362   :  { %4852 = vmatpush3.bf16.msra.mxu1 %v5134_v51  ;;  %4872 = vmatpush3.bf16.msra.mxu0 %v5142_v62 }
0x1363   :  { %4853 = vmatprep.subr.bf16.mxu1 %v8653_v52  ;;  %4873 = vmatprep.subr.bf16.mxu0 %v8653_v52 }
0x1366   :  { %4854 = vmatpush3.bf16.msra.mxu1 %v5135_v58  ;;  %4874 = vmatpush3.bf16.msra.mxu0 %v5143_v25 }
0x1367   :  { %4855 = vmatprep.subr.bf16.mxu1 %v8653_v52  ;;  %4875 = vmatprep.subr.bf16.mxu0 %v8653_v52 }
0x136a   :  { %4856 = vmatpush3.bf16.msra.mxu1 %v5136_v10  ;;  %4876 = vmatpush3.bf16.msra.mxu0 %v5144_v42 }
0x136b   :  { %4857 = vmatprep.subr.bf16.mxu1 %v8653_v52  ;;  %4877 = vmatprep.subr.bf16.mxu0 %v8653_v52 }
0x136e   :  { %4858 = vmatpush3.bf16.msra.mxu1 %v5137_v61  ;;  %4878 = vmatpush3.bf16.msra.mxu0 %v5145_v24 }
0x136f   :  { %4859 = vmatprep.subr.bf16.mxu1 %v8653_v52  ;;  %4879 = vmatprep.subr.bf16.mxu0 %v8653_v52 }
0x1372   :  { %4860 = vmatpush3.bf16.msra.mxu1 %v5138_v17  ;;  %4880 = vmatpush3.bf16.msra.mxu0 %v5146_v18 }
0x1373   :  { %4861 = vmatprep.subr.bf16.mxu1 %v8653_v52  ;;  %4881 = vmatprep.subr.bf16.mxu0 %v8653_v52 }
0x1376   :  { %4862 = vmatpush3.bf16.msra.mxu1 %v5139_v23  ;;  %4882 = vmatpush3.bf16.msra.mxu0 %v5147_v19 }
0x1377   :  { %4863 = vmatprep.subr.bf16.mxu1 %v8653_v52  ;;  %4883 = vmatprep.subr.bf16.mxu0 %v8653_v52 }
0x137a   :  { %4864 = vmatpush3.bf16.msra.mxu1 %v5140_v3  ;;  %4884 = vmatpush3.bf16.msra.mxu0 %v5148_v46 }
0x137b   :  { %4865 = vmatprep.subr.bf16.mxu1 %v8653_v52  ;;  %4885 = vmatprep.subr.bf16.mxu0 %v8653_v52  ;;  %v4563_v52 = vld [vmem:[%s8173_s9] ss:$0 sm:$0xff] }
0x137e   :  { %4866 = vmatpush3.bf16.msra.mxu1 %v5141_v7  ;;  %4886 = vmatpush3.bf16.msra.mxu0 %v5149_v34 }
0x1433   :  { %v4001_v16 = vpop.f32.mrb[116].mxu1  ;;  %v4042_v38 = vpop.f32.mrb[112].mxu0 }
0x1434   :  { %v4002_v39 = vadd.f32 %v4001_v16, %v8699_v2  ;;  %v4003_v28 = vpop.f32.mrb[117].mxu1  ;;  %v4044_v35 = vpop.f32.mrb[113].mxu0  ;;  %v4043_v12 = vadd.f32 %v4042_v38, %v8701_v45 }
0x1435   :  { %v4004_v21 = vadd.f32 %v4003_v28, %v8700_v6  ;;  %v4005_v31 = vpop.f32.mrb[118].mxu1  ;;  %v4046_v36 = vpop.f32.mrb[114].mxu0  ;;  %v4045_v48 = vadd.f32 %v4044_v35, %v8702_v20 }
0x1436   :  { %v4551_v40 = vmul.f32 -1.442695, %v4002_v39  ;;  %v4006_v26 = vpop.f32.mrb[119].mxu1  ;;  %v4047_v56 = vpop.f32.mrb[115].mxu0  ;;  %v4553_v32 = vmul.f32 -1.442695, %v4043_v12 }
0x1437   :  { %v4552_v13 = vmul.f32 -1.442695, %v4004_v21 }
0x1438   :  { %5454 = vpow2.f32 %v4551_v40 }
0x1439   :  { %5456 = vpow2.f32 %v4552_v13 }
0x143a   :  { %5458 = vtanh.f32 %v4045_v48 }
0x143b   :  { %5460 = vpow2.f32 %v4553_v32 }
0x1442   :  { %v5455_v30 = vpop.eup %5454 }
0x1443   :  { %v4058_v59 = vadd.f32 1.0, %v5455_v30  ;;  %v5457_v2 = vpop.eup %5456 }
0x1444   :  { %v4059_v6 = vadd.f32 1.0, %v5457_v2  ;;  %v5459_v1 = vpop.eup %5458 }
0x1445   :  { %5462 = vrcp.f32 %v4058_v59  ;;  %v5461_v8 = vpop.eup %5460 }
0x1446   :  { %5464 = vrcp.f32 %v4059_v6  ;;  %v4060_v44 = vadd.f32 1.0, %v5461_v8 }
0x1448   :  { %5466 = vrcp.f32 %v4060_v44 }
0x144f   :  { %v5463_v60 = vpop.eup %5462 }
0x1450   :  { %v4069_v15 = vmul.f32 %v5463_v60, %v5459_v1  ;;  %v5465_v22 = vpop.eup %5464 }
0x1451   :  { %v4068_v49 = vmul.f32 %v5465_v22, %v8087_v11 }
0x1452   :  { %v5467_v20 = vpop.eup %5466 }
0x1453   :  { %v4070_v45 = vadd.f32 %v4069_v15, %v4068_v49 }
0x1455   :  { %5468 = vtanh.f32 %v4070_v45 }
0x145f   :  { %v5469_v54 = vpop.eup %5468 }
0x1460   :  { %v4072_v63 = vmul.f32 %v5469_v54, %v5467_v20 }
0x1462   :  { %v4073_v29 = vpack.c.bf16 %v4072_v63, %v4072_v63 }
0x1464   :  { %4868 = vmatmul.mubr.bf16.vlgmr.msra.gmra.mrb[120].mxu1 %v4073_v29 }
0x1537   :  { %v4173_v11 = vpop.f32.mrb[120].mxu1 }
0x1538   :  { %v4179_v53 = vadd.f32 %v4173_v11, %v8100_v43  ;;  %v4869_v14 = vpop.f32.mrb[121].mxu1 }
0x1539   :  { %v4176_v37 = vpop.f32.mrb[122].mxu1 }
0x153a   :  { %v4187_v0 = vadd.f32 %v4562_v4, %v4179_v53  ;;  %v4870_v47 = vpop.f32.mrb[123].mxu1 }
0x153c   :  { %v4188_v41 = vmax.f32 %v4187_v0, 0.0 }
0x153e   :  { %v4189_v33 = vpack.c.bf16 %v4188_v41, %v4188_v41 }
0x1540   :  { %4888 = vmatmul.mubr.bf16.vlgmr.msra.gmra.mrb[116].mxu0 %v4189_v33 }
0x1613   :  { %v4295_v5 = vpop.f32.mrb[116].mxu0 }
0x1614   :  { %v4296_v9 = vadd.f32 %v4563_v52, %v4295_v5  ;;  %v4889_v55 = vpop.f32.mrb[117].mxu0 }
0x1615   :  { %v4298_v27 = vpop.f32.mrb[118].mxu0 }
0x1616   :  { %4301 = vst [vmem:[%s8174_s10] sm:$0xff] %v4296_v9  ;;  %v4890_v43 = vpop.f32.mrb[119].mxu0 }
0x1617   :  { %4306 = vsyncpa [#allocation3], 1 }
0x1618   :  { %4307 = vsyncpa [#allocation5], 1 }

</bundles_post_ra>
